<compile_context>
chip_gen: v7x
topology: tpu7x:2x2x1
jax: 0.10.0
libtpu: 0.0.40
codegen_flags: <defaults>
</compile_context>

<pallas_src>
import functools

import jax
import jax.numpy as jnp
from jax.experimental import pallas as pl
from jax.experimental.pallas import tpu as pltpu

DILATION = 2
PAD = 2
KSIZE = 3
BN_EPS = 1e-5


def _conv_stats_kernel(x_ref, w_ref, o_ref, psum_ref, psq_ref, *, th, w, cin, cout):
    """One output row-tile of the dilated conv + BN partial statistics.

    x_ref:    (Hp, Wp, Cin)  zero-padded input of the current image, pre-ReLU, f32
    w_ref:    (9*Cin, Cout)  conv weights, bf16, (kh, kw, cin)-major rows
    o_ref:    (th*w, Cout)   conv output rows for this tile, f32
    psum_ref: (8, Cout)      per-tile sum (same value broadcast over 8 sublanes)
    psq_ref:  (8, Cout)      per-tile sum of squares
    """
    ht = pl.program_id(1)

    # Padded input rows needed for output rows [ht*th, ht*th + th).
    xs = x_ref[pl.ds(ht * th, th + 2 * PAD), :, :]            # (th+4, Wp, Cin) f32
    # Fused ReLU (ReLU(0) == 0, so applying after zero-pad is equivalent);
    # cast only the MXU operands to bf16, keep accumulation/elementwise in f32.
    x = jnp.maximum(xs, 0.0).astype(jnp.bfloat16)

    # im2col: the 9 dilated taps concatenated along channels -> one K = 9*Cin matmul.
    taps = []
    for kh in range(KSIZE):
        for kw in range(KSIZE):
            p = x[kh * DILATION:kh * DILATION + th,
                  kw * DILATION:kw * DILATION + w, :]          # (th, w, Cin)
            taps.append(p.reshape(th * w, cin))
    cols = jnp.concatenate(taps, axis=1)                       # (th*w, 9*Cin) bf16

    acc = jnp.dot(cols, w_ref[...], preferred_element_type=jnp.float32)  # (th*w, Cout)
    o_ref[...] = acc

    # Single-pass BN partials; reduced across tiles outside the kernel.
    s = jnp.sum(acc, axis=0, keepdims=True)                    # (1, Cout)
    sq = jnp.sum(acc * acc, axis=0, keepdims=True)             # (1, Cout)
    psum_ref[...] = jnp.broadcast_to(s, (8, cout))
    psq_ref[...] = jnp.broadcast_to(sq, (8, cout))


def _bn_relu_kernel(y_ref, scale_ref, shift_ref, o_ref):
    # y * scale + shift, then ReLU (scale/shift fold mean/var/gamma/beta).
    o_ref[...] = jnp.maximum(
        y_ref[...] * scale_ref[...] + shift_ref[...], 0.0).astype(o_ref.dtype)


def _pick_row_tile(h):
    """Largest divisor of H that is <= 16 (keeps per-tile VMEM modest on v7x)."""
    for th in range(min(h, 16), 0, -1):
        if h % th == 0:
            return th
    return h


@jax.jit
def fused_relu_conv_bn_relu(x_nchw, weight_oihw, gamma, beta):
    """x_nchw: (N, Cin, H, W); weight_oihw: (Cout, Cin, 3, 3); gamma/beta: (Cout,)."""
    N, Cin, H, W = x_nchw.shape
    Cout = weight_oihw.shape[0]
    Hp, Wp = H + 2 * PAD, W + 2 * PAD

    TH = _pick_row_tile(H)
    h_tiles = H // TH
    TM = TH * W                       # rows of the flattened (NHW, Cout) output per tile
    grid = (N, h_tiles)               # both axes "parallel" -> shards across v7x's 2 TCs

    # Layout glue inside the same jit so XLA fuses transpose + pad (no extra round trip
    # beyond the unavoidable NCHW<->NHWC conversion at the module boundary).
    x_nhwc = jnp.transpose(x_nchw, (0, 2, 3, 1))
    x_pad = jnp.pad(x_nhwc, ((0, 0), (PAD, PAD), (PAD, PAD), (0, 0)))

    # Weights: OIHW -> (kh, kw, Cin, Cout) -> (9*Cin, Cout), bf16 for the MXU.
    w_mat = jnp.transpose(weight_oihw, (2, 3, 1, 0)).reshape(
        KSIZE * KSIZE * Cin, Cout).astype(jnp.bfloat16)

    kernel1 = functools.partial(_conv_stats_kernel, th=TH, w=W, cin=Cin, cout=Cout)

    conv, psum, psq = pl.pallas_call(
        kernel1,
        grid=grid,
        in_specs=[
            # Whole padded image of batch element n stays resident (index map ignores ht).
            pl.BlockSpec((None, Hp, Wp, Cin), lambda n, ht: (n, 0, 0, 0)),
            pl.BlockSpec((KSIZE * KSIZE * Cin, Cout), lambda n, ht: (0, 0)),
        ],
        out_specs=[
            pl.BlockSpec((TM, Cout), lambda n, ht: (n * h_tiles + ht, 0)),
            pl.BlockSpec((None, 8, Cout), lambda n, ht: (n * h_tiles + ht, 0, 0)),
            pl.BlockSpec((None, 8, Cout), lambda n, ht: (n * h_tiles + ht, 0, 0)),
        ],
        out_shape=[
            jax.ShapeDtypeStruct((N * H * W, Cout), jnp.float32),
            jax.ShapeDtypeStruct((N * h_tiles, 8, Cout), jnp.float32),
            jax.ShapeDtypeStruct((N * h_tiles, 8, Cout), jnp.float32),
        ],
        compiler_params=pltpu.CompilerParams(
            dimension_semantics=("parallel", "parallel"),
            vmem_limit_bytes=32 * 1024 * 1024),
    )(x_pad, w_mat)

    # Global BN statistics from the per-tile partials (tiny: h_tiles x Cout values).
    # TODO(synk): BatchNorm running_mean/running_var momentum buffers are stateful
    # training bookkeeping and are not materialized; forward output is unaffected.
    cnt = jnp.float32(N * H * W)
    total = jnp.sum(psum[:, 0, :], axis=0)
    total_sq = jnp.sum(psq[:, 0, :], axis=0)
    mean = total / cnt
    var = jnp.maximum(total_sq / cnt - mean * mean, 0.0)   # biased var (training BN)
    inv_std = jax.lax.rsqrt(var + BN_EPS)
    scale = (gamma * inv_std).reshape(1, Cout).astype(jnp.float32)
    shift = (beta - mean * gamma * inv_std).reshape(1, Cout).astype(jnp.float32)

    out_flat = pl.pallas_call(
        _bn_relu_kernel,
        grid=grid,
        in_specs=[
            pl.BlockSpec((TM, Cout), lambda n, ht: (n * h_tiles + ht, 0)),
            pl.BlockSpec((1, Cout), lambda n, ht: (0, 0)),
            pl.BlockSpec((1, Cout), lambda n, ht: (0, 0)),
        ],
        out_specs=pl.BlockSpec((TM, Cout), lambda n, ht: (n * h_tiles + ht, 0)),
        out_shape=jax.ShapeDtypeStruct((N * H * W, Cout), x_nchw.dtype),
        compiler_params=pltpu.CompilerParams(
            dimension_semantics=("parallel", "parallel")),
    )(conv, scale, shift)

    out_nhwc = out_flat.reshape(N, H, W, Cout)
    return jnp.transpose(out_nhwc, (0, 3, 1, 2))          # back to NCHW


def _reference(x_nchw, weight_oihw, gamma, beta):
    """Plain-JAX reference mirroring the PyTorch module (f32 conv, training-mode BN)."""
    x = jnp.maximum(x_nchw, 0.0)
    y = jax.lax.conv_general_dilated(
        x, weight_oihw,
        window_strides=(1, 1),
        padding=((PAD, PAD), (PAD, PAD)),
        rhs_dilation=(DILATION, DILATION),
        dimension_numbers=("NCHW", "OIHW", "NCHW"),
        precision=jax.lax.Precision.HIGHEST)
    mean = jnp.mean(y, axis=(0, 2, 3), keepdims=True)
    var = jnp.mean(jnp.square(y - mean), axis=(0, 2, 3), keepdims=True)
    y = (y - mean) * jax.lax.rsqrt(var + BN_EPS)
    y = y * gamma.reshape(1, -1, 1, 1) + beta.reshape(1, -1, 1, 1)
    return jnp.maximum(y, 0.0)


if __name__ == "__main__":
    # Shapes from the original module: x194 = (1, 256, 28, 28); Conv2d(256 -> 256, 3x3).
    N, C, H, W = 1, 256, 28, 28

    key = jax.random.PRNGKey(0)
    kx, kw, kg, kb = jax.random.split(key, 4)
    x = jax.random.normal(kx, (N, C, H, W), dtype=jnp.float32)
    weight = 0.05 * jax.random.normal(kw, (C, C, KSIZE, KSIZE), dtype=jnp.float32)
    gamma = 1.0 + 0.1 * jax.random.normal(kg, (C,), dtype=jnp.float32)
    beta = 0.1 * jax.random.normal(kb, (C,), dtype=jnp.float32)

    out = jax.block_until_ready(fused_relu_conv_bn_relu(x, weight, gamma, beta))
    ref = jax.block_until_ready(_reference(x, weight, gamma, beta))

    assert out.shape == (N, C, H, W)
    max_err = float(jnp.max(jnp.abs(out - ref)))
    assert jnp.allclose(out, ref, atol=5e-2, rtol=5e-2), max_err

    print("KERNEL_OK")
</pallas_src>

<mosaic_0001>
module attributes {stable_mosaic.version = 11 : i64} {
  func.func @_conv_stats_kernel(%arg0: i32, %arg1: i32, %arg2: memref<1x32x32x256xf32, #tpu.memory_space<vmem>>, %arg3: memref<2304x256xbf16, #tpu.memory_space<vmem>>, %arg4: memref<392x256xf32, #tpu.memory_space<vmem>>, %arg5: memref<1x8x256xf32, #tpu.memory_space<vmem>>, %arg6: memref<1x8x256xf32, #tpu.memory_space<vmem>>) attributes {dimension_semantics = [#tpu.dimension_semantics<parallel>, #tpu.dimension_semantics<parallel>], iteration_bounds = array<i64: 1, 2>, scalar_prefetch = 0 : i64, scratch_operands = 0 : i64, tpu.core_type = #tpu.core_type<tc>, window_params = [{transform_indices = @transform_0, window_bounds = array<i64: 1, 32, 32, 256>}, {pipeline_mode = #tpu.pipeline_mode<synchronous>, transform_indices = @transform_1, window_bounds = array<i64: 2304, 256>}, {transform_indices = @transform_2, window_bounds = array<i64: 392, 256>}, {transform_indices = @transform_3, window_bounds = array<i64: 1, 8, 256>}, {transform_indices = @transform_4, window_bounds = array<i64: 1, 8, 256>}]} {
    %c14_i32 = arith.constant 14 : i32
    %0 = arith.muli %arg1, %c14_i32 : i32
    %c0 = arith.constant 0 : index
    %1 = arith.index_cast %0 : i32 to index
    %c0_0 = arith.constant 0 : index
    %c0_1 = arith.constant 0 : index
    %2 = vector.load %arg2[%c0, %1, %c0_0, %c0_1] : memref<1x32x32x256xf32, #tpu.memory_space<vmem>>, vector<1x18x32x256xf32>
    %3 = vector.shape_cast %2 : vector<1x18x32x256xf32> to vector<18x32x256xf32>
    %cst = arith.constant 0.000000e+00 : f32
    %4 = vector.broadcast %cst : f32 to vector<18x32x256xf32>
    %5 = arith.maximumf %3, %4 : vector<18x32x256xf32>
    %6 = arith.truncf %5 : vector<18x32x256xf32> to vector<18x32x256xbf16>
    %7 = vector.extract_strided_slice %6 {offsets = [0, 0, 0], sizes = [14, 28, 256], strides = [1, 1, 1]} : vector<18x32x256xbf16> to vector<14x28x256xbf16>
    %8 = vector.shape_cast %7 : vector<14x28x256xbf16> to vector<392x256xbf16>
    %9 = vector.extract_strided_slice %6 {offsets = [0, 2, 0], sizes = [14, 28, 256], strides = [1, 1, 1]} : vector<18x32x256xbf16> to vector<14x28x256xbf16>
    %10 = vector.shape_cast %9 : vector<14x28x256xbf16> to vector<392x256xbf16>
    %11 = vector.extract_strided_slice %6 {offsets = [0, 4, 0], sizes = [14, 28, 256], strides = [1, 1, 1]} : vector<18x32x256xbf16> to vector<14x28x256xbf16>
    %12 = vector.shape_cast %11 : vector<14x28x256xbf16> to vector<392x256xbf16>
    %13 = vector.extract_strided_slice %6 {offsets = [2, 0, 0], sizes = [14, 28, 256], strides = [1, 1, 1]} : vector<18x32x256xbf16> to vector<14x28x256xbf16>
    %14 = vector.shape_cast %13 : vector<14x28x256xbf16> to vector<392x256xbf16>
    %15 = vector.extract_strided_slice %6 {offsets = [2, 2, 0], sizes = [14, 28, 256], strides = [1, 1, 1]} : vector<18x32x256xbf16> to vector<14x28x256xbf16>
    %16 = vector.shape_cast %15 : vector<14x28x256xbf16> to vector<392x256xbf16>
    %17 = vector.extract_strided_slice %6 {offsets = [2, 4, 0], sizes = [14, 28, 256], strides = [1, 1, 1]} : vector<18x32x256xbf16> to vector<14x28x256xbf16>
    %18 = vector.shape_cast %17 : vector<14x28x256xbf16> to vector<392x256xbf16>
    %19 = vector.extract_strided_slice %6 {offsets = [4, 0, 0], sizes = [14, 28, 256], strides = [1, 1, 1]} : vector<18x32x256xbf16> to vector<14x28x256xbf16>
    %20 = vector.shape_cast %19 : vector<14x28x256xbf16> to vector<392x256xbf16>
    %21 = vector.extract_strided_slice %6 {offsets = [4, 2, 0], sizes = [14, 28, 256], strides = [1, 1, 1]} : vector<18x32x256xbf16> to vector<14x28x256xbf16>
    %22 = vector.shape_cast %21 : vector<14x28x256xbf16> to vector<392x256xbf16>
    %23 = vector.extract_strided_slice %6 {offsets = [4, 4, 0], sizes = [14, 28, 256], strides = [1, 1, 1]} : vector<18x32x256xbf16> to vector<14x28x256xbf16>
    %24 = vector.shape_cast %23 : vector<14x28x256xbf16> to vector<392x256xbf16>
    %25 = tpu.concatenate %8, %10, %12, %14, %16, %18, %20, %22, %24 in 1 : vector<392x256xbf16>, vector<392x256xbf16>, vector<392x256xbf16>, vector<392x256xbf16>, vector<392x256xbf16>, vector<392x256xbf16>, vector<392x256xbf16>, vector<392x256xbf16>, vector<392x256xbf16> -> vector<392x2304xbf16>
    %c0_2 = arith.constant 0 : index
    %c0_3 = arith.constant 0 : index
    %26 = vector.load %arg3[%c0_2, %c0_3] : memref<2304x256xbf16, #tpu.memory_space<vmem>>, vector<2304x256xbf16>
    %cst_4 = arith.constant dense<0.000000e+00> : vector<392x256xf32>
    %27 = tpu.matmul %25, %26, %cst_4 {dimension_numbers = #tpu.dot_dimension_numbers<[1], [0], [0], [1], [0, 0, 1, 1], [], []>} : vector<392x2304xbf16>, vector<2304x256xbf16>, vector<392x256xf32> -> vector<392x256xf32>
    %c0_5 = arith.constant 0 : index
    %c0_6 = arith.constant 0 : index
    %28 = vector.load %arg4[%c0_5, %c0_6] : memref<392x256xf32, #tpu.memory_space<vmem>>, vector<392x256xf32>
    tpu.vector_store %arg4[%c0_5, %c0_6], %27 {strides = array<i32>} : memref<392x256xf32, #tpu.memory_space<vmem>>, vector<392x256xf32>,
    %cst_7 = arith.constant dense<0.000000e+00> : vector<256xf32>
    %29 = vector.multi_reduction <add>, %27, %cst_7 [0] : vector<392x256xf32> to vector<256xf32>
    %30 = vector.shape_cast %29 : vector<256xf32> to vector<1x256xf32>
    %31 = arith.mulf %27, %27 : vector<392x256xf32>
    %cst_8 = arith.constant dense<0.000000e+00> : vector<256xf32>
    %32 = vector.multi_reduction <add>, %31, %cst_8 [0] : vector<392x256xf32> to vector<256xf32>
    %33 = vector.shape_cast %32 : vector<256xf32> to vector<1x256xf32>
    %34 = vector.shape_cast %30 : vector<1x256xf32> to vector<1x256xf32>
    %35 = vector.broadcast %34 : vector<1x256xf32> to vector<8x256xf32>
    %c0_9 = arith.constant 0 : index
    %c0_10 = arith.constant 0 : index
    %c0_11 = arith.constant 0 : index
    %36 = vector.load %arg5[%c0_9, %c0_10, %c0_11] : memref<1x8x256xf32, #tpu.memory_space<vmem>>, vector<1x8x256xf32>
    %37 = vector.shape_cast %36 : vector<1x8x256xf32> to vector<8x256xf32>
    %38 = vector.shape_cast %35 : vector<8x256xf32> to vector<1x8x256xf32>
    tpu.vector_store %arg5[%c0_9, %c0_10, %c0_11], %38 {strides = array<i32>} : memref<1x8x256xf32, #tpu.memory_space<vmem>>, vector<1x8x256xf32>,
    %39 = vector.shape_cast %33 : vector<1x256xf32> to vector<1x256xf32>
    %40 = vector.broadcast %39 : vector<1x256xf32> to vector<8x256xf32>
    %c0_12 = arith.constant 0 : index
    %c0_13 = arith.constant 0 : index
    %c0_14 = arith.constant 0 : index
    %41 = vector.load %arg6[%c0_12, %c0_13, %c0_14] : memref<1x8x256xf32, #tpu.memory_space<vmem>>, vector<1x8x256xf32>
    %42 = vector.shape_cast %41 : vector<1x8x256xf32> to vector<8x256xf32>
    %43 = vector.shape_cast %40 : vector<8x256xf32> to vector<1x8x256xf32>
    tpu.vector_store %arg6[%c0_12, %c0_13, %c0_14], %43 {strides = array<i32>} : memref<1x8x256xf32, #tpu.memory_space<vmem>>, vector<1x8x256xf32>,
    return
  }
  func.func @transform_0(%arg0: i32, %arg1: i32) -> (i32, i32, i32, i32) {
    %c0_i32 = arith.constant 0 : i32
    %c0_i32_0 = arith.constant 0 : i32
    %c0_i32_1 = arith.constant 0 : i32
    %c0_i32_2 = arith.constant 0 : i32
    return %arg0, %c0_i32, %c0_i32_0, %c0_i32_1 : i32, i32, i32, i32
  }
  func.func @transform_1(%arg0: i32, %arg1: i32) -> (i32, i32) {
    %c0_i32 = arith.constant 0 : i32
    %c0_i32_0 = arith.constant 0 : i32
    %c0_i32_1 = arith.constant 0 : i32
    return %c0_i32, %c0_i32_0 : i32, i32
  }
  func.func @transform_2(%arg0: i32, %arg1: i32) -> (i32, i32) {
    %c2_i32 = arith.constant 2 : i32
    %0 = arith.muli %arg0, %c2_i32 : i32
    %1 = arith.addi %0, %arg1 : i32
    %c0_i32 = arith.constant 0 : i32
    %c0_i32_0 = arith.constant 0 : i32
    return %1, %c0_i32 : i32, i32
  }
  func.func @transform_3(%arg0: i32, %arg1: i32) -> (i32, i32, i32) {
    %c2_i32 = arith.constant 2 : i32
    %0 = arith.muli %arg0, %c2_i32 : i32
    %1 = arith.addi %0, %arg1 : i32
    %c0_i32 = arith.constant 0 : i32
    %c0_i32_0 = arith.constant 0 : i32
    %c0_i32_1 = arith.constant 0 : i32
    return %1, %c0_i32, %c0_i32_0 : i32, i32, i32
  }
  func.func @transform_4(%arg0: i32, %arg1: i32) -> (i32, i32, i32) {
    %c2_i32 = arith.constant 2 : i32
    %0 = arith.muli %arg0, %c2_i32 : i32
    %1 = arith.addi %0, %arg1 : i32
    %c0_i32 = arith.constant 0 : i32
    %c0_i32_0 = arith.constant 0 : i32
    %c0_i32_1 = arith.constant 0 : i32
    return %1, %c0_i32, %c0_i32_0 : i32, i32, i32
  }
}

module attributes {stable_mosaic.version = 11 : i64} {
  func.func @_bn_relu_kernel(%arg0: i32, %arg1: i32, %arg2: memref<392x256xf32, #tpu.memory_space<vmem>>, %arg3: memref<1x256xf32, #tpu.memory_space<vmem>>, %arg4: memref<1x256xf32, #tpu.memory_space<vmem>>, %arg5: memref<392x256xf32, #tpu.memory_space<vmem>>) attributes {dimension_semantics = [#tpu.dimension_semantics<parallel>, #tpu.dimension_semantics<parallel>], iteration_bounds = array<i64: 1, 2>, scalar_prefetch = 0 : i64, scratch_operands = 0 : i64, tpu.core_type = #tpu.core_type<tc>, window_params = [{transform_indices = @transform_0, window_bounds = array<i64: 392, 256>}, {pipeline_mode = #tpu.pipeline_mode<synchronous>, transform_indices = @transform_1, window_bounds = array<i64: 1, 256>}, {pipeline_mode = #tpu.pipeline_mode<synchronous>, transform_indices = @transform_2, window_bounds = array<i64: 1, 256>}, {transform_indices = @transform_3, window_bounds = array<i64: 392, 256>}]} {
    %c0 = arith.constant 0 : index
    %c0_0 = arith.constant 0 : index
    %0 = vector.load %arg2[%c0, %c0_0] : memref<392x256xf32, #tpu.memory_space<vmem>>, vector<392x256xf32>
    %c0_1 = arith.constant 0 : index
    %c0_2 = arith.constant 0 : index
    %1 = vector.load %arg3[%c0_1, %c0_2] : memref<1x256xf32, #tpu.memory_space<vmem>>, vector<1x256xf32>
    %2 = vector.broadcast %1 : vector<1x256xf32> to vector<392x256xf32>
    %3 = arith.mulf %0, %2 : vector<392x256xf32>
    %c0_3 = arith.constant 0 : index
    %c0_4 = arith.constant 0 : index
    %4 = vector.load %arg4[%c0_3, %c0_4] : memref<1x256xf32, #tpu.memory_space<vmem>>, vector<1x256xf32>
    %5 = vector.broadcast %4 : vector<1x256xf32> to vector<392x256xf32>
    %6 = arith.addf %3, %5 : vector<392x256xf32>
    %cst = arith.constant 0.000000e+00 : f32
    %7 = vector.broadcast %cst : f32 to vector<392x256xf32>
    %8 = arith.maximumf %6, %7 : vector<392x256xf32>
    %c0_5 = arith.constant 0 : index
    %c0_6 = arith.constant 0 : index
    %9 = vector.load %arg5[%c0_5, %c0_6] : memref<392x256xf32, #tpu.memory_space<vmem>>, vector<392x256xf32>
    tpu.vector_store %arg5[%c0_5, %c0_6], %8 {strides = array<i32>} : memref<392x256xf32, #tpu.memory_space<vmem>>, vector<392x256xf32>,
    return
  }
  func.func @transform_0(%arg0: i32, %arg1: i32) -> (i32, i32) {
    %c2_i32 = arith.constant 2 : i32
    %0 = arith.muli %arg0, %c2_i32 : i32
    %1 = arith.addi %0, %arg1 : i32
    %c0_i32 = arith.constant 0 : i32
    %c0_i32_0 = arith.constant 0 : i32
    return %1, %c0_i32 : i32, i32
  }
  func.func @transform_1(%arg0: i32, %arg1: i32) -> (i32, i32) {
    %c0_i32 = arith.constant 0 : i32
    %c0_i32_0 = arith.constant 0 : i32
    %c0_i32_1 = arith.constant 0 : i32
    return %c0_i32, %c0_i32_0 : i32, i32
  }
  func.func @transform_2(%arg0: i32, %arg1: i32) -> (i32, i32) {
    %c0_i32 = arith.constant 0 : i32
    %c0_i32_0 = arith.constant 0 : i32
    %c0_i32_1 = arith.constant 0 : i32
    return %c0_i32, %c0_i32_0 : i32, i32
  }
  func.func @transform_3(%arg0: i32, %arg1: i32) -> (i32, i32) {
    %c2_i32 = arith.constant 2 : i32
    %0 = arith.muli %arg0, %c2_i32 : i32
    %1 = arith.addi %0, %arg1 : i32
    %c0_i32 = arith.constant 0 : i32
    %c0_i32_0 = arith.constant 0 : i32
    return %1, %c0_i32 : i32, i32
  }
}

</mosaic_0001>

<bundles_post_ra>
// kernel: fused_relu_conv_bn_relu.3
= control target key start
LH: loop header
LB: loop body
LE: loop exit
PB: predicated region body
PF: predicated region fallthrough
CT: control target
= control target key end

     0   :  { %s883_s12 = smov 0   ;;  %s885_s13 = smov 0   ;;  %s1329_s0 = inlined_call_operand.vmem [shape: f32[784,256], index: 0, kind: input, shape index: {}]   ;;  %s1330_s1 = inlined_call_operand.vmem [shape: f32[1,256], index: 1, kind: input, shape index: {}]   ;;  %s1331_s2 = inlined_call_operand.vmem [shape: f32[1,256], index: 2, kind: input, shape index: {}]   ;;  %s1332_s3 = inlined_call_operand.vmem [shape: f32[784,256], index: 3, kind: output, shape index: {}]  }
   0x1   :  { %s887_s14 = smov 0  }
   0x2 LB: > { %s22_s15 = sadd.s32 1, %s857_s13  ;;  %p806_p0 = scmp.ge.s32.totalorder %s861_s14, 1  ;;  %s861_s14 = sphi %s887_s14, %s13_s14   ;;  %s857_s13 = sphi %s885_s13, %s1334_s13   ;;  %s853_s12 = sphi %s883_s12, %s1333_s12  }
   0x3   : > { %p23_p1 = scmp.ge.s32.totalorder %s22_s15, 2  ;;  %p163_p2 = scmp.lt.s32.totalorder %s861_s14, 3 }
   0x5   : > { %s1336_s15 = smov (%p23_p1, %s22_s15), 0  ;;  %p164_p3 = pnand %p806_p0, %p163_p2 }
   0x6   : > { %s195_s16 = smul.u32 (!%p164_p3), 49, %s853_s12  ;;  %v315_v0 = vlaneseq (!%p164_p3)  ;;  %v313_v2 = vld [vmem:[%s1330_s1] sm:$0x3] (!%p164_p3) }
   0x7   : > { %167 = sbr.rel (%p164_p3) target bundleno = 97 (0x61), region = 32  ;;  %v423_v4 = vld [vmem:[%s1331_s2] sm:$0x3] (!%p164_p3) }
   0x8   : > { %p196_p4 = scmp.lt.s32.totalorder (!%p164_p3), %s195_s16, 97  ;;  %v316_v1 = vshrl.u32 (!%p164_p3), %v315_v0, 7 }
   0xa   : > { %v317_v3 = vsub.s32 (!%p164_p3), 0, %v316_v1  ;;  %v321_v5 = vsub.s32 (!%p164_p3), 1, %v316_v1 }
   0xc   : > { %v910_v6 = vrot.slane (!%p164_p3), %v313_v2, %v317_v3  ;;  %v912_v7 = vrot.slane (!%p164_p3), %v313_v2, %v321_v5  ;;  %v919_v8 = vrot.slane (!%p164_p3), %v423_v4, %v317_v3  ;;  %v921_v9 = vrot.slane (!%p164_p3), %v423_v4, %v321_v5 }
   0xe   : > { %s1338_s16 = smov (!%p196_p4, %s195_s16), 97 }
   0xf   : > { %s813_s21 = sshll.u32 %s1338_s16, 4 }
  0x10   : > { %s917_s24 = scalar_lea.vmem %s1329_s0, %s813_s21  ;;  %s944_s27 = scalar_lea.vmem %s1332_s3, %s813_s21 }
  0x11   : > { %v215_v10 = vld [vmem:[%s917_s24] sm:$0xff]  ;;  %v216_v11 = vld [vmem:[%s917_s24 + $0x8] sm:$0xff]  ;;  %v217_v12 = vld [vmem:[%s917_s24 + $0x10] sm:$0xff] }
  0x12   : > { %v325_v13 = vmul.f32 %v910_v6, %v215_v10  ;;  %v326_v14 = vmul.f32 %v912_v7, %v216_v11  ;;  %v327_v15 = vmul.f32 %v910_v6, %v217_v12  ;;  %v218_v16 = vld [vmem:[%s917_s24 + $0x18] sm:$0xff]  ;;  %v219_v17 = vld [vmem:[%s917_s24 + $0x20] sm:$0xff]  ;;  %v220_v18 = vld [vmem:[%s917_s24 + $0x28] sm:$0xff] }
  0x13   : > { %v328_v19 = vmul.f32 %v912_v7, %v218_v16  ;;  %v329_v20 = vmul.f32 %v910_v6, %v219_v17  ;;  %v330_v21 = vmul.f32 %v912_v7, %v220_v18  ;;  %v221_v22 = vld [vmem:[%s917_s24 + $0x30] sm:$0xff]  ;;  %v222_v23 = vld [vmem:[%s917_s24 + $0x38] sm:$0xff]  ;;  %v223_v32 = vld [vmem:[%s917_s24 + $0x40] sm:$0xff] }
  0x14   : > { %v435_v24 = vadd.f32 %v919_v8, %v325_v13  ;;  %v436_v25 = vadd.f32 %v921_v9, %v326_v14  ;;  %v437_v26 = vadd.f32 %v919_v8, %v327_v15  ;;  %v331_v27 = vmul.f32 %v910_v6, %v221_v22  ;;  %v224_v33 = vld [vmem:[%s917_s24 + $0x48] sm:$0xff]  ;;  %v225_v34 = vld [vmem:[%s917_s24 + $0x50] sm:$0xff]  ;;  %v226_v39 = vld [vmem:[%s917_s24 + $0x58] sm:$0xff] }
  0x15   : > { %v438_v28 = vadd.f32 %v921_v9, %v328_v19  ;;  %v439_v29 = vadd.f32 %v919_v8, %v329_v20  ;;  %v440_v30 = vadd.f32 %v921_v9, %v330_v21  ;;  %v332_v31 = vmul.f32 %v912_v7, %v222_v23  ;;  %v227_v40 = vld [vmem:[%s917_s24 + $0x60] sm:$0xff]  ;;  %v228_v41 = vld [vmem:[%s917_s24 + $0x68] sm:$0xff]  ;;  %v229_v46 = vld [vmem:[%s917_s24 + $0x70] sm:$0xff] }
  0x16   : > { %v533_v35 = vmax.f32 %v435_v24, 0.0  ;;  %v534_v36 = vmax.f32 %v436_v25, 0.0  ;;  %v535_v37 = vmax.f32 %v437_v26, 0.0  ;;  %v441_v38 = vadd.f32 %v919_v8, %v331_v27  ;;  %v230_v51 = vld [vmem:[%s917_s24 + $0x78] sm:$0xff]  ;;  %v231_v0 = vld [vmem:[%s917_s24 + $0x80] sm:$0xff]  ;;  %v232_v1 = vld [vmem:[%s917_s24 + $0x88] sm:$0xff] }
  0x17   : > { %v536_v42 = vmax.f32 %v438_v28, 0.0  ;;  %v537_v43 = vmax.f32 %v439_v29, 0.0  ;;  %v538_v44 = vmax.f32 %v440_v30, 0.0  ;;  %v442_v45 = vadd.f32 %v921_v9, %v332_v31  ;;  %v233_v2 = vld [vmem:[%s917_s24 + $0x90] sm:$0xff]  ;;  %v234_v11 = vld [vmem:[%s917_s24 + $0x98] sm:$0xff]  ;;  %v235_v12 = vld [vmem:[%s917_s24 + $0xa0] sm:$0xff] }
  0x18   : > { %631 = vst [vmem:[%s944_s27] sm:$0xff] %v533_v35  ;;  %632 = vst [vmem:[%s944_s27 + $0x8] sm:$0xff] %v534_v36  ;;  %v539_v47 = vmax.f32 %v441_v38, 0.0  ;;  %v333_v48 = vmul.f32 %v910_v6, %v223_v32  ;;  %v334_v49 = vmul.f32 %v912_v7, %v224_v33  ;;  %v335_v50 = vmul.f32 %v910_v6, %v225_v34  ;;  %v236_v13 = vld [vmem:[%s917_s24 + $0xa8] sm:$0xff]  ;;  %v237_v18 = vld [vmem:[%s917_s24 + $0xb0] sm:$0xff] }
  0x19   : > { %633 = vst [vmem:[%s944_s27 + $0x10] sm:$0xff] %v535_v37  ;;  %634 = vst [vmem:[%s944_s27 + $0x18] sm:$0xff] %v536_v42  ;;  %v540_v52 = vmax.f32 %v442_v45, 0.0  ;;  %v336_v53 = vmul.f32 %v912_v7, %v226_v39  ;;  %v337_v54 = vmul.f32 %v910_v6, %v227_v40  ;;  %v338_v55 = vmul.f32 %v912_v7, %v228_v41  ;;  %v238_v23 = vld [vmem:[%s917_s24 + $0xb8] sm:$0xff]  ;;  %v239_v36 = vld [vmem:[%s917_s24 + $0xc0] sm:$0xff] }
  0x1a   : > { %635 = vst [vmem:[%s944_s27 + $0x20] sm:$0xff] %v537_v43  ;;  %636 = vst [vmem:[%s944_s27 + $0x28] sm:$0xff] %v538_v44  ;;  %v443_v56 = vadd.f32 %v919_v8, %v333_v48  ;;  %v444_v57 = vadd.f32 %v921_v9, %v334_v49  ;;  %v445_v58 = vadd.f32 %v919_v8, %v335_v50  ;;  %v240_v37 = vld [vmem:[%s917_s24 + $0xc8] sm:$0xff]  ;;  %v241_v38 = vld [vmem:[%s917_s24 + $0xd0] sm:$0xff] }
  0x1b   : > { %637 = vst [vmem:[%s944_s27 + $0x30] sm:$0xff] %v539_v47  ;;  %v339_v59 = vmul.f32 %v910_v6, %v229_v46  ;;  %638 = vst [vmem:[%s944_s27 + $0x38] sm:$0xff] %v540_v52  ;;  %v446_v60 = vadd.f32 %v921_v9, %v336_v53  ;;  %v447_v61 = vadd.f32 %v919_v8, %v337_v54  ;;  %v242_v43 = vld [vmem:[%s917_s24 + $0xd8] sm:$0xff]  ;;  %v243_v44 = vld [vmem:[%s917_s24 + $0xe0] sm:$0xff] }
  0x1c   : > { %v448_v62 = vadd.f32 %v921_v9, %v338_v55  ;;  %v340_v63 = vmul.f32 %v912_v7, %v230_v51  ;;  %v541_v3 = vmax.f32 %v443_v56, 0.0  ;;  %v542_v4 = vmax.f32 %v444_v57, 0.0  ;;  %v244_v45 = vld [vmem:[%s917_s24 + $0xe8] sm:$0xff]  ;;  %v245_v50 = vld [vmem:[%s917_s24 + $0xf0] sm:$0xff]  ;;  %v246_v55 = vld [vmem:[%s917_s24 + $0xf8] sm:$0xff] }
  0x1d   : > { %v543_v5 = vmax.f32 %v445_v58, 0.0  ;;  %v449_v10 = vadd.f32 %v919_v8, %v339_v59  ;;  %v544_v14 = vmax.f32 %v446_v60, 0.0  ;;  %v545_v15 = vmax.f32 %v447_v61, 0.0 }
  0x1e   : > { %v546_v16 = vmax.f32 %v448_v62, 0.0  ;;  %v450_v17 = vadd.f32 %v921_v9, %v340_v63  ;;  %639 = vst [vmem:[%s944_s27 + $0x40] sm:$0xff] %v541_v3  ;;  %640 = vst [vmem:[%s944_s27 + $0x48] sm:$0xff] %v542_v4  ;;  %v341_v20 = vmul.f32 %v910_v6, %v231_v0  ;;  %v342_v21 = vmul.f32 %v912_v7, %v232_v1  ;;  %v247_v4 = vld [vmem:[%s917_s24 + $0x100] sm:$0xff] }
  0x1f   : > { %641 = vst [vmem:[%s944_s27 + $0x50] sm:$0xff] %v543_v5  ;;  %v547_v19 = vmax.f32 %v449_v10, 0.0  ;;  %v343_v22 = vmul.f32 %v910_v6, %v233_v2  ;;  %642 = vst [vmem:[%s944_s27 + $0x58] sm:$0xff] %v544_v14  ;;  %v344_v25 = vmul.f32 %v912_v7, %v234_v11  ;;  %v345_v26 = vmul.f32 %v910_v6, %v235_v12  ;;  %v248_v5 = vld [vmem:[%s917_s24 + $0x108] sm:$0xff]  ;;  %v249_v10 = vld [vmem:[%s917_s24 + $0x110] sm:$0xff] }
  0x20   : > { %643 = vst [vmem:[%s944_s27 + $0x60] sm:$0xff] %v545_v15  ;;  %644 = vst [vmem:[%s944_s27 + $0x68] sm:$0xff] %v546_v16  ;;  %v548_v24 = vmax.f32 %v450_v17, 0.0  ;;  %v346_v27 = vmul.f32 %v912_v7, %v236_v13  ;;  %v451_v28 = vadd.f32 %v919_v8, %v341_v20  ;;  %v452_v29 = vadd.f32 %v921_v9, %v342_v21  ;;  %v250_v15 = vld [vmem:[%s917_s24 + $0x118] sm:$0xff]  ;;  %v251_v16 = vld [vmem:[%s917_s24 + $0x120] sm:$0xff] }
  0x21   : > { %645 = vst [vmem:[%s944_s27 + $0x70] sm:$0xff] %v547_v19  ;;  %v453_v30 = vadd.f32 %v919_v8, %v343_v22  ;;  %v347_v31 = vmul.f32 %v910_v6, %v237_v18  ;;  %v454_v32 = vadd.f32 %v921_v9, %v344_v25  ;;  %v455_v33 = vadd.f32 %v919_v8, %v345_v26  ;;  %v252_v17 = vld [vmem:[%s917_s24 + $0x128] sm:$0xff]  ;;  %v253_v22 = vld [vmem:[%s917_s24 + $0x130] sm:$0xff] }
  0x22   : > { %646 = vst [vmem:[%s944_s27 + $0x78] sm:$0xff] %v548_v24  ;;  %v456_v34 = vadd.f32 %v921_v9, %v346_v27  ;;  %v348_v35 = vmul.f32 %v912_v7, %v238_v23  ;;  %v549_v39 = vmax.f32 %v451_v28, 0.0  ;;  %v550_v40 = vmax.f32 %v452_v29, 0.0  ;;  %v254_v27 = vld [vmem:[%s917_s24 + $0x138] sm:$0xff] }
  0x23   : > { %v551_v41 = vmax.f32 %v453_v30, 0.0  ;;  %v457_v42 = vadd.f32 %v919_v8, %v347_v31  ;;  %v552_v46 = vmax.f32 %v454_v32, 0.0  ;;  %v553_v47 = vmax.f32 %v455_v33, 0.0 }
  0x24   : > { %v554_v48 = vmax.f32 %v456_v34, 0.0  ;;  %v458_v49 = vadd.f32 %v921_v9, %v348_v35  ;;  %647 = vst [vmem:[%s944_s27 + $0x80] sm:$0xff] %v549_v39  ;;  %648 = vst [vmem:[%s944_s27 + $0x88] sm:$0xff] %v550_v40  ;;  %v349_v52 = vmul.f32 %v910_v6, %v239_v36  ;;  %v350_v53 = vmul.f32 %v912_v7, %v240_v37  ;;  %v255_v40 = vld [vmem:[%s917_s24 + $0x140] sm:$0xff] }
  0x25   : > { %649 = vst [vmem:[%s944_s27 + $0x90] sm:$0xff] %v551_v41  ;;  %v555_v51 = vmax.f32 %v457_v42, 0.0  ;;  %v351_v54 = vmul.f32 %v910_v6, %v241_v38  ;;  %650 = vst [vmem:[%s944_s27 + $0x98] sm:$0xff] %v552_v46  ;;  %v352_v57 = vmul.f32 %v912_v7, %v242_v43  ;;  %v353_v58 = vmul.f32 %v910_v6, %v243_v44  ;;  %v256_v41 = vld [vmem:[%s917_s24 + $0x148] sm:$0xff]  ;;  %v257_v42 = vld [vmem:[%s917_s24 + $0x150] sm:$0xff] }
  0x26   : > { %651 = vst [vmem:[%s944_s27 + $0xa0] sm:$0xff] %v553_v47  ;;  %652 = vst [vmem:[%s944_s27 + $0xa8] sm:$0xff] %v554_v48  ;;  %v556_v56 = vmax.f32 %v458_v49, 0.0  ;;  %v354_v59 = vmul.f32 %v912_v7, %v244_v45  ;;  %v459_v60 = vadd.f32 %v919_v8, %v349_v52  ;;  %v460_v61 = vadd.f32 %v921_v9, %v350_v53  ;;  %v258_v47 = vld [vmem:[%s917_s24 + $0x158] sm:$0xff]  ;;  %v259_v48 = vld [vmem:[%s917_s24 + $0x160] sm:$0xff] }
  0x27   : > { %653 = vst [vmem:[%s944_s27 + $0xb0] sm:$0xff] %v555_v51  ;;  %v461_v62 = vadd.f32 %v919_v8, %v351_v54  ;;  %v355_v63 = vmul.f32 %v910_v6, %v245_v50  ;;  %v462_v0 = vadd.f32 %v921_v9, %v352_v57  ;;  %v463_v1 = vadd.f32 %v919_v8, %v353_v58  ;;  %v260_v49 = vld [vmem:[%s917_s24 + $0x168] sm:$0xff]  ;;  %v261_v54 = vld [vmem:[%s917_s24 + $0x170] sm:$0xff] }
  0x28   : > { %654 = vst [vmem:[%s944_s27 + $0xb8] sm:$0xff] %v556_v56  ;;  %v464_v2 = vadd.f32 %v921_v9, %v354_v59  ;;  %v356_v3 = vmul.f32 %v912_v7, %v246_v55  ;;  %v557_v11 = vmax.f32 %v459_v60, 0.0  ;;  %v558_v12 = vmax.f32 %v460_v61, 0.0  ;;  %v262_v59 = vld [vmem:[%s917_s24 + $0x178] sm:$0xff] }
  0x29   : > { %v559_v13 = vmax.f32 %v461_v62, 0.0  ;;  %v465_v14 = vadd.f32 %v919_v8, %v355_v63  ;;  %v560_v18 = vmax.f32 %v462_v0, 0.0  ;;  %v561_v19 = vmax.f32 %v463_v1, 0.0 }
  0x2a   : > { %v562_v20 = vmax.f32 %v464_v2, 0.0  ;;  %v466_v21 = vadd.f32 %v921_v9, %v356_v3  ;;  %655 = vst [vmem:[%s944_s27 + $0xc0] sm:$0xff] %v557_v11  ;;  %656 = vst [vmem:[%s944_s27 + $0xc8] sm:$0xff] %v558_v12  ;;  %v357_v24 = vmul.f32 %v910_v6, %v247_v4  ;;  %v358_v25 = vmul.f32 %v912_v7, %v248_v5  ;;  %v263_v12 = vld [vmem:[%s917_s24 + $0x180] sm:$0xff] }
  0x2b   : > { %657 = vst [vmem:[%s944_s27 + $0xd0] sm:$0xff] %v559_v13  ;;  %v563_v23 = vmax.f32 %v465_v14, 0.0  ;;  %v359_v26 = vmul.f32 %v910_v6, %v249_v10  ;;  %658 = vst [vmem:[%s944_s27 + $0xd8] sm:$0xff] %v560_v18  ;;  %v360_v29 = vmul.f32 %v912_v7, %v250_v15  ;;  %v361_v30 = vmul.f32 %v910_v6, %v251_v16  ;;  %v264_v13 = vld [vmem:[%s917_s24 + $0x188] sm:$0xff]  ;;  %v265_v14 = vld [vmem:[%s917_s24 + $0x190] sm:$0xff] }
  0x2c   : > { %659 = vst [vmem:[%s944_s27 + $0xe0] sm:$0xff] %v561_v19  ;;  %660 = vst [vmem:[%s944_s27 + $0xe8] sm:$0xff] %v562_v20  ;;  %v564_v28 = vmax.f32 %v466_v21, 0.0  ;;  %v362_v31 = vmul.f32 %v912_v7, %v252_v17  ;;  %v467_v32 = vadd.f32 %v919_v8, %v357_v24  ;;  %v468_v33 = vadd.f32 %v921_v9, %v358_v25  ;;  %v266_v19 = vld [vmem:[%s917_s24 + $0x198] sm:$0xff]  ;;  %v267_v20 = vld [vmem:[%s917_s24 + $0x1a0] sm:$0xff] }
  0x2d   : > { %661 = vst [vmem:[%s944_s27 + $0xf0] sm:$0xff] %v563_v23  ;;  %v469_v34 = vadd.f32 %v919_v8, %v359_v26  ;;  %v363_v35 = vmul.f32 %v910_v6, %v253_v22  ;;  %v470_v36 = vadd.f32 %v921_v9, %v360_v29  ;;  %v471_v37 = vadd.f32 %v919_v8, %v361_v30  ;;  %v268_v21 = vld [vmem:[%s917_s24 + $0x1a8] sm:$0xff]  ;;  %v269_v26 = vld [vmem:[%s917_s24 + $0x1b0] sm:$0xff] }
  0x2e   : > { %662 = vst [vmem:[%s944_s27 + $0xf8] sm:$0xff] %v564_v28  ;;  %v472_v38 = vadd.f32 %v921_v9, %v362_v31  ;;  %v364_v39 = vmul.f32 %v912_v7, %v254_v27  ;;  %v565_v43 = vmax.f32 %v467_v32, 0.0  ;;  %v566_v44 = vmax.f32 %v468_v33, 0.0  ;;  %v270_v31 = vld [vmem:[%s917_s24 + $0x1b8] sm:$0xff] }
  0x2f   : > { %v567_v45 = vmax.f32 %v469_v34, 0.0  ;;  %v473_v46 = vadd.f32 %v919_v8, %v363_v35  ;;  %v568_v50 = vmax.f32 %v470_v36, 0.0  ;;  %v569_v51 = vmax.f32 %v471_v37, 0.0 }
  0x30   : > { %v570_v52 = vmax.f32 %v472_v38, 0.0  ;;  %v474_v53 = vadd.f32 %v921_v9, %v364_v39  ;;  %663 = vst [vmem:[%s944_s27 + $0x100] sm:$0xff] %v565_v43  ;;  %664 = vst [vmem:[%s944_s27 + $0x108] sm:$0xff] %v566_v44  ;;  %v365_v56 = vmul.f32 %v910_v6, %v255_v40  ;;  %v366_v57 = vmul.f32 %v912_v7, %v256_v41  ;;  %v271_v44 = vld [vmem:[%s917_s24 + $0x1c0] sm:$0xff] }
  0x31   : > { %665 = vst [vmem:[%s944_s27 + $0x110] sm:$0xff] %v567_v45  ;;  %v571_v55 = vmax.f32 %v473_v46, 0.0  ;;  %v367_v58 = vmul.f32 %v910_v6, %v257_v42  ;;  %666 = vst [vmem:[%s944_s27 + $0x118] sm:$0xff] %v568_v50  ;;  %v368_v61 = vmul.f32 %v912_v7, %v258_v47  ;;  %v369_v62 = vmul.f32 %v910_v6, %v259_v48  ;;  %v272_v45 = vld [vmem:[%s917_s24 + $0x1c8] sm:$0xff]  ;;  %v273_v46 = vld [vmem:[%s917_s24 + $0x1d0] sm:$0xff] }
  0x32   : > { %667 = vst [vmem:[%s944_s27 + $0x120] sm:$0xff] %v569_v51  ;;  %668 = vst [vmem:[%s944_s27 + $0x128] sm:$0xff] %v570_v52  ;;  %v572_v60 = vmax.f32 %v474_v53, 0.0  ;;  %v370_v63 = vmul.f32 %v912_v7, %v260_v49  ;;  %v475_v0 = vadd.f32 %v919_v8, %v365_v56  ;;  %v476_v1 = vadd.f32 %v921_v9, %v366_v57  ;;  %v274_v51 = vld [vmem:[%s917_s24 + $0x1d8] sm:$0xff]  ;;  %v275_v52 = vld [vmem:[%s917_s24 + $0x1e0] sm:$0xff] }
  0x33   : > { %669 = vst [vmem:[%s944_s27 + $0x130] sm:$0xff] %v571_v55  ;;  %v477_v2 = vadd.f32 %v919_v8, %v367_v58  ;;  %v371_v3 = vmul.f32 %v910_v6, %v261_v54  ;;  %v478_v4 = vadd.f32 %v921_v9, %v368_v61  ;;  %v479_v5 = vadd.f32 %v919_v8, %v369_v62  ;;  %v276_v53 = vld [vmem:[%s917_s24 + $0x1e8] sm:$0xff]  ;;  %v277_v58 = vld [vmem:[%s917_s24 + $0x1f0] sm:$0xff] }
  0x34   : > { %670 = vst [vmem:[%s944_s27 + $0x138] sm:$0xff] %v572_v60  ;;  %v480_v10 = vadd.f32 %v921_v9, %v370_v63  ;;  %v372_v11 = vmul.f32 %v912_v7, %v262_v59  ;;  %v573_v15 = vmax.f32 %v475_v0, 0.0  ;;  %v574_v16 = vmax.f32 %v476_v1, 0.0  ;;  %v278_v63 = vld [vmem:[%s917_s24 + $0x1f8] sm:$0xff] }
  0x35   : > { %v575_v17 = vmax.f32 %v477_v2, 0.0  ;;  %v481_v18 = vadd.f32 %v919_v8, %v371_v3  ;;  %v576_v22 = vmax.f32 %v478_v4, 0.0  ;;  %v577_v23 = vmax.f32 %v479_v5, 0.0 }
  0x36   : > { %v578_v24 = vmax.f32 %v480_v10, 0.0  ;;  %v482_v25 = vadd.f32 %v921_v9, %v372_v11  ;;  %671 = vst [vmem:[%s944_s27 + $0x140] sm:$0xff] %v573_v15  ;;  %672 = vst [vmem:[%s944_s27 + $0x148] sm:$0xff] %v574_v16  ;;  %v373_v28 = vmul.f32 %v910_v6, %v263_v12  ;;  %v374_v29 = vmul.f32 %v912_v7, %v264_v13  ;;  %v279_v16 = vld [vmem:[%s917_s24 + $0x200] sm:$0xff] }
  0x37   : > { %673 = vst [vmem:[%s944_s27 + $0x150] sm:$0xff] %v575_v17  ;;  %v579_v27 = vmax.f32 %v481_v18, 0.0  ;;  %v375_v30 = vmul.f32 %v910_v6, %v265_v14  ;;  %674 = vst [vmem:[%s944_s27 + $0x158] sm:$0xff] %v576_v22  ;;  %v376_v33 = vmul.f32 %v912_v7, %v266_v19  ;;  %v377_v34 = vmul.f32 %v910_v6, %v267_v20  ;;  %v280_v17 = vld [vmem:[%s917_s24 + $0x208] sm:$0xff]  ;;  %v281_v18 = vld [vmem:[%s917_s24 + $0x210] sm:$0xff] }
  0x38   : > { %675 = vst [vmem:[%s944_s27 + $0x160] sm:$0xff] %v577_v23  ;;  %676 = vst [vmem:[%s944_s27 + $0x168] sm:$0xff] %v578_v24  ;;  %v580_v32 = vmax.f32 %v482_v25, 0.0  ;;  %v378_v35 = vmul.f32 %v912_v7, %v268_v21  ;;  %v483_v36 = vadd.f32 %v919_v8, %v373_v28  ;;  %v484_v37 = vadd.f32 %v921_v9, %v374_v29  ;;  %v282_v23 = vld [vmem:[%s917_s24 + $0x218] sm:$0xff]  ;;  %v283_v24 = vld [vmem:[%s917_s24 + $0x220] sm:$0xff] }
  0x39   : > { %677 = vst [vmem:[%s944_s27 + $0x170] sm:$0xff] %v579_v27  ;;  %v485_v38 = vadd.f32 %v919_v8, %v375_v30  ;;  %v379_v39 = vmul.f32 %v910_v6, %v269_v26  ;;  %v486_v40 = vadd.f32 %v921_v9, %v376_v33  ;;  %v487_v41 = vadd.f32 %v919_v8, %v377_v34  ;;  %v284_v25 = vld [vmem:[%s917_s24 + $0x228] sm:$0xff]  ;;  %v285_v30 = vld [vmem:[%s917_s24 + $0x230] sm:$0xff] }
  0x3a   : > { %678 = vst [vmem:[%s944_s27 + $0x178] sm:$0xff] %v580_v32  ;;  %v488_v42 = vadd.f32 %v921_v9, %v378_v35  ;;  %v380_v43 = vmul.f32 %v912_v7, %v270_v31  ;;  %v581_v47 = vmax.f32 %v483_v36, 0.0  ;;  %v582_v48 = vmax.f32 %v484_v37, 0.0  ;;  %v286_v35 = vld [vmem:[%s917_s24 + $0x238] sm:$0xff] }
  0x3b   : > { %v583_v49 = vmax.f32 %v485_v38, 0.0  ;;  %v489_v50 = vadd.f32 %v919_v8, %v379_v39  ;;  %v584_v54 = vmax.f32 %v486_v40, 0.0  ;;  %v585_v55 = vmax.f32 %v487_v41, 0.0 }
  0x3c   : > { %v586_v56 = vmax.f32 %v488_v42, 0.0  ;;  %v490_v57 = vadd.f32 %v921_v9, %v380_v43  ;;  %679 = vst [vmem:[%s944_s27 + $0x180] sm:$0xff] %v581_v47  ;;  %680 = vst [vmem:[%s944_s27 + $0x188] sm:$0xff] %v582_v48  ;;  %v381_v60 = vmul.f32 %v910_v6, %v271_v44  ;;  %v382_v61 = vmul.f32 %v912_v7, %v272_v45  ;;  %v287_v48 = vld [vmem:[%s917_s24 + $0x240] sm:$0xff] }
  0x3d   : > { %681 = vst [vmem:[%s944_s27 + $0x190] sm:$0xff] %v583_v49  ;;  %v587_v59 = vmax.f32 %v489_v50, 0.0  ;;  %v383_v62 = vmul.f32 %v910_v6, %v273_v46  ;;  %682 = vst [vmem:[%s944_s27 + $0x198] sm:$0xff] %v584_v54  ;;  %v384_v1 = vmul.f32 %v912_v7, %v274_v51  ;;  %v385_v2 = vmul.f32 %v910_v6, %v275_v52  ;;  %v288_v49 = vld [vmem:[%s917_s24 + $0x248] sm:$0xff]  ;;  %v289_v50 = vld [vmem:[%s917_s24 + $0x250] sm:$0xff] }
  0x3e   : > { %683 = vst [vmem:[%s944_s27 + $0x1a0] sm:$0xff] %v585_v55  ;;  %684 = vst [vmem:[%s944_s27 + $0x1a8] sm:$0xff] %v586_v56  ;;  %v588_v0 = vmax.f32 %v490_v57, 0.0  ;;  %v386_v3 = vmul.f32 %v912_v7, %v276_v53  ;;  %v491_v4 = vadd.f32 %v919_v8, %v381_v60  ;;  %v492_v5 = vadd.f32 %v921_v9, %v382_v61  ;;  %v290_v55 = vld [vmem:[%s917_s24 + $0x258] sm:$0xff]  ;;  %v291_v56 = vld [vmem:[%s917_s24 + $0x260] sm:$0xff] }
  0x3f   : > { %685 = vst [vmem:[%s944_s27 + $0x1b0] sm:$0xff] %v587_v59  ;;  %v493_v10 = vadd.f32 %v919_v8, %v383_v62  ;;  %v387_v11 = vmul.f32 %v910_v6, %v277_v58  ;;  %v494_v12 = vadd.f32 %v921_v9, %v384_v1  ;;  %v495_v13 = vadd.f32 %v919_v8, %v385_v2  ;;  %v292_v57 = vld [vmem:[%s917_s24 + $0x268] sm:$0xff]  ;;  %v293_v62 = vld [vmem:[%s917_s24 + $0x270] sm:$0xff] }
  0x40   : > { %686 = vst [vmem:[%s944_s27 + $0x1b8] sm:$0xff] %v588_v0  ;;  %v496_v14 = vadd.f32 %v921_v9, %v386_v3  ;;  %v388_v15 = vmul.f32 %v912_v7, %v278_v63  ;;  %v589_v19 = vmax.f32 %v491_v4, 0.0  ;;  %v590_v20 = vmax.f32 %v492_v5, 0.0  ;;  %v294_v3 = vld [vmem:[%s917_s24 + $0x278] sm:$0xff] }
  0x41   : > { %v591_v21 = vmax.f32 %v493_v10, 0.0  ;;  %v497_v22 = vadd.f32 %v919_v8, %v387_v11  ;;  %v592_v26 = vmax.f32 %v494_v12, 0.0  ;;  %v593_v27 = vmax.f32 %v495_v13, 0.0 }
  0x42   : > { %v594_v28 = vmax.f32 %v496_v14, 0.0  ;;  %v498_v29 = vadd.f32 %v921_v9, %v388_v15  ;;  %687 = vst [vmem:[%s944_s27 + $0x1c0] sm:$0xff] %v589_v19  ;;  %688 = vst [vmem:[%s944_s27 + $0x1c8] sm:$0xff] %v590_v20  ;;  %v389_v32 = vmul.f32 %v910_v6, %v279_v16  ;;  %v390_v33 = vmul.f32 %v912_v7, %v280_v17  ;;  %v295_v20 = vld [vmem:[%s917_s24 + $0x280] sm:$0xff] }
  0x43   : > { %689 = vst [vmem:[%s944_s27 + $0x1d0] sm:$0xff] %v591_v21  ;;  %v595_v31 = vmax.f32 %v497_v22, 0.0  ;;  %v391_v34 = vmul.f32 %v910_v6, %v281_v18  ;;  %690 = vst [vmem:[%s944_s27 + $0x1d8] sm:$0xff] %v592_v26  ;;  %v392_v37 = vmul.f32 %v912_v7, %v282_v23  ;;  %v393_v38 = vmul.f32 %v910_v6, %v283_v24  ;;  %v296_v21 = vld [vmem:[%s917_s24 + $0x288] sm:$0xff]  ;;  %v297_v22 = vld [vmem:[%s917_s24 + $0x290] sm:$0xff] }
  0x44   : > { %691 = vst [vmem:[%s944_s27 + $0x1e0] sm:$0xff] %v593_v27  ;;  %692 = vst [vmem:[%s944_s27 + $0x1e8] sm:$0xff] %v594_v28  ;;  %v596_v36 = vmax.f32 %v498_v29, 0.0  ;;  %v394_v39 = vmul.f32 %v912_v7, %v284_v25  ;;  %v499_v40 = vadd.f32 %v919_v8, %v389_v32  ;;  %v500_v41 = vadd.f32 %v921_v9, %v390_v33  ;;  %v298_v27 = vld [vmem:[%s917_s24 + $0x298] sm:$0xff]  ;;  %v299_v28 = vld [vmem:[%s917_s24 + $0x2a0] sm:$0xff] }
  0x45   : > { %693 = vst [vmem:[%s944_s27 + $0x1f0] sm:$0xff] %v595_v31  ;;  %v501_v42 = vadd.f32 %v919_v8, %v391_v34  ;;  %v395_v43 = vmul.f32 %v910_v6, %v285_v30  ;;  %v502_v44 = vadd.f32 %v921_v9, %v392_v37  ;;  %v503_v45 = vadd.f32 %v919_v8, %v393_v38  ;;  %v300_v29 = vld [vmem:[%s917_s24 + $0x2a8] sm:$0xff]  ;;  %v301_v34 = vld [vmem:[%s917_s24 + $0x2b0] sm:$0xff] }
  0x46   : > { %694 = vst [vmem:[%s944_s27 + $0x1f8] sm:$0xff] %v596_v36  ;;  %v504_v46 = vadd.f32 %v921_v9, %v394_v39  ;;  %v396_v47 = vmul.f32 %v912_v7, %v286_v35  ;;  %v597_v51 = vmax.f32 %v499_v40, 0.0  ;;  %v598_v52 = vmax.f32 %v500_v41, 0.0  ;;  %v302_v39 = vld [vmem:[%s917_s24 + $0x2b8] sm:$0xff] }
  0x47   : > { %v599_v53 = vmax.f32 %v501_v42, 0.0  ;;  %v505_v54 = vadd.f32 %v919_v8, %v395_v43  ;;  %v600_v58 = vmax.f32 %v502_v44, 0.0  ;;  %v601_v59 = vmax.f32 %v503_v45, 0.0 }
  0x48   : > { %v602_v60 = vmax.f32 %v504_v46, 0.0  ;;  %v506_v61 = vadd.f32 %v921_v9, %v396_v47  ;;  %695 = vst [vmem:[%s944_s27 + $0x200] sm:$0xff] %v597_v51  ;;  %696 = vst [vmem:[%s944_s27 + $0x208] sm:$0xff] %v598_v52  ;;  %v397_v0 = vmul.f32 %v910_v6, %v287_v48  ;;  %v398_v1 = vmul.f32 %v912_v7, %v288_v49  ;;  %v303_v52 = vld [vmem:[%s917_s24 + $0x2c0] sm:$0xff] }
  0x49   : > { %697 = vst [vmem:[%s944_s27 + $0x210] sm:$0xff] %v599_v53  ;;  %v603_v63 = vmax.f32 %v505_v54, 0.0  ;;  %v399_v2 = vmul.f32 %v910_v6, %v289_v50  ;;  %698 = vst [vmem:[%s944_s27 + $0x218] sm:$0xff] %v600_v58  ;;  %v400_v5 = vmul.f32 %v912_v7, %v290_v55  ;;  %v401_v10 = vmul.f32 %v910_v6, %v291_v56  ;;  %v304_v53 = vld [vmem:[%s917_s24 + $0x2c8] sm:$0xff]  ;;  %v305_v54 = vld [vmem:[%s917_s24 + $0x2d0] sm:$0xff] }
  0x4a   : > { %699 = vst [vmem:[%s944_s27 + $0x220] sm:$0xff] %v601_v59  ;;  %700 = vst [vmem:[%s944_s27 + $0x228] sm:$0xff] %v602_v60  ;;  %v604_v4 = vmax.f32 %v506_v61, 0.0  ;;  %v402_v11 = vmul.f32 %v912_v7, %v292_v57  ;;  %v507_v12 = vadd.f32 %v919_v8, %v397_v0  ;;  %v508_v13 = vadd.f32 %v921_v9, %v398_v1  ;;  %v306_v59 = vld [vmem:[%s917_s24 + $0x2d8] sm:$0xff]  ;;  %v307_v60 = vld [vmem:[%s917_s24 + $0x2e0] sm:$0xff] }
  0x4b   : > { %701 = vst [vmem:[%s944_s27 + $0x230] sm:$0xff] %v603_v63  ;;  %v509_v14 = vadd.f32 %v919_v8, %v399_v2  ;;  %v403_v15 = vmul.f32 %v910_v6, %v293_v62  ;;  %v510_v16 = vadd.f32 %v921_v9, %v400_v5  ;;  %v511_v17 = vadd.f32 %v919_v8, %v401_v10  ;;  %v308_v61 = vld [vmem:[%s917_s24 + $0x2e8] sm:$0xff]  ;;  %v309_v2 = vld [vmem:[%s917_s24 + $0x2f0] sm:$0xff] }
  0x4c   : > { %702 = vst [vmem:[%s944_s27 + $0x238] sm:$0xff] %v604_v4  ;;  %v512_v18 = vadd.f32 %v921_v9, %v402_v11  ;;  %v404_v19 = vmul.f32 %v912_v7, %v294_v3  ;;  %v605_v23 = vmax.f32 %v507_v12, 0.0  ;;  %v606_v24 = vmax.f32 %v508_v13, 0.0  ;;  %v310_v11 = vld [vmem:[%s917_s24 + $0x2f8] sm:$0xff] }
  0x4d   : > { %v607_v25 = vmax.f32 %v509_v14, 0.0  ;;  %v513_v26 = vadd.f32 %v919_v8, %v403_v15  ;;  %v608_v30 = vmax.f32 %v510_v16, 0.0  ;;  %v609_v31 = vmax.f32 %v511_v17, 0.0 }
  0x4e   : > { %v610_v32 = vmax.f32 %v512_v18, 0.0  ;;  %v514_v33 = vadd.f32 %v921_v9, %v404_v19  ;;  %703 = vst [vmem:[%s944_s27 + $0x240] sm:$0xff] %v605_v23  ;;  %704 = vst [vmem:[%s944_s27 + $0x248] sm:$0xff] %v606_v24  ;;  %v405_v36 = vmul.f32 %v910_v6, %v295_v20  ;;  %v406_v37 = vmul.f32 %v912_v7, %v296_v21  ;;  %v311_v24 = vld [vmem:[%s917_s24 + $0x300] sm:$0xff] }
  0x4f   : > { %705 = vst [vmem:[%s944_s27 + $0x250] sm:$0xff] %v607_v25  ;;  %v611_v35 = vmax.f32 %v513_v26, 0.0  ;;  %v407_v38 = vmul.f32 %v910_v6, %v297_v22  ;;  %706 = vst [vmem:[%s944_s27 + $0x258] sm:$0xff] %v608_v30  ;;  %v408_v41 = vmul.f32 %v912_v7, %v298_v27  ;;  %v409_v42 = vmul.f32 %v910_v6, %v299_v28  ;;  %v312_v25 = vld [vmem:[%s917_s24 + $0x308] sm:$0xff] }
  0x50   : > { %707 = vst [vmem:[%s944_s27 + $0x260] sm:$0xff] %v609_v31  ;;  %708 = vst [vmem:[%s944_s27 + $0x268] sm:$0xff] %v610_v32  ;;  %v612_v40 = vmax.f32 %v514_v33, 0.0  ;;  %v410_v43 = vmul.f32 %v912_v7, %v300_v29  ;;  %v515_v44 = vadd.f32 %v919_v8, %v405_v36  ;;  %v516_v45 = vadd.f32 %v921_v9, %v406_v37 }
  0x51   : > { %709 = vst [vmem:[%s944_s27 + $0x270] sm:$0xff] %v611_v35  ;;  %v517_v46 = vadd.f32 %v919_v8, %v407_v38  ;;  %v411_v47 = vmul.f32 %v910_v6, %v301_v34  ;;  %v518_v48 = vadd.f32 %v921_v9, %v408_v41  ;;  %v519_v49 = vadd.f32 %v919_v8, %v409_v42 }
  0x52   : > { %710 = vst [vmem:[%s944_s27 + $0x278] sm:$0xff] %v612_v40  ;;  %v520_v50 = vadd.f32 %v921_v9, %v410_v43  ;;  %v412_v51 = vmul.f32 %v912_v7, %v302_v39  ;;  %v613_v55 = vmax.f32 %v515_v44, 0.0  ;;  %v614_v56 = vmax.f32 %v516_v45, 0.0 }
  0x53   : > { %v615_v57 = vmax.f32 %v517_v46, 0.0  ;;  %v521_v58 = vadd.f32 %v919_v8, %v411_v47  ;;  %v616_v62 = vmax.f32 %v518_v48, 0.0  ;;  %v617_v63 = vmax.f32 %v519_v49, 0.0 }
  0x54   : > { %v618_v0 = vmax.f32 %v520_v50, 0.0  ;;  %v522_v1 = vadd.f32 %v921_v9, %v412_v51  ;;  %711 = vst [vmem:[%s944_s27 + $0x280] sm:$0xff] %v613_v55  ;;  %712 = vst [vmem:[%s944_s27 + $0x288] sm:$0xff] %v614_v56  ;;  %v413_v4 = vmul.f32 %v910_v6, %v303_v52  ;;  %v414_v5 = vmul.f32 %v912_v7, %v304_v53 }
  0x55   : > { %713 = vst [vmem:[%s944_s27 + $0x290] sm:$0xff] %v615_v57  ;;  %v619_v3 = vmax.f32 %v521_v58, 0.0  ;;  %v415_v10 = vmul.f32 %v910_v6, %v305_v54  ;;  %714 = vst [vmem:[%s944_s27 + $0x298] sm:$0xff] %v616_v62  ;;  %v416_v13 = vmul.f32 %v912_v7, %v306_v59  ;;  %v417_v14 = vmul.f32 %v910_v6, %v307_v60 }
  0x56   : > { %715 = vst [vmem:[%s944_s27 + $0x2a0] sm:$0xff] %v617_v63  ;;  %716 = vst [vmem:[%s944_s27 + $0x2a8] sm:$0xff] %v618_v0  ;;  %v620_v12 = vmax.f32 %v522_v1, 0.0  ;;  %v418_v15 = vmul.f32 %v912_v7, %v308_v61  ;;  %v523_v16 = vadd.f32 %v919_v8, %v413_v4  ;;  %v524_v17 = vadd.f32 %v921_v9, %v414_v5 }
  0x57   : > { %717 = vst [vmem:[%s944_s27 + $0x2b0] sm:$0xff] %v619_v3  ;;  %v525_v18 = vadd.f32 %v919_v8, %v415_v10  ;;  %v419_v19 = vmul.f32 %v910_v6, %v309_v2  ;;  %v526_v20 = vadd.f32 %v921_v9, %v416_v13  ;;  %v527_v21 = vadd.f32 %v919_v8, %v417_v14 }
  0x58   : > { %718 = vst [vmem:[%s944_s27 + $0x2b8] sm:$0xff] %v620_v12  ;;  %v528_v22 = vadd.f32 %v921_v9, %v418_v15  ;;  %v420_v23 = vmul.f32 %v912_v7, %v310_v11  ;;  %v621_v26 = vmax.f32 %v523_v16, 0.0  ;;  %v622_v27 = vmax.f32 %v524_v17, 0.0 }
  0x59   : > { %v623_v28 = vmax.f32 %v525_v18, 0.0  ;;  %v529_v29 = vadd.f32 %v919_v8, %v419_v19  ;;  %v624_v30 = vmax.f32 %v526_v20, 0.0  ;;  %v625_v31 = vmax.f32 %v527_v21, 0.0 }
  0x5a   : > { %v626_v32 = vmax.f32 %v528_v22, 0.0  ;;  %v530_v33 = vadd.f32 %v921_v9, %v420_v23  ;;  %719 = vst [vmem:[%s944_s27 + $0x2c0] sm:$0xff] %v621_v26  ;;  %720 = vst [vmem:[%s944_s27 + $0x2c8] sm:$0xff] %v622_v27  ;;  %v421_v35 = vmul.f32 %v910_v6, %v311_v24  ;;  %v422_v36 = vmul.f32 %v912_v7, %v312_v25 }
  0x5b   : > { %721 = vst [vmem:[%s944_s27 + $0x2d0] sm:$0xff] %v623_v28  ;;  %v627_v34 = vmax.f32 %v529_v29, 0.0  ;;  %722 = vst [vmem:[%s944_s27 + $0x2d8] sm:$0xff] %v624_v30 }
  0x5c   : > { %723 = vst [vmem:[%s944_s27 + $0x2e0] sm:$0xff] %v625_v31  ;;  %724 = vst [vmem:[%s944_s27 + $0x2e8] sm:$0xff] %v626_v32  ;;  %v628_v37 = vmax.f32 %v530_v33, 0.0  ;;  %v531_v38 = vadd.f32 %v919_v8, %v421_v35  ;;  %v532_v39 = vadd.f32 %v921_v9, %v422_v36 }
  0x5d   : > { %725 = vst [vmem:[%s944_s27 + $0x2f0] sm:$0xff] %v627_v34 }
  0x5e   : > { %726 = vst [vmem:[%s944_s27 + $0x2f8] sm:$0xff] %v628_v37  ;;  %v629_v40 = vmax.f32 %v531_v38, 0.0  ;;  %v630_v41 = vmax.f32 %v532_v39, 0.0 }
  0x60   : > { %727 = vst [vmem:[%s944_s27 + $0x300] sm:$0xff] %v629_v40  ;;  %728 = vst [vmem:[%s944_s27 + $0x308] sm:$0xff] %v630_v41 }
  0x61 PF: > { %s13_s14 = sadd.s32 1, %s861_s14   ;;  %s1333_s12 = smov %s857_s13 }
  0x62   : > { %p10_p5 = scmp.ge.s32.totalorder %s13_s14, 4   ;;  %s1334_s13 = smov %s1336_s15 }
  0x64   :  { %12 = sbr.rel (!%p10_p5) target bundleno = 2 (0x2), region = 62 }

// kernel: fused_relu_conv_bn_relu.2
= control target key start
LH: loop header
LB: loop body
LE: loop exit
PB: predicated region body
PF: predicated region fallthrough
CT: control target
= control target key end

     0   :  { %s10558_s15 = smov 0   ;;  %s10560_s16 = smov 0   ;;  %s14791_s0 = inlined_call_operand.vmem [shape: f32[1,32,32,256], index: 0, kind: input, shape index: {}]   ;;  %s14792_s1 = inlined_call_operand.vmem [shape: bf16[2304,256], index: 1, kind: input, shape index: {}]   ;;  %s14793_s2 = inlined_call_operand.vmem [shape: f32[784,256], index: 2, kind: output, shape index: {0}]   ;;  %s14794_s3 = inlined_call_operand.vmem [shape: f32[2,8,256], index: 3, kind: output, shape index: {1}]   ;;  %s14795_s4 = inlined_call_operand.vmem [shape: f32[2,8,256], index: 4, kind: output, shape index: {2}]  }
   0x1   :  { %s10562_s17 = smov 0  }
   0x2 LB: > { %s24_s18 = sadd.s32 1, %s10526_s16  ;;  %p8787_p0 = scmp.ge.s32.totalorder %s10530_s17, 1  ;;  %s10530_s17 = sphi %s10562_s17, %s15_s17   ;;  %s10526_s16 = sphi %s10560_s16, %s15722_s16   ;;  %s10522_s15 = sphi %s10558_s15, %s15721_s15  }
   0x3   : > { %p25_p1 = scmp.ge.s32.totalorder %s24_s18, 2  ;;  %p191_p2 = scmp.lt.s32.totalorder %s10530_s17, 3 }
   0x5   : > { %s15724_s18 = smov (%p25_p1, %s24_s18), 0  ;;  %p192_p3 = pnand %p8787_p0, %p191_p2 }
   0x7   : > { %195 = sbr.rel (%p192_p3) target bundleno = 1225 (0x4c9), region = 28 }
   0xe   : > { %v10044_v0 = vld [vmem:[%s14792_s1 + $0x4] ss:$8 sps:$4 sm:$0xff]   ;;  %v10048_v2 = vld [vmem:[%s14792_s1] ss:$8 sps:$4 sm:$0xff]   ;;  %v10050_v4 = vld [vmem:[%s14792_s1 + $0x14] ss:$8 sps:$4 sm:$0xff]   ;;  %v693_v44 = vlaneseq }
   0xf   : > { %v10046_v1 = vld [vmem:[%s14792_s1 + $0x404] ss:$8 sps:$4 sm:$0xff]   ;;  %5682 = vmatprep.subr.bf16.mxu1 %v10044_v0  ;;  %v10049_v3 = vld [vmem:[%s14792_s1 + $0x400] ss:$8 sps:$4 sm:$0xff]   ;;  %v10052_v5 = vld [vmem:[%s14792_s1 + $0x414] ss:$8 sps:$4 sm:$0xff]  }
  0x10   : > { %6806 = vmatprep.subr.bf16.mxu0 %v10046_v1  ;;  %5683 = vmatpush1.bf16.msra.mxu1 %v10048_v2  ;;  %v10054_v6 = vld [vmem:[%s14792_s1 + $0x10] ss:$8 sps:$4 sm:$0xff]   ;;  %v10056_v8 = vld [vmem:[%s14792_s1 + $0x24] ss:$8 sps:$4 sm:$0xff]   ;;  %v10060_v10 = vld [vmem:[%s14792_s1 + $0x20] ss:$8 sps:$4 sm:$0xff]  }
  0x11   : > { %6807 = vmatpush1.bf16.msra.mxu0 %v10049_v3  ;;  %5684 = vmatprep.subr.bf16.mxu1 %v10050_v4  ;;  %v10055_v7 = vld [vmem:[%s14792_s1 + $0x410] ss:$8 sps:$4 sm:$0xff]   ;;  %v10058_v9 = vld [vmem:[%s14792_s1 + $0x424] ss:$8 sps:$4 sm:$0xff]   ;;  %v10061_v11 = vld [vmem:[%s14792_s1 + $0x420] ss:$8 sps:$4 sm:$0xff]  }
  0x12   : > { %6808 = vmatprep.subr.bf16.mxu0 %v10052_v5  ;;  %v10062_v12 = vld [vmem:[%s14792_s1 + $0x34] ss:$8 sps:$4 sm:$0xff]   ;;  %v10066_v14 = vld [vmem:[%s14792_s1 + $0x30] ss:$8 sps:$4 sm:$0xff]   ;;  %v10068_v16 = vld [vmem:[%s14792_s1 + $0x44] ss:$8 sps:$4 sm:$0xff]  }
  0x13   : > { %v10064_v13 = vld [vmem:[%s14792_s1 + $0x434] ss:$8 sps:$4 sm:$0xff]   ;;  %v10067_v15 = vld [vmem:[%s14792_s1 + $0x430] ss:$8 sps:$4 sm:$0xff]   ;;  %v10070_v17 = vld [vmem:[%s14792_s1 + $0x444] ss:$8 sps:$4 sm:$0xff]  }
  0x14   : > { %5685 = vmatpush1.bf16.msra.mxu1 %v10054_v6  ;;  %v10072_v18 = vld [vmem:[%s14792_s1 + $0x40] ss:$8 sps:$4 sm:$0xff]   ;;  %v10074_v20 = vld [vmem:[%s14792_s1 + $0x54] ss:$8 sps:$4 sm:$0xff]   ;;  %v10078_v22 = vld [vmem:[%s14792_s1 + $0x50] ss:$8 sps:$4 sm:$0xff]  }
  0x15   : > { %6809 = vmatpush1.bf16.msra.mxu0 %v10055_v7  ;;  %5686 = vmatprep.subr.bf16.mxu1 %v10056_v8  ;;  %v10073_v19 = vld [vmem:[%s14792_s1 + $0x440] ss:$8 sps:$4 sm:$0xff]   ;;  %v10076_v21 = vld [vmem:[%s14792_s1 + $0x454] ss:$8 sps:$4 sm:$0xff]   ;;  %v10079_v23 = vld [vmem:[%s14792_s1 + $0x450] ss:$8 sps:$4 sm:$0xff]  }
  0x16   : > { %6810 = vmatprep.subr.bf16.mxu0 %v10058_v9  ;;  %v10080_v24 = vld [vmem:[%s14792_s1 + $0x64] ss:$8 sps:$4 sm:$0xff]   ;;  %v10084_v26 = vld [vmem:[%s14792_s1 + $0x60] ss:$8 sps:$4 sm:$0xff]   ;;  %v10086_v28 = vld [vmem:[%s14792_s1 + $0x74] ss:$8 sps:$4 sm:$0xff]  }
  0x17   : > { %v10082_v25 = vld [vmem:[%s14792_s1 + $0x464] ss:$8 sps:$4 sm:$0xff]   ;;  %v10085_v27 = vld [vmem:[%s14792_s1 + $0x460] ss:$8 sps:$4 sm:$0xff]   ;;  %v10088_v29 = vld [vmem:[%s14792_s1 + $0x474] ss:$8 sps:$4 sm:$0xff]  }
  0x18   : > { %5687 = vmatpush1.bf16.msra.mxu1 %v10060_v10  ;;  %v10090_v30 = vld [vmem:[%s14792_s1 + $0x70] ss:$8 sps:$4 sm:$0xff]   ;;  %v10092_v32 = vld [vmem:[%s14792_s1 + $0x84] ss:$8 sps:$4 sm:$0xff]   ;;  %v10096_v34 = vld [vmem:[%s14792_s1 + $0x80] ss:$8 sps:$4 sm:$0xff]  }
  0x19   : > { %6811 = vmatpush1.bf16.msra.mxu0 %v10061_v11  ;;  %5688 = vmatprep.subr.bf16.mxu1 %v10062_v12  ;;  %v10091_v31 = vld [vmem:[%s14792_s1 + $0x470] ss:$8 sps:$4 sm:$0xff]   ;;  %v10094_v33 = vld [vmem:[%s14792_s1 + $0x484] ss:$8 sps:$4 sm:$0xff]   ;;  %v10097_v35 = vld [vmem:[%s14792_s1 + $0x480] ss:$8 sps:$4 sm:$0xff]  }
  0x1a   : > { %6812 = vmatprep.subr.bf16.mxu0 %v10064_v13  ;;  %v10098_v36 = vld [vmem:[%s14792_s1 + $0x94] ss:$8 sps:$4 sm:$0xff]   ;;  %v10102_v38 = vld [vmem:[%s14792_s1 + $0x90] ss:$8 sps:$4 sm:$0xff]   ;;  %v10104_v40 = vld [vmem:[%s14792_s1 + $0xa4] ss:$8 sps:$4 sm:$0xff]  }
  0x1b   : > { %v10100_v37 = vld [vmem:[%s14792_s1 + $0x494] ss:$8 sps:$4 sm:$0xff]   ;;  %v10103_v39 = vld [vmem:[%s14792_s1 + $0x490] ss:$8 sps:$4 sm:$0xff]   ;;  %v10106_v41 = vld [vmem:[%s14792_s1 + $0x4a4] ss:$8 sps:$4 sm:$0xff]  }
  0x1c   : > { %5689 = vmatpush1.bf16.msra.mxu1 %v10066_v14  ;;  %s9188_s11 = smul.u32 896, %s10522_s15  ;;  %v10532_v42 = vmov 1983009808   ;;  %v10108_v45 = vld [vmem:[%s14792_s1 + $0xa0] ss:$8 sps:$4 sm:$0xff]   ;;  %v694_v50 = vshrl.u32 %v693_v44, 7 }
  0x1d   : > { %6813 = vmatpush1.bf16.msra.mxu0 %v10067_v15  ;;  %5690 = vmatprep.subr.bf16.mxu1 %v10068_v16  ;;  %v691_v43 = vunpack.c.l.s4 %v10532_v42  ;;  %v10109_v46 = vld [vmem:[%s14792_s1 + $0x4a0] ss:$8 sps:$4 sm:$0xff]   ;;  %v10110_v47 = vld [vmem:[%s14792_s1 + $0xb4] ss:$8 sps:$4 sm:$0xff]   ;;  %v10114_v51 = vld [vmem:[%s14792_s1 + $0xb0] ss:$8 sps:$4 sm:$0xff]  }
  0x1e   : > { %6814 = vmatprep.subr.bf16.mxu0 %v10070_v17  ;;  %v10112_v48 = vld [vmem:[%s14792_s1 + $0x4b4] ss:$8 sps:$4 sm:$0xff]   ;;  %s10720_s26 = scalar_lea.vmem %s14791_s0, %s9188_s11  ;;  %v10115_v52 = vld [vmem:[%s14792_s1 + $0x4b0] ss:$8 sps:$4 sm:$0xff]   ;;  %vm1192_vm0 = vcmask 1040384   ;;  %vm1193_vm1 = vcmask 1042434  }
  0x1f   : > { %v692_v49 = vunpack.c.0.s8 %v691_v43  ;;  %v272_v53 = vld [vmem:[%s10720_s26] sm:$0xff]  ;;  %v273_v56 = vld [vmem:[%s10720_s26 + $0x8] sm:$0xff]  ;;  %v274_v57 = vld [vmem:[%s10720_s26 + $0x10] sm:$0xff]  ;;  %vm1195_vm2 = vcmask 1044484   ;;  %vm1197_vm5 = vcmask 1046534   ;;  %s241_s22 = smul.u32 49, %s10522_s15 }
  0x20   : > { %5691 = vmatpush1.bf16.msra.mxu1 %v10072_v18  ;;  %v10116_v54 = vld [vmem:[%s14792_s1 + $0xc4] ss:$8 sps:$4 sm:$0xff]   ;;  %v275_v58 = vld [vmem:[%s10720_s26 + $0x18] sm:$0xff]  ;;  %v416_v59 = vmax.f32 %v272_v53, 0.0  ;;  %v417_v60 = vmax.f32 %v273_v56, 0.0  ;;  %v418_v61 = vmax.f32 %v274_v57, 0.0  ;;  %vm10748_vm3 = vmor %vm1192_vm0, %vm1193_vm1 }
  0x21   : > { %6815 = vmatpush1.bf16.msra.mxu0 %v10073_v19  ;;  %5692 = vmatprep.subr.bf16.mxu1 %v10074_v20  ;;  %v10118_v55 = vld [vmem:[%s14792_s1 + $0x4c4] ss:$8 sps:$4 sm:$0xff]   ;;  %v419_v62 = vmax.f32 %v275_v58, 0.0  ;;  %v290_v1 = vld [vmem:[%s10720_s26 + $0x90] sm:$0xff]  ;;  %v10741_v2 = vsub.s32 %v692_v49, %v694_v50  ;;  %v291_v3 = vld [vmem:[%s10720_s26 + $0x98] sm:$0xff]  ;;  %p242_p4 = scmp.lt.s32.totalorder %s241_s22, 97 }
  0x22   : > { %6816 = vmatprep.subr.bf16.mxu0 %v10076_v21  ;;  %v288_v63 = vld [vmem:[%s10720_s26 + $0x80] sm:$0xff]  ;;  %v289_v0 = vld [vmem:[%s10720_s26 + $0x88] sm:$0xff]  ;;  %v434_v8 = vmax.f32 %v290_v1, 0.0  ;;  %v8796_v9 = vpack.c.bf16 %v417_v60, %v416_v59  ;;  %v435_v11 = vmax.f32 %v291_v3, 0.0  ;;  %v10122_v18 = vld [vmem:[%s14792_s1 + $0xd4] ss:$8 sps:$4 sm:$0xff]  }
  0x23   : > { %v292_v4 = vld [vmem:[%s10720_s26 + $0xa0] sm:$0xff]  ;;  %v293_v5 = vld [vmem:[%s10720_s26 + $0xa8] sm:$0xff]  ;;  %v432_v6 = vmax.f32 %v288_v63, 0.0  ;;  %v433_v7 = vmax.f32 %v289_v0, 0.0  ;;  %v8797_v10 = vpack.c.bf16 %v419_v62, %v418_v61  ;;  %v10124_v19 = vld [vmem:[%s14792_s1 + $0x4d4] ss:$8 sps:$4 sm:$0xff]  }
  0x24   : > { %5693 = vmatpush1.bf16.msra.mxu1 %v10078_v22  ;;  %v436_v12 = vmax.f32 %v292_v4, 0.0  ;;  %v10120_v14 = vld [vmem:[%s14792_s1 + $0xc0] ss:$8 sps:$4 sm:$0xff]   ;;  %v437_v16 = vmax.f32 %v293_v5, 0.0  ;;  %v10765_v20 = vrot.slane %v8796_v9, %v10741_v2  ;;  %v8805_v22 = vpack.c.bf16 %v435_v11, %v434_v8  ;;  %vm10779_vm4 = vmor %vm10748_vm3, %vm1195_vm2  ;;  %v294_v61 = vld [vmem:[%s10720_s26 + $0xb0] sm:$0xff]  ;;  %s15726_s22 = smov (!%p242_p4, %s241_s22), 97 }
  0x25   : > { %6817 = vmatpush1.bf16.msra.mxu0 %v10079_v23  ;;  %5694 = vmatprep.subr.bf16.mxu1 %v10080_v24  ;;  %v10121_v15 = vld [vmem:[%s14792_s1 + $0x4c0] ss:$8 sps:$4 sm:$0xff]   ;;  %v8804_v17 = vpack.c.bf16 %v433_v7, %v432_v6  ;;  %v10768_v21 = vrot.slane %v8797_v10, %v10741_v2  ;;  %vm10826_vm6 = vmor %vm10779_vm4, %vm1197_vm5  ;;  %v295_v4 = vld [vmem:[%s10720_s26 + $0xb8] sm:$0xff]  ;;  %s9185_s23 = sshll.u32 %s15726_s22, 4  ;;  %p252_p5 = scmp.lt.s32.totalorder %s10522_s15, 1 }
  0x26   : > { %6818 = vmatprep.subr.bf16.mxu0 %v10082_v25  ;;  %15205 = vst [vmem:[#allocation2_spill] sm:$0xff] %v10765_v20  ;;  %v10771_v23 = vld [vmem:[%s10720_s26 + $0x20] sm:$0xff]  ;;  %v8806_v25 = vpack.c.bf16 %v437_v16, %v436_v12  ;;  %v10134_v6 = vld [vmem:[%s14792_s1 + $0xf4] ss:$8 sps:$4 sm:$0xff]   ;;  %v297_v12 = vld [vmem:[%s10720_s26 + $0xc8] sm:$0xff] }
  0x27   : > { %15206 = vst [vmem:[#allocation3_spill] sm:$0xff] %v10768_v21  ;;  %v10774_v24 = vrot.slane %v8804_v17, %v10741_v2  ;;  %v10133_v62 = vld [vmem:[%s14792_s1 + $0x4e0] ss:$8 sps:$4 sm:$0xff]   ;;  %v10136_v7 = vld [vmem:[%s14792_s1 + $0x4f4] ss:$8 sps:$4 sm:$0xff]   ;;  %v438_v17 = vmax.f32 %v294_v61, 0.0 }
  0x28   : > { %5695 = vmatpush1.bf16.msra.mxu1 %v10084_v26  ;;  %v296_v5 = vld [vmem:[%s10720_s26 + $0xc0] sm:$0xff]  ;;  %v10138_v13 = vld [vmem:[%s14792_s1 + $0xf0] ss:$8 sps:$4 sm:$0xff]   ;;  %s15728_s15 = smov (!%p252_p5, %s10522_s15), 1 }
  0x29   : > { %6819 = vmatpush1.bf16.msra.mxu0 %v10085_v27  ;;  %5696 = vmatprep.subr.bf16.mxu1 %v10086_v28  ;;  %v277_v27 = vld [vmem:[%s10720_s26 + $0x28] sm:$0xff]  ;;  %v278_v28 = vld [vmem:[%s10720_s26 + $0x30] sm:$0xff]  ;;  %v283_v26 = vld [vmem:[%s10720_s26 + $0x58] sm:$0xff]  ;;  %s9186_s27 = sshll.u32 %s15728_s15, 4 }
  0x2a   : > { %6820 = vmatprep.subr.bf16.mxu0 %v10088_v29  ;;  %v10126_v29 = vld [vmem:[%s14792_s1 + $0xd0] ss:$8 sps:$4 sm:$0xff]   ;;  %v10146_v61 = vld [vmem:[%s14792_s1 + $0x100] ss:$8 sps:$4 sm:$0xff]   ;;  %s256_s30 = scalar_lea.vmem %s14794_s3, %s9186_s27  ;;  %s265_s7 = scalar_lea.vmem %s14795_s4, %s9186_s27 }
  0x2c   : > { %5697 = vmatpush1.bf16.msra.mxu1 %v10090_v30  ;;  %v10127_v30 = vld [vmem:[%s14792_s1 + $0x4d0] ss:$8 sps:$4 sm:$0xff]  }
  0x2d   : > { %6821 = vmatpush1.bf16.msra.mxu0 %v10091_v31  ;;  %5698 = vmatprep.subr.bf16.mxu1 %v10092_v32  ;;  %v10793_v31 = vcombine.high %v10765_v20, %v10765_v20  ;;  %v10797_v32 = vcombine.high %v10768_v21, %v10768_v21 }
  0x2e   : > { %6822 = vmatprep.subr.bf16.mxu0 %v10094_v33  ;;  %v10800_v33 = vrot.slane %v8805_v22, %v10741_v2 }
  0x2f   : > { %15209 = vst [vmem:[#allocation4_spill] sm:$0xff] %v10793_v31  ;;  %15210 = vst [vmem:[#allocation5_spill] sm:$0xff] %v10797_v32  ;;  %v1755_v42 = vcombine.low %v10765_v20, %v10793_v31  ;;  %v1756_v43 = vcombine.low %v10768_v21, %v10797_v32  ;;  %v336_v20 = vld [vmem:[%s10720_s26 + $0x200] sm:$0xff]  ;;  %v337_v21 = vld [vmem:[%s10720_s26 + $0x208] sm:$0xff] }
  0x30   : > { %5699 = vmatpush1.bf16.msra.mxu1 %v10096_v34  ;;  %v10128_v34 = vld [vmem:[%s14792_s1 + $0xe4] ss:$8 sps:$4 sm:$0xff]   ;;  %v1248_v49 = vrot.slane %v10800_v33, 7 }
  0x31   : > { %6823 = vmatpush1.bf16.msra.mxu0 %v10097_v35  ;;  %5700 = vmatprep.subr.bf16.mxu1 %v10098_v36  ;;  %v10130_v35 = vld [vmem:[%s14792_s1 + $0x4e4] ss:$8 sps:$4 sm:$0xff]   ;;  %v10810_v36 = vcombine.high %v10774_v24, %v10774_v24  ;;  %v10842_v53 = vrot.slane %v1755_v42, %v10741_v2 }
  0x32   : > { %6824 = vmatprep.subr.bf16.mxu0 %v10100_v37  ;;  %v10813_v37 = vrot.slane %v8806_v25, %v10741_v2  ;;  %v1250_v59 = vrot.slane %v1248_v49, 2  ;;  %v440_v25 = vmax.f32 %v296_v5, 0.0  ;;  %v10148_v42 = vld [vmem:[%s14792_s1 + $0x104] ss:$8 sps:$4 sm:$0xff]   ;;  %v10145_v5 = vld [vmem:[%s14792_s1 + $0x514] ss:$8 sps:$4 sm:$0xff]  }
  0x34   : > { %5701 = vmatpush1.bf16.msra.mxu1 %v10102_v38  ;;  %v8854_v38 = vrot.slane %v10774_v24, 9  ;;  %v1254_v50 = vrot.slane %v10813_v37, 7 }
  0x35   : > { %6825 = vmatpush1.bf16.msra.mxu0 %v10103_v39  ;;  %5702 = vmatprep.subr.bf16.mxu1 %v10104_v40  ;;  %v279_v39 = vld [vmem:[%s10720_s26 + $0x38] sm:$0xff]  ;;  %v280_v40 = vld [vmem:[%s10720_s26 + $0x40] sm:$0xff] }
  0x36   : > { %6826 = vmatprep.subr.bf16.mxu0 %v10106_v41  ;;  %v420_v41 = vmax.f32 %v10771_v23, 0.0  ;;  %v424_v56 = vmax.f32 %v280_v40, 0.0  ;;  %v10856_v0 = vrot.slane %v1254_v50, 2  ;;  %v439_v23 = vmax.f32 %v295_v4, 0.0 }
  0x38   : > { %5703 = vmatpush1.bf16.msra.mxu1 %v10108_v45  ;;  %v421_v45 = vmax.f32 %v277_v27, 0.0  ;;  %v10139_v27 = vld [vmem:[%s14792_s1 + $0x4f0] ss:$8 sps:$4 sm:$0xff]  }
  0x39   : > { %6827 = vmatpush1.bf16.msra.mxu0 %v10109_v46  ;;  %5704 = vmatprep.subr.bf16.mxu1 %v10110_v47  ;;  %v422_v46 = vmax.f32 %v278_v28, 0.0  ;;  %v10832_v47 = vcombine.high %v10800_v33, %v10800_v33 }
  0x3a   : > { %6828 = vmatprep.subr.bf16.mxu0 %v10112_v48  ;;  %v1245_v48 = vrot.slane %v10810_v36, 7  ;;  %v8798_v11 = vpack.c.bf16 %v421_v45, %v420_v41  ;;  %v8807_v41 = vpack.c.bf16 %v439_v23, %v438_v17  ;;  %v299_v17 = vld [vmem:[%s10720_s26 + $0xd8] sm:$0xff]  ;;  %v301_v23 = vld [vmem:[%s10720_s26 + $0xe8] sm:$0xff] }
  0x3b   : > { %v1251_v60 = vrot.slane %v10832_v47, 7 }
  0x3c   : > { %5705 = vmatpush1.bf16.msra.mxu1 %v10114_v51  ;;  %v281_v51 = vld [vmem:[%s10720_s26 + $0x48] sm:$0xff]  ;;  %v1246_v57 = vsel %vm10826_vm6, %v8854_v38, %v1245_v48  ;;  %v1247_v58 = vrot.slane %v1245_v48, 2  ;;  %v10882_v22 = vrot.slane %v8798_v11, %v10741_v2  ;;  %v10143_v11 = vld [vmem:[%s14792_s1 + $0x510] ss:$8 sps:$4 sm:$0xff]  }
  0x3d   : > { %6829 = vmatpush1.bf16.msra.mxu0 %v10115_v52  ;;  %5706 = vmatprep.subr.bf16.mxu1 %v10116_v54  ;;  %v10132_v52 = vld [vmem:[%s14792_s1 + $0xe0] ss:$8 sps:$4 sm:$0xff]   ;;  %v10845_v54 = vrot.slane %v1756_v43, %v10741_v2  ;;  %v425_v3 = vmax.f32 %v281_v51, 0.0  ;;  %v1252_v9 = vsel %vm10826_vm6, %v1250_v59, %v1251_v60  ;;  %v1253_v10 = vrot.slane %v1251_v60, 2  ;;  %v10142_v38 = vld [vmem:[%s14792_s1 + $0x504] ss:$8 sps:$4 sm:$0xff]  }
  0x3e   : > { %6830 = vmatprep.subr.bf16.mxu0 %v10118_v55  ;;  %v423_v55 = vmax.f32 %v279_v39, 0.0  ;;  %v1249_v8 = vsel %vm10826_vm6, %v1247_v58, %v1248_v49  ;;  %15213 = vst [vmem:[#allocation6_spill] sm:$0xff] %v10882_v22  ;;  %v10902_v39 = vcombine.high %v10882_v22, %v10882_v22  ;;  %v427_v49 = vmax.f32 %v283_v26, 0.0  ;;  %v10140_v58 = vld [vmem:[%s14792_s1 + $0x500] ss:$8 sps:$4 sm:$0xff]  }
  0x3f   : > { %v1772_v63 = vcombine.high %v10842_v53, %v10845_v54  ;;  %v1771_v1 = vcombine.low %v10842_v53, %v10845_v54  ;;  %v8800_v16 = vpack.c.bf16 %v425_v3, %v424_v56 }
  0x40   : > { %5707 = vmatpush1.bf16.msra.mxu1 %v10120_v14  ;;  %v2301_v14 = vcombine.low %v1246_v57, %v1249_v8  ;;  %15216 = vst [vmem:[#allocation9_spill] sm:$0xff] %v10902_v39 }
  0x41   : > { %6831 = vmatpush1.bf16.msra.mxu0 %v10121_v15  ;;  %5708 = vmatprep.subr.bf16.mxu1 %v10122_v18  ;;  %v8799_v15 = vpack.c.bf16 %v423_v55, %v422_v46  ;;  %v10877_v18 = vld [vmem:[%s10720_s26 + $0x50] sm:$0xff]  ;;  %v10905_v40 = vrot.slane %v8800_v16, %v10741_v2  ;;  %v10916_v46 = vcombine.high %v10813_v37, %v10813_v37  ;;  %v10151_v16 = vld [vmem:[%s14792_s1 + $0x524] ss:$8 sps:$4 sm:$0xff]  }
  0x42   : > { %6832 = vmatprep.subr.bf16.mxu0 %v10124_v19  ;;  %5714 = vmatprep.mubr.bf16.mxu1 %v1772_v63  ;;  %v1255_v19 = vsel %vm10826_vm6, %v1253_v10, %v1254_v50  ;;  %v10889_v28 = vrot.slane %v2301_v14, %v10741_v2  ;;  %v426_v43 = vmax.f32 %v10877_v18, 0.0  ;;  %v1773_v50 = vcombine.low %v10882_v22, %v10902_v39  ;;  %v10209_v39 = vld [vmem:[%s14792_s1 + $0x5f0] ss:$8 sps:$4 sm:$0xff]  }
  0x43   : > { %15217 = vst [vmem:[#allocation10_spill] sm:$0xff] %v10905_v40  ;;  %v1257_v60 = vrot.slane %v10916_v46, 7 }
  0x44   : > { %5709 = vmatpush1.bf16.msra.mxu1 %v10126_v29  ;;  %15214 = vst [vmem:[#allocation7_spill] sm:$0xff] %v10889_v28  ;;  %v2318_v29 = vcombine.low %v1252_v9, %v1255_v19  ;;  %v8801_v54 = vpack.c.bf16 %v427_v49, %v426_v43  ;;  %v443_v43 = vmax.f32 %v299_v17, 0.0 }
  0x45   : > { %6833 = vmatpush1.bf16.msra.mxu0 %v10127_v30  ;;  %5710 = vmatprep.subr.bf16.mxu1 %v10128_v34  ;;  %v10892_v30 = vrot.slane %v8799_v15, %v10741_v2  ;;  %v441_v34 = vmax.f32 %v297_v12, 0.0  ;;  %v1258_v8 = vsel %vm10826_vm6, %v10856_v0, %v1257_v60  ;;  %v1259_v9 = vrot.slane %v1257_v60, 2  ;;  %v298_v12 = vld [vmem:[%s10720_s26 + $0xd0] sm:$0xff] }
  0x46   : > { %6834 = vmatprep.subr.bf16.mxu0 %v10130_v35  ;;  %v10895_v35 = vld [vmem:[%s10720_s26 + $0x60] sm:$0xff]  ;;  %v10912_v45 = vrot.slane %v2318_v29, %v10741_v2  ;;  %v10989_v29 = vcombine.high %v10905_v40, %v10905_v40 }
  0x47   : > { %15215 = vst [vmem:[#allocation8_spill] sm:$0xff] %v10892_v30  ;;  %v8808_v48 = vpack.c.bf16 %v441_v34, %v440_v25  ;;  %v1774_v51 = vcombine.low %v10892_v30, %v10905_v40  ;;  %v428_v55 = vmax.f32 %v10895_v35, 0.0  ;;  %v10155_v25 = vld [vmem:[%s14792_s1 + $0x110] ss:$8 sps:$4 sm:$0xff]   ;;  %v442_v34 = vmax.f32 %v298_v12, 0.0 }
  0x48   : > { %5711 = vmatpush1.bf16.msra.mxu1 %v10132_v52  ;;  %15218 = vst [vmem:[#allocation11_spill] sm:$0xff] %v10912_v45  ;;  %v10923_v52 = vrot.slane %v8807_v41, %v10741_v2  ;;  %v3384_v56 = vcombine.high %v10889_v28, %v10912_v45  ;;  %v3383_v57 = vcombine.low %v10889_v28, %v10912_v45  ;;  %15219 = vst [vmem:[#allocation12_spill] sm:$0xff] %v10989_v29  ;;  %v10163_v35 = vld [vmem:[%s14792_s1 + $0x124] ss:$8 sps:$4 sm:$0xff]  }
  0x49   : > { %6835 = vmatpush1.bf16.msra.mxu0 %v10133_v62  ;;  %5712 = vmatprep.subr.bf16.mxu1 %v10134_v6  ;;  %v10934_v59 = vrot.slane %v8808_v48, %v10741_v2  ;;  %v10941_v62 = vrot.slane %v1773_v50, %v10741_v2  ;;  %v10944_v63 = vrot.slane %v1774_v51, %v10741_v2  ;;  %v285_v6 = vld [vmem:[%s10720_s26 + $0x68] sm:$0xff]  ;;  %v286_v48 = vld [vmem:[%s10720_s26 + $0x70] sm:$0xff] }
  0x4a   : > { %6836 = vmatprep.subr.bf16.mxu0 %v10136_v7  ;;  %v1180_v3 = vcombine.high %v10923_v52, %v10923_v52  ;;  %v1260_v4 = vrot.slane %v10923_v52, 7  ;;  %6838 = vmatprep.mubr.bf16.mxu0 %v3384_v56  ;;  %v429_v53 = vmax.f32 %v285_v6, 0.0  ;;  %v10997_v41 = vrot.slane %v8801_v54, %v10741_v2  ;;  %v10149_v56 = vld [vmem:[%s14792_s1 + $0x520] ss:$8 sps:$4 sm:$0xff]   ;;  %v10152_v54 = vld [vmem:[%s14792_s1 + $0x530] ss:$8 sps:$4 sm:$0xff]  }
  0x4b   : > { %v10955_v7 = vcombine.high %v10934_v59, %v10934_v59  ;;  %v8855_v10 = vrot.slane %v10934_v59, 9  ;;  %v1790_v0 = vcombine.high %v10941_v62, %v10944_v63  ;;  %v1789_v51 = vcombine.low %v10941_v62, %v10944_v63  ;;  %v10154_v62 = vld [vmem:[%s14792_s1 + $0x534] ss:$8 sps:$4 sm:$0xff]  }
  0x4c   : > { %5713 = vmatpush1.bf16.msra.mxu1 %v10138_v13  ;;  %v10157_v13 = vld [vmem:[%s14792_s1 + $0x114] ss:$8 sps:$4 sm:$0xff]   ;;  %v1262_v14 = vrot.slane %v1260_v4, 2  ;;  %v1263_v15 = vrot.slane %v1180_v3, 7  ;;  %v1261_v18 = vsel %vm10826_vm6, %v1259_v9, %v1260_v4  ;;  %15220 = vst [vmem:[#allocation13_spill] sm:$0xff] %v10997_v41  ;;  %v445_v3 = vmax.f32 %v301_v23, 0.0 }
  0x4d   : > { %6837 = vmatpush1.bf16.msra.mxu0 %v10139_v27  ;;  %5963 = vmatprep.subr.bf16.mxu1 %v10148_v42  ;;  %v1267_v19 = vrot.slane %v10955_v7, 7  ;;  %v2319_v27 = vcombine.low %v1258_v8, %v1261_v18  ;;  %v8802_v42 = vpack.c.bf16 %v429_v53, %v428_v55  ;;  %v11011_v55 = vcombine.high %v10997_v41, %v10997_v41  ;;  %v11022_v63 = vld [vmem:[%s10720_s26 + $0xf0] sm:$0xff]  ;;  %v11028_v9 = vld [vmem:[%s10720_s26 + $0xf8] sm:$0xff] }
  0x4e   : > { %7087 = vmatprep.subr.bf16.mxu0 %v10142_v38  ;;  %v1264_v26 = vsel %vm10826_vm6, %v1262_v14, %v1263_v15  ;;  %v430_v8 = vmax.f32 %v286_v48, 0.0  ;;  %v10172_v18 = vld [vmem:[%s14792_s1 + $0x134] ss:$8 sps:$4 sm:$0xff]   ;;  %v1810_v23 = vcombine.low %v10774_v24, %v10810_v36 }
  0x4f   : > { %5715 = vmatmul.mubr.bf16.vlgmr.msra.gmra.mrb[0].mxu1 %v1771_v1  ;;  %v300_v1 = vld [vmem:[%s10720_s26 + $0xe0] sm:$0xff]  ;;  %v1268_v38 = vsel %vm10826_vm6, %v8855_v10, %v1267_v19  ;;  %v11001_v49 = vrot.slane %v2319_v27, %v10741_v2  ;;  %15222 = vst [vmem:[#allocation15_spill] sm:$0xff] %v11011_v55  ;;  %v11014_v60 = vrot.slane %v8802_v42, %v10741_v2  ;;  %v1269_v6 = vrot.slane %v1267_v19, 2 }
  0x50   : > { %6839 = vmatmul.mubr.bf16.vlgmr.msra.gmra.mrb[0].mxu0 %v3383_v57  ;;  %5964 = vmatpush1.bf16.msra.mxu1 %v10146_v61  ;;  %v2336_v50 = vcombine.low %v1264_v26, %v1268_v38  ;;  %v444_v57 = vmax.f32 %v300_v1, 0.0  ;;  %v1791_v61 = vcombine.low %v10989_v29, %v10997_v41  ;;  %v447_v38 = vmax.f32 %v11028_v9, 0.0  ;;  %v322_v41 = vld [vmem:[%s10720_s26 + $0x190] sm:$0xff] }
  0x51   : > { %7088 = vmatpush1.bf16.msra.mxu0 %v10140_v58  ;;  %5724 = vmatprep.mubr.bf16.mxu1 %v1790_v0  ;;  %15221 = vst [vmem:[#allocation14_spill] sm:$0xff] %v11001_v49  ;;  %v287_v58 = vld [vmem:[%s10720_s26 + $0x78] sm:$0xff]  ;;  %15223 = vst [vmem:[#allocation16_spill] sm:$0xff] %v11014_v60  ;;  %v1792_v10 = vcombine.low %v11011_v55, %v11014_v60  ;;  %v10161_v0 = vld [vmem:[%s14792_s1 + $0x120] ss:$8 sps:$4 sm:$0xff]   ;;  %v11045_v17 = vcombine.high %v11014_v60, %v11014_v60 }
  0x52   : > { %7089 = vmatprep.subr.bf16.mxu0 %v10145_v5  ;;  %5965 = vmatprep.subr.bf16.mxu1 %v10157_v13  ;;  %v11025_v4 = vrot.slane %v2336_v50, %v10741_v2  ;;  %v8809_v5 = vpack.c.bf16 %v443_v43, %v442_v34  ;;  %v8810_v12 = vpack.c.bf16 %v445_v3, %v444_v57  ;;  %v431_v13 = vmax.f32 %v287_v58, 0.0  ;;  %v304_v34 = vld [vmem:[%s10720_s26 + $0x100] sm:$0xff]  ;;  %v305_v50 = vld [vmem:[%s10720_s26 + $0x108] sm:$0xff]  ;;  %v306_v3 = vld [vmem:[%s10720_s26 + $0x110] sm:$0xff] }
  0x53   : > { %15225 = vst [vmem:[#allocation18_spill] sm:$0xff] %v11045_v17  ;;  %v1806_v19 = vrot.slane %v1792_v10, %v10741_v2  ;;  %v448_v9 = vmax.f32 %v304_v34, 0.0 }
  0x54   : > { %5966 = vmatpush1.bf16.msra.mxu1 %v10155_v25  ;;  %15224 = vst [vmem:[#allocation17_spill] sm:$0xff] %v11025_v4  ;;  %v3386_v14 = vcombine.high %v11001_v49, %v11025_v4  ;;  %v3385_v15 = vcombine.low %v11001_v49, %v11025_v4  ;;  %v11052_v53 = vrot.slane %v8810_v12, %v10741_v2  ;;  %v10160_v25 = vld [vmem:[%s14792_s1 + $0x544] ss:$8 sps:$4 sm:$0xff]  }
  0x55   : > { %7090 = vmatpush1.bf16.msra.mxu0 %v10143_v11  ;;  %5967 = vmatprep.subr.bf16.mxu1 %v10163_v35  ;;  %v1799_v11 = vrot.slane %v1791_v61, %v10741_v2  ;;  %v8803_v1 = vpack.c.bf16 %v431_v13, %v430_v8  ;;  %v446_v35 = vmax.f32 %v11022_v63, 0.0  ;;  %v10158_v63 = vld [vmem:[%s14792_s1 + $0x540] ss:$8 sps:$4 sm:$0xff]   ;;  %v449_v13 = vmax.f32 %v305_v50, 0.0 }
  0x56   : > { %7091 = vmatprep.subr.bf16.mxu0 %v10151_v16  ;;  %v11041_v16 = vrot.slane %v8809_v5, %v10741_v2  ;;  %6848 = vmatprep.mubr.bf16.mxu0 %v3386_v14  ;;  %v11072_v42 = vcombine.high %v11052_v53, %v11052_v53  ;;  %v1276_v43 = vrot.slane %v11052_v53, 7  ;;  %v10181_v14 = vld [vmem:[%s14792_s1 + $0x144] ss:$8 sps:$4 sm:$0xff]  }
  0x57   : > { %5725 = vmatmul.mubr.bf16.gmra.mrb[4].mxu1 %v1789_v51  ;;  %v1808_v24 = vcombine.high %v1799_v11, %v1806_v19  ;;  %v1807_v48 = vcombine.low %v1799_v11, %v1806_v19  ;;  %v10170_v51 = vld [vmem:[%s14792_s1 + $0x130] ss:$8 sps:$4 sm:$0xff]   ;;  %v11083_v61 = vrot.slane %v8803_v1, %v10741_v2  ;;  %v450_v19 = vmax.f32 %v306_v3, 0.0  ;;  %v10179_v1 = vld [vmem:[%s14792_s1 + $0x140] ss:$8 sps:$4 sm:$0xff]  }
  0x58   : > { %v11064_v26 = vcombine.high %v11041_v16, %v11041_v16  ;;  %v1270_v27 = vrot.slane %v11041_v16, 7  ;;  %6849 = vmatmul.mubr.bf16.gmra.mrb[4].mxu0 %v3385_v15  ;;  %5968 = vmatpush1.bf16.msra.mxu1 %v10161_v0  ;;  %v1278_v5 = vrot.slane %v1276_v43, 2  ;;  %v1279_v8 = vrot.slane %v11072_v42, 7  ;;  %v10166_v0 = vld [vmem:[%s14792_s1 + $0x554] ss:$8 sps:$4 sm:$0xff]   ;;  %v316_v49 = vld [vmem:[%s10720_s26 + $0x160] sm:$0xff] }
  0x59   : > { %7092 = vmatpush1.bf16.msra.mxu0 %v10149_v56  ;;  %15226 = vst [vmem:[#allocation19_spill] sm:$0xff] %v11083_v61  ;;  %5969 = vmatprep.subr.bf16.mxu1 %v10172_v18  ;;  %v1809_v12 = vcombine.low %v11045_v17, %v11083_v61  ;;  %v8812_v34 = vpack.c.bf16 %v449_v13, %v448_v9  ;;  %v10169_v3 = vld [vmem:[%s14792_s1 + $0x564] ss:$8 sps:$4 sm:$0xff]   ;;  %v10188_v9 = vld [vmem:[%s14792_s1 + $0x150] ss:$8 sps:$4 sm:$0xff]  }
  0x5a   : > { %7093 = vmatprep.subr.bf16.mxu0 %v10154_v62  ;;  %v1271_v56 = vsel %vm10826_vm6, %v1269_v6, %v1270_v27  ;;  %v1272_v57 = vrot.slane %v1270_v27, 2  ;;  %v1273_v58 = vrot.slane %v11064_v26, 7  ;;  %v307_v62 = vld [vmem:[%s10720_s26 + $0x118] sm:$0xff]  ;;  %5734 = vmatprep.mubr.bf16.mxu1 %v1808_v24  ;;  %v11092_v6 = vrot.slane %v1810_v23, %v10741_v2  ;;  %v321_v61 = vld [vmem:[%s10720_s26 + $0x188] sm:$0xff] }
  0x5b   : > { %v1280_v15 = vsel %vm10826_vm6, %v1278_v5, %v1279_v8  ;;  %v8811_v27 = vpack.c.bf16 %v447_v38, %v446_v35  ;;  %v11123_v35 = vrot.slane %v8812_v34, %v10741_v2  ;;  %v1827_v5 = vcombine.low %v10800_v33, %v10832_v47 }
  0x5c   : > { %15227 = vst [vmem:[#allocation20_spill] sm:$0xff] %v11092_v6  ;;  %v1274_v10 = vsel %vm10826_vm6, %v1272_v57, %v1273_v58  ;;  %v1275_v11 = vrot.slane %v1273_v58, 2  ;;  %5970 = vmatpush1.bf16.msra.mxu1 %v10170_v51  ;;  %v1281_v57 = vrot.slane %v1279_v8, 2  ;;  %v10164_v51 = vld [vmem:[%s14792_s1 + $0x550] ss:$8 sps:$4 sm:$0xff]   ;;  %v308_v58 = vld [vmem:[%s10720_s26 + $0x120] sm:$0xff]  ;;  %v1828_v8 = vcombine.low %v10813_v37, %v10916_v46 }
  0x5d   : > { %7094 = vmatpush1.bf16.msra.mxu0 %v10152_v54  ;;  %v2337_v18 = vcombine.low %v1271_v56, %v1274_v10  ;;  %v451_v54 = vmax.f32 %v307_v62, 0.0  ;;  %5971 = vmatprep.subr.bf16.mxu1 %v10181_v14  ;;  %v11145_v10 = vcombine.high %v11123_v35, %v11123_v35  ;;  %v8856_v13 = vrot.slane %v11123_v35, 9  ;;  %v310_v14 = vld [vmem:[%s10720_s26 + $0x130] sm:$0xff] }
  0x5e   : > { %7095 = vmatprep.subr.bf16.mxu0 %v10160_v25  ;;  %v1277_v23 = vsel %vm10826_vm6, %v1275_v11, %v1276_v43  ;;  %v1817_v25 = vrot.slane %v1809_v12, %v10741_v2 }
  0x5f   : > { %5735 = vmatmul.mubr.bf16.gmra.mrb[8].mxu1 %v1807_v48  ;;  %v11113_v24 = vrot.slane %v2337_v18, %v10741_v2  ;;  %v2354_v50 = vcombine.low %v1277_v23, %v1280_v15  ;;  %v8813_v56 = vpack.c.bf16 %v451_v54, %v450_v19  ;;  %v11120_v48 = vrot.slane %v8811_v27, %v10741_v2  ;;  %v10190_v15 = vld [vmem:[%s14792_s1 + $0x154] ss:$8 sps:$4 sm:$0xff]  }
  0x60   : > { %v1826_v43 = vcombine.high %v1817_v25, %v11092_v6  ;;  %v1825_v38 = vcombine.low %v1817_v25, %v11092_v6  ;;  %5972 = vmatpush1.bf16.msra.mxu1 %v10179_v1  ;;  %v11164_v1 = vrot.slane %v1827_v5, %v10741_v2  ;;  %v311_v23 = vld [vmem:[%s10720_s26 + $0x138] sm:$0xff]  ;;  %v10167_v25 = vld [vmem:[%s14792_s1 + $0x560] ss:$8 sps:$4 sm:$0xff]   ;;  %v452_v5 = vmax.f32 %v308_v58, 0.0 }
  0x61   : > { %15228 = vst [vmem:[#allocation21_spill] sm:$0xff] %v11113_v24  ;;  %7096 = vmatpush1.bf16.msra.mxu0 %v10158_v63  ;;  %v11131_v62 = vrot.slane %v2354_v50, %v10741_v2  ;;  %v11134_v63 = vrot.slane %v8813_v56, %v10741_v2  ;;  %v11149_v11 = vcombine.high %v11120_v48, %v11120_v48  ;;  %v1282_v12 = vrot.slane %v11120_v48, 7 }
  0x62   : > { %7097 = vmatprep.subr.bf16.mxu0 %v10166_v0  ;;  %5744 = vmatprep.mubr.bf16.mxu1 %v1826_v43  ;;  %v309_v0 = vld [vmem:[%s10720_s26 + $0x128] sm:$0xff]  ;;  %15230 = vst [vmem:[#allocation23_spill] sm:$0xff] %v11164_v1  ;;  %v1289_v56 = vrot.slane %v11145_v10, 7  ;;  %v10175_v43 = vld [vmem:[%s14792_s1 + $0x574] ss:$8 sps:$4 sm:$0xff]  }
  0x63   : > { %15229 = vst [vmem:[#allocation22_spill] sm:$0xff] %v11131_v62  ;;  %v3388_v18 = vcombine.high %v11113_v24, %v11131_v62  ;;  %v3387_v19 = vcombine.low %v11113_v24, %v11131_v62  ;;  %v1292_v54 = vrot.slane %v11134_v63, 7  ;;  %v1283_v27 = vsel %vm10826_vm6, %v1281_v57, %v1282_v12  ;;  %5973 = vmatprep.subr.bf16.mxu1 %v10190_v15 }
  0x64   : > { %v1284_v34 = vrot.slane %v1282_v12, 2  ;;  %v1285_v50 = vrot.slane %v11149_v11, 7  ;;  %v453_v6 = vmax.f32 %v309_v0, 0.0  ;;  %v454_v62 = vmax.f32 %v310_v14, 0.0  ;;  %5974 = vmatpush1.bf16.msra.mxu1 %v10188_v9  ;;  %v312_v0 = vld [vmem:[%s10720_s26 + $0x140] sm:$0xff] }
  0x65   : > { %7098 = vmatpush1.bf16.msra.mxu0 %v10164_v51  ;;  %6858 = vmatprep.mubr.bf16.mxu0 %v3388_v18  ;;  %v11178_v51 = vrot.slane %v1828_v8, %v10741_v2  ;;  %v1291_v12 = vrot.slane %v1289_v56, 2  ;;  %v455_v15 = vmax.f32 %v311_v23, 0.0  ;;  %v11188_v58 = vcombine.high %v11134_v63, %v11134_v63  ;;  %v10173_v14 = vld [vmem:[%s14792_s1 + $0x570] ss:$8 sps:$4 sm:$0xff]  }
  0x66   : > { %7099 = vmatprep.subr.bf16.mxu0 %v10169_v3  ;;  %6859 = vmatmul.mubr.bf16.gmra.mrb[8].mxu0 %v3387_v19  ;;  %v1286_v57 = vsel %vm10826_vm6, %v1284_v34, %v1285_v50  ;;  %v1290_v3 = vsel %vm10826_vm6, %v8856_v13, %v1289_v56  ;;  %v8814_v9 = vpack.c.bf16 %v453_v6, %v452_v5  ;;  %v1294_v19 = vrot.slane %v1292_v54, 2  ;;  %v10178_v6 = vld [vmem:[%s14792_s1 + $0x584] ss:$8 sps:$4 sm:$0xff]  }
  0x67   : > { %15231 = vst [vmem:[#allocation24_spill] sm:$0xff] %v11178_v51  ;;  %5745 = vmatmul.mubr.bf16.gmra.mrb[12].mxu1 %v1825_v38  ;;  %v2355_v18 = vcombine.low %v1283_v27, %v1286_v57  ;;  %v1844_v8 = vcombine.high %v11164_v1, %v11178_v51  ;;  %v1293_v13 = vsel %vm10826_vm6, %v1291_v12, %v1292_v54  ;;  %v313_v27 = vld [vmem:[%s10720_s26 + $0x148] sm:$0xff]  ;;  %v456_v57 = vmax.f32 %v312_v0, 0.0 }
  0x68   : > { %v8815_v38 = vpack.c.bf16 %v455_v15, %v454_v62  ;;  %v1843_v23 = vcombine.low %v11164_v1, %v11178_v51  ;;  %v2372_v34 = vcombine.low %v1290_v3, %v1293_v13  ;;  %v11206_v50 = vrot.slane %v8814_v9, %v10741_v2  ;;  %v10197_v54 = vld [vmem:[%s14792_s1 + $0x160] ss:$8 sps:$4 sm:$0xff]   ;;  %v10199_v3 = vld [vmem:[%s14792_s1 + $0x164] ss:$8 sps:$4 sm:$0xff]   ;;  %v314_v9 = vld [vmem:[%s10720_s26 + $0x150] sm:$0xff] }
  0x69   : > { %7100 = vmatpush1.bf16.msra.mxu0 %v10167_v25  ;;  %v11203_v25 = vrot.slane %v2355_v18, %v10741_v2  ;;  %5754 = vmatprep.mubr.bf16.mxu1 %v1844_v8  ;;  %v1295_v62 = vrot.slane %v11188_v58, 7  ;;  %v1846_v5 = vcombine.low %v10955_v7, %v11041_v16  ;;  %v10176_v7 = vld [vmem:[%s14792_s1 + $0x580] ss:$8 sps:$4 sm:$0xff]   ;;  %v315_v51 = vld [vmem:[%s10720_s26 + $0x158] sm:$0xff]  ;;  %v457_v1 = vmax.f32 %v313_v27, 0.0 }
  0x6a   : > { %7101 = vmatprep.subr.bf16.mxu0 %v10175_v43  ;;  %v11213_v56 = vrot.slane %v8815_v38, %v10741_v2  ;;  %v1845_v43 = vcombine.low %v10923_v52, %v10934_v59  ;;  %v11223_v12 = vrot.slane %v2372_v34, %v10741_v2  ;;  %v11227_v15 = vcombine.high %v11206_v50, %v11206_v50 }
  0x6b   : > { %15232 = vst [vmem:[#allocation25_spill] sm:$0xff] %v11203_v25  ;;  %v1296_v18 = vsel %vm10826_vm6, %v1294_v19, %v1295_v62  ;;  %v1297_v8 = vrot.slane %v1295_v62, 2  ;;  %v1298_v0 = vrot.slane %v11206_v50, 7  ;;  %v11241_v34 = vrot.slane %v1846_v5, %v10741_v2  ;;  %5975 = vmatprep.subr.bf16.mxu1 %v10199_v3 }
  0x6c   : > { %15233 = vst [vmem:[#allocation26_spill] sm:$0xff] %v11223_v12  ;;  %v1304_v13 = vrot.slane %v11213_v56, 7  ;;  %v11238_v38 = vrot.slane %v1845_v43, %v10741_v2  ;;  %v3389_v19 = vcombine.low %v11203_v25, %v11223_v12  ;;  %v1301_v62 = vrot.slane %v11227_v15, 7  ;;  %v10184_v43 = vld [vmem:[%s14792_s1 + $0x594] ss:$8 sps:$4 sm:$0xff]   ;;  %5976 = vmatpush1.bf16.msra.mxu1 %v10197_v54 }
  0x6d   : > { %7102 = vmatpush1.bf16.msra.mxu0 %v10173_v14  ;;  %15235 = vst [vmem:[#allocation28_spill] sm:$0xff] %v11241_v34  ;;  %v3390_v14 = vcombine.high %v11203_v25, %v11223_v12  ;;  %v1299_v5 = vsel %vm10826_vm6, %v1297_v8, %v1298_v0  ;;  %v458_v4 = vmax.f32 %v314_v9, 0.0  ;;  %v10182_v12 = vld [vmem:[%s14792_s1 + $0x590] ss:$8 sps:$4 sm:$0xff]   ;;  %v459_v24 = vmax.f32 %v315_v51, 0.0 }
  0x6e   : > { %15234 = vst [vmem:[#allocation27_spill] sm:$0xff] %v11238_v38  ;;  %7103 = vmatprep.subr.bf16.mxu0 %v10178_v6  ;;  %v1300_v6 = vrot.slane %v1298_v0, 2  ;;  %v1862_v3 = vcombine.high %v11238_v38, %v11241_v34  ;;  %v1303_v27 = vrot.slane %v1301_v62, 2  ;;  %v2373_v25 = vcombine.low %v1296_v18, %v1299_v5  ;;  %v10187_v54 = vld [vmem:[%s14792_s1 + $0x5a4] ss:$8 sps:$4 sm:$0xff]  }
  0x6f   : > { %5755 = vmatmul.mubr.bf16.gmra.mrb[16].mxu1 %v1843_v23  ;;  %6868 = vmatprep.mubr.bf16.mxu0 %v3390_v14  ;;  %v8816_v45 = vpack.c.bf16 %v457_v1, %v456_v57  ;;  %v1182_v8 = vcombine.high %v11213_v56, %v11213_v56  ;;  %v1306_v9 = vrot.slane %v1304_v13, 2  ;;  %v1861_v51 = vcombine.low %v11238_v38, %v11241_v34  ;;  %v10206_v1 = vld [vmem:[%s14792_s1 + $0x170] ss:$8 sps:$4 sm:$0xff]   ;;  %v10208_v57 = vld [vmem:[%s14792_s1 + $0x174] ss:$8 sps:$4 sm:$0xff]   ;;  %v11331_v34 = vld [vmem:[%s10720_s26 + $0x180] sm:$0xff] }
  0x70   : > { %6869 = vmatmul.mubr.bf16.gmra.mrb[12].mxu0 %v3389_v19  ;;  %v1302_v23 = vsel %vm10826_vm6, %v1300_v6, %v1301_v62  ;;  %5764 = vmatprep.mubr.bf16.mxu1 %v1862_v3  ;;  %v1305_v18 = vsel %vm10826_vm6, %v1303_v27, %v1304_v13  ;;  %v8817_v0 = vpack.c.bf16 %v459_v24, %v458_v4  ;;  %v317_v3 = vld [vmem:[%s10720_s26 + $0x168] sm:$0xff]  ;;  %v318_v24 = vld [vmem:[%s10720_s26 + $0x170] sm:$0xff] }
  0x71   : > { %7104 = vmatpush1.bf16.msra.mxu0 %v10176_v7  ;;  %v11278_v7 = vrot.slane %v2373_v25, %v10741_v2  ;;  %v11281_v14 = vrot.slane %v8816_v45, %v10741_v2  ;;  %v2390_v19 = vcombine.low %v1302_v23, %v1305_v18  ;;  %v1307_v62 = vrot.slane %v1182_v8, 7  ;;  %5977 = vmatprep.subr.bf16.mxu1 %v10208_v57  ;;  %v319_v25 = vld [vmem:[%s10720_s26 + $0x178] sm:$0xff]  ;;  %v10185_v27 = vld [vmem:[%s14792_s1 + $0x5a0] ss:$8 sps:$4 sm:$0xff]  }
  0x72   : > { %7105 = vmatprep.subr.bf16.mxu0 %v10184_v43  ;;  %v1863_v5 = vcombine.low %v11064_v26, %v11052_v53  ;;  %v1864_v6 = vcombine.low %v11072_v42, %v11120_v48  ;;  %v11289_v13 = vrot.slane %v8817_v0, %v10741_v2  ;;  %v460_v43 = vmax.f32 %v316_v49, 0.0  ;;  %5978 = vmatpush1.bf16.msra.mxu1 %v10206_v1  ;;  %v10193_v49 = vld [vmem:[%s14792_s1 + $0x5b4] ss:$8 sps:$4 sm:$0xff]   ;;  %v10215_v38 = vld [vmem:[%s14792_s1 + $0x180] ss:$8 sps:$4 sm:$0xff]  }
  0x73   : > { %15236 = vst [vmem:[#allocation29_spill] sm:$0xff] %v11278_v7  ;;  %v11293_v4 = vcombine.high %v11281_v14, %v11281_v14  ;;  %v8857_v45 = vrot.slane %v11281_v14, 9  ;;  %v11302_v23 = vrot.slane %v2390_v19, %v10741_v2  ;;  %v1308_v8 = vsel %vm10826_vm6, %v1306_v9, %v1307_v62  ;;  %v10217_v19 = vld [vmem:[%s14792_s1 + $0x184] ss:$8 sps:$4 sm:$0xff]  }
  0x74   : > { %v11307_v57 = vrot.slane %v1863_v5, %v10741_v2  ;;  %v11310_v18 = vrot.slane %v1864_v6, %v10741_v2  ;;  %v1314_v9 = vrot.slane %v11289_v13, 7  ;;  %v461_v0 = vmax.f32 %v317_v3, 0.0  ;;  %v10191_v3 = vld [vmem:[%s14792_s1 + $0x5b0] ss:$8 sps:$4 sm:$0xff]   ;;  %5979 = vmatprep.subr.bf16.mxu1 %v10217_v19 }
  0x75   : > { %7106 = vmatpush1.bf16.msra.mxu0 %v10182_v12  ;;  %15237 = vst [vmem:[#allocation30_spill] sm:$0xff] %v11302_v23  ;;  %v11317_v12 = vcombine.high %v11289_v13, %v11289_v13  ;;  %v1311_v1 = vrot.slane %v11293_v4, 7  ;;  %v3391_v62 = vcombine.low %v11278_v7, %v11302_v23  ;;  %v462_v6 = vmax.f32 %v318_v24, 0.0 }
  0x76   : > { %15238 = vst [vmem:[#allocation31_spill] sm:$0xff] %v11307_v57  ;;  %15239 = vst [vmem:[#allocation32_spill] sm:$0xff] %v11310_v18  ;;  %7107 = vmatprep.subr.bf16.mxu0 %v10187_v54  ;;  %v3392_v54 = vcombine.high %v11278_v7, %v11302_v23  ;;  %v1880_v5 = vcombine.high %v11307_v57, %v11310_v18  ;;  %v463_v17 = vmax.f32 %v319_v25, 0.0  ;;  %5980 = vmatpush1.bf16.msra.mxu1 %v10215_v38 }
  0x77   : > { %5765 = vmatmul.mubr.bf16.gmra.mrb[20].mxu1 %v1861_v51  ;;  %v1312_v28 = vsel %vm10826_vm6, %v8857_v45, %v1311_v1  ;;  %v1313_v23 = vrot.slane %v1311_v1, 2  ;;  %v1316_v51 = vrot.slane %v1314_v9, 2  ;;  %v1317_v7 = vrot.slane %v11317_v12, 7  ;;  %v10196_v45 = vld [vmem:[%s14792_s1 + $0x5c4] ss:$8 sps:$4 sm:$0xff]   ;;  %v323_v1 = vld [vmem:[%s10720_s26 + $0x198] sm:$0xff] }
  0x78   : > { %6878 = vmatprep.mubr.bf16.mxu0 %v3392_v54  ;;  %v2391_v24 = vcombine.low %v1308_v8, %v1312_v28  ;;  %5774 = vmatprep.mubr.bf16.mxu1 %v1880_v5  ;;  %v8818_v60 = vpack.c.bf16 %v461_v0, %v460_v43  ;;  %v1879_v55 = vcombine.low %v11307_v57, %v11310_v18  ;;  %v10200_v18 = vld [vmem:[%s14792_s1 + $0x5d0] ss:$8 sps:$4 sm:$0xff]  }
  0x79   : > { %7108 = vmatpush1.bf16.msra.mxu0 %v10185_v27  ;;  %v10223_v27 = vld [vmem:[%s14792_s1 + $0x194] ss:$8 sps:$4 sm:$0xff]   ;;  %v1315_v28 = vsel %vm10826_vm6, %v1313_v23, %v1314_v9  ;;  %v1318_v25 = vsel %vm10826_vm6, %v1316_v51, %v1317_v7  ;;  %v1319_v43 = vrot.slane %v1317_v7, 2  ;;  %v1881_v8 = vcombine.low %v11123_v35, %v11145_v10  ;;  %v325_v51 = vld [vmem:[%s10720_s26 + $0x1a8] sm:$0xff] }
  0x7a   : > { %6879 = vmatmul.mubr.bf16.gmra.mrb[16].mxu0 %v3391_v62  ;;  %7109 = vmatprep.subr.bf16.mxu0 %v10193_v49  ;;  %v11360_v0 = vrot.slane %v2391_v24, %v10741_v2  ;;  %v2408_v19 = vcombine.low %v1315_v28, %v1318_v25  ;;  %v8819_v54 = vpack.c.bf16 %v463_v17, %v462_v6  ;;  %v324_v62 = vld [vmem:[%s10720_s26 + $0x1a0] sm:$0xff]  ;;  %v464_v35 = vmax.f32 %v11331_v34, 0.0  ;;  %v10202_v6 = vld [vmem:[%s14792_s1 + $0x5d4] ss:$8 sps:$4 sm:$0xff]  }
  0x7b   : > { %v11363_v5 = vrot.slane %v8818_v60, %v10741_v2  ;;  %v1882_v23 = vcombine.low %v11134_v63, %v11188_v58  ;;  %v11369_v7 = vrot.slane %v1881_v8, %v10741_v2  ;;  %v465_v49 = vmax.f32 %v321_v61, 0.0  ;;  %v10194_v17 = vld [vmem:[%s14792_s1 + $0x5c0] ss:$8 sps:$4 sm:$0xff]   ;;  %v10221_v60 = vld [vmem:[%s14792_s1 + $0x190] ss:$8 sps:$4 sm:$0xff]   ;;  %5981 = vmatprep.subr.bf16.mxu1 %v10223_v27 }
  0x7c   : > { %15240 = vst [vmem:[#allocation33_spill] sm:$0xff] %v11360_v0  ;;  %v11379_v38 = vrot.slane %v2408_v19, %v10741_v2  ;;  %v11382_v9 = vrot.slane %v8819_v54, %v10741_v2  ;;  %v466_v24 = vmax.f32 %v322_v41, 0.0  ;;  %v467_v27 = vmax.f32 %v323_v1, 0.0  ;;  %v10229_v41 = vld [vmem:[%s14792_s1 + $0x1a4] ss:$8 sps:$4 sm:$0xff]   ;;  %5982 = vmatpush1.bf16.msra.mxu1 %v10221_v60 }
  0x7d   : > { %15241 = vst [vmem:[#allocation34_spill] sm:$0xff] %v11369_v7  ;;  %7110 = vmatpush1.bf16.msra.mxu0 %v10191_v3  ;;  %v11386_v34 = vcombine.high %v11363_v5, %v11363_v5  ;;  %v1320_v61 = vrot.slane %v11363_v5, 7  ;;  %v11393_v3 = vrot.slane %v1882_v23, %v10741_v2  ;;  %v468_v28 = vmax.f32 %v324_v62, 0.0  ;;  %5983 = vmatprep.subr.bf16.mxu1 %v10229_v41 }
  0x7e   : > { %15242 = vst [vmem:[#allocation35_spill] sm:$0xff] %v11379_v38  ;;  %7111 = vmatprep.subr.bf16.mxu0 %v10196_v45  ;;  %v3394_v25 = vcombine.high %v11360_v0, %v11379_v38  ;;  %v3393_v8 = vcombine.low %v11360_v0, %v11379_v38  ;;  %v11402_v45 = vcombine.high %v11382_v9, %v11382_v9  ;;  %v1326_v62 = vrot.slane %v11382_v9, 7  ;;  %v10205_v38 = vld [vmem:[%s14792_s1 + $0x5e4] ss:$8 sps:$4 sm:$0xff]  }
  0x7f   : > { %15243 = vst [vmem:[#allocation36_spill] sm:$0xff] %v11393_v3  ;;  %v1321_v19 = vsel %vm10826_vm6, %v1319_v43, %v1320_v61  ;;  %5775 = vmatmul.mubr.bf16.gmra.mrb[24].mxu1 %v1879_v55  ;;  %v1322_v1 = vrot.slane %v1320_v61, 2  ;;  %v1323_v54 = vrot.slane %v11386_v34, 7  ;;  %v11413_v23 = vcombine.high %v11369_v7, %v11393_v3 }
  0x80   : > { %15244 = vst [vmem:[#allocation37_spill] sm:$0xff] %v11402_v45  ;;  %6888 = vmatprep.mubr.bf16.mxu0 %v3394_v25  ;;  %v1329_v55 = vrot.slane %v11402_v45, 7  ;;  %v469_v43 = vmax.f32 %v325_v51, 0.0  ;;  %v8820_v61 = vpack.c.bf16 %v465_v49, %v464_v35  ;;  %v8821_v57 = vpack.c.bf16 %v467_v27, %v466_v24  ;;  %v10227_v35 = vld [vmem:[%s14792_s1 + $0x1a0] ss:$8 sps:$4 sm:$0xff]   ;;  %v326_v27 = vld [vmem:[%s10720_s26 + $0x1b0] sm:$0xff] }
  0x81   : > { %15245 = vst [vmem:[#allocation38_spill] sm:$0xff] %v11413_v23  ;;  %7112 = vmatpush1.bf16.msra.mxu0 %v10194_v17  ;;  %v1324_v17 = vsel %vm10826_vm6, %v1322_v1, %v1323_v54  ;;  %v1325_v0 = vrot.slane %v1323_v54, 2  ;;  %v1328_v40 = vrot.slane %v1326_v62, 2  ;;  %5784 = vmatprep.mubr.bf16.mxu1 %v11413_v23  ;;  %v11427_v60 = vcombine.low %v11369_v7, %v11393_v3  ;;  %v10235_v25 = vld [vmem:[%s14792_s1 + $0x1b4] ss:$8 sps:$4 sm:$0xff]   ;;  %v328_v3 = vld [vmem:[%s10720_s26 + $0x1c0] sm:$0xff] }
  0x82   : > { %7113 = vmatprep.subr.bf16.mxu0 %v10202_v6  ;;  %6889 = vmatmul.mubr.bf16.gmra.mrb[20].mxu0 %v3393_v8  ;;  %v2409_v49 = vcombine.low %v1321_v19, %v1324_v17  ;;  %v11433_v6 = vrot.slane %v8820_v61, %v10741_v2  ;;  %v11436_v51 = vrot.slane %v8821_v57, %v10741_v2  ;;  %v470_v23 = vmax.f32 %v326_v27, 0.0  ;;  %v10214_v27 = vld [vmem:[%s14792_s1 + $0x604] ss:$8 sps:$4 sm:$0xff]   ;;  %v338_v45 = vld [vmem:[%s10720_s26 + $0x210] sm:$0xff] }
  0x83   : > { %15246 = vst [vmem:[#allocation39_spill] sm:$0xff] %v11427_v60  ;;  %v8822_v24 = vpack.c.bf16 %v469_v43, %v468_v28  ;;  %v1327_v8 = vsel %vm10826_vm6, %v1325_v0, %v1326_v62  ;;  %v1330_v19 = vsel %vm10826_vm6, %v1328_v40, %v1329_v55  ;;  %v1899_v1 = vcombine.low %v11206_v50, %v11227_v15  ;;  %v10203_v28 = vld [vmem:[%s14792_s1 + $0x5e0] ss:$8 sps:$4 sm:$0xff]   ;;  %v327_v62 = vld [vmem:[%s10720_s26 + $0x1b8] sm:$0xff] }
  0x84   : > { %15247 = vst [vmem:[#allocation40_spill] sm:$0xff] %v11436_v51  ;;  %v1900_v57 = vcombine.low %v11213_v56, %v11281_v14  ;;  %v11454_v41 = vrot.slane %v2409_v49, %v10741_v2  ;;  %v2426_v54 = vcombine.low %v1327_v8, %v1330_v19  ;;  %v11458_v0 = vcombine.high %v11433_v6, %v11433_v6 }
  0x85   : > { %7114 = vmatpush1.bf16.msra.mxu0 %v10200_v18  ;;  %v11462_v40 = vcombine.high %v11436_v51, %v11436_v51  ;;  %v10211_v18 = vld [vmem:[%s14792_s1 + $0x5f4] ss:$8 sps:$4 sm:$0xff]   ;;  %v11469_v55 = vrot.slane %v8822_v24, %v10741_v2  ;;  %v8858_v43 = vrot.slane %v11433_v6, 9  ;;  %v1336_v61 = vrot.slane %v11436_v51, 7  ;;  %5984 = vmatpush1.bf16.msra.mxu1 %v10227_v35  ;;  %v10241_v35 = vld [vmem:[%s14792_s1 + $0x1c4] ss:$8 sps:$4 sm:$0xff]  }
  0x86   : > { %15248 = vst [vmem:[#allocation41_spill] sm:$0xff] %v11454_v41  ;;  %15249 = vst [vmem:[#allocation42_spill] sm:$0xff] %v11458_v0  ;;  %7115 = vmatprep.subr.bf16.mxu0 %v10205_v38  ;;  %v11474_v17 = vrot.slane %v1899_v1, %v10741_v2  ;;  %v10233_v38 = vld [vmem:[%s14792_s1 + $0x1b0] ss:$8 sps:$4 sm:$0xff]   ;;  %v11480_v49 = vrot.slane %v2426_v54, %v10741_v2  ;;  %v1333_v8 = vrot.slane %v11458_v0, 7  ;;  %5985 = vmatprep.subr.bf16.mxu1 %v10235_v25  ;;  %v329_v54 = vld [vmem:[%s10720_s26 + $0x1c8] sm:$0xff] }
  0x87   : > { %15250 = vst [vmem:[#allocation43_spill] sm:$0xff] %v11462_v40  ;;  %15251 = vst [vmem:[#allocation44_spill] sm:$0xff] %v11469_v55  ;;  %v1339_v24 = vrot.slane %v11462_v40, 7  ;;  %5785 = vmatmul.mubr.bf16.gmra.mrb[28].mxu1 %v11427_v60  ;;  %v11486_v19 = vrot.slane %v1900_v57, %v10741_v2  ;;  %v1338_v1 = vrot.slane %v1336_v61, 2  ;;  %v1342_v7 = vrot.slane %v11469_v55, 7 }
  0x88   : > { %15252 = vst [vmem:[#allocation45_spill] sm:$0xff] %v11474_v17  ;;  %15253 = vst [vmem:[#allocation46_spill] sm:$0xff] %v11480_v49  ;;  %v471_v29 = vmax.f32 %v327_v62, 0.0  ;;  %v3396_v30 = vcombine.high %v11454_v41, %v11480_v49  ;;  %v3395_v57 = vcombine.low %v11454_v41, %v11480_v49  ;;  %v1334_v25 = vsel %vm10826_vm6, %v8858_v43, %v1333_v8 }
  0x89   : > { %15254 = vst [vmem:[#allocation47_spill] sm:$0xff] %v11486_v19  ;;  %7116 = vmatpush1.bf16.msra.mxu0 %v10203_v28  ;;  %v1335_v60 = vrot.slane %v1333_v8, 2  ;;  %v1340_v28 = vsel %vm10826_vm6, %v1338_v1, %v1339_v24  ;;  %v1341_v62 = vrot.slane %v1339_v24, 2  ;;  %v11510_v49 = vcombine.high %v11474_v17, %v11486_v19  ;;  %5986 = vmatpush1.bf16.msra.mxu1 %v10233_v38  ;;  %v10239_v8 = vld [vmem:[%s14792_s1 + $0x1c0] ss:$8 sps:$4 sm:$0xff]   ;;  %v11522_v24 = vld [vmem:[%s10720_s26 + $0x1d0] sm:$0xff] }
  0x8a   : > { %7117 = vmatprep.subr.bf16.mxu0 %v10211_v18  ;;  %v472_v43 = vmax.f32 %v328_v3, 0.0  ;;  %6898 = vmatprep.mubr.bf16.mxu0 %v3396_v30  ;;  %v473_v41 = vmax.f32 %v329_v54, 0.0  ;;  %v8823_v22 = vpack.c.bf16 %v471_v29, %v470_v23  ;;  %v11519_v1 = vcombine.high %v11469_v55, %v11469_v55  ;;  %v10247_v29 = vld [vmem:[%s14792_s1 + $0x1d4] ss:$8 sps:$4 sm:$0xff]  }
  0x8b   : > { %15255 = vst [vmem:[#allocation48_spill] sm:$0xff] %v11510_v49  ;;  %v1337_v18 = vsel %vm10826_vm6, %v1335_v60, %v1336_v61  ;;  %5987 = vmatprep.subr.bf16.mxu1 %v10241_v35  ;;  %6899 = vmatmul.mubr.bf16.gmra.mrb[24].mxu0 %v3395_v57  ;;  %v1343_v3 = vsel %vm10826_vm6, %v1341_v62, %v1342_v7  ;;  %v1344_v30 = vrot.slane %v1342_v7, 2 }
  0x8c   : > { %15256 = vst [vmem:[#allocation49_spill] sm:$0xff] %v11519_v1  ;;  %v2427_v38 = vcombine.low %v1334_v25, %v1337_v18  ;;  %5794 = vmatprep.mubr.bf16.mxu1 %v11510_v49  ;;  %v11529_v60 = vcombine.low %v11474_v17, %v11486_v19  ;;  %v2444_v23 = vcombine.low %v1340_v28, %v1343_v3  ;;  %v1345_v54 = vrot.slane %v11519_v1, 7  ;;  %v332_v3 = vld [vmem:[%s10720_s26 + $0x1e0] sm:$0xff]  ;;  %v334_v17 = vld [vmem:[%s10720_s26 + $0x1f0] sm:$0xff] }
  0x8d   : > { %v11535_v61 = vrot.slane %v8823_v22, %v10741_v2  ;;  %v8824_v35 = vpack.c.bf16 %v473_v41, %v472_v43  ;;  %7118 = vmatpush1.bf16.msra.mxu0 %v10209_v39  ;;  %v1917_v7 = vcombine.low %v11293_v4, %v11289_v13  ;;  %v1918_v25 = vcombine.low %v11317_v12, %v11363_v5  ;;  %v10245_v22 = vld [vmem:[%s14792_s1 + $0x1d0] ss:$8 sps:$4 sm:$0xff]  }
  0x8e   : > { %15257 = vst [vmem:[#allocation50_spill] sm:$0xff] %v11529_v60  ;;  %v11539_v57 = vrot.slane %v2427_v38, %v10741_v2  ;;  %v474_v28 = vmax.f32 %v11522_v24, 0.0  ;;  %7368 = vmatprep.subr.bf16.mxu0 %v10214_v27  ;;  %5988 = vmatpush1.bf16.msra.mxu1 %v10239_v8  ;;  %v11550_v39 = vrot.slane %v2444_v23, %v10741_v2  ;;  %v1347_v27 = vrot.slane %v1345_v54, 2  ;;  %v331_v24 = vld [vmem:[%s10720_s26 + $0x1d8] sm:$0xff] }
  0x8f   : > { %v11553_v41 = vrot.slane %v8824_v35, %v10741_v2  ;;  %v1184_v4 = vcombine.high %v11535_v61, %v11535_v61  ;;  %v1346_v62 = vsel %vm10826_vm6, %v1344_v30, %v1345_v54  ;;  %5795 = vmatmul.mubr.bf16.gmra.mrb[32].mxu1 %v11529_v60  ;;  %v1348_v43 = vrot.slane %v11535_v61, 7  ;;  %5989 = vmatprep.subr.bf16.mxu1 %v10247_v29  ;;  %v333_v54 = vld [vmem:[%s10720_s26 + $0x1e8] sm:$0xff]  ;;  %v335_v60 = vld [vmem:[%s10720_s26 + $0x1f8] sm:$0xff] }
  0x90   : > { %15258 = vst [vmem:[#allocation51_spill] sm:$0xff] %v11539_v57  ;;  %15259 = vst [vmem:[#allocation52_spill] sm:$0xff] %v11550_v39  ;;  %v11562_v8 = vrot.slane %v1917_v7, %v10741_v2  ;;  %v11565_v18 = vrot.slane %v1918_v25, %v10741_v2  ;;  %v3398_v38 = vcombine.high %v11539_v57, %v11550_v39  ;;  %v477_v32 = vmax.f32 %v333_v54, 0.0 }
  0x91   : > { %v3397_v30 = vcombine.low %v11539_v57, %v11550_v39  ;;  %v11575_v23 = vcombine.high %v11553_v41, %v11553_v41  ;;  %v1351_v35 = vrot.slane %v1184_v4, 7  ;;  %v1349_v7 = vsel %vm10826_vm6, %v1347_v27, %v1348_v43  ;;  %v10251_v4 = vld [vmem:[%s14792_s1 + $0x1e0] ss:$8 sps:$4 sm:$0xff]   ;;  %v10253_v27 = vld [vmem:[%s14792_s1 + $0x1e4] ss:$8 sps:$4 sm:$0xff]  }
  0x92   : > { %15260 = vst [vmem:[#allocation53_spill] sm:$0xff] %v11562_v8  ;;  %15261 = vst [vmem:[#allocation54_spill] sm:$0xff] %v11565_v18  ;;  %v1350_v25 = vrot.slane %v1348_v43, 2  ;;  %v8859_v29 = vrot.slane %v11553_v41, 9  ;;  %v11583_v19 = vcombine.high %v11562_v8, %v11565_v18  ;;  %5990 = vmatpush1.bf16.msra.mxu1 %v10245_v22  ;;  %6908 = vmatprep.mubr.bf16.mxu0 %v3398_v38  ;;  %v475_v39 = vmax.f32 %v331_v24, 0.0 }
  0x93   : > { %v1355_v43 = vrot.slane %v11575_v23, 7  ;;  %v2445_v49 = vcombine.low %v1346_v62, %v1349_v7  ;;  %v476_v57 = vmax.f32 %v332_v3, 0.0  ;;  %6909 = vmatmul.mubr.bf16.gmra.mrb[28].mxu0 %v3397_v30  ;;  %v11601_v31 = vcombine.low %v11562_v8, %v11565_v18  ;;  %v339_v62 = vld [vmem:[%s10720_s26 + $0x218] sm:$0xff]  ;;  %5991 = vmatprep.subr.bf16.mxu1 %v10253_v27 }
  0x94   : > { %15262 = vst [vmem:[#allocation55_spill] sm:$0xff] %v11583_v19  ;;  %v1352_v22 = vsel %vm10826_vm6, %v1350_v25, %v1351_v35  ;;  %5804 = vmatprep.mubr.bf16.mxu1 %v11583_v19  ;;  %v1935_v38 = vcombine.low %v11386_v34, %v11382_v9  ;;  %v8825_v30 = vpack.c.bf16 %v475_v39, %v474_v28  ;;  %v480_v19 = vmax.f32 %v336_v20, 0.0 }
  0x95   : > { %15263 = vst [vmem:[#allocation56_spill] sm:$0xff] %v11601_v31  ;;  %v1356_v24 = vsel %vm10826_vm6, %v8859_v29, %v1355_v43  ;;  %v11610_v3 = vrot.slane %v2445_v49, %v10741_v2  ;;  %v1357_v35 = vrot.slane %v1355_v43, 2  ;;  %v8826_v54 = vpack.c.bf16 %v477_v32, %v476_v57 }
  0x96   : > { %v2462_v7 = vcombine.low %v1352_v22, %v1356_v24  ;;  %v1936_v25 = vcombine.low %v11433_v6, %v11458_v0  ;;  %v11615_v18 = vrot.slane %v1935_v38, %v10741_v2  ;;  %5992 = vmatpush1.bf16.msra.mxu1 %v10251_v4  ;;  %v11618_v8 = vrot.slane %v8825_v30, %v10741_v2 }
  0x97   : > { %15264 = vst [vmem:[#allocation57_spill] sm:$0xff] %v11610_v3  ;;  %5805 = vmatmul.mubr.bf16.gmra.mrb[36].mxu1 %v11601_v31  ;;  %v478_v29 = vmax.f32 %v334_v17, 0.0  ;;  %v479_v49 = vmax.f32 %v335_v60, 0.0  ;;  %v11625_v32 = vrot.slane %v8826_v54, %v10741_v2  ;;  %v481_v57 = vmax.f32 %v337_v21, 0.0 }
  0x98   : > { %15265 = vst [vmem:[#allocation58_spill] sm:$0xff] %v11615_v18  ;;  %v11622_v28 = vrot.slane %v2462_v7, %v10741_v2  ;;  %v11628_v6 = vrot.slane %v1936_v25, %v10741_v2  ;;  %v11632_v39 = vcombine.high %v11618_v8, %v11618_v8  ;;  %v1358_v4 = vrot.slane %v11618_v8, 7 }
  0x99   : > { %v482_v27 = vmax.f32 %v338_v45, 0.0  ;;  %v483_v17 = vmax.f32 %v339_v62, 0.0  ;;  %v11641_v43 = vcombine.high %v11625_v32, %v11625_v32  ;;  %v1364_v21 = vrot.slane %v11625_v32, 7 }
  0x9a   : > { %15266 = vst [vmem:[#allocation59_spill] sm:$0xff] %v11622_v28  ;;  %15267 = vst [vmem:[#allocation60_spill] sm:$0xff] %v11628_v6  ;;  %v3400_v20 = vcombine.high %v11610_v3, %v11622_v28  ;;  %v3399_v60 = vcombine.low %v11610_v3, %v11622_v28  ;;  %v1359_v22 = vsel %vm10826_vm6, %v1357_v35, %v1358_v4  ;;  %v1360_v38 = vrot.slane %v1358_v4, 2 }
  0x9b   : > { %v1361_v24 = vrot.slane %v11632_v39, 7  ;;  %v11649_v45 = vcombine.high %v11615_v18, %v11628_v6  ;;  %v1366_v62 = vrot.slane %v1364_v21, 2  ;;  %v1367_v30 = vrot.slane %v11641_v43, 7 }
  0x9c   : > { %6918 = vmatprep.mubr.bf16.mxu0 %v3400_v20  ;;  %v8827_v7 = vpack.c.bf16 %v479_v49, %v478_v29  ;;  %v8828_v54 = vpack.c.bf16 %v481_v57, %v480_v19  ;;  %v8829_v35 = vpack.c.bf16 %v483_v17, %v482_v27  ;;  %v11657_v4 = vcombine.low %v11615_v18, %v11628_v6  ;;  %v340_v29 = vld [vmem:[%s10720_s26 + $0x220] sm:$0xff]  ;;  %v10257_v6 = vld [vmem:[%s14792_s1 + $0x1f0] ss:$8 sps:$4 sm:$0xff]  }
  0x9d   : > { %15268 = vst [vmem:[#allocation61_spill] sm:$0xff] %v11649_v45  ;;  %6919 = vmatmul.mubr.bf16.gmra.mrb[32].mxu0 %v3399_v60  ;;  %v1362_v25 = vsel %vm10826_vm6, %v1360_v38, %v1361_v24  ;;  %v1363_v31 = vrot.slane %v1361_v24, 2  ;;  %5814 = vmatprep.mubr.bf16.mxu1 %v11649_v45  ;;  %v1368_v20 = vsel %vm10826_vm6, %v1366_v62, %v1367_v30  ;;  %v1369_v27 = vrot.slane %v1367_v30, 2 }
  0x9e   : > { %15269 = vst [vmem:[#allocation62_spill] sm:$0xff] %v11657_v4  ;;  %v2463_v28 = vcombine.low %v1359_v22, %v1362_v25  ;;  %v11662_v3 = vrot.slane %v8827_v7, %v10741_v2  ;;  %v11665_v19 = vrot.slane %v8828_v54, %v10741_v2  ;;  %v11671_v57 = vrot.slane %v8829_v35, %v10741_v2 }
  0x9f   : > { %v1365_v49 = vsel %vm10826_vm6, %v1363_v31, %v1364_v21  ;;  %5815 = vmatmul.mubr.bf16.gmra.mrb[40].mxu1 %v11657_v4  ;;  %v1953_v17 = vcombine.low %v11436_v51, %v11462_v40  ;;  %v1954_v30 = vcombine.low %v11469_v55, %v11519_v1  ;;  %v484_v45 = vmax.f32 %v340_v29, 0.0 }
  0xa0   : > { %v11677_v60 = vrot.slane %v2463_v28, %v10741_v2  ;;  %v2480_v22 = vcombine.low %v1365_v49, %v1368_v20  ;;  %v11681_v38 = vcombine.high %v11665_v19, %v11665_v19  ;;  %v11685_v31 = vcombine.high %v11662_v3, %v11662_v3  ;;  %v341_v28 = vld [vmem:[%s10720_s26 + $0x228] sm:$0xff]  ;;  %v342_v20 = vld [vmem:[%s10720_s26 + $0x230] sm:$0xff]  ;;  %v343_v49 = vld [vmem:[%s10720_s26 + $0x238] sm:$0xff] }
  0xa1   : > { %v1370_v21 = vrot.slane %v11662_v3, 7  ;;  %v8860_v24 = vrot.slane %v11665_v19, 9  ;;  %v1380_v62 = vrot.slane %v11671_v57, 7  ;;  %v11699_v35 = vrot.slane %v1953_v17, %v10741_v2 }
  0xa2   : > { %15270 = vst [vmem:[#allocation63_spill] sm:$0xff] %v11677_v60  ;;  %15271 = vst [vmem:[#allocation64_spill] sm:$0xff] %v11685_v31  ;;  %v11694_v7 = vrot.slane %v2480_v22, %v10741_v2  ;;  %v1373_v54 = vrot.slane %v11685_v31, 7  ;;  %v1377_v25 = vrot.slane %v11681_v38, 7  ;;  %v11709_v22 = vrot.slane %v1954_v30, %v10741_v2  ;;  %v10259_v31 = vld [vmem:[%s14792_s1 + $0x1f4] ss:$8 sps:$4 sm:$0xff]  }
  0xa3   : > { %15273 = vst [vmem:[#allocation66_spill] sm:$0xff] %v11699_v35  ;;  %v1371_v18 = vsel %vm10826_vm6, %v1369_v27, %v1370_v21  ;;  %v1372_v4 = vrot.slane %v1370_v21, 2  ;;  %v344_v27 = vld [vmem:[%s10720_s26 + $0x240] sm:$0xff]  ;;  %v485_v30 = vmax.f32 %v341_v28, 0.0  ;;  %v486_v0 = vmax.f32 %v342_v20, 0.0  ;;  %5993 = vmatprep.subr.bf16.mxu1 %v10259_v31 }
  0xa4   : > { %15272 = vst [vmem:[#allocation65_spill] sm:$0xff] %v11694_v7  ;;  %15274 = vst [vmem:[#allocation67_spill] sm:$0xff] %v11709_v22  ;;  %v3402_v17 = vcombine.high %v11677_v60, %v11694_v7  ;;  %v3401_v1 = vcombine.low %v11677_v60, %v11694_v7  ;;  %v1378_v40 = vsel %vm10826_vm6, %v8860_v24, %v1377_v25  ;;  %v1379_v55 = vrot.slane %v1377_v25, 2 }
  0xa5   : > { %v1374_v21 = vsel %vm10826_vm6, %v1372_v4, %v1373_v54  ;;  %v11725_v29 = vcombine.high %v11699_v35, %v11709_v22  ;;  %v487_v60 = vmax.f32 %v343_v49, 0.0  ;;  %v11731_v24 = vcombine.high %v11671_v57, %v11671_v57  ;;  %5994 = vmatpush1.bf16.msra.mxu1 %v10257_v6 }
  0xa6   : > { %6928 = vmatprep.mubr.bf16.mxu0 %v3402_v17  ;;  %v1381_v51 = vsel %vm10826_vm6, %v1379_v55, %v1380_v62  ;;  %v2481_v7 = vcombine.low %v1371_v18, %v1374_v21  ;;  %v8830_v28 = vpack.c.bf16 %v485_v30, %v484_v45  ;;  %v1382_v54 = vrot.slane %v1380_v62, 2  ;;  %v345_v45 = vld [vmem:[%s10720_s26 + $0x248] sm:$0xff]  ;;  %v346_v62 = vld [vmem:[%s10720_s26 + $0x250] sm:$0xff]  ;;  %v347_v17 = vld [vmem:[%s10720_s26 + $0x258] sm:$0xff] }
  0xa7   : > { %15275 = vst [vmem:[#allocation68_spill] sm:$0xff] %v11725_v29  ;;  %6929 = vmatmul.mubr.bf16.gmra.mrb[36].mxu0 %v3401_v1  ;;  %v2498_v4 = vcombine.low %v1378_v40, %v1381_v51  ;;  %5824 = vmatprep.mubr.bf16.mxu1 %v11725_v29  ;;  %v11736_v31 = vcombine.low %v11699_v35, %v11709_v22  ;;  %v1383_v25 = vrot.slane %v11731_v24, 7  ;;  %v10265_v21 = vld [vmem:[%s14792_s1 + $0x204] ss:$8 sps:$4 sm:$0xff]  }
  0xa8   : > { %v11739_v55 = vrot.slane %v2481_v7, %v10741_v2  ;;  %v8831_v18 = vpack.c.bf16 %v487_v60, %v486_v0  ;;  %v1971_v6 = vcombine.low %v11535_v61, %v11553_v41  ;;  %v11748_v40 = vrot.slane %v8830_v28, %v10741_v2  ;;  %6244 = vmatprep.subr.bf16.mxu1 %v10265_v21 }
  0xa9   : > { %15276 = vst [vmem:[#allocation69_spill] sm:$0xff] %v11736_v31  ;;  %v11745_v51 = vrot.slane %v2498_v4, %v10741_v2  ;;  %5825 = vmatmul.mubr.bf16.gmra.mrb[44].mxu1 %v11736_v31  ;;  %v1972_v1 = vcombine.low %v11575_v23, %v11618_v8  ;;  %v488_v7 = vmax.f32 %v344_v27, 0.0  ;;  %v1384_v60 = vsel %vm10826_vm6, %v1382_v54, %v1383_v25 }
  0xaa   : > { %15277 = vst [vmem:[#allocation70_spill] sm:$0xff] %v11739_v55  ;;  %v11756_v0 = vrot.slane %v8831_v18, %v10741_v2  ;;  %v1385_v20 = vrot.slane %v1383_v25, 2  ;;  %v11761_v49 = vrot.slane %v1971_v6, %v10741_v2  ;;  %v11773_v30 = vcombine.high %v11748_v40, %v11748_v40 }
  0xab   : > { %15278 = vst [vmem:[#allocation71_spill] sm:$0xff] %v11745_v51  ;;  %v3404_v23 = vcombine.high %v11739_v55, %v11745_v51  ;;  %v3403_v27 = vcombine.low %v11739_v55, %v11745_v51  ;;  %v1386_v4 = vrot.slane %v11748_v40, 7  ;;  %v11778_v54 = vrot.slane %v1972_v1, %v10741_v2 }
  0xac   : > { %15279 = vst [vmem:[#allocation72_spill] sm:$0xff] %v11761_v49  ;;  %v1392_v28 = vrot.slane %v11756_v0, 7  ;;  %v489_v18 = vmax.f32 %v345_v45, 0.0  ;;  %v490_v25 = vmax.f32 %v346_v62, 0.0  ;;  %v1389_v35 = vrot.slane %v11773_v30, 7 }
  0xad   : > { %15280 = vst [vmem:[#allocation73_spill] sm:$0xff] %v11778_v54  ;;  %6938 = vmatprep.mubr.bf16.mxu0 %v3404_v23  ;;  %v1387_v6 = vsel %vm10826_vm6, %v1385_v20, %v1386_v4  ;;  %v1388_v22 = vrot.slane %v1386_v4, 2  ;;  %v491_v31 = vmax.f32 %v347_v17, 0.0  ;;  %v11785_v51 = vcombine.high %v11761_v49, %v11778_v54 }
  0xae   : > { %v2499_v29 = vcombine.low %v1384_v60, %v1387_v6  ;;  %v8832_v55 = vpack.c.bf16 %v489_v18, %v488_v7  ;;  %v1186_v1 = vcombine.high %v11756_v0, %v11756_v0  ;;  %v1391_v62 = vrot.slane %v1389_v35, 2 }
  0xaf   : > { %15281 = vst [vmem:[#allocation74_spill] sm:$0xff] %v11785_v51  ;;  %6939 = vmatmul.mubr.bf16.gmra.mrb[40].mxu0 %v3403_v27  ;;  %v1390_v45 = vsel %vm10826_vm6, %v1388_v22, %v1389_v35  ;;  %v8833_v21 = vpack.c.bf16 %v491_v31, %v490_v25  ;;  %v1394_v20 = vrot.slane %v1392_v28, 2  ;;  %5834 = vmatprep.mubr.bf16.mxu1 %v11785_v51 }
  0xb0   : > { %v11792_v23 = vrot.slane %v2499_v29, %v10741_v2  ;;  %v11796_v60 = vrot.slane %v8832_v55, %v10741_v2  ;;  %v1395_v17 = vrot.slane %v1186_v1, 7  ;;  %v11800_v7 = vcombine.low %v11761_v49, %v11778_v54  ;;  %v352_v49 = vld [vmem:[%s10720_s26 + $0x280] sm:$0xff] }
  0xb1   : > { %v1393_v27 = vsel %vm10826_vm6, %v1391_v62, %v1392_v28  ;;  %v11805_v35 = vrot.slane %v8833_v21, %v10741_v2  ;;  %v1989_v22 = vcombine.low %v11632_v39, %v11625_v32  ;;  %v1990_v29 = vcombine.low %v11641_v43, %v11662_v3 }
  0xb2   : > { %15282 = vst [vmem:[#allocation75_spill] sm:$0xff] %v11792_v23  ;;  %15283 = vst [vmem:[#allocation76_spill] sm:$0xff] %v11800_v7  ;;  %v2516_v31 = vcombine.low %v1390_v45, %v1393_v27  ;;  %v11813_v55 = vcombine.high %v11796_v60, %v11796_v60  ;;  %v1396_v4 = vsel %vm10826_vm6, %v1394_v20, %v1395_v17  ;;  %v8861_v18 = vrot.slane %v11796_v60, 9 }
  0xb3   : > { %5835 = vmatmul.mubr.bf16.gmra.mrb[48].mxu1 %v11800_v7  ;;  %v11821_v28 = vcombine.high %v11805_v35, %v11805_v35  ;;  %v1402_v25 = vrot.slane %v11805_v35, 7  ;;  %v11825_v6 = vrot.slane %v1989_v22, %v10741_v2  ;;  %v11828_v1 = vrot.slane %v1990_v29, %v10741_v2 }
  0xb4   : > { %v11831_v45 = vrot.slane %v2516_v31, %v10741_v2  ;;  %v1399_v62 = vrot.slane %v11813_v55, 7  ;;  %v2792_v21 = vcombine.low %v10810_v36, %v10800_v33  ;;  %v2809_v20 = vcombine.low %v10832_v47, %v10813_v37 }
  0xb5   : > { %15284 = vst [vmem:[#allocation77_spill] sm:$0xff] %v11825_v6  ;;  %15285 = vst [vmem:[#allocation78_spill] sm:$0xff] %v11828_v1  ;;  %v1404_v17 = vrot.slane %v1402_v25, 2  ;;  %v14923_v27 = vrot.slane %v11821_v28, 7  ;;  %v11841_v22 = vcombine.high %v11825_v6, %v11828_v1  ;;  %v11845_v29 = vcombine.low %v11825_v6, %v11828_v1 }
  0xb6   : > { %15286 = vst [vmem:[#allocation79_spill] sm:$0xff] %v11831_v45  ;;  %v3406_v31 = vcombine.high %v11792_v23, %v11831_v45  ;;  %v3405_v33 = vcombine.low %v11792_v23, %v11831_v45  ;;  %v1400_v36 = vsel %vm10826_vm6, %v8861_v18, %v1399_v62  ;;  %v1401_v37 = vrot.slane %v1399_v62, 2  ;;  %v355_v23 = vld [vmem:[%s10720_s26 + $0x298] sm:$0xff] }
  0xb7   : > { %15287 = vst [vmem:[#allocation80_spill] sm:$0xff] %v11841_v22  ;;  %15288 = vst [vmem:[#allocation81_spill] sm:$0xff] %v11845_v29  ;;  %v1406_v47 = vsel %vm10826_vm6, %v1404_v17, %v14923_v27  ;;  %v2517_v54 = vcombine.low %v1396_v4, %v1400_v36  ;;  %5844 = vmatprep.mubr.bf16.mxu1 %v11841_v22  ;;  %v2007_v6 = vcombine.low %v11665_v19, %v11681_v38 }
  0xb8   : > { %6948 = vmatprep.mubr.bf16.mxu0 %v3406_v31  ;;  %v1403_v1 = vsel %vm10826_vm6, %v1401_v37, %v1402_v25  ;;  %v2008_v18 = vcombine.low %v11671_v57, %v11731_v24  ;;  %v11868_v4 = vrot.slane %v2792_v21, %v10741_v2  ;;  %v11871_v31 = vrot.slane %v2809_v20, %v10741_v2  ;;  %v351_v37 = vld [vmem:[%s10720_s26 + $0x278] sm:$0xff] }
  0xb9   : > { %6949 = vmatmul.mubr.bf16.gmra.mrb[44].mxu0 %v3405_v33  ;;  %v11865_v62 = vrot.slane %v2517_v54, %v10741_v2  ;;  %v2534_v17 = vcombine.low %v1403_v1, %v1406_v47  ;;  %v11875_v19 = vrot.slane %v2007_v6, %v10741_v2  ;;  %v348_v33 = vld [vmem:[%s10720_s26 + $0x260] sm:$0xff]  ;;  %v349_v54 = vld [vmem:[%s10720_s26 + $0x268] sm:$0xff]  ;;  %v2025_v21 = vcombine.low %v11748_v40, %v11773_v30  ;;  %v350_v6 = vld [vmem:[%s10720_s26 + $0x270] sm:$0xff] }
  0xba   : > { %15290 = vst [vmem:[#allocation83_spill] sm:$0xff] %v11868_v4  ;;  %15291 = vst [vmem:[#allocation84_spill] sm:$0xff] %v11871_v31  ;;  %v11878_v25 = vrot.slane %v2008_v18, %v10741_v2  ;;  %v2026_v20 = vcombine.low %v11756_v0, %v11796_v60  ;;  %v3539_v22 = vcombine.high %v11868_v4, %v11871_v31  ;;  %v493_v45 = vmax.f32 %v349_v54, 0.0 }
  0xbb   : > { %15289 = vst [vmem:[#allocation82_spill] sm:$0xff] %v11865_v62  ;;  %5845 = vmatmul.mubr.bf16.gmra.mrb[52].mxu1 %v11845_v29  ;;  %15292 = vst [vmem:[#allocation85_spill] sm:$0xff] %v11875_v19  ;;  %v11883_v1 = vrot.slane %v2534_v17, %v10741_v2  ;;  %v11900_v17 = vrot.slane %v2025_v21, %v10741_v2  ;;  %v353_v29 = vld [vmem:[%s10720_s26 + $0x288] sm:$0xff]  ;;  %v2810_v7 = vcombine.low %v10916_v46, %v10923_v52 }
  0xbc   : > { %15293 = vst [vmem:[#allocation86_spill] sm:$0xff] %v11878_v25  ;;  %v11891_v36 = vcombine.high %v11875_v19, %v11878_v25  ;;  %v11903_v27 = vrot.slane %v2026_v20, %v10741_v2  ;;  %v8887_v51 = vcombine.high %v10923_v52, %v10934_v59  ;;  %v11916_v21 = vcombine.low %v11875_v19, %v11878_v25  ;;  %v354_v59 = vld [vmem:[%s10720_s26 + $0x290] sm:$0xff] }
  0xbd   : > { %15294 = vst [vmem:[#allocation87_spill] sm:$0xff] %v11883_v1  ;;  %v3408_v47 = vcombine.high %v11865_v62, %v11883_v1  ;;  %v3407_v18 = vcombine.low %v11865_v62, %v11883_v1  ;;  %15296 = vst [vmem:[#allocation89_spill] sm:$0xff] %v11900_v17  ;;  %v492_v1 = vmax.f32 %v348_v33, 0.0  ;;  %v2043_v46 = vcombine.low %v11813_v55, %v11805_v35 }
  0xbe   : > { %15295 = vst [vmem:[#allocation88_spill] sm:$0xff] %v11891_v36  ;;  %15297 = vst [vmem:[#allocation90_spill] sm:$0xff] %v11903_v27  ;;  %5854 = vmatprep.mubr.bf16.mxu1 %v11891_v36  ;;  %v11920_v20 = vcombine.high %v11900_v17, %v11903_v27  ;;  %v494_v62 = vmax.f32 %v350_v6, 0.0  ;;  %v495_v52 = vmax.f32 %v351_v37, 0.0  ;;  %v11930_v25 = vrot.slane %v8887_v51, %v10741_v2  ;;  %v10212_v51 = vld [vmem:[%s14792_s1 + $0x600] ss:$8 sps:$4 sm:$0xff]  }
  0xbf   : > { %15298 = vst [vmem:[#allocation91_spill] sm:$0xff] %v11916_v21  ;;  %6958 = vmatprep.mubr.bf16.mxu0 %v3408_v47  ;;  %v8834_v36 = vpack.c.bf16 %v493_v45, %v492_v1  ;;  %v11927_v47 = vrot.slane %v2810_v7, %v10741_v2  ;;  %v496_v33 = vmax.f32 %v352_v49, 0.0  ;;  %v497_v54 = vmax.f32 %v353_v29, 0.0  ;;  %v357_v45 = vld [vmem:[%s10720_s26 + $0x2a8] sm:$0xff]  ;;  %v10220_v37 = vld [vmem:[%s14792_s1 + $0x614] ss:$8 sps:$4 sm:$0xff]  }
  0xc0   : > { %15299 = vst [vmem:[#allocation92_spill] sm:$0xff] %v11920_v20  ;;  %15301 = vst [vmem:[#allocation94_spill] sm:$0xff] %v11930_v25  ;;  %v3538_v55 = vcombine.low %v11868_v4, %v11871_v31  ;;  %v8835_v7 = vpack.c.bf16 %v495_v52, %v494_v62  ;;  %v2828_v49 = vcombine.low %v11041_v16, %v11064_v26  ;;  %v498_v29 = vmax.f32 %v354_v59, 0.0  ;;  %v360_v31 = vld [vmem:[%s10720_s26 + $0x2c0] sm:$0xff] }
  0xc1   : > { %6959 = vmatmul.mubr.bf16.gmra.mrb[48].mxu0 %v3407_v18  ;;  %15300 = vst [vmem:[#allocation93_spill] sm:$0xff] %v11927_v47  ;;  %v356_v18 = vld [vmem:[%s10720_s26 + $0x2a0] sm:$0xff]  ;;  %v11939_v1 = vrot.slane %v8834_v36, %v10741_v2  ;;  %v499_v6 = vmax.f32 %v355_v23, 0.0  ;;  %v2845_v36 = vcombine.low %v11052_v53, %v11072_v42  ;;  %v11954_v52 = vrot.slane %v2043_v46, %v10741_v2  ;;  %v358_v42 = vld [vmem:[%s10720_s26 + $0x2b0] sm:$0xff]  ;;  %v359_v46 = vld [vmem:[%s10720_s26 + $0x2b8] sm:$0xff] }
  0xc2   : > { %7119 = vmatprep.mubr.bf16.mxu0 %v3539_v22  ;;  %v8836_v22 = vpack.c.bf16 %v497_v54, %v496_v33  ;;  %v11957_v19 = vrot.slane %v8835_v7, %v10741_v2  ;;  %v3541_v16 = vcombine.high %v11927_v47, %v11930_v25  ;;  %v11963_v26 = vcombine.low %v11900_v17, %v11903_v27  ;;  %v10218_v27 = vld [vmem:[%s14792_s1 + $0x610] ss:$8 sps:$4 sm:$0xff]  }
  0xc3   : > { %5855 = vmatmul.mubr.bf16.gmra.mrb[56].mxu1 %v11916_v21  ;;  %v2044_v62 = vcombine.low %v11821_v28, %v11939_v1  ;;  %15302 = vst [vmem:[#allocation95_spill] sm:$0xff] %v11954_v52  ;;  %v11967_v23 = vcombine.high %v11939_v1, %v11939_v1  ;;  %v500_v33 = vmax.f32 %v356_v18, 0.0  ;;  %v501_v54 = vmax.f32 %v357_v45, 0.0 }
  0xc4   : > { %5864 = vmatprep.mubr.bf16.mxu1 %v11920_v20  ;;  %15303 = vst [vmem:[#allocation96_spill] sm:$0xff] %v11963_v26  ;;  %v11970_v53 = vrot.slane %v8836_v22, %v10741_v2  ;;  %v8837_v7 = vpack.c.bf16 %v499_v6, %v498_v29  ;;  %v361_v29 = vld [vmem:[%s10720_s26 + $0x2c8] sm:$0xff]  ;;  %v362_v6 = vld [vmem:[%s10720_s26 + $0x2d0] sm:$0xff]  ;;  %v11997_v4 = vrot.slane %v2828_v49, %v10741_v2 }
  0xc5   : > { %v11975_v59 = vrot.slane %v2044_v62, %v10741_v2  ;;  %v2061_v22 = vcombine.low %v11967_v23, %v11957_v19  ;;  %v8838_v45 = vpack.c.bf16 %v501_v54, %v500_v33  ;;  %v12000_v20 = vrot.slane %v2845_v36, %v10741_v2  ;;  %v10226_v33 = vld [vmem:[%s14792_s1 + $0x624] ss:$8 sps:$4 sm:$0xff]  }
  0xc6   : > { %15304 = vst [vmem:[#allocation97_spill] sm:$0xff] %v11970_v53  ;;  %v11983_v17 = vcombine.high %v11970_v53, %v11970_v53  ;;  %v11992_v18 = vrot.slane %v8837_v7, %v10741_v2  ;;  %15309 = vst [vmem:[#allocation102_spill] sm:$0xff] %v11997_v4  ;;  %v502_v36 = vmax.f32 %v358_v42, 0.0  ;;  %v503_v54 = vmax.f32 %v359_v46, 0.0 }
  0xc7   : > { %15305 = vst [vmem:[#allocation98_spill] sm:$0xff] %v11975_v59  ;;  %v11989_v62 = vcombine.high %v11954_v52, %v11975_v59  ;;  %15310 = vst [vmem:[#allocation103_spill] sm:$0xff] %v12000_v20  ;;  %v12013_v49 = vrot.slane %v8838_v45, %v10741_v2  ;;  %v505_v21 = vmax.f32 %v361_v29, 0.0  ;;  %v2846_v45 = vcombine.low %v11120_v48, %v11149_v11  ;;  %v364_v29 = vld [vmem:[%s10720_s26 + $0x2e0] sm:$0xff] }
  0xc8   : > { %15306 = vst [vmem:[#allocation99_spill] sm:$0xff] %v11983_v17  ;;  %15308 = vst [vmem:[#allocation101_spill] sm:$0xff] %v11992_v18  ;;  %v506_v46 = vmax.f32 %v362_v6, 0.0  ;;  %v8839_v6 = vpack.c.bf16 %v503_v54, %v502_v36  ;;  %v10230_v36 = vld [vmem:[%s14792_s1 + $0x630] ss:$8 sps:$4 sm:$0xff]  }
  0xc9   : > { %7120 = vmatmul.mubr.bf16.vlgmr.msra.gmra.mrb[0].mxu0 %v3538_v55  ;;  %15307 = vst [vmem:[#allocation100_spill] sm:$0xff] %v11989_v62  ;;  %v2062_v55 = vcombine.low %v11970_v53, %v11983_v17  ;;  %v3540_v53 = vcombine.low %v11927_v47, %v11930_v25  ;;  %v12029_v42 = vcombine.high %v12013_v49, %v12013_v49  ;;  %v365_v25 = vld [vmem:[%s10720_s26 + $0x2e8] sm:$0xff] }
  0xca   : > { %7369 = vmatpush1.bf16.msra.mxu0 %v10212_v51  ;;  %7129 = vmatprep.mubr.bf16.mxu0 %v3541_v16  ;;  %v12010_v51 = vcombine.high %v11992_v18, %v11992_v18  ;;  %v363_v16 = vld [vmem:[%s10720_s26 + $0x2d8] sm:$0xff]  ;;  %v509_v17 = vmax.f32 %v365_v25, 0.0 }
  0xcb   : > { %7370 = vmatprep.subr.bf16.mxu0 %v10220_v37  ;;  %5865 = vmatmul.mubr.bf16.gmra.mrb[60].mxu1 %v11963_v26  ;;  %v12018_v37 = vrot.slane %v2061_v22, %v10741_v2  ;;  %v12021_v7 = vrot.slane %v2062_v55, %v10741_v2  ;;  %v504_v26 = vmax.f32 %v360_v31, 0.0  ;;  %v3543_v22 = vcombine.high %v11997_v4, %v12000_v20  ;;  %v10224_v31 = vld [vmem:[%s14792_s1 + $0x620] ss:$8 sps:$4 sm:$0xff]  }
  0xcc   : > { %15311 = vst [vmem:[#allocation104_spill] sm:$0xff] %v12010_v51  ;;  %5874 = vmatprep.mubr.bf16.mxu1 %v11989_v62  ;;  %v2863_v55 = vcombine.low %v11145_v10, %v11134_v63  ;;  %v2079_v48 = vcombine.low %v11992_v18, %v12010_v51  ;;  %v507_v11 = vmax.f32 %v363_v16, 0.0  ;;  %v10232_v63 = vld [vmem:[%s14792_s1 + $0x634] ss:$8 sps:$4 sm:$0xff]   ;;  %v2080_v10 = vcombine.low %v12013_v49, %v12029_v42 }
  0xcd   : > { %15312 = vst [vmem:[#allocation105_spill] sm:$0xff] %v12018_v37  ;;  %15313 = vst [vmem:[#allocation106_spill] sm:$0xff] %v12021_v7  ;;  %v12053_v47 = vcombine.high %v12018_v37, %v12021_v7  ;;  %v8840_v16 = vpack.c.bf16 %v505_v21, %v504_v26  ;;  %v12056_v51 = vrot.slane %v2846_v45, %v10741_v2  ;;  %v10238_v45 = vld [vmem:[%s14792_s1 + $0x644] ss:$8 sps:$4 sm:$0xff]  }
  0xce   : > { %7371 = vmatpush1.bf16.msra.mxu0 %v10218_v27  ;;  %v12044_v27 = vcombine.low %v11954_v52, %v11975_v59  ;;  %v8841_v62 = vpack.c.bf16 %v507_v11, %v506_v46  ;;  %v366_v59 = vld [vmem:[%s10720_s26 + $0x2f0] sm:$0xff]  ;;  %v508_v52 = vmax.f32 %v364_v29, 0.0  ;;  %v12061_v18 = vrot.slane %v2863_v55, %v10741_v2 }
  0xcf   : > { %7372 = vmatprep.subr.bf16.mxu0 %v10226_v33  ;;  %15315 = vst [vmem:[#allocation108_spill] sm:$0xff] %v12053_v47  ;;  %15316 = vst [vmem:[#allocation109_spill] sm:$0xff] %v12056_v51  ;;  %v367_v33 = vld [vmem:[%s10720_s26 + $0x2f8] sm:$0xff]  ;;  %v12067_v21 = vrot.slane %v2079_v48, %v10741_v2  ;;  %v12070_v26 = vrot.slane %v8840_v16, %v10741_v2  ;;  %v12074_v25 = vrot.slane %v2080_v10, %v10741_v2  ;;  %v368_v48 = vld [vmem:[%s10720_s26 + $0x300] sm:$0xff] }
  0xd0   : > { %15314 = vst [vmem:[#allocation107_spill] sm:$0xff] %v12044_v27  ;;  %15317 = vst [vmem:[#allocation110_spill] sm:$0xff] %v12061_v18  ;;  %v12080_v54 = vrot.slane %v8841_v62, %v10741_v2  ;;  %v511_v55 = vmax.f32 %v367_v33, 0.0  ;;  %v3542_v11 = vcombine.low %v11997_v4, %v12000_v20  ;;  %v369_v62 = vld [vmem:[%s10720_s26 + $0x308] sm:$0xff]  ;;  %v3545_v29 = vcombine.high %v12056_v51, %v12061_v18  ;;  %v10244_v4 = vld [vmem:[%s14792_s1 + $0x654] ss:$8 sps:$4 sm:$0xff]  }
  0xd1   : > { %7130 = vmatmul.mubr.bf16.gmra.mrb[4].mxu0 %v3540_v53  ;;  %15318 = vst [vmem:[#allocation111_spill] sm:$0xff] %v12067_v21  ;;  %15319 = vst [vmem:[#allocation112_spill] sm:$0xff] %v12074_v25  ;;  %v12077_v53 = vrot.slane %v8839_v6, %v10741_v2  ;;  %v12088_v46 = vcombine.high %v12070_v26, %v12070_v26  ;;  %v2881_v10 = vcombine.low %v11227_v15, %v11213_v56 }
  0xd2   : > { %7139 = vmatprep.mubr.bf16.mxu0 %v3543_v22  ;;  %7373 = vmatpush1.bf16.msra.mxu0 %v10224_v31  ;;  %v510_v22 = vmax.f32 %v366_v59, 0.0  ;;  %v8842_v31 = vpack.c.bf16 %v509_v17, %v508_v52  ;;  %v10236_v59 = vld [vmem:[%s14792_s1 + $0x640] ss:$8 sps:$4 sm:$0xff]   ;;  %v370_v17 = vld [vmem:[%s10720_s26 + $0x310] sm:$0xff]  ;;  %v371_v52 = vld [vmem:[%s10720_s26 + $0x318] sm:$0xff]  ;;  %v12107_v6 = vcombine.low %v12018_v37, %v12021_v7  ;;  %v12111_v16 = vcombine.high %v12067_v21, %v12074_v25 }
  0xd3   : > { %5875 = vmatmul.mubr.bf16.gmra.mrb[64].mxu1 %v12044_v27  ;;  %7374 = vmatprep.subr.bf16.mxu0 %v10232_v63  ;;  %15320 = vst [vmem:[#allocation113_spill] sm:$0xff] %v12088_v46  ;;  %v2864_v63 = vcombine.low %v11188_v58, %v11206_v50  ;;  %v2097_v58 = vcombine.low %v12077_v53, %v12070_v26  ;;  %v512_v50 = vmax.f32 %v368_v48, 0.0  ;;  %v513_v20 = vmax.f32 %v369_v62, 0.0  ;;  %v10250_v62 = vld [vmem:[%s14792_s1 + $0x664] ss:$8 sps:$4 sm:$0xff]  }
  0xd4   : > { %5884 = vmatprep.mubr.bf16.mxu1 %v12053_v47  ;;  %15321 = vst [vmem:[#allocation114_spill] sm:$0xff] %v12107_v6  ;;  %15322 = vst [vmem:[#allocation115_spill] sm:$0xff] %v12111_v16  ;;  %v2098_v15 = vcombine.low %v12088_v46, %v12080_v54  ;;  %v8843_v33 = vpack.c.bf16 %v511_v55, %v510_v22  ;;  %v514_v7 = vmax.f32 %v370_v17, 0.0  ;;  %v515_v37 = vmax.f32 %v371_v52, 0.0  ;;  %v10242_v22 = vld [vmem:[%s14792_s1 + $0x650] ss:$8 sps:$4 sm:$0xff]  }
  0xd5   : > { %v12127_v48 = vrot.slane %v2881_v10, %v10741_v2  ;;  %v12134_v55 = vrot.slane %v2097_v58, %v10741_v2  ;;  %v373_v17 = vld [vmem:[%s10720_s26 + $0x328] sm:$0xff]  ;;  %v3544_v52 = vcombine.low %v12056_v51, %v12061_v18  ;;  %v375_v18 = vld [vmem:[%s10720_s26 + $0x338] sm:$0xff] }
  0xd6   : > { %7375 = vmatpush1.bf16.msra.mxu0 %v10230_v36  ;;  %v12118_v36 = vrot.slane %v8842_v31, %v10741_v2  ;;  %v12138_v31 = vcombine.high %v12080_v54, %v12080_v54 }
  0xd7   : > { %7376 = vmatprep.subr.bf16.mxu0 %v10238_v45  ;;  %v12124_v45 = vrot.slane %v2864_v63, %v10741_v2  ;;  %15324 = vst [vmem:[#allocation117_spill] sm:$0xff] %v12127_v48  ;;  %15325 = vst [vmem:[#allocation118_spill] sm:$0xff] %v12134_v55  ;;  %v12148_v63 = vrot.slane %v8843_v33, %v10741_v2  ;;  %v374_v33 = vld [vmem:[%s10720_s26 + $0x330] sm:$0xff] }
  0xd8   : > { %v12152_v10 = vcombine.high %v12118_v36, %v12118_v36 }
  0xd9   : > { %7140 = vmatmul.mubr.bf16.gmra.mrb[8].mxu0 %v3542_v11  ;;  %15323 = vst [vmem:[#allocation116_spill] sm:$0xff] %v12124_v45  ;;  %v8844_v11 = vpack.c.bf16 %v513_v20, %v512_v50  ;;  %v372_v20 = vld [vmem:[%s10720_s26 + $0x320] sm:$0xff]  ;;  %v3547_v58 = vcombine.high %v12124_v45, %v12127_v48  ;;  %v8888_v50 = vcombine.high %v11213_v56, %v11281_v14  ;;  %v517_v56 = vmax.f32 %v373_v17, 0.0 }
  0xda   : > { %7149 = vmatprep.mubr.bf16.mxu0 %v3545_v29  ;;  %7377 = vmatpush1.bf16.msra.mxu0 %v10236_v59  ;;  %v12145_v29 = vrot.slane %v2098_v15, %v10741_v2  ;;  %v8845_v59 = vpack.c.bf16 %v515_v37, %v514_v7  ;;  %v2899_v15 = vcombine.low %v11289_v13, %v11317_v12  ;;  %v10248_v37 = vld [vmem:[%s14792_s1 + $0x660] ss:$8 sps:$4 sm:$0xff]   ;;  %v516_v51 = vmax.f32 %v372_v20, 0.0  ;;  %v10256_v20 = vld [vmem:[%s14792_s1 + $0x674] ss:$8 sps:$4 sm:$0xff]  }
  0xdb   : > { %5885 = vmatmul.mubr.bf16.gmra.mrb[68].mxu1 %v12107_v6  ;;  %7378 = vmatprep.subr.bf16.mxu0 %v10244_v4  ;;  %v12169_v7 = vcombine.low %v12067_v21, %v12074_v25  ;;  %v12172_v4 = vrot.slane %v8844_v11, %v10741_v2  ;;  %v2115_v13 = vcombine.low %v12138_v31, %v12118_v36  ;;  %v376_v11 = vld [vmem:[%s10720_s26 + $0x340] sm:$0xff]  ;;  %v377_v25 = vld [vmem:[%s10720_s26 + $0x348] sm:$0xff]  ;;  %v518_v21 = vmax.f32 %v374_v33, 0.0 }
  0xdc   : > { %5894 = vmatprep.mubr.bf16.mxu1 %v12111_v16  ;;  %15326 = vst [vmem:[#allocation119_spill] sm:$0xff] %v12145_v29  ;;  %v12178_v14 = vcombine.high %v12134_v55, %v12145_v29  ;;  %v2116_v12 = vcombine.low %v12152_v10, %v12148_v63  ;;  %v12196_v17 = vrot.slane %v2899_v15, %v10741_v2  ;;  %v519_v16 = vmax.f32 %v375_v18, 0.0  ;;  %v10262_v15 = vld [vmem:[%s14792_s1 + $0x684] ss:$8 sps:$4 sm:$0xff]  }
  0xdd   : > { %15327 = vst [vmem:[#allocation120_spill] sm:$0xff] %v12169_v7  ;;  %15328 = vst [vmem:[#allocation121_spill] sm:$0xff] %v12172_v4  ;;  %v8846_v6 = vpack.c.bf16 %v517_v56, %v516_v51  ;;  %v12211_v18 = vrot.slane %v2115_v13, %v10741_v2  ;;  %v3546_v51 = vcombine.low %v12124_v45, %v12127_v48  ;;  %v379_v56 = vld [vmem:[%s10720_s26 + $0x358] sm:$0xff] }
  0xde   : > { %7379 = vmatpush1.bf16.msra.mxu0 %v10242_v22  ;;  %15329 = vst [vmem:[#allocation122_spill] sm:$0xff] %v12178_v14  ;;  %v12185_v22 = vrot.slane %v8845_v59, %v10741_v2  ;;  %15331 = vst [vmem:[#allocation124_spill] sm:$0xff] %v12196_v17  ;;  %v10254_v59 = vld [vmem:[%s14792_s1 + $0x670] ss:$8 sps:$4 sm:$0xff]   ;;  %v2900_v13 = vcombine.low %v11363_v5, %v11386_v34  ;;  %v8847_v45 = vpack.c.bf16 %v519_v16, %v518_v21  ;;  %v10268_v21 = vld [vmem:[%s14792_s1 + $0x694] ss:$8 sps:$4 sm:$0xff]  }
  0xdf   : > { %7380 = vmatprep.subr.bf16.mxu0 %v10250_v62  ;;  %v12193_v62 = vrot.slane %v8888_v50, %v10741_v2  ;;  %v521_v50 = vmax.f32 %v377_v25, 0.0  ;;  %15332 = vst [vmem:[#allocation125_spill] sm:$0xff] %v12211_v18  ;;  %v378_v25 = vld [vmem:[%s10720_s26 + $0x350] sm:$0xff]  ;;  %v12240_v47 = vrot.slane %v8846_v6, %v10741_v2 }
  0xe0   : > { %v12218_v33 = vcombine.high %v12185_v22, %v12185_v22  ;;  %v12254_v6 = vrot.slane %v2900_v13, %v10741_v2 }
  0xe1   : > { %7150 = vmatmul.mubr.bf16.gmra.mrb[12].mxu0 %v3544_v52  ;;  %15330 = vst [vmem:[#allocation123_spill] sm:$0xff] %v12193_v62  ;;  %v12204_v52 = vcombine.high %v12172_v4, %v12172_v4 }
  0xe2   : > { %7159 = vmatprep.mubr.bf16.mxu0 %v3547_v58  ;;  %7381 = vmatpush1.bf16.msra.mxu0 %v10248_v37  ;;  %v520_v58 = vmax.f32 %v376_v11, 0.0  ;;  %v12214_v37 = vrot.slane %v2116_v12, %v10741_v2  ;;  %v3549_v11 = vcombine.high %v12193_v62, %v12196_v17  ;;  %v2134_v34 = vcombine.low %v12185_v22, %v12218_v33 }
  0xe3   : > { %5895 = vmatmul.mubr.bf16.gmra.mrb[72].mxu1 %v12169_v7  ;;  %7382 = vmatprep.subr.bf16.mxu0 %v10256_v20  ;;  %v12232_v7 = vcombine.low %v12134_v55, %v12145_v29  ;;  %v10260_v20 = vld [vmem:[%s14792_s1 + $0x680] ss:$8 sps:$4 sm:$0xff]   ;;  %v2133_v48 = vcombine.low %v12172_v4, %v12204_v52  ;;  %15337 = vst [vmem:[#allocation128_spill] sm:$0xff] %v12254_v6  ;;  %v15343_v4 = vld [vmem:[#allocation44_spill] sm:$0xff] }
  0xe4   : > { %5904 = vmatprep.mubr.bf16.mxu1 %v12178_v14  ;;  %15333 = vst [vmem:[#allocation126_spill] sm:$0xff] %v12214_v37  ;;  %v15334_v14 = vld [vmem:[#allocation37_spill] sm:$0xff]  ;;  %v8848_v5 = vpack.c.bf16 %v521_v50, %v520_v58  ;;  %v380_v29 = vld [vmem:[%s10720_s26 + $0x360] sm:$0xff]  ;;  %v381_v55 = vld [vmem:[%s10720_s26 + $0x368] sm:$0xff] }
  0xe5   : > { %v2917_v12 = vcombine.low %v11382_v9, %v15334_v14  ;;  %15335 = vst [vmem:[#allocation37_spill] sm:$0xff] %v12232_v7  ;;  %v12244_v9 = vcombine.high %v12211_v18, %v12214_v37  ;;  %v522_v14 = vmax.f32 %v378_v25, 0.0  ;;  %v10266_v58 = vld [vmem:[%s14792_s1 + $0x690] ss:$8 sps:$4 sm:$0xff]   ;;  %v12264_v50 = vrot.slane %v2133_v48, %v10741_v2 }
  0xe6   : > { %7383 = vmatpush1.bf16.msra.mxu0 %v10254_v59  ;;  %v523_v59 = vmax.f32 %v379_v56, 0.0  ;;  %v12274_v25 = vrot.slane %v8848_v5, %v10741_v2  ;;  %v10274_v56 = vld [vmem:[%s14792_s1 + $0x6a4] ss:$8 sps:$4 sm:$0xff]   ;;  %v524_v48 = vmax.f32 %v380_v29, 0.0  ;;  %v525_v13 = vmax.f32 %v381_v55, 0.0  ;;  %v15341_v5 = vld [vmem:[#allocation40_spill] sm:$0xff] }
  0xe7   : > { %7384 = vmatprep.subr.bf16.mxu0 %v10262_v15  ;;  %15336 = vst [vmem:[#allocation127_spill] sm:$0xff] %v12244_v9  ;;  %v12257_v16 = vrot.slane %v2917_v12, %v10741_v2  ;;  %15339 = vst [vmem:[#allocation130_spill] sm:$0xff] %v12264_v50  ;;  %v12267_v15 = vrot.slane %v8847_v45, %v10741_v2  ;;  %v3548_v12 = vcombine.low %v12193_v62, %v12196_v17 }
  0xe8   : > { %v8849_v45 = vpack.c.bf16 %v523_v59, %v522_v14  ;;  %v12293_v55 = vcombine.low %v12211_v18, %v12214_v37  ;;  %v10272_v14 = vld [vmem:[%s14792_s1 + $0x6a0] ss:$8 sps:$4 sm:$0xff]   ;;  %v10280_v59 = vld [vmem:[%s14792_s1 + $0x6b4] ss:$8 sps:$4 sm:$0xff]  }
  0xe9   : > { %7160 = vmatmul.mubr.bf16.gmra.mrb[16].mxu0 %v3546_v51  ;;  %15338 = vst [vmem:[#allocation129_spill] sm:$0xff] %v12257_v16  ;;  %v12271_v51 = vcombine.high %v12240_v47, %v12240_v47  ;;  %v15353_v18 = vld [vmem:[#allocation49_spill] sm:$0xff] }
  0xea   : > { %7169 = vmatprep.mubr.bf16.mxu0 %v3549_v11  ;;  %7385 = vmatpush1.bf16.msra.mxu0 %v10260_v20  ;;  %v12281_v11 = vrot.slane %v2134_v34, %v10741_v2  ;;  %v3551_v20 = vcombine.high %v12254_v6, %v12257_v16  ;;  %15345 = vst [vmem:[#allocation40_spill] sm:$0xff] %v12293_v55 }
  0xeb   : > { %5905 = vmatmul.mubr.bf16.gmra.mrb[76].mxu1 %v12232_v7  ;;  %7386 = vmatprep.subr.bf16.mxu0 %v10268_v21  ;;  %v15342_v7 = vld [vmem:[#allocation42_spill] sm:$0xff]  ;;  %v2151_v29 = vcombine.low %v12240_v47, %v12271_v51  ;;  %v2152_v34 = vcombine.low %v12267_v15, %v12274_v25  ;;  %v382_v21 = vld [vmem:[%s10720_s26 + $0x370] sm:$0xff]  ;;  %v2936_v17 = vcombine.low %v15353_v18, %v11535_v61 }
  0xec   : > { %5914 = vmatprep.mubr.bf16.mxu1 %v12244_v9  ;;  %15340 = vst [vmem:[#allocation131_spill] sm:$0xff] %v12281_v11  ;;  %v2918_v27 = vcombine.low %v15342_v7, %v15341_v5  ;;  %v15344_v9 = vld [vmem:[#allocation43_spill] sm:$0xff]  ;;  %v12304_v7 = vcombine.high %v12264_v50, %v12281_v11 }
  0xed   : > { %v2935_v46 = vcombine.low %v15344_v9, %v15343_v4  ;;  %v12307_v4 = vrot.slane %v8849_v45, %v10741_v2  ;;  %v8850_v9 = vpack.c.bf16 %v525_v13, %v524_v48  ;;  %v12324_v48 = vrot.slane %v2151_v29, %v10741_v2 }
  0xee   : > { %7387 = vmatpush1.bf16.msra.mxu0 %v10266_v58  ;;  %15346 = vst [vmem:[#allocation42_spill] sm:$0xff] %v12304_v7  ;;  %v383_v58 = vld [vmem:[%s10720_s26 + $0x378] sm:$0xff]  ;;  %v12315_v5 = vrot.slane %v2918_v27, %v10741_v2  ;;  %v12327_v13 = vrot.slane %v2152_v34, %v10741_v2  ;;  %v12331_v45 = vcombine.high %v12274_v25, %v12274_v25  ;;  %v10286_v34 = vld [vmem:[%s14792_s1 + $0x6c4] ss:$8 sps:$4 sm:$0xff]  }
  0xef   : > { %7388 = vmatprep.subr.bf16.mxu0 %v10274_v56  ;;  %v12318_v56 = vrot.slane %v2935_v46, %v10741_v2  ;;  %15349 = vst [vmem:[#allocation132_spill] sm:$0xff] %v12324_v48  ;;  %v10278_v27 = vld [vmem:[%s14792_s1 + $0x6b0] ss:$8 sps:$4 sm:$0xff]   ;;  %v12339_v46 = vcombine.high %v12307_v4, %v12307_v4  ;;  %v527_v29 = vmax.f32 %v383_v58, 0.0 }
  0xf0   : > { %15347 = vst [vmem:[#allocation44_spill] sm:$0xff] %v12315_v5  ;;  %15350 = vst [vmem:[#allocation133_spill] sm:$0xff] %v12327_v13  ;;  %v12364_v58 = vcombine.high %v12324_v48, %v12327_v13 }
  0xf1   : > { %7170 = vmatmul.mubr.bf16.gmra.mrb[20].mxu0 %v3548_v12  ;;  %15348 = vst [vmem:[#allocation43_spill] sm:$0xff] %v12318_v56  ;;  %15351 = vst [vmem:[#allocation134_spill] sm:$0xff] %v12331_v45  ;;  %v12342_v12 = vrot.slane %v8850_v9, %v10741_v2  ;;  %v3553_v37 = vcombine.high %v12315_v5, %v12318_v56  ;;  %v8889_v9 = vcombine.high %v11535_v61, %v11553_v41  ;;  %v10292_v41 = vld [vmem:[%s14792_s1 + $0x6d4] ss:$8 sps:$4 sm:$0xff]  }
  0xf2   : > { %7179 = vmatprep.mubr.bf16.mxu0 %v3551_v20  ;;  %7389 = vmatpush1.bf16.msra.mxu0 %v10272_v14  ;;  %v526_v20 = vmax.f32 %v382_v21, 0.0  ;;  %v3550_v14 = vcombine.low %v12254_v6, %v12257_v16  ;;  %v12357_v21 = vcombine.low %v12264_v50, %v12281_v11  ;;  %15355 = vst [vmem:[#allocation136_spill] sm:$0xff] %v12364_v58 }
  0xf3   : > { %5915 = vmatmul.mubr.bf16.gmra.mrb[80].mxu1 %v12293_v55  ;;  %15352 = vst [vmem:[#allocation135_spill] sm:$0xff] %v12342_v12  ;;  %7390 = vmatprep.subr.bf16.mxu0 %v10280_v59  ;;  %v10284_v59 = vld [vmem:[%s14792_s1 + $0x6c0] ss:$8 sps:$4 sm:$0xff]   ;;  %v2169_v16 = vcombine.low %v12331_v45, %v12307_v4  ;;  %v2170_v18 = vcombine.low %v12339_v46, %v12342_v12 }
  0xf4   : > { %5924 = vmatprep.mubr.bf16.mxu1 %v12304_v7  ;;  %15354 = vst [vmem:[#allocation49_spill] sm:$0xff] %v12357_v21  ;;  %v8851_v61 = vpack.c.bf16 %v527_v29, %v526_v20  ;;  %v12377_v11 = vrot.slane %v8889_v9, %v10741_v2  ;;  %v12382_v50 = vcombine.high %v12342_v12, %v12342_v12  ;;  %v10290_v20 = vld [vmem:[%s14792_s1 + $0x6d0] ss:$8 sps:$4 sm:$0xff]   ;;  %v10298_v9 = vld [vmem:[%s14792_s1 + $0x6e4] ss:$8 sps:$4 sm:$0xff]  }
  0xf5   : > { %v15358_v29 = vld [vmem:[#allocation4_spill] sm:$0xff]  ;;  %v3552_v62 = vcombine.low %v12315_v5, %v12318_v56  ;;  %v15364_v7 = vld [vmem:[#allocation2_spill] sm:$0xff] }
  0xf6   : > { %7391 = vmatpush1.bf16.msra.mxu0 %v10278_v27  ;;  %v12374_v27 = vrot.slane %v2936_v17, %v10741_v2  ;;  %15357 = vst [vmem:[#allocation138_spill] sm:$0xff] %v12377_v11  ;;  %v12390_v17 = vrot.slane %v2169_v16, %v10741_v2  ;;  %v8852_v55 = vrot.slane %v15364_v7, 9 }
  0xf7   : > { %7392 = vmatprep.subr.bf16.mxu0 %v10286_v34  ;;  %v1201_v34 = vrot.slane %v15358_v29, 7 }
  0xf8   : > { %15356 = vst [vmem:[#allocation137_spill] sm:$0xff] %v12374_v27  ;;  %15359 = vst [vmem:[#allocation139_spill] sm:$0xff] %v12390_v17  ;;  %v3555_v16 = vcombine.high %v12374_v27, %v12377_v11 }
  0xf9   : > { %7180 = vmatmul.mubr.bf16.gmra.mrb[24].mxu0 %v3550_v14  ;;  %v12396_v14 = vrot.slane %v8851_v61, %v10741_v2  ;;  %v2971_v61 = vcombine.low %v11625_v32, %v11641_v43  ;;  %v15366_v32 = vld [vmem:[#allocation6_spill] sm:$0xff] }
  0xfa   : > { %7189 = vmatprep.mubr.bf16.mxu0 %v3553_v37  ;;  %7393 = vmatpush1.bf16.msra.mxu0 %v10284_v59  ;;  %v12393_v37 = vrot.slane %v2170_v18, %v10741_v2  ;;  %v15361_v59 = vld [vmem:[#allocation5_spill] sm:$0xff]  ;;  %v2954_v18 = vcombine.low %v11618_v8, %v11632_v39  ;;  %v1210_v43 = vrot.slane %v15366_v32, 7 }
  0xfb   : > { %5925 = vmatmul.mubr.bf16.gmra.mrb[84].mxu1 %v12357_v21  ;;  %7394 = vmatprep.subr.bf16.mxu0 %v10292_v41  ;;  %v1207_v6 = vrot.slane %v15361_v59, 7  ;;  %v12413_v41 = vcombine.low %v12324_v48, %v12327_v13  ;;  %v2187_v5 = vcombine.low %v12382_v50, %v12396_v14  ;;  %v1203_v59 = vrot.slane %v1201_v34, 2 }
  0xfc   : > { %5934 = vmatprep.mubr.bf16.mxu1 %v12364_v58  ;;  %15360 = vst [vmem:[#allocation140_spill] sm:$0xff] %v12393_v37  ;;  %v15362_v58 = vld [vmem:[#allocation3_spill] sm:$0xff]  ;;  %v12418_v56 = vcombine.high %v12390_v17, %v12393_v37  ;;  %v12427_v7 = vrot.slane %v2954_v18, %v10741_v2  ;;  %v12430_v13 = vrot.slane %v2971_v61, %v10741_v2  ;;  %v15370_v61 = vld [vmem:[#allocation9_spill] sm:$0xff] }
  0xfd   : > { %v1204_v21 = vrot.slane %v15362_v58, 7  ;;  %15363 = vst [vmem:[#allocation141_spill] sm:$0xff] %v12413_v41  ;;  %v1209_v39 = vrot.slane %v1207_v6, 2  ;;  %v12440_v48 = vrot.slane %v2187_v5, %v10741_v2  ;;  %v1213_v32 = vrot.slane %v15370_v61, 7 }
  0xfe   : > { %7395 = vmatpush1.bf16.msra.mxu0 %v10290_v20  ;;  %15365 = vst [vmem:[#allocation2_spill] sm:$0xff] %v12418_v56  ;;  %v10296_v20 = vld [vmem:[%s14792_s1 + $0x6e0] ss:$8 sps:$4 sm:$0xff]   ;;  %15367 = vst [vmem:[#allocation142_spill] sm:$0xff] %v12427_v7 }
  0xff   : > { %7396 = vmatprep.subr.bf16.mxu0 %v10298_v9  ;;  %v1206_v8 = vrot.slane %v1204_v21, 2  ;;  %15368 = vst [vmem:[#allocation143_spill] sm:$0xff] %v12430_v13  ;;  %v10304_v9 = vld [vmem:[%s14792_s1 + $0x6f4] ss:$8 sps:$4 sm:$0xff]   ;;  %15369 = vst [vmem:[#allocation144_spill] sm:$0xff] %v12440_v48  ;;  %v1205_v18 = vsel %vm10826_vm6, %v1203_v59, %v1204_v21  ;;  %v2989_v59 = vcombine.low %v11681_v38, %v11671_v57  ;;  %v1215_v61 = vrot.slane %v1213_v32, 2 }
 0x100   : > { %v10302_v57 = vld [vmem:[%s14792_s1 + $0x6f0] ss:$8 sps:$4 sm:$0xff]  }
 0x101   : > { %7190 = vmatmul.mubr.bf16.gmra.mrb[28].mxu0 %v3552_v62  ;;  %v3554_v62 = vcombine.low %v12374_v27, %v12377_v11  ;;  %v1208_v29 = vsel %vm10826_vm6, %v1206_v8, %v1207_v6  ;;  %v1211_v11 = vsel %vm10826_vm6, %v1209_v39, %v1210_v43  ;;  %v15371_v27 = vld [vmem:[#allocation8_spill] sm:$0xff]  ;;  %v12462_v6 = vcombine.low %v12390_v17, %v12393_v37 }
 0x102   : > { %7199 = vmatprep.mubr.bf16.mxu0 %v3555_v16  ;;  %v1202_v16 = vsel %vm10826_vm6, %v8852_v55, %v1201_v34  ;;  %v1216_v5 = vrot.slane %v15371_v27, 7  ;;  %7397 = vmatpush1.bf16.msra.mxu0 %v10296_v20  ;;  %v3557_v55 = vcombine.high %v12427_v7, %v12430_v13  ;;  %v15372_v34 = vld [vmem:[#allocation64_spill] sm:$0xff]  ;;  %v2195_v39 = vcombine.high %v12440_v48, %v12440_v48 }
 0x103   : > { %5935 = vmatmul.mubr.bf16.gmra.mrb[88].mxu1 %v12413_v41  ;;  %v2972_v21 = vcombine.low %v11662_v3, %v15372_v34  ;;  %7398 = vmatprep.subr.bf16.mxu0 %v10304_v9  ;;  %15373 = vst [vmem:[#allocation64_spill] sm:$0xff] %v12462_v6  ;;  %v2246_v8 = vcombine.low %v1202_v16, %v1205_v18  ;;  %v1212_v20 = vrot.slane %v1210_v43, 2  ;;  %v15375_v34 = vld [vmem:[#allocation10_spill] sm:$0xff] }
 0x104   : > { %5944 = vmatprep.mubr.bf16.mxu1 %v12418_v56  ;;  %v1178_v56 = vcombine.high %v15371_v27, %v15371_v27  ;;  %v2247_v41 = vcombine.low %v1208_v29, %v1211_v11  ;;  %v15374_v27 = vld [vmem:[#allocation12_spill] sm:$0xff]  ;;  %v1218_v45 = vrot.slane %v1216_v5, 2  ;;  %v8853_v12 = vrot.slane %v15375_v34, 9 }
 0x105   : > { %v1223_v58 = vrot.slane %v15374_v27, 7  ;;  %v12472_v38 = vrot.slane %v2972_v21, %v10741_v2  ;;  %v12475_v9 = vrot.slane %v2989_v59, %v10741_v2  ;;  %v3556_v11 = vcombine.low %v12427_v7, %v12430_v13  ;;  %v15379_v21 = vld [vmem:[#allocation15_spill] sm:$0xff]  ;;  %v15381_v13 = vld [vmem:[#allocation18_spill] sm:$0xff] }
 0x106   : > { %v1219_v3 = vrot.slane %v1178_v56, 7  ;;  %v2254_v56 = vrot.slane %v2246_v8, %v10741_v2  ;;  %v2261_v27 = vrot.slane %v2247_v41, %v10741_v2  ;;  %v1214_v29 = vsel %vm10826_vm6, %v1212_v20, %v1213_v32  ;;  %v15380_v8 = vld [vmem:[#allocation16_spill] sm:$0xff]  ;;  %7399 = vmatpush1.bf16.msra.mxu0 %v10302_v57 }
 0x107   : > { %15376 = vst [vmem:[#allocation12_spill] sm:$0xff] %v12472_v38  ;;  %15377 = vst [vmem:[#allocation10_spill] sm:$0xff] %v12475_v9  ;;  %v1217_v43 = vsel %vm10826_vm6, %v1215_v61, %v1216_v5  ;;  %v1229_v59 = vrot.slane %v15379_v21, 7  ;;  %v3559_v41 = vcombine.high %v12472_v38, %v12475_v9  ;;  %v2990_v32 = vcombine.low %v11731_v24, %v11748_v40  ;;  %v10310_v24 = vld [vmem:[%s14792_s1 + $0x704] ss:$8 sps:$4 sm:$0xff]  }
 0x108   : > { %v1220_v18 = vsel %vm10826_vm6, %v1218_v45, %v1219_v3  ;;  %v3007_v61 = vcombine.low %v11773_v30, %v11756_v0  ;;  %v2264_v5 = vcombine.low %v1214_v29, %v1217_v43  ;;  %v2263_v20 = vcombine.high %v2254_v56, %v2261_v27  ;;  %7649 = vmatprep.subr.bf16.mxu0 %v10310_v24 }
 0x109   : > { %7200 = vmatmul.mubr.bf16.gmra.mrb[32].mxu0 %v3554_v62  ;;  %v15378_v62 = vld [vmem:[#allocation13_spill] sm:$0xff]  ;;  %v1225_v3 = vrot.slane %v1223_v58, 2  ;;  %v1235_v7 = vrot.slane %v15381_v13, 7  ;;  %v12501_v57 = vrot.slane %v2990_v32, %v10741_v2  ;;  %v3558_v40 = vcombine.low %v12472_v38, %v12475_v9 }
 0x10a   : > { %7209 = vmatprep.mubr.bf16.mxu0 %v3557_v55  ;;  %v1226_v16 = vrot.slane %v15378_v62, 7  ;;  %v1224_v55 = vsel %vm10826_vm6, %v8853_v12, %v1223_v58  ;;  %v1231_v12 = vrot.slane %v1229_v59, 2  ;;  %v2272_v30 = vrot.slane %v2264_v5, %v10741_v2 }
 0x10b   : > { %5945 = vmatmul.mubr.bf16.gmra.mrb[92].mxu1 %v12462_v6  ;;  %v2265_v45 = vcombine.low %v1220_v18, %v1224_v55  ;;  %15382 = vst [vmem:[#allocation145_spill] sm:$0xff] %v12501_v57  ;;  %v12504_v6 = vrot.slane %v3007_v61, %v10741_v2  ;;  %v15384_v55 = vld [vmem:[#allocation19_spill] sm:$0xff]  ;;  %v12758_v9 = vcombine.high %v12396_v14, %v12396_v14 }
 0x10c   : > { %5954 = vmatprep.mubr.bf16.mxu1 %v2195_v39  ;;  %v1232_v39 = vrot.slane %v15380_v8, 7  ;;  %v1228_v37 = vrot.slane %v1226_v16, 2  ;;  %v1238_v32 = vrot.slane %v15384_v55, 7 }
 0x10d   : > { %15383 = vst [vmem:[#allocation146_spill] sm:$0xff] %v12504_v6  ;;  %v2279_v58 = vrot.slane %v2265_v45, %v10741_v2  ;;  %v3561_v61 = vcombine.high %v12501_v57, %v12504_v6  ;;  %v1237_v45 = vrot.slane %v1235_v7, 2  ;;  %v3169_v38 = vcombine.low %v12396_v14, %v12758_v9 }
 0x10e   : > { %v1234_v17 = vrot.slane %v1232_v39, 2  ;;  %v1230_v29 = vsel %vm10826_vm6, %v1228_v37, %v1229_v59  ;;  %v1233_v43 = vsel %vm10826_vm6, %v1231_v12, %v1232_v39  ;;  %v2262_v37 = vcombine.low %v2254_v56, %v2261_v27  ;;  %v10263_v39 = vld [vmem:[%s14792_s1 + $0x200] ss:$8 sps:$4 sm:$0xff]  }
 0x10f   : > { %v2281_v59 = vcombine.high %v2272_v30, %v2279_v58  ;;  %v12549_v27 = vcombine.high %v11957_v19, %v11957_v19 }
 0x110   : > { %v1236_v18 = vsel %vm10826_vm6, %v1234_v17, %v1235_v7 }
 0x111   : > { %7210 = vmatmul.mubr.bf16.gmra.mrb[36].mxu0 %v3556_v11  ;;  %v1227_v11 = vsel %vm10826_vm6, %v1225_v3, %v1226_v16  ;;  %v8890_v16 = vcombine.high %v11756_v0, %v11796_v60  ;;  %v2283_v17 = vcombine.low %v1233_v43, %v1236_v18  ;;  %v1240_v3 = vrot.slane %v1238_v32, 2  ;;  %v10277_v43 = vld [vmem:[%s14792_s1 + $0x224] ss:$8 sps:$4 sm:$0xff]  }
 0x112   : > { %7219 = vmatprep.mubr.bf16.mxu0 %v3559_v41  ;;  %v12524_v41 = vcombine.high %v15384_v55, %v15384_v55  ;;  %v2282_v5 = vcombine.low %v1227_v11, %v1230_v29  ;;  %v15387_v60 = vcombine.low %v11805_v35, %v11821_v28  ;;  %v3560_v35 = vcombine.low %v12501_v57, %v12504_v6  ;;  %v389_v6 = vld [vmem:[%s10720_s26 + $0x3a8] sm:$0xff] }
 0x113   : > { %5955 = vmatmul.mubr.bf16.gmra.mrb[96].mxu1 %v12440_v48  ;;  %v12539_v0 = vrot.slane %v8890_v16, %v10741_v2  ;;  %v2297_v24 = vrot.slane %v2283_v17, %v10741_v2  ;;  %v1239_v11 = vsel %vm10826_vm6, %v1237_v45, %v1238_v32  ;;  %v3043_v16 = vcombine.low %v11957_v19, %v12549_v27 }
 0x114   : > { %5995 = vmatprep.mubr.bf16.mxu1 %v2263_v20  ;;  %15385 = vst [vmem:[#allocation147_spill] sm:$0xff] %v12524_v41  ;;  %v10271_v20 = vld [vmem:[%s14792_s1 + $0x214] ss:$8 sps:$4 sm:$0xff]   ;;  %v1241_v12 = vrot.slane %v12524_v41, 7  ;;  %v12545_v56 = vrot.slane %v15387_v60, %v10741_v2  ;;  %v2290_v7 = vrot.slane %v2282_v5, %v10741_v2 }
 0x115   : > { %15386 = vst [vmem:[#allocation148_spill] sm:$0xff] %v12539_v0  ;;  %v10283_v5 = vld [vmem:[%s14792_s1 + $0x234] ss:$8 sps:$4 sm:$0xff]  }
 0x116   : > { %15388 = vst [vmem:[#allocation149_spill] sm:$0xff] %v12545_v56  ;;  %v1242_v29 = vsel %vm10826_vm6, %v1240_v3, %v1241_v12  ;;  %v3563_v18 = vcombine.high %v12539_v0, %v12545_v56  ;;  %v3562_v45 = vcombine.low %v12539_v0, %v12545_v56  ;;  %v10289_v3 = vld [vmem:[%s14792_s1 + $0x244] ss:$8 sps:$4 sm:$0xff]   ;;  %v15391_v60 = vld [vmem:[#allocation101_spill] sm:$0xff] }
 0x117   : > { %v2300_v32 = vcombine.low %v1239_v11, %v1242_v29  ;;  %v15393_v11 = vld [vmem:[#allocation104_spill] sm:$0xff] }
 0x118   : > { %v3061_v29 = vcombine.low %v15393_v11, %v12013_v49 }
 0x119   : > { %7220 = vmatmul.mubr.bf16.gmra.mrb[40].mxu0 %v3558_v40  ;;  %v10269_v40 = vld [vmem:[%s14792_s1 + $0x210] ss:$8 sps:$4 sm:$0xff]  }
 0x11a   : > { %7229 = vmatprep.mubr.bf16.mxu0 %v3561_v61  ;;  %v3026_v61 = vcombine.low %v11939_v1, %v11967_v23 }
 0x11b   : > { %5996 = vmatmul.mubr.bf16.vlgmr.msra.gmra.mrb[0].mxu1 %v2262_v37  ;;  %v2280_v37 = vcombine.low %v2272_v30, %v2279_v58  ;;  %v2308_v30 = vrot.slane %v2300_v32, %v10741_v2  ;;  %v10281_v58 = vld [vmem:[%s14792_s1 + $0x230] ss:$8 sps:$4 sm:$0xff]   ;;  %v12609_v32 = vrot.slane %v3061_v29, %v10741_v2 }
 0x11c   : > { %6005 = vmatprep.mubr.bf16.mxu1 %v2281_v59  ;;  %6245 = vmatpush1.bf16.msra.mxu1 %v10263_v39  ;;  %v2299_v59 = vcombine.high %v2290_v7, %v2297_v24  ;;  %v10275_v39 = vld [vmem:[%s14792_s1 + $0x220] ss:$8 sps:$4 sm:$0xff]   ;;  %v12578_v17 = vrot.slane %v3026_v61, %v10741_v2 }
 0x11d   : > { %6246 = vmatprep.subr.bf16.mxu1 %v10271_v20  ;;  %v12581_v20 = vrot.slane %v3043_v16, %v10741_v2  ;;  %v10287_v16 = vld [vmem:[%s14792_s1 + $0x240] ss:$8 sps:$4 sm:$0xff]  }
 0x11e   : > { %15389 = vst [vmem:[#allocation150_spill] sm:$0xff] %v12578_v17 }
 0x11f   : > { %15390 = vst [vmem:[#allocation151_spill] sm:$0xff] %v12581_v20  ;;  %v3565_v12 = vcombine.high %v12578_v17, %v12581_v20 }
 0x120   : > { %6247 = vmatpush1.bf16.msra.mxu1 %v10269_v40  ;;  %v15392_v40 = vld [vmem:[#allocation99_spill] sm:$0xff] }
 0x121   : > { %7230 = vmatmul.mubr.bf16.gmra.mrb[44].mxu0 %v3560_v35  ;;  %6248 = vmatprep.subr.bf16.mxu1 %v10277_v43  ;;  %v3044_v35 = vcombine.low %v15392_v40, %v15391_v60  ;;  %v2298_v43 = vcombine.low %v2290_v7, %v2297_v24  ;;  %15396 = vst [vmem:[#allocation99_spill] sm:$0xff] %v12609_v32  ;;  %v10293_v7 = vld [vmem:[%s14792_s1 + $0x250] ss:$8 sps:$4 sm:$0xff]  }
 0x122   : > { %7239 = vmatprep.mubr.bf16.mxu0 %v3563_v18  ;;  %v15394_v18 = vld [vmem:[#allocation7_spill] sm:$0xff]  ;;  %v3564_v24 = vcombine.low %v12578_v17, %v12581_v20 }
 0x123   : > { %6006 = vmatmul.mubr.bf16.gmra.mrb[4].mxu1 %v2280_v37  ;;  %v2317_v61 = vcombine.high %v2308_v30, %v15394_v18  ;;  %v10295_v37 = vld [vmem:[%s14792_s1 + $0x254] ss:$8 sps:$4 sm:$0xff]  }
 0x124   : > { %6015 = vmatprep.mubr.bf16.mxu1 %v2299_v59  ;;  %6249 = vmatpush1.bf16.msra.mxu1 %v10275_v39  ;;  %v12606_v59 = vrot.slane %v3044_v35, %v10741_v2  ;;  %v10301_v39 = vld [vmem:[%s14792_s1 + $0x264] ss:$8 sps:$4 sm:$0xff]  }
 0x125   : > { %6250 = vmatprep.subr.bf16.mxu1 %v10283_v5  ;;  %v15398_v35 = vld [vmem:[#allocation11_spill] sm:$0xff] }
 0x126   : > { %15395 = vst [vmem:[#allocation101_spill] sm:$0xff] %v12606_v59  ;;  %v3567_v5 = vcombine.high %v12606_v59, %v12609_v32 }
 0x128   : > { %6251 = vmatpush1.bf16.msra.mxu1 %v10281_v58  ;;  %v3062_v58 = vcombine.low %v12029_v42, %v12077_v53 }
 0x129   : > { %7240 = vmatmul.mubr.bf16.gmra.mrb[48].mxu0 %v3562_v45  ;;  %6252 = vmatprep.subr.bf16.mxu1 %v10289_v3  ;;  %v8891_v45 = vcombine.high %v12077_v53, %v12070_v26  ;;  %v2316_v3 = vcombine.low %v2308_v30, %v15394_v18  ;;  %v10305_v18 = vld [vmem:[%s14792_s1 + $0x270] ss:$8 sps:$4 sm:$0xff]  }
 0x12a   : > { %7249 = vmatprep.mubr.bf16.mxu0 %v3565_v12  ;;  %v15397_v12 = vld [vmem:[#allocation14_spill] sm:$0xff] }
 0x12b   : > { %6016 = vmatmul.mubr.bf16.gmra.mrb[8].mxu1 %v2298_v43  ;;  %v2335_v29 = vcombine.high %v15398_v35, %v15397_v12  ;;  %v10299_v43 = vld [vmem:[%s14792_s1 + $0x260] ss:$8 sps:$4 sm:$0xff]   ;;  %v12638_v30 = vrot.slane %v8891_v45, %v10741_v2  ;;  %v15401_v45 = vld [vmem:[#allocation21_spill] sm:$0xff] }
 0x12c   : > { %6025 = vmatprep.mubr.bf16.mxu1 %v2317_v61  ;;  %6253 = vmatpush1.bf16.msra.mxu1 %v10287_v16  ;;  %v10307_v61 = vld [vmem:[%s14792_s1 + $0x274] ss:$8 sps:$4 sm:$0xff]   ;;  %v12635_v16 = vrot.slane %v3062_v58, %v10741_v2  ;;  %v2334_v58 = vcombine.low %v15398_v35, %v15397_v12  ;;  %v12672_v35 = vcombine.high %v12148_v63, %v12148_v63 }
 0x12d   : > { %6254 = vmatprep.subr.bf16.mxu1 %v10295_v37  ;;  %15400 = vst [vmem:[#allocation7_spill] sm:$0xff] %v12638_v30  ;;  %v3566_v37 = vcombine.low %v12606_v59, %v12609_v32  ;;  %v384_v59 = vld [vmem:[%s10720_s26 + $0x380] sm:$0xff] }
 0x12e   : > { %15399 = vst [vmem:[#allocation104_spill] sm:$0xff] %v12635_v16 }
 0x130   : > { %6255 = vmatpush1.bf16.msra.mxu1 %v10293_v7  ;;  %v10313_v7 = vld [vmem:[%s14792_s1 + $0x284] ss:$8 sps:$4 sm:$0xff]  }
 0x131   : > { %7250 = vmatmul.mubr.bf16.gmra.mrb[52].mxu0 %v3564_v24  ;;  %6256 = vmatprep.subr.bf16.mxu1 %v10301_v39  ;;  %v3569_v24 = vcombine.high %v12635_v16, %v12638_v30  ;;  %v3080_v39 = vcombine.low %v12080_v54, %v12138_v31 }
 0x132   : > { %7259 = vmatprep.mubr.bf16.mxu0 %v3567_v5  ;;  %v3097_v5 = vcombine.low %v12118_v36, %v12152_v10 }
 0x133   : > { %6026 = vmatmul.mubr.bf16.gmra.mrb[12].mxu1 %v2316_v3  ;;  %v15402_v3 = vld [vmem:[#allocation17_spill] sm:$0xff]  ;;  %v12665_v32 = vrot.slane %v3080_v39, %v10741_v2  ;;  %v3098_v39 = vcombine.low %v12148_v63, %v12672_v35 }
 0x134   : > { %6035 = vmatprep.mubr.bf16.mxu1 %v2335_v29  ;;  %6257 = vmatpush1.bf16.msra.mxu1 %v10299_v43  ;;  %v2353_v29 = vcombine.high %v15402_v3, %v15401_v45  ;;  %v10311_v43 = vld [vmem:[%s14792_s1 + $0x280] ss:$8 sps:$4 sm:$0xff]   ;;  %v12668_v12 = vrot.slane %v3097_v5, %v10741_v2  ;;  %v3115_v5 = vcombine.low %v12204_v52, %v12185_v22 }
 0x135   : > { %6258 = vmatprep.subr.bf16.mxu1 %v10307_v61  ;;  %v10319_v61 = vld [vmem:[%s14792_s1 + $0x294] ss:$8 sps:$4 sm:$0xff]   ;;  %15403 = vst [vmem:[#allocation14_spill] sm:$0xff] %v12665_v32  ;;  %v12699_v20 = vrot.slane %v3098_v39, %v10741_v2 }
 0x136   : > { %15404 = vst [vmem:[#allocation11_spill] sm:$0xff] %v12668_v12 }
 0x137   : > { %15407 = vst [vmem:[#allocation21_spill] sm:$0xff] %v12699_v20 }
 0x138   : > { %6259 = vmatpush1.bf16.msra.mxu1 %v10305_v18  ;;  %v10317_v18 = vld [vmem:[%s14792_s1 + $0x290] ss:$8 sps:$4 sm:$0xff]  }
 0x139   : > { %7260 = vmatmul.mubr.bf16.gmra.mrb[56].mxu0 %v3566_v37  ;;  %6260 = vmatprep.subr.bf16.mxu1 %v10313_v7  ;;  %v3568_v37 = vcombine.low %v12635_v16, %v12638_v30  ;;  %v10325_v7 = vld [vmem:[%s14792_s1 + $0x2a4] ss:$8 sps:$4 sm:$0xff]   ;;  %v10331_v16 = vld [vmem:[%s14792_s1 + $0x2b4] ss:$8 sps:$4 sm:$0xff]  }
 0x13a   : > { %7269 = vmatprep.mubr.bf16.mxu0 %v3569_v24  ;;  %v3571_v24 = vcombine.high %v12665_v32, %v12668_v12 }
 0x13b   : > { %6036 = vmatmul.mubr.bf16.gmra.mrb[16].mxu1 %v2334_v58  ;;  %v2352_v58 = vcombine.low %v15402_v3, %v15401_v45  ;;  %v12702_v45 = vrot.slane %v3115_v5, %v10741_v2  ;;  %v10329_v3 = vld [vmem:[%s14792_s1 + $0x2b0] ss:$8 sps:$4 sm:$0xff]  }
 0x13c   : > { %6045 = vmatprep.mubr.bf16.mxu1 %v2353_v29  ;;  %6261 = vmatpush1.bf16.msra.mxu1 %v10311_v43  ;;  %v15405_v29 = vld [vmem:[#allocation25_spill] sm:$0xff]  ;;  %v15406_v43 = vld [vmem:[#allocation22_spill] sm:$0xff] }
 0x13d   : > { %6262 = vmatprep.subr.bf16.mxu1 %v10319_v61  ;;  %v2371_v30 = vcombine.high %v15406_v43, %v15405_v29  ;;  %v10323_v61 = vld [vmem:[%s14792_s1 + $0x2a0] ss:$8 sps:$4 sm:$0xff]   ;;  %15408 = vst [vmem:[#allocation17_spill] sm:$0xff] %v12702_v45  ;;  %v2370_v39 = vcombine.low %v15406_v43, %v15405_v29  ;;  %v15409_v5 = vld [vmem:[#allocation29_spill] sm:$0xff]  ;;  %v386_v43 = vld [vmem:[%s10720_s26 + $0x390] sm:$0xff] }
 0x13e   : > { %v385_v29 = vld [vmem:[%s10720_s26 + $0x388] sm:$0xff]  ;;  %v530_v56 = vmax.f32 %v386_v43, 0.0 }
 0x140   : > { %6263 = vmatpush1.bf16.msra.mxu1 %v10317_v18  ;;  %v3570_v18 = vcombine.low %v12665_v32, %v12668_v12 }
 0x141   : > { %7270 = vmatmul.mubr.bf16.gmra.mrb[60].mxu0 %v3568_v37  ;;  %6264 = vmatprep.subr.bf16.mxu1 %v10325_v7  ;;  %v3116_v37 = vcombine.low %v12218_v33, %v12240_v47  ;;  %v3133_v7 = vcombine.low %v12271_v51, %v12267_v15 }
 0x142   : > { %7279 = vmatprep.mubr.bf16.mxu0 %v3571_v24  ;;  %v3573_v24 = vcombine.high %v12699_v20, %v12702_v45 }
 0x143   : > { %6046 = vmatmul.mubr.bf16.gmra.mrb[20].mxu1 %v2352_v58  ;;  %v15410_v58 = vld [vmem:[#allocation26_spill] sm:$0xff]  ;;  %v12728_v12 = vrot.slane %v3116_v37, %v10741_v2  ;;  %v12731_v32 = vrot.slane %v3133_v7, %v10741_v2  ;;  %v8892_v7 = vcombine.high %v12267_v15, %v12274_v25 }
 0x144   : > { %6055 = vmatprep.mubr.bf16.mxu1 %v2371_v30  ;;  %6265 = vmatpush1.bf16.msra.mxu1 %v10323_v61  ;;  %v10337_v30 = vld [vmem:[%s14792_s1 + $0x2c4] ss:$8 sps:$4 sm:$0xff]   ;;  %v12722_v61 = vcombine.high %v15410_v58, %v15409_v5 }
 0x145   : > { %6266 = vmatprep.subr.bf16.mxu1 %v10331_v16  ;;  %v10335_v16 = vld [vmem:[%s14792_s1 + $0x2c0] ss:$8 sps:$4 sm:$0xff]   ;;  %15412 = vst [vmem:[#allocation22_spill] sm:$0xff] %v12728_v12  ;;  %15413 = vst [vmem:[#allocation29_spill] sm:$0xff] %v12731_v32  ;;  %v3575_v37 = vcombine.high %v12728_v12, %v12731_v32 }
 0x146   : > { %15411 = vst [vmem:[#allocation25_spill] sm:$0xff] %v12722_v61 }
 0x148   : > { %6267 = vmatpush1.bf16.msra.mxu1 %v10329_v3  ;;  %v387_v3 = vld [vmem:[%s10720_s26 + $0x398] sm:$0xff] }
 0x149   : > { %7280 = vmatmul.mubr.bf16.gmra.mrb[64].mxu0 %v3570_v18  ;;  %6268 = vmatprep.subr.bf16.mxu1 %v10337_v30  ;;  %v3572_v18 = vcombine.low %v12699_v20, %v12702_v45  ;;  %v3151_v30 = vcombine.low %v12307_v4, %v12339_v46  ;;  %v531_v17 = vmax.f32 %v387_v3, 0.0  ;;  %v15415_v45 = vld [vmem:[#allocation33_spill] sm:$0xff]  ;;  %v15416_v20 = vld [vmem:[#allocation30_spill] sm:$0xff]  ;;  %v533_v3 = vmax.f32 %v389_v6, 0.0  ;;  %v390_v6 = vld [vmem:[%s10720_s26 + $0x3b0] sm:$0xff] }
 0x14a   : > { %7289 = vmatprep.mubr.bf16.mxu0 %v3573_v24  ;;  %v528_v24 = vmax.f32 %v384_v59, 0.0  ;;  %v12754_v0 = vcombine.high %v15416_v20, %v15415_v45  ;;  %v12761_v59 = vrot.slane %v8892_v7, %v10741_v2 }
 0x14b   : > { %6056 = vmatmul.mubr.bf16.gmra.mrb[24].mxu1 %v2370_v39  ;;  %v529_v39 = vmax.f32 %v385_v29, 0.0  ;;  %v12764_v29 = vrot.slane %v3151_v30, %v10741_v2  ;;  %v8867_v7 = vpack.c.bf16 %v531_v17, %v530_v56  ;;  %v15420_v30 = vld [vmem:[#allocation135_spill] sm:$0xff] }
 0x14c   : > { %6065 = vmatprep.mubr.bf16.mxu1 %v12722_v61  ;;  %6269 = vmatpush1.bf16.msra.mxu1 %v10335_v16  ;;  %v12748_v61 = vcombine.low %v15410_v58, %v15409_v5  ;;  %v388_v16 = vld [vmem:[%s10720_s26 + $0x3a0] sm:$0xff]  ;;  %15417 = vst [vmem:[#allocation33_spill] sm:$0xff] %v12754_v0  ;;  %15418 = vst [vmem:[#allocation30_spill] sm:$0xff] %v12761_v59  ;;  %v10341_v5 = vld [vmem:[%s14792_s1 + $0x2d0] ss:$8 sps:$4 sm:$0xff]   ;;  %v3152_v57 = vcombine.low %v15420_v30, %v12382_v50 }
 0x14d   : > { %15419 = vst [vmem:[#allocation152_spill] sm:$0xff] %v12764_v29  ;;  %v10343_v58 = vld [vmem:[%s14792_s1 + $0x2d4] ss:$8 sps:$4 sm:$0xff]   ;;  %v532_v43 = vmax.f32 %v388_v16, 0.0  ;;  %v12787_v17 = vrot.slane %v8867_v7, %v10741_v2 }
 0x14e   : > { %15414 = vst [vmem:[#allocation26_spill] sm:$0xff] %v12748_v61  ;;  %6270 = vmatprep.subr.bf16.mxu1 %v10343_v58  ;;  %v391_v16 = vld [vmem:[%s10720_s26 + $0x3b8] sm:$0xff]  ;;  %v392_v58 = vld [vmem:[%s10720_s26 + $0x3c0] sm:$0xff] }
 0x14f   : > { %v536_v48 = vmax.f32 %v392_v58, 0.0  ;;  %v3576_v58 = vcombine.low %v12761_v59, %v12764_v29 }
 0x150   : > { %6271 = vmatpush1.bf16.msra.mxu1 %v10341_v5  ;;  %v12794_v5 = vcombine.low %v15416_v20, %v15415_v45  ;;  %v10347_v20 = vld [vmem:[%s14792_s1 + $0x2e0] ss:$8 sps:$4 sm:$0xff]  }
 0x151   : > { %7290 = vmatmul.mubr.bf16.gmra.mrb[68].mxu0 %v3572_v18  ;;  %v8866_v18 = vpack.c.bf16 %v529_v39, %v528_v24  ;;  %v3577_v24 = vcombine.high %v12761_v59, %v12764_v29  ;;  %v8868_v39 = vpack.c.bf16 %v533_v3, %v532_v43  ;;  %v534_v43 = vmax.f32 %v390_v6, 0.0  ;;  %v395_v6 = vld [vmem:[%s10720_s26 + $0x3d8] sm:$0xff] }
 0x152   : > { %7299 = vmatprep.mubr.bf16.mxu0 %v3575_v37  ;;  %v3574_v37 = vcombine.low %v12728_v12, %v12731_v32  ;;  %15422 = vst [vmem:[#allocation153_spill] sm:$0xff] %v12794_v5  ;;  %v12797_v32 = vrot.slane %v3152_v57, %v10741_v2  ;;  %v12800_v12 = vrot.slane %v3169_v38, %v10741_v2  ;;  %v535_v3 = vmax.f32 %v391_v16, 0.0  ;;  %v397_v16 = vld [vmem:[%s10720_s26 + $0x3e8] sm:$0xff] }
 0x153   : > { %6066 = vmatmul.mubr.bf16.gmra.mrb[28].mxu1 %v12748_v61  ;;  %v12784_v56 = vrot.slane %v8866_v18, %v10741_v2  ;;  %v15425_v18 = vld [vmem:[#allocation41_spill] sm:$0xff]  ;;  %v15426_v61 = vld [vmem:[#allocation35_spill] sm:$0xff]  ;;  %v12815_v57 = vcombine.high %v12787_v17, %v12787_v17  ;;  %v12818_v45 = vrot.slane %v8868_v39, %v10741_v2  ;;  %v539_v13 = vmax.f32 %v395_v6, 0.0 }
 0x154   : > { %6075 = vmatprep.mubr.bf16.mxu1 %v12754_v0  ;;  %v393_v0 = vld [vmem:[%s10720_s26 + $0x3c8] sm:$0xff]  ;;  %15423 = vst [vmem:[#allocation154_spill] sm:$0xff] %v12797_v32  ;;  %15424 = vst [vmem:[#allocation155_spill] sm:$0xff] %v12800_v12  ;;  %v12804_v7 = vcombine.high %v15426_v61, %v15425_v18  ;;  %v8869_v39 = vpack.c.bf16 %v535_v3, %v534_v43  ;;  %v541_v59 = vmax.f32 %v397_v16, 0.0  ;;  %v15429_v43 = vld [vmem:[#allocation46_spill] sm:$0xff] }
 0x155   : > { %15421 = vst [vmem:[#allocation135_spill] sm:$0xff] %v12784_v56  ;;  %v537_v55 = vmax.f32 %v393_v0, 0.0  ;;  %v12811_v38 = vcombine.high %v12784_v56, %v12784_v56  ;;  %v10349_v0 = vld [vmem:[%s14792_s1 + $0x2e4] ss:$8 sps:$4 sm:$0xff]   ;;  %v3579_v56 = vcombine.high %v12797_v32, %v12800_v12  ;;  %v12839_v21 = vcombine.low %v15426_v61, %v15425_v18  ;;  %v399_v16 = vld [vmem:[%s10720_s26 + $0x3f8] sm:$0xff] }
 0x156   : > { %6272 = vmatprep.subr.bf16.mxu1 %v10349_v0  ;;  %v15428_v0 = vld [vmem:[#allocation51_spill] sm:$0xff]  ;;  %v12850_v3 = vcombine.high %v12818_v45, %v12818_v45 }
 0x157   : > { %v8870_v41 = vpack.c.bf16 %v537_v55, %v536_v48  ;;  %6273 = vmatpush1.bf16.msra.mxu1 %v10347_v20  ;;  %v3580_v62 = vcombine.low %v12811_v38, %v12787_v17  ;;  %15427 = vst [vmem:[#allocation41_spill] sm:$0xff] %v12839_v21  ;;  %v12843_v48 = vcombine.high %v15429_v43, %v15428_v0 }
 0x158   : > { %v12846_v55 = vrot.slane %v8869_v39, %v10741_v2  ;;  %v15434_v39 = vld [vmem:[#allocation57_spill] sm:$0xff] }
 0x159   : > { %7300 = vmatmul.mubr.bf16.gmra.mrb[72].mxu0 %v3574_v37  ;;  %v394_v37 = vld [vmem:[%s10720_s26 + $0x3d0] sm:$0xff]  ;;  %15430 = vst [vmem:[#allocation35_spill] sm:$0xff] %v12843_v48  ;;  %v12853_v20 = vrot.slane %v8870_v41, %v10741_v2  ;;  %v12856_v61 = vrot.slane %v3580_v62, %v10741_v2 }
 0x15a   : > { %7309 = vmatprep.mubr.bf16.mxu0 %v3577_v24  ;;  %v396_v24 = vld [vmem:[%s10720_s26 + $0x3e0] sm:$0xff]  ;;  %v538_v8 = vmax.f32 %v394_v37, 0.0 }
 0x15b   : > { %6076 = vmatmul.mubr.bf16.gmra.mrb[32].mxu1 %v12794_v5  ;;  %v3581_v5 = vcombine.low %v12815_v57, %v12818_v45  ;;  %v540_v29 = vmax.f32 %v396_v24, 0.0  ;;  %15431 = vst [vmem:[#allocation51_spill] sm:$0xff] %v12856_v61  ;;  %v398_v24 = vld [vmem:[%s10720_s26 + $0x3f0] sm:$0xff]  ;;  %v8893_v62 = vcombine.high %v12846_v55, %v12853_v20 }
 0x15c   : > { %6085 = vmatprep.mubr.bf16.mxu1 %v12804_v7  ;;  %v8871_v37 = vpack.c.bf16 %v539_v13, %v538_v8  ;;  %v3598_v13 = vcombine.low %v12850_v3, %v12846_v55 }
 0x15d   : > { %v12859_v18 = vrot.slane %v3581_v5, %v10741_v2  ;;  %v8872_v6 = vpack.c.bf16 %v541_v59, %v540_v29  ;;  %v542_v29 = vmax.f32 %v398_v24, 0.0  ;;  %v12881_v5 = vcombine.low %v15429_v43, %v15428_v0 }
 0x15e   : > { %v12872_v8 = vrot.slane %v8871_v37, %v10741_v2  ;;  %v12888_v37 = vrot.slane %v3598_v13, %v10741_v2 }
 0x15f   : > { %15432 = vst [vmem:[#allocation46_spill] sm:$0xff] %v12859_v18  ;;  %v3597_v41 = vcombine.high %v12856_v61, %v12859_v18  ;;  %v12877_v59 = vrot.slane %v8872_v6, %v10741_v2  ;;  %15433 = vst [vmem:[#allocation156_spill] sm:$0xff] %v12881_v5  ;;  %v12894_v6 = vrot.slane %v8893_v62, %v10741_v2 }
 0x160   : > { %v12898_v0 = vcombine.high %v12872_v8, %v12872_v8 }
 0x161   : > { %7310 = vmatmul.mubr.bf16.gmra.mrb[76].mxu0 %v3576_v58  ;;  %v3578_v58 = vcombine.low %v12797_v32, %v12800_v12  ;;  %v15435_v12 = vld [vmem:[#allocation52_spill] sm:$0xff]  ;;  %15438 = vst [vmem:[#allocation157_spill] sm:$0xff] %v12894_v6  ;;  %v12902_v43 = vcombine.high %v12877_v59, %v12877_v59  ;;  %v3615_v13 = vcombine.high %v12888_v37, %v12894_v6 }
 0x162   : > { %7319 = vmatprep.mubr.bf16.mxu0 %v3579_v56  ;;  %v543_v56 = vmax.f32 %v399_v16, 0.0  ;;  %v12885_v32 = vcombine.high %v15435_v12, %v15434_v39  ;;  %15437 = vst [vmem:[#allocation52_spill] sm:$0xff] %v12888_v37  ;;  %v10355_v16 = vld [vmem:[%s14792_s1 + $0x2f4] ss:$8 sps:$4 sm:$0xff]   ;;  %v3616_v62 = vcombine.low %v12872_v8, %v12898_v0 }
 0x163   : > { %6086 = vmatmul.mubr.bf16.gmra.mrb[36].mxu1 %v12839_v21  ;;  %6274 = vmatprep.subr.bf16.mxu1 %v10355_v16  ;;  %v15440_v16 = vld [vmem:[#allocation63_spill] sm:$0xff] }
 0x164   : > { %6095 = vmatprep.mubr.bf16.mxu1 %v12843_v48  ;;  %15436 = vst [vmem:[#allocation57_spill] sm:$0xff] %v12885_v32  ;;  %v10353_v48 = vld [vmem:[%s14792_s1 + $0x2f0] ss:$8 sps:$4 sm:$0xff]   ;;  %v8873_v24 = vpack.c.bf16 %v543_v56, %v542_v29  ;;  %v12922_v56 = vcombine.low %v15435_v12, %v15434_v39  ;;  %v10361_v12 = vld [vmem:[%s14792_s1 + $0x304] ss:$8 sps:$4 sm:$0xff]   ;;  %v3614_v39 = vcombine.low %v12888_v37, %v12894_v6  ;;  %v1408_v6 = vrot.slane %v11939_v1, 7 }
 0x165   : > { %6275 = vmatpush1.bf16.msra.mxu1 %v10353_v48  ;;  %v12929_v48 = vrot.slane %v3616_v62, %v10741_v2  ;;  %v1411_v1 = vrot.slane %v11967_v23, 7 }
 0x166   : > { %v12918_v29 = vrot.slane %v8873_v24, %v10741_v2  ;;  %6525 = vmatprep.subr.bf16.mxu1 %v10361_v12 }
 0x168   : > { %15439 = vst [vmem:[#allocation158_spill] sm:$0xff] %v12918_v29  ;;  %v12936_v24 = vcombine.high %v12918_v29, %v12918_v29 }
 0x169   : > { %7320 = vmatmul.mubr.bf16.gmra.mrb[80].mxu0 %v3578_v58  ;;  %v3596_v58 = vcombine.low %v12856_v61, %v12859_v18 }
 0x16a   : > { %7329 = vmatprep.mubr.bf16.mxu0 %v3597_v41  ;;  %v3617_v41 = vcombine.low %v12877_v59, %v12902_v43  ;;  %15445 = vst [vmem:[#allocation160_spill] sm:$0xff] %v12936_v24 }
 0x16b   : > { %6096 = vmatmul.mubr.bf16.gmra.mrb[40].mxu1 %v12881_v5  ;;  %v15448_v5 = vld [vmem:[#allocation65_spill] sm:$0xff] }
 0x16c   : > { %6105 = vmatprep.mubr.bf16.mxu1 %v12885_v32  ;;  %v15441_v32 = vld [vmem:[#allocation59_spill] sm:$0xff]  ;;  %v12932_v61 = vrot.slane %v3617_v41, %v10741_v2  ;;  %v15447_v41 = vld [vmem:[#allocation70_spill] sm:$0xff] }
 0x16d   : > { %v12926_v18 = vcombine.high %v15441_v32, %v15440_v16  ;;  %15443 = vst [vmem:[#allocation59_spill] sm:$0xff] %v12929_v48  ;;  %v12951_v62 = vcombine.low %v15441_v32, %v15440_v16  ;;  %v12955_v21 = vcombine.high %v15448_v5, %v15447_v41  ;;  %v12969_v16 = vcombine.low %v15448_v5, %v15447_v41 }
 0x16e   : > { %15444 = vst [vmem:[#allocation159_spill] sm:$0xff] %v12932_v61  ;;  %v3632_v37 = vcombine.low %v12929_v48, %v12932_v61 }
 0x16f   : > { %15442 = vst [vmem:[#allocation63_spill] sm:$0xff] %v12926_v18  ;;  %15446 = vst [vmem:[#allocation161_spill] sm:$0xff] %v12951_v62 }
 0x170   : > { %15449 = vst [vmem:[#allocation70_spill] sm:$0xff] %v12955_v21  ;;  %15451 = vst [vmem:[#allocation162_spill] sm:$0xff] %v12969_v16 }
 0x171   : > { %7330 = vmatmul.mubr.bf16.gmra.mrb[84].mxu0 %v3596_v58  ;;  %v3633_v58 = vcombine.high %v12929_v48, %v12932_v61  ;;  %v1414_v61 = vrot.slane %v11957_v19, 7  ;;  %v1424_v19 = vrot.slane %v15391_v60, 7 }
 0x172   : > { %7339 = vmatprep.mubr.bf16.mxu0 %v3615_v13  ;;  %v3634_v13 = vcombine.low %v12918_v29, %v12936_v24  ;;  %v15455_v24 = vrot.slane %v11821_v28, 7  ;;  %v1421_v28 = vrot.slane %v15392_v40, 7  ;;  %v15460_v40 = vld [vmem:[#allocation38_spill] sm:$0xff] }
 0x173   : > { %6106 = vmatmul.mubr.bf16.gmra.mrb[44].mxu1 %v12922_v56 }
 0x174   : > { %6115 = vmatprep.mubr.bf16.mxu1 %v12926_v18  ;;  %v12958_v12 = vrot.slane %v3634_v13, %v10741_v2 }
 0x176   : > { %15450 = vst [vmem:[#allocation65_spill] sm:$0xff] %v12958_v12  ;;  %v3642_v32 = vcombine.high %v12958_v12, %v12958_v12 }
 0x179   : > { %7340 = vmatmul.mubr.bf16.gmra.mrb[88].mxu0 %v3614_v39  ;;  %v15452_v39 = vld [vmem:[#allocation75_spill] sm:$0xff] }
 0x17a   : > { %7349 = vmatprep.mubr.bf16.mxu0 %v3633_v58  ;;  %v15453_v58 = vld [vmem:[#allocation71_spill] sm:$0xff] }
 0x17b   : > { %6116 = vmatmul.mubr.bf16.gmra.mrb[48].mxu1 %v12951_v62  ;;  %v12973_v13 = vcombine.high %v15453_v58, %v15452_v39  ;;  %v1407_v62 = vrot.slane %v15455_v24, 2  ;;  %v1417_v24 = vrot.slane %v12549_v27, 7  ;;  %v12989_v23 = vcombine.low %v15453_v58, %v15452_v39 }
 0x17c   : > { %6125 = vmatprep.mubr.bf16.mxu1 %v12955_v21  ;;  %v1410_v21 = vrot.slane %v1408_v6, 2 }
 0x17d   : > { %15454 = vst [vmem:[#allocation75_spill] sm:$0xff] %v12973_v13  ;;  %v1409_v5 = vsel %vm10826_vm6, %v1407_v62, %v1408_v6  ;;  %v1416_v6 = vrot.slane %v1414_v61, 2  ;;  %v15459_v62 = vld [vmem:[#allocation97_spill] sm:$0xff] }
 0x17e   : > { %v1412_v41 = vsel %vm10826_vm6, %v1410_v21, %v1411_v1  ;;  %v8862_v18 = vrot.slane %v15459_v62, 9  ;;  %v1423_v21 = vrot.slane %v1421_v28, 2  ;;  %v10308_v62 = vld [vmem:[%s14792_s1 + $0x700] ss:$8 sps:$4 sm:$0xff]  }
 0x17f   : > { %v1418_v58 = vsel %vm10826_vm6, %v1416_v6, %v1417_v24 }
 0x180   : > { %v1422_v60 = vsel %vm10826_vm6, %v8862_v18, %v1421_v28 }
 0x181   : > { %7350 = vmatmul.mubr.bf16.gmra.mrb[92].mxu0 %v3632_v37  ;;  %v15456_v37 = vld [vmem:[#allocation82_spill] sm:$0xff] }
 0x182   : > { %7359 = vmatprep.mubr.bf16.mxu0 %v3642_v32  ;;  %v15457_v32 = vld [vmem:[#allocation79_spill] sm:$0xff] }
 0x183   : > { %6126 = vmatmul.mubr.bf16.gmra.mrb[52].mxu1 %v12969_v16  ;;  %v12993_v48 = vcombine.high %v15457_v32, %v15456_v37  ;;  %v1413_v16 = vrot.slane %v1411_v1, 2  ;;  %v1425_v1 = vsel %vm10826_vm6, %v1423_v21, %v1424_v19  ;;  %v13023_v18 = vcombine.low %v15457_v32, %v15456_v37  ;;  %v10314_v37 = vld [vmem:[%s14792_s1 + $0x710] ss:$8 sps:$4 sm:$0xff]   ;;  %v10322_v32 = vld [vmem:[%s14792_s1 + $0x724] ss:$8 sps:$4 sm:$0xff]  }
 0x184   : > { %6135 = vmatprep.mubr.bf16.mxu1 %v12973_v13  ;;  %v2535_v13 = vcombine.low %v1409_v5, %v1412_v41  ;;  %v1427_v5 = vrot.slane %v15393_v11, 7  ;;  %v1430_v41 = vrot.slane %v12013_v49, 7  ;;  %v2553_v28 = vcombine.low %v1422_v60, %v1425_v1  ;;  %v15462_v11 = vld [vmem:[#allocation87_spill] sm:$0xff] }
 0x185   : > { %15458 = vst [vmem:[#allocation71_spill] sm:$0xff] %v12993_v48  ;;  %v1415_v39 = vsel %vm10826_vm6, %v1413_v16, %v1414_v61  ;;  %v10316_v61 = vld [vmem:[%s14792_s1 + $0x714] ss:$8 sps:$4 sm:$0xff]   ;;  %v1426_v49 = vrot.slane %v1424_v19, 2  ;;  %v1188_v1 = vcombine.high %v12077_v53, %v12077_v53 }
 0x186   : > { %v13001_v27 = vrot.slane %v2535_v13, %v10741_v2  ;;  %v1433_v13 = vrot.slane %v12029_v42, 7  ;;  %v2552_v16 = vcombine.low %v1415_v39, %v1418_v58  ;;  %v15463_v42 = vld [vmem:[#allocation39_spill] sm:$0xff]  ;;  %v1429_v6 = vrot.slane %v1427_v5, 2  ;;  %v15467_v58 = vld [vmem:[#allocation113_spill] sm:$0xff] }
 0x187   : > { %v1432_v21 = vrot.slane %v1430_v41, 2  ;;  %v13043_v39 = vrot.slane %v2553_v28, %v10741_v2  ;;  %v1443_v60 = vrot.slane %v15467_v58, 7  ;;  %v1446_v28 = vrot.slane %v12080_v54, 7  ;;  %v15469_v58 = vld [vmem:[#allocation55_spill] sm:$0xff] }
 0x188   : > { %15461 = vst [vmem:[#allocation82_spill] sm:$0xff] %v13001_v27  ;;  %v13027_v24 = vcombine.high %v15462_v11, %v13001_v27  ;;  %v13040_v19 = vrot.slane %v2552_v16, %v10741_v2 }
 0x189   : > { %7360 = vmatmul.mubr.bf16.gmra.mrb[96].mxu0 %v12958_v12  ;;  %v1436_v12 = vrot.slane %v12077_v53, 7  ;;  %15466 = vst [vmem:[#allocation97_spill] sm:$0xff] %v13043_v39 }
 0x18a   : > { %7400 = vmatprep.mubr.bf16.mxu0 %v15460_v40  ;;  %v1435_v40 = vrot.slane %v1433_v13, 2  ;;  %15465 = vst [vmem:[#allocation79_spill] sm:$0xff] %v13040_v19  ;;  %v13067_v53 = vcombine.high %v13040_v19, %v13043_v39 }
 0x18b   : > { %6136 = vmatmul.mubr.bf16.gmra.mrb[56].mxu1 %v12989_v23 }
 0x18c   : > { %6145 = vmatprep.mubr.bf16.mxu1 %v12993_v48  ;;  %v15464_v48 = vld [vmem:[#allocation48_spill] sm:$0xff]  ;;  %v1437_v16 = vsel %vm10826_vm6, %v1435_v40, %v1436_v12  ;;  %v8863_v40 = vrot.slane %v12070_v26, 9  ;;  %v10334_v26 = vld [vmem:[%s14792_s1 + $0x744] ss:$8 sps:$4 sm:$0xff]  }
 0x191   : > { %7401 = vmatmul.mubr.bf16.vlgmr.msra.gmra.mrb[0].mxu0 %v15463_v42  ;;  %v10320_v42 = vld [vmem:[%s14792_s1 + $0x720] ss:$8 sps:$4 sm:$0xff]  }
 0x192   : > { %7650 = vmatpush1.bf16.msra.mxu0 %v10308_v62  ;;  %7410 = vmatprep.mubr.bf16.mxu0 %v15464_v48  ;;  %v1428_v48 = vsel %vm10826_vm6, %v1426_v49, %v1427_v5  ;;  %v1431_v62 = vsel %vm10826_vm6, %v1429_v6, %v1430_v41  ;;  %v13063_v5 = vcombine.low %v15462_v11, %v13001_v27  ;;  %v10328_v41 = vld [vmem:[%s14792_s1 + $0x734] ss:$8 sps:$4 sm:$0xff]   ;;  %v1438_v49 = vrot.slane %v1436_v12, 2  ;;  %v10326_v27 = vld [vmem:[%s14792_s1 + $0x730] ss:$8 sps:$4 sm:$0xff]  }
 0x193   : > { %7651 = vmatprep.subr.bf16.mxu0 %v10316_v61  ;;  %6146 = vmatmul.mubr.bf16.gmra.mrb[60].mxu1 %v13023_v18  ;;  %v1434_v61 = vsel %vm10826_vm6, %v1432_v21, %v1433_v13  ;;  %v2570_v13 = vcombine.low %v1428_v48, %v1431_v62  ;;  %v1439_v6 = vrot.slane %v1188_v1, 7  ;;  %v15468_v21 = vld [vmem:[#allocation50_spill] sm:$0xff]  ;;  %v1448_v11 = vrot.slane %v1446_v28, 2 }
 0x194   : > { %6155 = vmatprep.mubr.bf16.mxu1 %v13027_v24  ;;  %v2571_v54 = vcombine.low %v1434_v61, %v1437_v16  ;;  %v1452_v48 = vrot.slane %v12118_v36, 7  ;;  %v1455_v12 = vrot.slane %v12152_v10, 7  ;;  %v1444_v61 = vsel %vm10826_vm6, %v8863_v40, %v1443_v60  ;;  %v10332_v10 = vld [vmem:[%s14792_s1 + $0x740] ss:$8 sps:$4 sm:$0xff]   ;;  %v15472_v40 = vld [vmem:[#allocation56_spill] sm:$0xff] }
 0x195   : > { %v13088_v1 = vrot.slane %v2570_v13, %v10741_v2  ;;  %v1440_v36 = vsel %vm10826_vm6, %v1438_v49, %v1439_v6  ;;  %v1461_v13 = vrot.slane %v12672_v35, 7  ;;  %v15473_v35 = vld [vmem:[#allocation61_spill] sm:$0xff] }
 0x196   : > { %7652 = vmatpush1.bf16.msra.mxu0 %v10314_v37  ;;  %v1445_v37 = vrot.slane %v1443_v60, 2  ;;  %v13091_v62 = vrot.slane %v2571_v54, %v10741_v2  ;;  %v13107_v54 = vcombine.low %v13040_v19, %v13043_v39  ;;  %v1457_v60 = vrot.slane %v1455_v12, 2 }
 0x197   : > { %7653 = vmatprep.subr.bf16.mxu0 %v10322_v32  ;;  %v1449_v32 = vrot.slane %v12138_v31, 7  ;;  %v1458_v31 = vrot.slane %v12148_v63, 7  ;;  %15470 = vst [vmem:[#allocation38_spill] sm:$0xff] %v13088_v1  ;;  %v2588_v6 = vcombine.low %v1440_v36, %v1444_v61  ;;  %v1465_v36 = vrot.slane %v12204_v52, 7 }
 0x198   : > { %15471 = vst [vmem:[#allocation87_spill] sm:$0xff] %v13091_v62  ;;  %v1447_v16 = vsel %vm10826_vm6, %v1445_v37, %v1446_v28  ;;  %v10340_v28 = vld [vmem:[%s14792_s1 + $0x754] ss:$8 sps:$4 sm:$0xff]   ;;  %v1468_v61 = vrot.slane %v12185_v22, 7  ;;  %v10344_v22 = vld [vmem:[%s14792_s1 + $0x760] ss:$8 sps:$4 sm:$0xff]   ;;  %v13148_v52 = vcombine.low %v13088_v1, %v13091_v62 }
 0x199   : > { %7411 = vmatmul.mubr.bf16.gmra.mrb[4].mxu0 %v15468_v21  ;;  %v1450_v63 = vsel %vm10826_vm6, %v1448_v11, %v1449_v32  ;;  %v1460_v49 = vrot.slane %v1458_v31, 2 }
 0x19a   : > { %7420 = vmatprep.mubr.bf16.mxu0 %v15469_v58  ;;  %7654 = vmatpush1.bf16.msra.mxu0 %v10320_v42  ;;  %v1451_v42 = vrot.slane %v1449_v32, 2  ;;  %v2589_v21 = vcombine.low %v1447_v16, %v1450_v63  ;;  %v10338_v32 = vld [vmem:[%s14792_s1 + $0x750] ss:$8 sps:$4 sm:$0xff]   ;;  %v1459_v58 = vsel %vm10826_vm6, %v1457_v60, %v1458_v31  ;;  %v1471_v31 = vrot.slane %v12218_v33, 7  ;;  %v10352_v33 = vld [vmem:[%s14792_s1 + $0x774] ss:$8 sps:$4 sm:$0xff]  }
 0x19b   : > { %6156 = vmatmul.mubr.bf16.gmra.mrb[64].mxu1 %v13063_v5  ;;  %7655 = vmatprep.subr.bf16.mxu0 %v10328_v41  ;;  %v1454_v41 = vrot.slane %v1452_v48, 2  ;;  %v1470_v60 = vrot.slane %v1468_v61, 2 }
 0x19c   : > { %6165 = vmatprep.mubr.bf16.mxu1 %v13067_v53  ;;  %v1453_v37 = vsel %vm10826_vm6, %v1451_v42, %v1452_v48  ;;  %v10346_v48 = vld [vmem:[%s14792_s1 + $0x764] ss:$8 sps:$4 sm:$0xff]   ;;  %v13140_v16 = vrot.slane %v2589_v21, %v10741_v2  ;;  %v15476_v42 = vld [vmem:[#allocation121_spill] sm:$0xff] }
 0x19d   : > { %v1456_v11 = vsel %vm10826_vm6, %v1454_v41, %v1455_v12  ;;  %v13137_v12 = vrot.slane %v2588_v6, %v10741_v2  ;;  %v8864_v41 = vrot.slane %v15476_v42, 9  ;;  %v1474_v6 = vrot.slane %v12240_v47, 7  ;;  %v15477_v21 = vld [vmem:[#allocation62_spill] sm:$0xff] }
 0x19e   : > { %7656 = vmatpush1.bf16.msra.mxu0 %v10326_v27  ;;  %v13114_v27 = vcombine.high %v13088_v1, %v13091_v62  ;;  %15475 = vst [vmem:[#allocation48_spill] sm:$0xff] %v13140_v16  ;;  %v2606_v63 = vcombine.low %v1453_v37, %v1456_v11  ;;  %v10350_v11 = vld [vmem:[%s14792_s1 + $0x770] ss:$8 sps:$4 sm:$0xff]   ;;  %v409_v1 = vld [vmem:[%s10720_s26 + $0x448] sm:$0xff] }
 0x19f   : > { %7657 = vmatprep.subr.bf16.mxu0 %v10334_v26  ;;  %v1462_v26 = vsel %vm10826_vm6, %v1460_v49, %v1461_v13  ;;  %15474 = vst [vmem:[#allocation39_spill] sm:$0xff] %v13137_v12  ;;  %v1467_v13 = vrot.slane %v1465_v36, 2  ;;  %v13156_v49 = vcombine.high %v13137_v12, %v13140_v16  ;;  %v1466_v47 = vsel %vm10826_vm6, %v8864_v41, %v1465_v36  ;;  %v10437_v62 = vld [vmem:[%s14792_s1 + $0x3d0] ss:$8 sps:$4 sm:$0xff]  }
 0x1a0   : > { %v1477_v36 = vrot.slane %v12271_v51, 7  ;;  %v1476_v51 = vrot.slane %v1474_v6, 2 }
 0x1a1   : > { %7421 = vmatmul.mubr.bf16.gmra.mrb[8].mxu0 %v15472_v40  ;;  %v15478_v40 = vld [vmem:[#allocation68_spill] sm:$0xff] }
 0x1a2   : > { %7430 = vmatprep.mubr.bf16.mxu0 %v15473_v35  ;;  %7658 = vmatpush1.bf16.msra.mxu0 %v10332_v10  ;;  %v2607_v10 = vcombine.low %v1459_v58, %v1462_v26  ;;  %v13162_v35 = vrot.slane %v2606_v63, %v10741_v2  ;;  %v1472_v58 = vsel %vm10826_vm6, %v1470_v60, %v1471_v31  ;;  %v10358_v26 = vld [vmem:[%s14792_s1 + $0x784] ss:$8 sps:$4 sm:$0xff]  }
 0x1a3   : > { %6166 = vmatmul.mubr.bf16.gmra.mrb[68].mxu1 %v13107_v54  ;;  %7659 = vmatprep.subr.bf16.mxu0 %v10340_v28  ;;  %v1473_v28 = vrot.slane %v1471_v31, 2  ;;  %v1190_v63 = vcombine.high %v12267_v15, %v12267_v15  ;;  %v10356_v31 = vld [vmem:[%s14792_s1 + $0x780] ss:$8 sps:$4 sm:$0xff]  }
 0x1a4   : > { %6175 = vmatprep.mubr.bf16.mxu1 %v13114_v27  ;;  %15479 = vst [vmem:[#allocation113_spill] sm:$0xff] %v13162_v35  ;;  %v13165_v37 = vrot.slane %v2607_v10, %v10741_v2  ;;  %v13192_v10 = vcombine.low %v13137_v12, %v13140_v16  ;;  %v15483_v16 = vld [vmem:[#allocation74_spill] sm:$0xff]  ;;  %v3307_v12 = vcombine.low %v12898_v0, %v12877_v59 }
 0x1a6   : > { %7660 = vmatpush1.bf16.msra.mxu0 %v10338_v32  ;;  %15480 = vst [vmem:[#allocation50_spill] sm:$0xff] %v13165_v37  ;;  %v1469_v32 = vsel %vm10826_vm6, %v1467_v13, %v1468_v61  ;;  %v1480_v61 = vrot.slane %v12267_v15, 7  ;;  %v10364_v15 = vld [vmem:[%s14792_s1 + $0x794] ss:$8 sps:$4 sm:$0xff]   ;;  %v1479_v13 = vrot.slane %v1477_v36, 2 }
 0x1a7   : > { %7661 = vmatprep.subr.bf16.mxu0 %v10346_v48  ;;  %v1475_v48 = vsel %vm10826_vm6, %v1473_v28, %v1474_v6  ;;  %v2624_v42 = vcombine.low %v1466_v47, %v1469_v32  ;;  %v15481_v28 = vld [vmem:[#allocation134_spill] sm:$0xff]  ;;  %v10362_v47 = vld [vmem:[%s14792_s1 + $0x790] ss:$8 sps:$4 sm:$0xff]  }
 0x1a8   : > { %v2625_v41 = vcombine.low %v1472_v58, %v1475_v48  ;;  %v1482_v60 = vrot.slane %v1480_v61, 2  ;;  %v10370_v32 = vld [vmem:[%s14792_s1 + $0x7a4] ss:$8 sps:$4 sm:$0xff]   ;;  %v1481_v58 = vsel %vm10826_vm6, %v1479_v13, %v1480_v61  ;;  %v13235_v61 = vcombine.low %v13162_v35, %v13165_v37 }
 0x1a9   : > { %7431 = vmatmul.mubr.bf16.gmra.mrb[12].mxu0 %v15477_v21  ;;  %v1487_v21 = vrot.slane %v15481_v28, 7  ;;  %v13210_v6 = vrot.slane %v2624_v42, %v10741_v2  ;;  %v1496_v42 = vrot.slane %v15420_v30, 7  ;;  %v1499_v28 = vrot.slane %v12382_v50, 7 }
 0x1aa   : > { %7440 = vmatprep.mubr.bf16.mxu0 %v15478_v40  ;;  %7662 = vmatpush1.bf16.msra.mxu0 %v10344_v22  ;;  %v13196_v22 = vcombine.high %v13162_v35, %v13165_v37  ;;  %v15482_v40 = vld [vmem:[#allocation69_spill] sm:$0xff] }
 0x1ab   : > { %6176 = vmatmul.mubr.bf16.gmra.mrb[72].mxu1 %v13148_v52  ;;  %7663 = vmatprep.subr.bf16.mxu0 %v10352_v33  ;;  %v1483_v33 = vrot.slane %v1190_v63, 7  ;;  %15484 = vst [vmem:[#allocation55_spill] sm:$0xff] %v13210_v6  ;;  %v1490_v63 = vrot.slane %v12307_v4, 7 }
 0x1ac   : > { %6185 = vmatprep.mubr.bf16.mxu1 %v13156_v49 }
 0x1ad   : > { %v1492_v13 = vrot.slane %v1490_v63, 2 }
 0x1ae   : > { %7664 = vmatpush1.bf16.msra.mxu0 %v10350_v11  ;;  %v8865_v11 = vrot.slane %v12274_v25, 9  ;;  %v13217_v25 = vrot.slane %v2625_v41, %v10741_v2  ;;  %v10376_v41 = vld [vmem:[%s14792_s1 + $0x7b4] ss:$8 sps:$4 sm:$0xff]  }
 0x1af   : > { %7665 = vmatprep.subr.bf16.mxu0 %v10358_v26  ;;  %v1484_v26 = vsel %vm10826_vm6, %v1482_v60, %v1483_v33  ;;  %v1498_v33 = vrot.slane %v1496_v42, 2 }
 0x1b0   : > { %15485 = vst [vmem:[#allocation56_spill] sm:$0xff] %v13217_v25  ;;  %v1488_v48 = vsel %vm10826_vm6, %v8865_v11, %v1487_v21  ;;  %v13242_v4 = vcombine.high %v13210_v6, %v13217_v25  ;;  %v10374_v11 = vld [vmem:[%s14792_s1 + $0x7b0] ss:$8 sps:$4 sm:$0xff]  }
 0x1b1   : > { %7441 = vmatmul.mubr.bf16.gmra.mrb[16].mxu0 %v15482_v40  ;;  %v2643_v30 = vcombine.low %v1484_v26, %v1488_v48  ;;  %v15487_v40 = vld [vmem:[#allocation80_spill] sm:$0xff]  ;;  %v1500_v26 = vsel %vm10826_vm6, %v1498_v33, %v1499_v28  ;;  %v1502_v48 = vrot.slane %v12396_v14, 7  ;;  %v10394_v33 = vld [vmem:[%s14792_s1 + $0x7e4] ss:$8 sps:$4 sm:$0xff]  }
 0x1b2   : > { %7450 = vmatprep.mubr.bf16.mxu0 %v15483_v16  ;;  %7666 = vmatpush1.bf16.msra.mxu0 %v10356_v31  ;;  %v1478_v16 = vsel %vm10826_vm6, %v1476_v51, %v1477_v36  ;;  %v1493_v31 = vrot.slane %v12339_v46, 7  ;;  %v10368_v36 = vld [vmem:[%s14792_s1 + $0x7a0] ss:$8 sps:$4 sm:$0xff]   ;;  %v15486_v51 = vld [vmem:[#allocation76_spill] sm:$0xff] }
 0x1b3   : > { %6186 = vmatmul.mubr.bf16.gmra.mrb[76].mxu1 %v13192_v10  ;;  %7667 = vmatprep.subr.bf16.mxu0 %v10364_v15  ;;  %v2642_v46 = vcombine.low %v1478_v16, %v1481_v58  ;;  %v1489_v15 = vrot.slane %v1487_v21, 2  ;;  %v10382_v21 = vld [vmem:[%s14792_s1 + $0x7c4] ss:$8 sps:$4 sm:$0xff]   ;;  %v13259_v50 = vrot.slane %v2643_v30, %v10741_v2  ;;  %v15490_v30 = vld [vmem:[#allocation81_spill] sm:$0xff] }
 0x1b4   : > { %6195 = vmatprep.mubr.bf16.mxu1 %v13196_v22  ;;  %v1495_v60 = vrot.slane %v1493_v31, 2  ;;  %v1494_v16 = vsel %vm10826_vm6, %v1492_v13, %v1493_v31  ;;  %v15491_v13 = vld [vmem:[#allocation88_spill] sm:$0xff] }
 0x1b5   : > { %15489 = vst [vmem:[#allocation121_spill] sm:$0xff] %v13259_v50 }
 0x1b6   : > { %7668 = vmatpush1.bf16.msra.mxu0 %v10362_v47  ;;  %v13256_v47 = vrot.slane %v2642_v46, %v10741_v2  ;;  %v1497_v58 = vsel %vm10826_vm6, %v1495_v60, %v1496_v42  ;;  %v1505_v46 = vrot.slane %v12758_v9, 7  ;;  %v10386_v60 = vld [vmem:[%s14792_s1 + $0x7d0] ss:$8 sps:$4 sm:$0xff]  }
 0x1b7   : > { %7669 = vmatprep.subr.bf16.mxu0 %v10370_v32  ;;  %v1491_v32 = vsel %vm10826_vm6, %v1489_v15, %v1490_v63  ;;  %v10388_v63 = vld [vmem:[%s14792_s1 + $0x7d4] ss:$8 sps:$4 sm:$0xff]   ;;  %v2661_v14 = vcombine.low %v1497_v58, %v1500_v26  ;;  %v1501_v15 = vrot.slane %v1499_v28, 2  ;;  %v15494_v26 = vld [vmem:[#allocation91_spill] sm:$0xff] }
 0x1b8   : > { %15488 = vst [vmem:[#allocation61_spill] sm:$0xff] %v13256_v47  ;;  %v13282_v31 = vcombine.high %v13256_v47, %v13259_v50  ;;  %v2660_v42 = vcombine.low %v1491_v32, %v1494_v16  ;;  %v13310_v32 = vcombine.low %v13256_v47, %v13259_v50  ;;  %v15510_v50 = vld [vmem:[#allocation114_spill] sm:$0xff] }
 0x1b9   : > { %7451 = vmatmul.mubr.bf16.gmra.mrb[20].mxu0 %v15486_v51  ;;  %v1504_v51 = vrot.slane %v1502_v48, 2  ;;  %v13299_v28 = vrot.slane %v2661_v14, %v10741_v2 }
 0x1ba   : > { %7460 = vmatprep.mubr.bf16.mxu0 %v15487_v40  ;;  %7670 = vmatpush1.bf16.msra.mxu0 %v10368_v36  ;;  %v10380_v36 = vld [vmem:[%s14792_s1 + $0x7c0] ss:$8 sps:$4 sm:$0xff]   ;;  %v13296_v9 = vrot.slane %v2660_v42, %v10741_v2  ;;  %v1503_v40 = vsel %vm10826_vm6, %v1501_v15, %v1502_v48  ;;  %v10400_v48 = vld [vmem:[%s14792_s1 + $0x7f4] ss:$8 sps:$4 sm:$0xff]  }
 0x1bb   : > { %6196 = vmatmul.mubr.bf16.gmra.mrb[80].mxu1 %v13235_v61  ;;  %7671 = vmatprep.subr.bf16.mxu0 %v10376_v41  ;;  %v13275_v41 = vcombine.low %v13210_v6, %v13217_v25  ;;  %15493 = vst [vmem:[#allocation68_spill] sm:$0xff] %v13299_v28  ;;  %v15497_v15 = vld [vmem:[#allocation4_spill] sm:$0xff]  ;;  %v401_v25 = vld [vmem:[%s10720_s26 + $0x408] sm:$0xff] }
 0x1bc   : > { %6205 = vmatprep.mubr.bf16.mxu1 %v13242_v4  ;;  %15492 = vst [vmem:[#allocation62_spill] sm:$0xff] %v13296_v9  ;;  %v13314_v16 = vcombine.high %v13296_v9, %v13299_v28  ;;  %v13331_v14 = vcombine.low %v13296_v9, %v13299_v28  ;;  %v15509_v28 = vld [vmem:[#allocation16_spill] sm:$0xff]  ;;  %v400_v9 = vld [vmem:[%s10720_s26 + $0x400] sm:$0xff]  ;;  %v545_v47 = vmax.f32 %v401_v25, 0.0 }
 0x1be   : > { %7672 = vmatpush1.bf16.msra.mxu0 %v10374_v11  ;;  %v1506_v11 = vsel %vm10826_vm6, %v1504_v51, %v1505_v46 }
 0x1bf   : > { %7673 = vmatprep.subr.bf16.mxu0 %v10382_v21  ;;  %v10392_v21 = vld [vmem:[%s14792_s1 + $0x7e0] ss:$8 sps:$4 sm:$0xff]   ;;  %v2678_v58 = vcombine.low %v1503_v40, %v1506_v11  ;;  %v15500_v40 = vld [vmem:[#allocation96_spill] sm:$0xff] }
 0x1c0   : > { %v15501_v11 = vld [vmem:[#allocation100_spill] sm:$0xff] }
 0x1c1   : > { %7461 = vmatmul.mubr.bf16.gmra.mrb[24].mxu0 %v15490_v30  ;;  %v13327_v42 = vrot.slane %v2678_v58, %v10741_v2  ;;  %v15496_v30 = vld [vmem:[#allocation3_spill] sm:$0xff] }
 0x1c2   : > { %7470 = vmatprep.mubr.bf16.mxu0 %v15491_v13  ;;  %7674 = vmatpush1.bf16.msra.mxu0 %v10380_v36  ;;  %v15495_v36 = vld [vmem:[#allocation92_spill] sm:$0xff]  ;;  %v2737_v51 = vcombine.low %v15497_v15, %v15496_v30  ;;  %v15498_v13 = vld [vmem:[#allocation6_spill] sm:$0xff]  ;;  %v15504_v15 = vld [vmem:[#allocation107_spill] sm:$0xff] }
 0x1c3   : > { %6206 = vmatmul.mubr.bf16.gmra.mrb[84].mxu1 %v13275_v41  ;;  %7675 = vmatprep.subr.bf16.mxu0 %v10388_v63  ;;  %v10398_v63 = vld [vmem:[%s14792_s1 + $0x7f0] ss:$8 sps:$4 sm:$0xff]   ;;  %v2686_v46 = vcombine.high %v13327_v42, %v13327_v42 }
 0x1c4   : > { %6215 = vmatprep.mubr.bf16.mxu1 %v13282_v31 }
 0x1c6   : > { %7676 = vmatpush1.bf16.msra.mxu0 %v10386_v60  ;;  %v15499_v60 = vld [vmem:[#allocation5_spill] sm:$0xff] }
 0x1c7   : > { %7677 = vmatprep.subr.bf16.mxu0 %v10394_v33  ;;  %v2738_v33 = vcombine.low %v15499_v60, %v15498_v13  ;;  %v10406_v13 = vld [vmem:[%s14792_s1 + $0x804] ss:$8 sps:$4 sm:$0xff]   ;;  %v15505_v60 = vld [vmem:[#allocation108_spill] sm:$0xff] }
 0x1c9   : > { %7471 = vmatmul.mubr.bf16.gmra.mrb[28].mxu0 %v15494_v26  ;;  %v2752_v58 = vrot.slane %v2738_v33, %v10741_v2 }
 0x1ca   : > { %7480 = vmatprep.mubr.bf16.mxu0 %v15495_v36  ;;  %7678 = vmatpush1.bf16.msra.mxu0 %v10392_v21  ;;  %v2745_v21 = vrot.slane %v2737_v51, %v10741_v2  ;;  %v15503_v36 = vld [vmem:[#allocation9_spill] sm:$0xff] }
 0x1cb   : > { %6216 = vmatmul.mubr.bf16.gmra.mrb[88].mxu1 %v13310_v32  ;;  %7679 = vmatprep.subr.bf16.mxu0 %v10400_v48  ;;  %v15502_v48 = vld [vmem:[#allocation8_spill] sm:$0xff] }
 0x1cc   : > { %6225 = vmatprep.mubr.bf16.mxu1 %v13314_v16  ;;  %v2754_v26 = vcombine.high %v2745_v21, %v2752_v58  ;;  %v8886_v30 = vcombine.high %v15502_v48, %v15375_v34  ;;  %v2753_v33 = vcombine.low %v2745_v21, %v2752_v58  ;;  %v10359_v34 = vld [vmem:[%s14792_s1 + $0x300] ss:$8 sps:$4 sm:$0xff]  }
 0x1ce   : > { %7680 = vmatpush1.bf16.msra.mxu0 %v10398_v63  ;;  %v2755_v63 = vcombine.low %v15503_v36, %v15502_v48  ;;  %v2770_v51 = vrot.slane %v8886_v30, %v10741_v2  ;;  %v15507_v48 = vld [vmem:[#allocation13_spill] sm:$0xff] }
 0x1cf   : > { %7930 = vmatprep.subr.bf16.mxu0 %v10406_v13  ;;  %v10365_v30 = vld [vmem:[%s14792_s1 + $0x310] ss:$8 sps:$4 sm:$0xff]  }
 0x1d1   : > { %7481 = vmatmul.mubr.bf16.gmra.mrb[32].mxu0 %v15500_v40 }
 0x1d2   : > { %7490 = vmatprep.mubr.bf16.mxu0 %v15501_v11  ;;  %v15506_v11 = vld [vmem:[#allocation15_spill] sm:$0xff] }
 0x1d3   : > { %6226 = vmatmul.mubr.bf16.gmra.mrb[92].mxu1 %v13331_v14  ;;  %v2773_v36 = vcombine.low %v15507_v48, %v15506_v11  ;;  %v15512_v11 = vld [vmem:[#allocation147_spill] sm:$0xff]  ;;  %v15514_v48 = vld [vmem:[#allocation120_spill] sm:$0xff] }
 0x1d4   : > { %6235 = vmatprep.mubr.bf16.mxu1 %v2686_v46  ;;  %v2763_v46 = vrot.slane %v2755_v63, %v10741_v2  ;;  %v15511_v63 = vld [vmem:[#allocation115_spill] sm:$0xff] }
 0x1d5   : > { %v2781_v21 = vrot.slane %v2773_v36, %v10741_v2  ;;  %v10379_v36 = vld [vmem:[%s14792_s1 + $0x334] ss:$8 sps:$4 sm:$0xff]  }
 0x1d6   : > { %v2772_v40 = vcombine.high %v2763_v46, %v2770_v51 }
 0x1d9   : > { %7491 = vmatmul.mubr.bf16.gmra.mrb[36].mxu0 %v15504_v15  ;;  %v15508_v15 = vld [vmem:[#allocation18_spill] sm:$0xff] }
 0x1da   : > { %7500 = vmatprep.mubr.bf16.mxu0 %v15505_v60  ;;  %v2774_v60 = vcombine.low %v15509_v28, %v15508_v15  ;;  %v2771_v28 = vcombine.low %v2763_v46, %v2770_v51  ;;  %v15515_v15 = vld [vmem:[#allocation122_spill] sm:$0xff]  ;;  %v10377_v51 = vld [vmem:[%s14792_s1 + $0x330] ss:$8 sps:$4 sm:$0xff]  }
 0x1db   : > { %6236 = vmatmul.mubr.bf16.gmra.mrb[96].mxu1 %v13327_v42 }
 0x1dc   : > { %6276 = vmatprep.mubr.bf16.mxu1 %v2754_v26  ;;  %v10367_v26 = vld [vmem:[%s14792_s1 + $0x314] ss:$8 sps:$4 sm:$0xff]   ;;  %v2788_v58 = vrot.slane %v2774_v60, %v10741_v2  ;;  %v10385_v60 = vld [vmem:[%s14792_s1 + $0x344] ss:$8 sps:$4 sm:$0xff]  }
 0x1de   : > { %v2790_v13 = vcombine.high %v2781_v21, %v2788_v58 }
 0x1e1   : > { %7501 = vmatmul.mubr.bf16.gmra.mrb[40].mxu0 %v15510_v50  ;;  %v10373_v50 = vld [vmem:[%s14792_s1 + $0x324] ss:$8 sps:$4 sm:$0xff]  }
 0x1e2   : > { %7510 = vmatprep.mubr.bf16.mxu0 %v15511_v63  ;;  %v15516_v63 = vld [vmem:[#allocation83_spill] sm:$0xff] }
 0x1e3   : > { %6277 = vmatmul.mubr.bf16.vlgmr.msra.gmra.mrb[0].mxu1 %v2753_v33  ;;  %v15513_v33 = vld [vmem:[#allocation19_spill] sm:$0xff] }
 0x1e4   : > { %6286 = vmatprep.mubr.bf16.mxu1 %v2772_v40  ;;  %6526 = vmatpush1.bf16.msra.mxu1 %v10359_v34  ;;  %v2791_v40 = vcombine.low %v15513_v33, %v15512_v11  ;;  %v10371_v34 = vld [vmem:[%s14792_s1 + $0x320] ss:$8 sps:$4 sm:$0xff]  }
 0x1e5   : > { %6527 = vmatprep.subr.bf16.mxu1 %v10367_v26  ;;  %v2789_v26 = vcombine.low %v2781_v21, %v2788_v58  ;;  %v15518_v11 = vld [vmem:[#allocation127_spill] sm:$0xff]  ;;  %v10389_v21 = vld [vmem:[%s14792_s1 + $0x350] ss:$8 sps:$4 sm:$0xff]  }
 0x1e6   : > { %v2799_v46 = vrot.slane %v2791_v40, %v10741_v2  ;;  %v10397_v58 = vld [vmem:[%s14792_s1 + $0x364] ss:$8 sps:$4 sm:$0xff]   ;;  %v15519_v40 = vld [vmem:[#allocation93_spill] sm:$0xff] }
 0x1e8   : > { %6528 = vmatpush1.bf16.msra.mxu1 %v10365_v30  ;;  %v2808_v30 = vcombine.high %v2799_v46, %v15516_v63  ;;  %v2807_v33 = vcombine.low %v2799_v46, %v15516_v63  ;;  %v10401_v46 = vld [vmem:[%s14792_s1 + $0x370] ss:$8 sps:$4 sm:$0xff]  }
 0x1e9   : > { %7511 = vmatmul.mubr.bf16.gmra.mrb[44].mxu0 %v15514_v48  ;;  %6529 = vmatprep.subr.bf16.mxu1 %v10373_v50  ;;  %v10383_v50 = vld [vmem:[%s14792_s1 + $0x340] ss:$8 sps:$4 sm:$0xff]  }
 0x1ea   : > { %7520 = vmatprep.mubr.bf16.mxu0 %v15515_v15  ;;  %v15521_v15 = vld [vmem:[#allocation40_spill] sm:$0xff] }
 0x1eb   : > { %6287 = vmatmul.mubr.bf16.gmra.mrb[4].mxu1 %v2771_v28  ;;  %v15517_v28 = vld [vmem:[#allocation37_spill] sm:$0xff] }
 0x1ec   : > { %6296 = vmatprep.mubr.bf16.mxu1 %v2790_v13  ;;  %6530 = vmatpush1.bf16.msra.mxu1 %v10371_v34  ;;  %v10391_v13 = vld [vmem:[%s14792_s1 + $0x354] ss:$8 sps:$4 sm:$0xff]  }
 0x1ed   : > { %6531 = vmatprep.subr.bf16.mxu1 %v10379_v36  ;;  %v15520_v34 = vld [vmem:[#allocation84_spill] sm:$0xff]  ;;  %v10395_v36 = vld [vmem:[%s14792_s1 + $0x360] ss:$8 sps:$4 sm:$0xff]  }
 0x1ee   : > { %v2826_v48 = vcombine.high %v15520_v34, %v15519_v40  ;;  %v2825_v63 = vcombine.low %v15520_v34, %v15519_v40  ;;  %v10421_v40 = vld [vmem:[%s14792_s1 + $0x3a4] ss:$8 sps:$4 sm:$0xff]  }
 0x1ef   : > { %v15527_v34 = vld [vmem:[#allocation135_spill] sm:$0xff] }
 0x1f0   : > { %6532 = vmatpush1.bf16.msra.mxu1 %v10377_v51  ;;  %v10403_v51 = vld [vmem:[%s14792_s1 + $0x374] ss:$8 sps:$4 sm:$0xff]  }
 0x1f1   : > { %7521 = vmatmul.mubr.bf16.gmra.mrb[48].mxu0 %v15517_v28  ;;  %6533 = vmatprep.subr.bf16.mxu1 %v10385_v60  ;;  %v15522_v60 = vld [vmem:[#allocation42_spill] sm:$0xff] }
 0x1f2   : > { %7530 = vmatprep.mubr.bf16.mxu0 %v15518_v11  ;;  %v15525_v11 = vld [vmem:[#allocation49_spill] sm:$0xff] }
 0x1f3   : > { %6297 = vmatmul.mubr.bf16.gmra.mrb[8].mxu1 %v2789_v26  ;;  %v10409_v26 = vld [vmem:[%s14792_s1 + $0x384] ss:$8 sps:$4 sm:$0xff]  }
 0x1f4   : > { %6306 = vmatprep.mubr.bf16.mxu1 %v2808_v30  ;;  %6534 = vmatpush1.bf16.msra.mxu1 %v10383_v50  ;;  %v15523_v30 = vld [vmem:[#allocation102_spill] sm:$0xff] }
 0x1f5   : > { %6535 = vmatprep.subr.bf16.mxu1 %v10391_v13  ;;  %v15524_v50 = vld [vmem:[#allocation94_spill] sm:$0xff] }
 0x1f6   : > { %v2844_v28 = vcombine.high %v15524_v50, %v15523_v30  ;;  %v10407_v13 = vld [vmem:[%s14792_s1 + $0x380] ss:$8 sps:$4 sm:$0xff]  }
 0x1f8   : > { %6536 = vmatpush1.bf16.msra.mxu1 %v10389_v21  ;;  %v10415_v21 = vld [vmem:[%s14792_s1 + $0x394] ss:$8 sps:$4 sm:$0xff]  }
 0x1f9   : > { %7531 = vmatmul.mubr.bf16.gmra.mrb[52].mxu0 %v15521_v15  ;;  %6537 = vmatprep.subr.bf16.mxu1 %v10397_v58  ;;  %v15526_v58 = vld [vmem:[#allocation136_spill] sm:$0xff]  ;;  %v15528_v15 = vld [vmem:[#allocation109_spill] sm:$0xff] }
 0x1fa   : > { %7540 = vmatprep.mubr.bf16.mxu0 %v15522_v60 }
 0x1fb   : > { %6307 = vmatmul.mubr.bf16.gmra.mrb[12].mxu1 %v2807_v33  ;;  %v10413_v33 = vld [vmem:[%s14792_s1 + $0x390] ss:$8 sps:$4 sm:$0xff]  }
 0x1fc   : > { %6316 = vmatprep.mubr.bf16.mxu1 %v2826_v48  ;;  %6538 = vmatpush1.bf16.msra.mxu1 %v10395_v36  ;;  %v3270_v48 = vcombine.low %v15527_v34, %v12811_v38  ;;  %v2843_v36 = vcombine.low %v15524_v50, %v15523_v30  ;;  %v10425_v30 = vld [vmem:[%s14792_s1 + $0x3b0] ss:$8 sps:$4 sm:$0xff]   ;;  %v3271_v50 = vcombine.low %v12787_v17, %v12815_v57 }
 0x1fd   : > { %6539 = vmatprep.subr.bf16.mxu1 %v10403_v51  ;;  %v15529_v51 = vld [vmem:[#allocation103_spill] sm:$0xff] }
 0x1fe   : > { %v2862_v60 = vcombine.high %v15529_v51, %v15528_v15 }
 0x200   : > { %6540 = vmatpush1.bf16.msra.mxu1 %v10401_v46  ;;  %v10419_v46 = vld [vmem:[%s14792_s1 + $0x3a0] ss:$8 sps:$4 sm:$0xff]  }
 0x201   : > { %7541 = vmatmul.mubr.bf16.gmra.mrb[56].mxu0 %v15525_v11  ;;  %6541 = vmatprep.subr.bf16.mxu1 %v10409_v26  ;;  %v15530_v26 = vld [vmem:[#allocation141_spill] sm:$0xff]  ;;  %v3288_v11 = vcombine.low %v12818_v45, %v12850_v3 }
 0x202   : > { %7550 = vmatprep.mubr.bf16.mxu0 %v15526_v58  ;;  %v15533_v58 = vld [vmem:[#allocation144_spill] sm:$0xff] }
 0x203   : > { %6317 = vmatmul.mubr.bf16.gmra.mrb[16].mxu1 %v2825_v63  ;;  %v10427_v63 = vld [vmem:[%s14792_s1 + $0x3b4] ss:$8 sps:$4 sm:$0xff]  }
 0x204   : > { %6326 = vmatprep.mubr.bf16.mxu1 %v2844_v28  ;;  %6542 = vmatpush1.bf16.msra.mxu1 %v10407_v13  ;;  %v15531_v28 = vld [vmem:[#allocation2_spill] sm:$0xff]  ;;  %v13458_v13 = vrot.slane %v3270_v48, %v10741_v2  ;;  %v15534_v48 = vld [vmem:[#allocation116_spill] sm:$0xff] }
 0x205   : > { %6543 = vmatprep.subr.bf16.mxu1 %v10415_v21  ;;  %v10433_v21 = vld [vmem:[%s14792_s1 + $0x3c4] ss:$8 sps:$4 sm:$0xff]  }
 0x206   : > { %15532 = vst [vmem:[#allocation134_spill] sm:$0xff] %v13458_v13 }
 0x208   : > { %6544 = vmatpush1.bf16.msra.mxu1 %v10413_v33  ;;  %v3694_v33 = vcombine.high %v15533_v58, %v13458_v13 }
 0x209   : > { %7551 = vmatmul.mubr.bf16.gmra.mrb[60].mxu0 %v15530_v26  ;;  %6545 = vmatprep.subr.bf16.mxu1 %v10421_v40  ;;  %v2861_v40 = vcombine.low %v15529_v51, %v15528_v15  ;;  %v15537_v26 = vld [vmem:[#allocation64_spill] sm:$0xff]  ;;  %v13492_v15 = vcombine.high %v12853_v20, %v12853_v20 }
 0x20a   : > { %7560 = vmatprep.mubr.bf16.mxu0 %v15531_v28  ;;  %v13486_v28 = vrot.slane %v3288_v11, %v10741_v2  ;;  %v402_v51 = vld [vmem:[%s10720_s26 + $0x410] sm:$0xff] }
 0x20b   : > { %6327 = vmatmul.mubr.bf16.gmra.mrb[20].mxu1 %v2843_v36  ;;  %v15535_v36 = vld [vmem:[#allocation110_spill] sm:$0xff] }
 0x20c   : > { %6336 = vmatprep.mubr.bf16.mxu1 %v2862_v60  ;;  %6546 = vmatpush1.bf16.msra.mxu1 %v10419_v46  ;;  %v13476_v60 = vcombine.high %v15535_v36, %v15534_v48  ;;  %v10431_v46 = vld [vmem:[%s14792_s1 + $0x3c0] ss:$8 sps:$4 sm:$0xff]   ;;  %15539 = vst [vmem:[#allocation76_spill] sm:$0xff] %v13486_v28  ;;  %v13507_v25 = vcombine.low %v15535_v36, %v15534_v48 }
 0x20d   : > { %6547 = vmatprep.subr.bf16.mxu1 %v10427_v63  ;;  %v13483_v63 = vrot.slane %v3271_v50, %v10741_v2  ;;  %v3693_v50 = vcombine.low %v15533_v58, %v13458_v13 }
 0x20e   : > { %15536 = vst [vmem:[#allocation69_spill] sm:$0xff] %v13476_v60  ;;  %15540 = vst [vmem:[#allocation80_spill] sm:$0xff] %v13507_v25 }
 0x20f   : > { %15538 = vst [vmem:[#allocation74_spill] sm:$0xff] %v13483_v63  ;;  %v3696_v11 = vcombine.high %v13483_v63, %v13486_v28 }
 0x210   : > { %6548 = vmatpush1.bf16.msra.mxu1 %v10425_v30  ;;  %v403_v30 = vld [vmem:[%s10720_s26 + $0x418] sm:$0xff] }
 0x211   : > { %7561 = vmatmul.mubr.bf16.gmra.mrb[64].mxu0 %v15537_v26  ;;  %6549 = vmatprep.subr.bf16.mxu1 %v10433_v21  ;;  %v544_v26 = vmax.f32 %v400_v9, 0.0  ;;  %v3289_v21 = vcombine.low %v12846_v55, %v12853_v20  ;;  %v547_v37 = vmax.f32 %v403_v30, 0.0  ;;  %v15541_v9 = vld [vmem:[#allocation123_spill] sm:$0xff] }
 0x212   : > { %7570 = vmatprep.mubr.bf16.mxu0 %v3694_v33  ;;  %v3306_v33 = vcombine.low %v13492_v15, %v12872_v8 }
 0x213   : > { %6337 = vmatmul.mubr.bf16.gmra.mrb[24].mxu1 %v2861_v40  ;;  %v546_v40 = vmax.f32 %v402_v51, 0.0  ;;  %v8876_v35 = vpack.c.bf16 %v545_v47, %v544_v26  ;;  %v10439_v51 = vld [vmem:[%s14792_s1 + $0x3d4] ss:$8 sps:$4 sm:$0xff]   ;;  %v13520_v30 = vrot.slane %v3289_v21, %v10741_v2  ;;  %v404_v47 = vld [vmem:[%s10720_s26 + $0x420] sm:$0xff]  ;;  %v405_v26 = vld [vmem:[%s10720_s26 + $0x428] sm:$0xff] }
 0x214   : > { %6346 = vmatprep.mubr.bf16.mxu1 %v13476_v60  ;;  %6550 = vmatpush1.bf16.msra.mxu1 %v10431_v46  ;;  %v15542_v46 = vld [vmem:[#allocation117_spill] sm:$0xff]  ;;  %v13523_v48 = vrot.slane %v3306_v33, %v10741_v2  ;;  %v406_v21 = vld [vmem:[%s10720_s26 + $0x430] sm:$0xff]  ;;  %v548_v33 = vmax.f32 %v404_v47, 0.0 }
 0x215   : > { %v13511_v6 = vcombine.high %v15542_v46, %v15541_v9  ;;  %15544 = vst [vmem:[#allocation88_spill] sm:$0xff] %v13520_v30  ;;  %v8877_v36 = vpack.c.bf16 %v547_v37, %v546_v40  ;;  %6551 = vmatprep.subr.bf16.mxu1 %v10439_v51  ;;  %v549_v37 = vmax.f32 %v405_v26, 0.0  ;;  %v3324_v51 = vcombine.low %v12902_v43, %v12918_v29  ;;  %v15548_v47 = vld [vmem:[#allocation128_spill] sm:$0xff] }
 0x216   : > { %15545 = vst [vmem:[#allocation91_spill] sm:$0xff] %v13523_v48  ;;  %v3698_v40 = vcombine.high %v13520_v30, %v13523_v48  ;;  %v13549_v19 = vcombine.low %v15542_v46, %v15541_v9  ;;  %v15549_v26 = vld [vmem:[#allocation124_spill] sm:$0xff]  ;;  %v10443_v9 = vld [vmem:[%s14792_s1 + $0x3e0] ss:$8 sps:$4 sm:$0xff]   ;;  %v13563_v46 = vrot.slane %v3307_v12, %v10741_v2  ;;  %v3697_v12 = vcombine.low %v13520_v30, %v13523_v48 }
 0x217   : > { %15543 = vst [vmem:[#allocation81_spill] sm:$0xff] %v13511_v6  ;;  %v13542_v39 = vrot.slane %v8877_v36, %v10741_v2  ;;  %v13566_v60 = vrot.slane %v3324_v51, %v10741_v2  ;;  %v412_v30 = vld [vmem:[%s10720_s26 + $0x460] sm:$0xff] }
 0x218   : > { %6552 = vmatpush1.bf16.msra.mxu1 %v10437_v62  ;;  %v408_v62 = vld [vmem:[%s10720_s26 + $0x440] sm:$0xff]  ;;  %15547 = vst [vmem:[#allocation3_spill] sm:$0xff] %v13549_v19  ;;  %15551 = vst [vmem:[#allocation6_spill] sm:$0xff] %v13563_v46 }
 0x219   : > { %7571 = vmatmul.mubr.bf16.gmra.mrb[68].mxu0 %v3693_v50  ;;  %v13530_v50 = vrot.slane %v8876_v35, %v10741_v2  ;;  %v407_v35 = vld [vmem:[%s10720_s26 + $0x438] sm:$0xff]  ;;  %v552_v58 = vmax.f32 %v408_v62, 0.0  ;;  %15552 = vst [vmem:[#allocation5_spill] sm:$0xff] %v13566_v60  ;;  %v13570_v29 = vcombine.high %v13542_v39, %v13542_v39 }
 0x21a   : > { %7580 = vmatprep.mubr.bf16.mxu0 %v3696_v11  ;;  %v3695_v11 = vcombine.low %v13483_v63, %v13486_v28  ;;  %v13553_v28 = vcombine.high %v15549_v26, %v15548_v47  ;;  %v550_v63 = vmax.f32 %v406_v21, 0.0  ;;  %v551_v36 = vmax.f32 %v407_v35, 0.0  ;;  %v411_v21 = vld [vmem:[%s10720_s26 + $0x458] sm:$0xff] }
 0x21b   : > { %6347 = vmatmul.mubr.bf16.gmra.mrb[28].mxu1 %v13507_v25  ;;  %15546 = vst [vmem:[#allocation92_spill] sm:$0xff] %v13530_v50  ;;  %v13557_v13 = vcombine.high %v13530_v50, %v13530_v50  ;;  %v8878_v25 = vpack.c.bf16 %v549_v37, %v548_v33  ;;  %v3700_v35 = vcombine.high %v13563_v46, %v13566_v60  ;;  %v555_v48 = vmax.f32 %v411_v21, 0.0 }
 0x21c   : > { %6356 = vmatprep.mubr.bf16.mxu1 %v13511_v6  ;;  %15550 = vst [vmem:[#allocation4_spill] sm:$0xff] %v13553_v28  ;;  %v553_v6 = vmax.f32 %v409_v1, 0.0  ;;  %v10445_v1 = vld [vmem:[%s14792_s1 + $0x3e4] ss:$8 sps:$4 sm:$0xff]   ;;  %v8879_v37 = vpack.c.bf16 %v551_v36, %v550_v63  ;;  %v3702_v62 = vcombine.low %v13542_v39, %v13570_v29  ;;  %v15554_v63 = vld [vmem:[#allocation44_spill] sm:$0xff]  ;;  %v15555_v36 = vld [vmem:[#allocation129_spill] sm:$0xff] }
 0x21d   : > { %6553 = vmatprep.subr.bf16.mxu1 %v10445_v1  ;;  %v3701_v33 = vcombine.low %v13530_v50, %v13557_v13  ;;  %v13592_v1 = vcombine.low %v15549_v26, %v15548_v47 }
 0x21e   : > { %v8880_v51 = vpack.c.bf16 %v553_v6, %v552_v58  ;;  %6554 = vmatpush1.bf16.msra.mxu1 %v10443_v9  ;;  %v13602_v58 = vrot.slane %v8879_v37, %v10741_v2  ;;  %v3716_v26 = vrot.slane %v3702_v62, %v10741_v2  ;;  %v15559_v62 = vld [vmem:[#allocation137_spill] sm:$0xff] }
 0x21f   : > { %15553 = vst [vmem:[#allocation96_spill] sm:$0xff] %v13592_v1  ;;  %v3709_v6 = vrot.slane %v3701_v33, %v10741_v2  ;;  %v3699_v33 = vcombine.low %v13563_v46, %v13566_v60 }
 0x220   : > { %v13609_v47 = vrot.slane %v8880_v51, %v10741_v2 }
 0x221   : > { %7581 = vmatmul.mubr.bf16.gmra.mrb[72].mxu0 %v3695_v11  ;;  %v410_v11 = vld [vmem:[%s10720_s26 + $0x450] sm:$0xff]  ;;  %v3718_v50 = vcombine.high %v3709_v6, %v3716_v26 }
 0x222   : > { %7590 = vmatprep.mubr.bf16.mxu0 %v3698_v40  ;;  %v13584_v40 = vrot.slane %v8878_v25, %v10741_v2  ;;  %v13598_v25 = vcombine.high %v15555_v36, %v15554_v63  ;;  %15557 = vst [vmem:[#allocation8_spill] sm:$0xff] %v13609_v47  ;;  %v3720_v51 = vcombine.low %v13602_v58, %v13609_v47 }
 0x223   : > { %6357 = vmatmul.mubr.bf16.gmra.mrb[32].mxu1 %v13549_v19  ;;  %v554_v19 = vmax.f32 %v410_v11, 0.0  ;;  %v556_v11 = vmax.f32 %v412_v30, 0.0 }
 0x224   : > { %6366 = vmatprep.mubr.bf16.mxu1 %v13553_v28  ;;  %v413_v28 = vld [vmem:[%s10720_s26 + $0x468] sm:$0xff]  ;;  %15556 = vst [vmem:[#allocation100_spill] sm:$0xff] %v13598_v25  ;;  %v13606_v9 = vcombine.high %v13584_v40, %v13584_v40 }
 0x225   : > { %v557_v21 = vmax.f32 %v413_v28, 0.0  ;;  %v414_v28 = vld [vmem:[%s10720_s26 + $0x470] sm:$0xff] }
 0x226   : > { %v3719_v37 = vcombine.low %v13584_v40, %v13606_v9 }
 0x227   : > { %v8882_v30 = vpack.c.bf16 %v557_v21, %v556_v11  ;;  %v558_v21 = vmax.f32 %v414_v28, 0.0 }
 0x228   : > { %v3727_v46 = vrot.slane %v3719_v37, %v10741_v2  ;;  %v10451_v37 = vld [vmem:[%s14792_s1 + $0x3f4] ss:$8 sps:$4 sm:$0xff]  }
 0x229   : > { %7591 = vmatmul.mubr.bf16.gmra.mrb[76].mxu0 %v3697_v12  ;;  %v8881_v12 = vpack.c.bf16 %v555_v48, %v554_v19  ;;  %v13625_v19 = vcombine.low %v15555_v36, %v15554_v63  ;;  %v415_v48 = vld [vmem:[%s10720_s26 + $0x478] sm:$0xff]  ;;  %v13647_v11 = vrot.slane %v8882_v30, %v10741_v2  ;;  %6555 = vmatprep.subr.bf16.mxu1 %v10451_v37  ;;  %v15563_v37 = vld [vmem:[#allocation142_spill] sm:$0xff]  ;;  %s14484_s26 = scalar_lea.vmem %s14793_s2, %s9185_s23 }
 0x22a   : > { %7600 = vmatprep.mubr.bf16.mxu0 %v3700_v35  ;;  %v10449_v63 = vld [vmem:[%s14792_s1 + $0x3f0] ss:$8 sps:$4 sm:$0xff]  }
 0x22b   : > { %6367 = vmatmul.mubr.bf16.gmra.mrb[36].mxu1 %v13592_v1  ;;  %v13621_v35 = vrot.slane %v8881_v12, %v10741_v2  ;;  %15558 = vst [vmem:[#allocation9_spill] sm:$0xff] %v13625_v19  ;;  %v3734_v1 = vrot.slane %v3720_v51, %v10741_v2  ;;  %v13637_v12 = vcombine.high %v13609_v47, %v13609_v47 }
 0x22c   : > { %6376 = vmatprep.mubr.bf16.mxu1 %v13598_v25  ;;  %v15560_v25 = vld [vmem:[#allocation43_spill] sm:$0xff]  ;;  %v3717_v51 = vcombine.low %v3709_v6, %v3716_v26  ;;  %6556 = vmatpush1.bf16.msra.mxu1 %v10449_v63  ;;  %v15564_v6 = vld [vmem:[#allocation138_spill] sm:$0xff] }
 0x22d   : > { %v13631_v60 = vcombine.high %v15560_v25, %v15559_v62  ;;  %v13644_v36 = vcombine.high %v13621_v35, %v13621_v35  ;;  %v3737_v47 = vcombine.low %v13637_v12, %v13621_v35  ;;  %v13667_v26 = vcombine.high %v15564_v6, %v15563_v37 }
 0x22f   : > { %15561 = vst [vmem:[#allocation107_spill] sm:$0xff] %v13631_v60  ;;  %v3738_v30 = vcombine.low %v13644_v36, %v13647_v11  ;;  %15565 = vst [vmem:[#allocation15_spill] sm:$0xff] %v13667_v26  ;;  %v3745_v63 = vrot.slane %v3737_v47, %v10741_v2  ;;  %v13684_v47 = vcombine.low %v15564_v6, %v15563_v37  ;;  %v15568_v37 = vld [vmem:[#allocation145_spill] sm:$0xff]  ;;  %v15569_v6 = vld [vmem:[#allocation10_spill] sm:$0xff] }
 0x231   : > { %7601 = vmatmul.mubr.bf16.gmra.mrb[80].mxu0 %v3699_v33  ;;  %v559_v33 = vmax.f32 %v415_v48, 0.0  ;;  %v10476_v48 = vld [vmem:[%s14792_s1 + $0x404] ss:$8 sps:$4 sm:$0xff]  }
 0x232   : > { %7610 = vmatprep.mubr.bf16.mxu0 %v3718_v50  ;;  %v3736_v50 = vcombine.high %v3727_v46, %v3734_v1  ;;  %9189 = vmatprep.subr.bf16.mxu1 %v10476_v48 }
 0x233   : > { %6377 = vmatmul.mubr.bf16.gmra.mrb[40].mxu1 %v13625_v19  ;;  %v8883_v28 = vpack.c.bf16 %v559_v33, %v558_v21  ;;  %v13663_v19 = vcombine.low %v15560_v25, %v15559_v62  ;;  %v13676_v33 = vcombine.high %v13647_v11, %v13647_v11  ;;  %v3735_v25 = vcombine.low %v3727_v46, %v3734_v1 }
 0x234   : > { %6386 = vmatprep.mubr.bf16.mxu1 %v13631_v60  ;;  %v3752_v60 = vrot.slane %v3738_v30, %v10741_v2  ;;  %v15567_v30 = vld [vmem:[#allocation143_spill] sm:$0xff] }
 0x235   : > { %15562 = vst [vmem:[#allocation108_spill] sm:$0xff] %v13663_v19  ;;  %v13672_v21 = vrot.slane %v8883_v28, %v10741_v2 }
 0x236   : > { %v3754_v62 = vcombine.high %v3745_v63, %v3752_v60  ;;  %v3753_v46 = vcombine.low %v3745_v63, %v3752_v60  ;;  %v15571_v60 = vld [vmem:[#allocation148_spill] sm:$0xff]  ;;  %v15572_v63 = vld [vmem:[#allocation146_spill] sm:$0xff] }
 0x239   : > { %7611 = vmatmul.mubr.bf16.gmra.mrb[84].mxu0 %v3717_v51  ;;  %v3755_v51 = vcombine.low %v13676_v33, %v13672_v21 }
 0x23a   : > { %7620 = vmatprep.mubr.bf16.mxu0 %v3736_v50  ;;  %v15566_v50 = vld [vmem:[#allocation12_spill] sm:$0xff] }
 0x23b   : > { %6387 = vmatmul.mubr.bf16.gmra.mrb[44].mxu1 %v13663_v19  ;;  %v13688_v28 = vcombine.high %v15567_v30, %v15566_v50  ;;  %v3762_v48 = vrot.slane %v3755_v51, %v10741_v2  ;;  %v13699_v19 = vcombine.high %v15569_v6, %v15568_v37  ;;  %v15574_v51 = vld [vmem:[#allocation25_spill] sm:$0xff] }
 0x23c   : > { %6396 = vmatprep.mubr.bf16.mxu1 %v13667_v26  ;;  %v13695_v26 = vcombine.low %v15567_v30, %v15566_v50  ;;  %v10404_v50 = vld [vmem:[%s14792_s1 + $0x800] ss:$8 sps:$4 sm:$0xff]   ;;  %v10412_v30 = vld [vmem:[%s14792_s1 + $0x814] ss:$8 sps:$4 sm:$0xff]  }
 0x23d   : > { %v3763_v1 = vcombine.high %v3762_v48, %v3762_v48 }
 0x241   : > { %7621 = vmatmul.mubr.bf16.gmra.mrb[88].mxu0 %v3735_v25  ;;  %v13705_v25 = vcombine.low %v15569_v6, %v15568_v37  ;;  %v15578_v6 = vld [vmem:[#allocation26_spill] sm:$0xff] }
 0x242   : > { %7630 = vmatprep.mubr.bf16.mxu0 %v3754_v62  ;;  %v13709_v62 = vcombine.high %v15572_v63, %v15571_v60 }
 0x243   : > { %6397 = vmatmul.mubr.bf16.gmra.mrb[48].mxu1 %v13684_v47  ;;  %15570 = vst [vmem:[#allocation13_spill] sm:$0xff] %v13705_v25 }
 0x244   : > { %6406 = vmatprep.mubr.bf16.mxu1 %v13688_v28  ;;  %15573 = vst [vmem:[#allocation18_spill] sm:$0xff] %v13709_v62 }
 0x249   : > { %7631 = vmatmul.mubr.bf16.gmra.mrb[92].mxu0 %v3753_v46  ;;  %v13722_v46 = vcombine.low %v15572_v63, %v15571_v60  ;;  %v10418_v60 = vld [vmem:[%s14792_s1 + $0x824] ss:$8 sps:$4 sm:$0xff]   ;;  %v10416_v63 = vld [vmem:[%s14792_s1 + $0x820] ss:$8 sps:$4 sm:$0xff]  }
 0x24a   : > { %7640 = vmatprep.mubr.bf16.mxu0 %v3763_v1  ;;  %v15576_v1 = vld [vmem:[#allocation150_spill] sm:$0xff] }
 0x24b   : > { %6407 = vmatmul.mubr.bf16.gmra.mrb[52].mxu1 %v13695_v26  ;;  %15575 = vst [vmem:[#allocation16_spill] sm:$0xff] %v13722_v46 }
 0x24c   : > { %6416 = vmatprep.mubr.bf16.mxu1 %v13699_v19 }
 0x251   : > { %7641 = vmatmul.mubr.bf16.gmra.mrb[96].mxu0 %v3762_v48  ;;  %v15577_v48 = vld [vmem:[#allocation149_spill] sm:$0xff] }
 0x252   : > { %7681 = vmatprep.mubr.bf16.mxu0 %v15574_v51  ;;  %v13726_v37 = vcombine.high %v15577_v48, %v15576_v1  ;;  %v15579_v51 = vld [vmem:[#allocation33_spill] sm:$0xff] }
 0x253   : > { %6417 = vmatmul.mubr.bf16.gmra.mrb[56].mxu1 %v13705_v25  ;;  %v15584_v25 = vld [vmem:[#allocation153_spill] sm:$0xff] }
 0x254   : > { %6426 = vmatprep.mubr.bf16.mxu1 %v13709_v62  ;;  %v10410_v62 = vld [vmem:[%s14792_s1 + $0x810] ss:$8 sps:$4 sm:$0xff]  }
 0x259   : > { %7682 = vmatmul.mubr.bf16.vlgmr.msra.gmra.mrb[0].mxu0 %v15578_v6  ;;  %v15581_v6 = vld [vmem:[#allocation101_spill] sm:$0xff] }
 0x25a   : > { %7931 = vmatpush1.bf16.msra.mxu0 %v10404_v50  ;;  %7691 = vmatprep.mubr.bf16.mxu0 %v15579_v51  ;;  %v13743_v50 = vcombine.low %v15577_v48, %v15576_v1  ;;  %v15582_v51 = vld [vmem:[#allocation151_spill] sm:$0xff]  ;;  %v10436_v48 = vld [vmem:[%s14792_s1 + $0x854] ss:$8 sps:$4 sm:$0xff]  }
 0x25b   : > { %7932 = vmatprep.subr.bf16.mxu0 %v10412_v30  ;;  %6427 = vmatmul.mubr.bf16.gmra.mrb[60].mxu1 %v13722_v46  ;;  %v10424_v30 = vld [vmem:[%s14792_s1 + $0x834] ss:$8 sps:$4 sm:$0xff]   ;;  %v13750_v46 = vcombine.high %v15582_v51, %v15581_v6  ;;  %v10430_v1 = vld [vmem:[%s14792_s1 + $0x844] ss:$8 sps:$4 sm:$0xff]  }
 0x25c   : > { %6436 = vmatprep.mubr.bf16.mxu1 %v13726_v37  ;;  %15580 = vst [vmem:[#allocation114_spill] sm:$0xff] %v13743_v50 }
 0x25d   : > { %15583 = vst [vmem:[#allocation115_spill] sm:$0xff] %v13750_v46 }
 0x25e   : > { %7933 = vmatpush1.bf16.msra.mxu0 %v10410_v62  ;;  %v10422_v62 = vld [vmem:[%s14792_s1 + $0x830] ss:$8 sps:$4 sm:$0xff]  }
 0x25f   : > { %7934 = vmatprep.subr.bf16.mxu0 %v10418_v60  ;;  %v15586_v60 = vld [vmem:[#allocation104_spill] sm:$0xff] }
 0x261   : > { %7692 = vmatmul.mubr.bf16.gmra.mrb[4].mxu0 %v15584_v25  ;;  %v10428_v25 = vld [vmem:[%s14792_s1 + $0x840] ss:$8 sps:$4 sm:$0xff]  }
 0x262   : > { %7701 = vmatprep.mubr.bf16.mxu0 %v12804_v7  ;;  %7935 = vmatpush1.bf16.msra.mxu0 %v10416_v63  ;;  %v13767_v7 = vcombine.low %v15582_v51, %v15581_v6  ;;  %v15587_v63 = vld [vmem:[#allocation99_spill] sm:$0xff] }
 0x263   : > { %6437 = vmatmul.mubr.bf16.gmra.mrb[64].mxu1 %v13743_v50  ;;  %7936 = vmatprep.subr.bf16.mxu0 %v10424_v30  ;;  %v13774_v30 = vcombine.high %v15587_v63, %v15586_v60  ;;  %v15589_v50 = vld [vmem:[#allocation41_spill] sm:$0xff]  ;;  %v10442_v6 = vld [vmem:[%s14792_s1 + $0x864] ss:$8 sps:$4 sm:$0xff]   ;;  %v13791_v51 = vcombine.low %v15587_v63, %v15586_v60 }
 0x264   : > { %6446 = vmatprep.mubr.bf16.mxu1 %v13750_v46  ;;  %15585 = vst [vmem:[#allocation147_spill] sm:$0xff] %v13767_v7  ;;  %v10434_v46 = vld [vmem:[%s14792_s1 + $0x850] ss:$8 sps:$4 sm:$0xff]   ;;  %v10454_v60 = vld [vmem:[%s14792_s1 + $0x884] ss:$8 sps:$4 sm:$0xff]  }
 0x265   : > { %15588 = vst [vmem:[#allocation19_spill] sm:$0xff] %v13774_v30 }
 0x266   : > { %7937 = vmatpush1.bf16.msra.mxu0 %v10422_v62  ;;  %v15590_v62 = vld [vmem:[#allocation35_spill] sm:$0xff] }
 0x267   : > { %7938 = vmatprep.subr.bf16.mxu0 %v10430_v1  ;;  %v10448_v1 = vld [vmem:[%s14792_s1 + $0x874] ss:$8 sps:$4 sm:$0xff]  }
 0x269   : > { %7702 = vmatmul.mubr.bf16.gmra.mrb[8].mxu0 %v15589_v50  ;;  %v10440_v50 = vld [vmem:[%s14792_s1 + $0x860] ss:$8 sps:$4 sm:$0xff]  }
 0x26a   : > { %7711 = vmatprep.mubr.bf16.mxu0 %v15590_v62  ;;  %7939 = vmatpush1.bf16.msra.mxu0 %v10428_v25  ;;  %v15591_v25 = vld [vmem:[#allocation14_spill] sm:$0xff] }
 0x26b   : > { %6447 = vmatmul.mubr.bf16.gmra.mrb[68].mxu1 %v13767_v7  ;;  %7940 = vmatprep.subr.bf16.mxu0 %v10436_v48  ;;  %v15592_v48 = vld [vmem:[#allocation7_spill] sm:$0xff]  ;;  %v15594_v7 = vld [vmem:[#allocation156_spill] sm:$0xff] }
 0x26c   : > { %6456 = vmatprep.mubr.bf16.mxu1 %v13774_v30  ;;  %v13798_v62 = vcombine.high %v15592_v48, %v15591_v25  ;;  %v10446_v30 = vld [vmem:[%s14792_s1 + $0x870] ss:$8 sps:$4 sm:$0xff]   ;;  %v13815_v63 = vcombine.low %v15592_v48, %v15591_v25  ;;  %v10460_v25 = vld [vmem:[%s14792_s1 + $0x8a4] ss:$8 sps:$4 sm:$0xff]  }
 0x26e   : > { %7941 = vmatpush1.bf16.msra.mxu0 %v10434_v46  ;;  %15593 = vst [vmem:[#allocation120_spill] sm:$0xff] %v13798_v62  ;;  %v15595_v46 = vld [vmem:[#allocation57_spill] sm:$0xff]  ;;  %15596 = vst [vmem:[#allocation122_spill] sm:$0xff] %v13815_v63 }
 0x26f   : > { %7942 = vmatprep.subr.bf16.mxu0 %v10442_v6  ;;  %v10457_v6 = vld [vmem:[%s14792_s1 + $0x894] ss:$8 sps:$4 sm:$0xff]  }
 0x271   : > { %7712 = vmatmul.mubr.bf16.gmra.mrb[12].mxu0 %v15594_v7  ;;  %v10452_v7 = vld [vmem:[%s14792_s1 + $0x880] ss:$8 sps:$4 sm:$0xff]  }
 0x272   : > { %7721 = vmatprep.mubr.bf16.mxu0 %v15595_v46  ;;  %7943 = vmatpush1.bf16.msra.mxu0 %v10440_v50  ;;  %v15597_v50 = vld [vmem:[#allocation21_spill] sm:$0xff] }
 0x273   : > { %6457 = vmatmul.mubr.bf16.gmra.mrb[72].mxu1 %v13791_v51  ;;  %7944 = vmatprep.subr.bf16.mxu0 %v10448_v1  ;;  %v15598_v1 = vld [vmem:[#allocation11_spill] sm:$0xff] }
 0x274   : > { %6466 = vmatprep.mubr.bf16.mxu1 %v13798_v62  ;;  %v13822_v46 = vcombine.high %v15598_v1, %v15597_v50  ;;  %v10455_v62 = vld [vmem:[%s14792_s1 + $0x890] ss:$8 sps:$4 sm:$0xff]   ;;  %v13839_v48 = vcombine.low %v15598_v1, %v15597_v50  ;;  %v10466_v50 = vld [vmem:[%s14792_s1 + $0x8c4] ss:$8 sps:$4 sm:$0xff]  }
 0x276   : > { %7945 = vmatpush1.bf16.msra.mxu0 %v10446_v30  ;;  %15599 = vst [vmem:[#allocation83_spill] sm:$0xff] %v13822_v46  ;;  %v15600_v30 = vld [vmem:[#allocation63_spill] sm:$0xff]  ;;  %15601 = vst [vmem:[#allocation37_spill] sm:$0xff] %v13839_v48 }
 0x277   : > { %7946 = vmatprep.subr.bf16.mxu0 %v10454_v60  ;;  %v10463_v60 = vld [vmem:[%s14792_s1 + $0x8b4] ss:$8 sps:$4 sm:$0xff]  }
 0x279   : > { %7722 = vmatmul.mubr.bf16.gmra.mrb[16].mxu0 %v12922_v56  ;;  %v10458_v56 = vld [vmem:[%s14792_s1 + $0x8a0] ss:$8 sps:$4 sm:$0xff]  }
 0x27a   : > { %7731 = vmatprep.mubr.bf16.mxu0 %v15600_v30  ;;  %7947 = vmatpush1.bf16.msra.mxu0 %v10452_v7  ;;  %v15602_v7 = vld [vmem:[#allocation22_spill] sm:$0xff] }
 0x27b   : > { %6467 = vmatmul.mubr.bf16.gmra.mrb[76].mxu1 %v13815_v63  ;;  %7948 = vmatprep.subr.bf16.mxu0 %v10457_v6  ;;  %v15603_v6 = vld [vmem:[#allocation17_spill] sm:$0xff] }
 0x27c   : > { %6476 = vmatprep.mubr.bf16.mxu1 %v13822_v46  ;;  %v13846_v30 = vcombine.high %v15603_v6, %v15602_v7  ;;  %v15605_v63 = vld [vmem:[#allocation161_spill] sm:$0xff]  ;;  %v13863_v1 = vcombine.low %v15603_v6, %v15602_v7  ;;  %v10472_v7 = vld [vmem:[%s14792_s1 + $0x8e4] ss:$8 sps:$4 sm:$0xff]  }
 0x27d   : > { %v10461_v46 = vld [vmem:[%s14792_s1 + $0x8b0] ss:$8 sps:$4 sm:$0xff]  }
 0x27e   : > { %7949 = vmatpush1.bf16.msra.mxu0 %v10455_v62  ;;  %15604 = vst [vmem:[#allocation127_spill] sm:$0xff] %v13846_v30  ;;  %v15606_v62 = vld [vmem:[#allocation70_spill] sm:$0xff] }
 0x27f   : > { %7950 = vmatprep.subr.bf16.mxu0 %v10460_v25  ;;  %v10469_v25 = vld [vmem:[%s14792_s1 + $0x8d4] ss:$8 sps:$4 sm:$0xff]  }
 0x281   : > { %7732 = vmatmul.mubr.bf16.gmra.mrb[20].mxu0 %v15605_v63  ;;  %v10464_v63 = vld [vmem:[%s14792_s1 + $0x8c0] ss:$8 sps:$4 sm:$0xff]  }
 0x282   : > { %7741 = vmatprep.mubr.bf16.mxu0 %v15606_v62  ;;  %7951 = vmatpush1.bf16.msra.mxu0 %v10458_v56  ;;  %v15607_v56 = vld [vmem:[#allocation30_spill] sm:$0xff] }
 0x283   : > { %6477 = vmatmul.mubr.bf16.gmra.mrb[80].mxu1 %v13839_v48  ;;  %7952 = vmatprep.subr.bf16.mxu0 %v10463_v60  ;;  %v15608_v60 = vld [vmem:[#allocation29_spill] sm:$0xff]  ;;  %v15610_v48 = vld [vmem:[#allocation162_spill] sm:$0xff] }
 0x284   : > { %6486 = vmatprep.mubr.bf16.mxu1 %v13846_v30  ;;  %v13870_v62 = vcombine.high %v15608_v60, %v15607_v56  ;;  %v10467_v30 = vld [vmem:[%s14792_s1 + $0x8d0] ss:$8 sps:$4 sm:$0xff]   ;;  %v13887_v6 = vcombine.low %v15608_v60, %v15607_v56  ;;  %v15615_v56 = vld [vmem:[#allocation155_spill] sm:$0xff] }
 0x285   : > { %v3177_v60 = vcombine.high %v15615_v56, %v15615_v56 }
 0x286   : > { %7953 = vmatpush1.bf16.msra.mxu0 %v10461_v46  ;;  %15609 = vst [vmem:[#allocation93_spill] sm:$0xff] %v13870_v62  ;;  %v15611_v46 = vld [vmem:[#allocation75_spill] sm:$0xff] }
 0x287   : > { %7954 = vmatprep.subr.bf16.mxu0 %v10466_v50  ;;  %v15612_v50 = vld [vmem:[#allocation154_spill] sm:$0xff] }
 0x289   : > { %7742 = vmatmul.mubr.bf16.gmra.mrb[24].mxu0 %v15610_v48  ;;  %v10470_v48 = vld [vmem:[%s14792_s1 + $0x8e0] ss:$8 sps:$4 sm:$0xff]  }
 0x28a   : > { %7751 = vmatprep.mubr.bf16.mxu0 %v15611_v46  ;;  %7955 = vmatpush1.bf16.msra.mxu0 %v10464_v63  ;;  %v15613_v63 = vld [vmem:[#allocation152_spill] sm:$0xff] }
 0x28b   : > { %6487 = vmatmul.mubr.bf16.gmra.mrb[84].mxu1 %v13863_v1  ;;  %7956 = vmatprep.subr.bf16.mxu0 %v10469_v25  ;;  %v13891_v46 = vcombine.high %v15613_v63, %v15612_v50  ;;  %v10475_v25 = vld [vmem:[%s14792_s1 + $0x8f4] ss:$8 sps:$4 sm:$0xff]  }
 0x28c   : > { %6496 = vmatprep.mubr.bf16.mxu1 %v13870_v62  ;;  %v10473_v62 = vld [vmem:[%s14792_s1 + $0x8f0] ss:$8 sps:$4 sm:$0xff]  }
 0x28e   : > { %7957 = vmatpush1.bf16.msra.mxu0 %v10467_v30  ;;  %v15614_v30 = vld [vmem:[#allocation71_spill] sm:$0xff] }
 0x28f   : > { %7958 = vmatprep.subr.bf16.mxu0 %v10472_v7  ;;  %v15616_v7 = vld [vmem:[#allocation23_spill] sm:$0xff] }
 0x291   : > { %7752 = vmatmul.mubr.bf16.gmra.mrb[28].mxu0 %v12989_v23  ;;  %v13905_v23 = vcombine.low %v15613_v63, %v15612_v50  ;;  %v15618_v50 = vld [vmem:[#allocation27_spill] sm:$0xff] }
 0x292   : > { %7761 = vmatprep.mubr.bf16.mxu0 %v15614_v30  ;;  %7959 = vmatpush1.bf16.msra.mxu0 %v10470_v48  ;;  %v15617_v48 = vld [vmem:[#allocation20_spill] sm:$0xff]  ;;  %v15620_v30 = vld [vmem:[#allocation31_spill] sm:$0xff] }
 0x293   : > { %6497 = vmatmul.mubr.bf16.gmra.mrb[88].mxu1 %v13887_v6  ;;  %7960 = vmatprep.subr.bf16.mxu0 %v10475_v25  ;;  %v3229_v25 = vcombine.high %v15617_v48, %v15616_v7 }
 0x294   : > { %6506 = vmatprep.mubr.bf16.mxu1 %v13891_v46 }
 0x296   : > { %7961 = vmatpush1.bf16.msra.mxu0 %v10473_v62  ;;  %v3228_v62 = vcombine.low %v15617_v48, %v15616_v7  ;;  %v10480_v7 = vld [vmem:[%s14792_s1 + $0x424] ss:$8 sps:$4 sm:$0xff]   ;;  %v10481_v48 = vld [vmem:[%s14792_s1 + $0x420] ss:$8 sps:$4 sm:$0xff]  }
 0x299   : > { %7762 = vmatmul.mubr.bf16.gmra.mrb[32].mxu0 %v13023_v18  ;;  %v15619_v18 = vld [vmem:[#allocation24_spill] sm:$0xff] }
 0x29a   : > { %7771 = vmatprep.mubr.bf16.mxu0 %v13027_v24  ;;  %v3231_v63 = vcombine.high %v15619_v18, %v15618_v50  ;;  %v10477_v24 = vld [vmem:[%s14792_s1 + $0x400] ss:$8 sps:$4 sm:$0xff]  }
 0x29b   : > { %6507 = vmatmul.mubr.bf16.gmra.mrb[92].mxu1 %v13905_v23 }
 0x29c   : > { %6516 = vmatprep.mubr.bf16.mxu1 %v3177_v60  ;;  %v15621_v60 = vld [vmem:[#allocation28_spill] sm:$0xff] }
 0x2a1   : > { %7772 = vmatmul.mubr.bf16.gmra.mrb[36].mxu0 %v13063_v5  ;;  %v10478_v5 = vld [vmem:[%s14792_s1 + $0x414] ss:$8 sps:$4 sm:$0xff]  }
 0x2a2   : > { %7781 = vmatprep.mubr.bf16.mxu0 %v13067_v53  ;;  %v3230_v53 = vcombine.low %v15619_v18, %v15618_v50  ;;  %v15623_v50 = vld [vmem:[#allocation32_spill] sm:$0xff] }
 0x2a3   : > { %6517 = vmatmul.mubr.bf16.gmra.mrb[96].mxu1 %v15615_v56 }
 0x2a4   : > { %6557 = vmatprep.mubr.bf16.mxu1 %v3229_v25  ;;  %v10482_v25 = vld [vmem:[%s14792_s1 + $0x434] ss:$8 sps:$4 sm:$0xff]  }
 0x2a9   : > { %7782 = vmatmul.mubr.bf16.gmra.mrb[40].mxu0 %v13107_v54  ;;  %v3233_v54 = vcombine.high %v15621_v60, %v15620_v30 }
 0x2aa   : > { %7791 = vmatprep.mubr.bf16.mxu0 %v13114_v27  ;;  %v10479_v27 = vld [vmem:[%s14792_s1 + $0x410] ss:$8 sps:$4 sm:$0xff]  }
 0x2ab   : > { %6558 = vmatmul.mubr.bf16.vlgmr.msra.gmra.mrb[0].mxu1 %v3228_v62  ;;  %v15622_v62 = vld [vmem:[#allocation34_spill] sm:$0xff] }
 0x2ac   : > { %6567 = vmatprep.mubr.bf16.mxu1 %v3231_v63  ;;  %9205 = vmatpush1.bf16.msra.mxu1 %v10477_v24  ;;  %v3235_v18 = vcombine.high %v15623_v50, %v15622_v62  ;;  %v10484_v63 = vld [vmem:[%s14792_s1 + $0x444] ss:$8 sps:$4 sm:$0xff]   ;;  %v10485_v24 = vld [vmem:[%s14792_s1 + $0x440] ss:$8 sps:$4 sm:$0xff]  }
 0x2ad   : > { %9190 = vmatprep.subr.bf16.mxu1 %v10478_v5  ;;  %v10486_v5 = vld [vmem:[%s14792_s1 + $0x454] ss:$8 sps:$4 sm:$0xff]  }
 0x2b0   : > { %9206 = vmatpush1.bf16.msra.mxu1 %v10479_v27  ;;  %v1589_v27 = vrot.slane %v12811_v38, 7  ;;  %v15626_v38 = vld [vmem:[#allocation53_spill] sm:$0xff] }
 0x2b1   : > { %7792 = vmatmul.mubr.bf16.gmra.mrb[44].mxu0 %v13148_v52  ;;  %9191 = vmatprep.subr.bf16.mxu1 %v10480_v7  ;;  %v3232_v52 = vcombine.low %v15621_v60, %v15620_v30  ;;  %v15625_v30 = vld [vmem:[#allocation36_spill] sm:$0xff]  ;;  %v10489_v7 = vld [vmem:[%s14792_s1 + $0x460] ss:$8 sps:$4 sm:$0xff]  }
 0x2b2   : > { %7801 = vmatprep.mubr.bf16.mxu0 %v13156_v49  ;;  %v10483_v49 = vld [vmem:[%s14792_s1 + $0x430] ss:$8 sps:$4 sm:$0xff]  }
 0x2b3   : > { %6568 = vmatmul.mubr.bf16.gmra.mrb[4].mxu1 %v3230_v53  ;;  %v15624_v53 = vld [vmem:[#allocation45_spill] sm:$0xff] }
 0x2b4   : > { %6577 = vmatprep.mubr.bf16.mxu1 %v3233_v54  ;;  %9207 = vmatpush1.bf16.msra.mxu1 %v10481_v48  ;;  %v3237_v60 = vcombine.high %v15625_v30, %v15624_v53  ;;  %v10488_v54 = vld [vmem:[%s14792_s1 + $0x464] ss:$8 sps:$4 sm:$0xff]   ;;  %v8874_v48 = vrot.slane %v15527_v34, 9 }
 0x2b5   : > { %9192 = vmatprep.subr.bf16.mxu1 %v10482_v25  ;;  %v3236_v25 = vcombine.low %v15625_v30, %v15624_v53  ;;  %v10492_v34 = vld [vmem:[%s14792_s1 + $0x484] ss:$8 sps:$4 sm:$0xff]  }
 0x2b8   : > { %9208 = vmatpush1.bf16.msra.mxu1 %v10483_v49 }
 0x2b9   : > { %7802 = vmatmul.mubr.bf16.gmra.mrb[48].mxu0 %v13192_v10  ;;  %9193 = vmatprep.subr.bf16.mxu1 %v10484_v63  ;;  %v3234_v10 = vcombine.low %v15623_v50, %v15622_v62  ;;  %v15627_v62 = vld [vmem:[#allocation47_spill] sm:$0xff]  ;;  %v1595_v63 = vrot.slane %v12815_v57, 7 }
 0x2ba   : > { %7811 = vmatprep.mubr.bf16.mxu0 %v13196_v22  ;;  %v10487_v22 = vld [vmem:[%s14792_s1 + $0x450] ss:$8 sps:$4 sm:$0xff]   ;;  %v3239_v50 = vcombine.high %v15627_v62, %v15626_v38  ;;  %v3238_v53 = vcombine.low %v15627_v62, %v15626_v38 }
 0x2bb   : > { %6578 = vmatmul.mubr.bf16.gmra.mrb[8].mxu1 %v3232_v52  ;;  %v1592_v52 = vrot.slane %v12787_v17, 7  ;;  %v1590_v17 = vsel %vm10826_vm6, %v8874_v48, %v1589_v27  ;;  %v1597_v30 = vrot.slane %v1595_v63, 2  ;;  %v1611_v48 = vrot.slane %v13492_v15, 7 }
 0x2bc   : > { %6587 = vmatprep.mubr.bf16.mxu1 %v3235_v18  ;;  %9209 = vmatpush1.bf16.msra.mxu1 %v10485_v24  ;;  %v10491_v18 = vld [vmem:[%s14792_s1 + $0x470] ss:$8 sps:$4 sm:$0xff]   ;;  %v1598_v24 = vrot.slane %v12818_v45, 7 }
 0x2bd   : > { %9194 = vmatprep.subr.bf16.mxu1 %v10486_v5  ;;  %v10493_v5 = vld [vmem:[%s14792_s1 + $0x480] ss:$8 sps:$4 sm:$0xff]   ;;  %v1594_v57 = vrot.slane %v1592_v52, 2 }
 0x2be   : > { %v1600_v45 = vrot.slane %v1598_v24, 2  ;;  %v1599_v15 = vsel %vm10826_vm6, %v1597_v30, %v1598_v24 }
 0x2c0   : > { %9210 = vmatpush1.bf16.msra.mxu1 %v10487_v22  ;;  %v15628_v22 = vld [vmem:[#allocation58_spill] sm:$0xff] }
 0x2c1   : > { %7812 = vmatmul.mubr.bf16.gmra.mrb[52].mxu0 %v13235_v61  ;;  %9195 = vmatprep.subr.bf16.mxu1 %v10488_v54  ;;  %v10490_v61 = vld [vmem:[%s14792_s1 + $0x474] ss:$8 sps:$4 sm:$0xff]   ;;  %v15629_v54 = vld [vmem:[#allocation54_spill] sm:$0xff] }
 0x2c2   : > { %7821 = vmatprep.mubr.bf16.mxu0 %v13242_v4  ;;  %v1591_v4 = vrot.slane %v1589_v27, 2  ;;  %v3241_v27 = vcombine.high %v15629_v54, %v15628_v22 }
 0x2c3   : > { %6588 = vmatmul.mubr.bf16.gmra.mrb[12].mxu1 %v3234_v10 }
 0x2c4   : > { %6597 = vmatprep.mubr.bf16.mxu1 %v3237_v60  ;;  %9211 = vmatpush1.bf16.msra.mxu1 %v10489_v7  ;;  %v1593_v49 = vsel %vm10826_vm6, %v1591_v4, %v1592_v52  ;;  %v1585_v7 = vcombine.high %v12846_v55, %v12846_v55  ;;  %v10496_v4 = vld [vmem:[%s14792_s1 + $0x4a4] ss:$8 sps:$4 sm:$0xff]   ;;  %v1596_v52 = vsel %vm10826_vm6, %v1594_v57, %v1595_v63  ;;  %v10499_v57 = vld [vmem:[%s14792_s1 + $0x4b0] ss:$8 sps:$4 sm:$0xff]  }
 0x2c5   : > { %9196 = vmatprep.subr.bf16.mxu1 %v10490_v61  ;;  %v3425_v10 = vcombine.low %v1590_v17, %v1593_v49  ;;  %v10495_v61 = vld [vmem:[%s14792_s1 + $0x490] ss:$8 sps:$4 sm:$0xff]   ;;  %v1617_v17 = vrot.slane %v12898_v0, 7  ;;  %v10498_v49 = vld [vmem:[%s14792_s1 + $0x4b4] ss:$8 sps:$4 sm:$0xff]   ;;  %v3426_v24 = vcombine.low %v1596_v52, %v1599_v15 }
 0x2c6   : > { %v1607_v62 = vrot.slane %v1585_v7, 7  ;;  %v10502_v15 = vld [vmem:[%s14792_s1 + $0x4d4] ss:$8 sps:$4 sm:$0xff]  }
 0x2c8   : > { %9212 = vmatpush1.bf16.msra.mxu1 %v10491_v18  ;;  %v1613_v18 = vrot.slane %v1611_v48, 2 }
 0x2c9   : > { %7822 = vmatmul.mubr.bf16.gmra.mrb[56].mxu0 %v13275_v41  ;;  %9197 = vmatprep.subr.bf16.mxu1 %v10492_v34  ;;  %v1601_v41 = vrot.slane %v12850_v3, 7  ;;  %v1604_v3 = vrot.slane %v12846_v55, 7  ;;  %v14029_v55 = vrot.slane %v3425_v10, %v10741_v2 }
 0x2ca   : > { %7831 = vmatprep.mubr.bf16.mxu0 %v13282_v31  ;;  %v10494_v31 = vld [vmem:[%s14792_s1 + $0x494] ss:$8 sps:$4 sm:$0xff]  }
 0x2cb   : > { %6598 = vmatmul.mubr.bf16.gmra.mrb[16].mxu1 %v3236_v25  ;;  %v1603_v60 = vrot.slane %v1601_v41, 2  ;;  %v1614_v25 = vrot.slane %v12872_v8, 7  ;;  %v1602_v8 = vsel %vm10826_vm6, %v1600_v45, %v1601_v41  ;;  %v1606_v38 = vrot.slane %v1604_v3, 2 }
 0x2cc   : > { %6607 = vmatprep.mubr.bf16.mxu1 %v3239_v50  ;;  %9213 = vmatpush1.bf16.msra.mxu1 %v10493_v5  ;;  %v10497_v50 = vld [vmem:[%s14792_s1 + $0x4a0] ss:$8 sps:$4 sm:$0xff]   ;;  %v3781_v63 = vcombine.high %v13327_v42, %v14029_v55 }
 0x2cd   : > { %9198 = vmatprep.subr.bf16.mxu1 %v10494_v31  ;;  %v1616_v34 = vrot.slane %v1614_v25, 2  ;;  %v15630_v5 = vld [vmem:[#allocation66_spill] sm:$0xff]  ;;  %v15631_v31 = vld [vmem:[#allocation60_spill] sm:$0xff]  ;;  %v1615_v30 = vsel %vm10826_vm6, %v1613_v18, %v1614_v25  ;;  %v1619_v25 = vrot.slane %v1617_v17, 2 }
 0x2ce   : > { %v3243_v10 = vcombine.high %v15631_v31, %v15630_v5 }
 0x2cf   : > { %v1618_v45 = vsel %vm10826_vm6, %v1616_v34, %v1617_v17  ;;  %v15634_v34 = vld [vmem:[#allocation72_spill] sm:$0xff]  ;;  %v15635_v17 = vld [vmem:[#allocation67_spill] sm:$0xff] }
 0x2d0   : > { %9214 = vmatpush1.bf16.msra.mxu1 %v10495_v61 }
 0x2d1   : > { %7832 = vmatmul.mubr.bf16.gmra.mrb[60].mxu0 %v13310_v32  ;;  %9199 = vmatprep.subr.bf16.mxu1 %v10496_v4  ;;  %v1605_v32 = vsel %vm10826_vm6, %v1603_v60, %v1604_v3  ;;  %v1620_v60 = vrot.slane %v12877_v59, 7  ;;  %v1623_v3 = vrot.slane %v12902_v43, 7  ;;  %v3461_v59 = vcombine.low %v1615_v30, %v1618_v45  ;;  %v10501_v43 = vld [vmem:[%s14792_s1 + $0x4c0] ss:$8 sps:$4 sm:$0xff]  }
 0x2d2   : > { %7841 = vmatprep.mubr.bf16.mxu0 %v13314_v16  ;;  %v8875_v16 = vrot.slane %v12853_v20, 9  ;;  %v3443_v41 = vcombine.low %v1602_v8, %v1605_v32  ;;  %v3240_v20 = vcombine.low %v15629_v54, %v15628_v22  ;;  %v10500_v22 = vld [vmem:[%s14792_s1 + $0x4c4] ss:$8 sps:$4 sm:$0xff]   ;;  %v14071_v54 = vrot.slane %v3426_v24, %v10741_v2  ;;  %v15633_v8 = vld [vmem:[#allocation160_spill] sm:$0xff]  ;;  %v10505_v30 = vld [vmem:[%s14792_s1 + $0x4e0] ss:$8 sps:$4 sm:$0xff]  }
 0x2d3   : > { %6608 = vmatmul.mubr.bf16.gmra.mrb[20].mxu1 %v3238_v53  ;;  %v1608_v53 = vsel %vm10826_vm6, %v1606_v38, %v1607_v62  ;;  %v1622_v4 = vrot.slane %v1620_v60, 2  ;;  %v1625_v52 = vrot.slane %v1623_v3, 2  ;;  %v1629_v32 = vrot.slane %v15633_v8, 7  ;;  %v10507_v8 = vld [vmem:[%s14792_s1 + $0x4f0] ss:$8 sps:$4 sm:$0xff]  }
 0x2d4   : > { %6617 = vmatprep.mubr.bf16.mxu1 %v3241_v27  ;;  %9215 = vmatpush1.bf16.msra.mxu1 %v10497_v50  ;;  %v1612_v0 = vsel %vm10826_vm6, %v8875_v16, %v1611_v48  ;;  %v15632_v27 = vld [vmem:[#allocation158_spill] sm:$0xff]  ;;  %v3780_v48 = vcombine.low %v13327_v42, %v14029_v55  ;;  %v3242_v16 = vcombine.low %v15631_v31, %v15630_v5 }
 0x2d5   : > { %9200 = vmatprep.subr.bf16.mxu1 %v10498_v49  ;;  %v1626_v7 = vrot.slane %v15632_v27, 7  ;;  %v3444_v61 = vcombine.low %v1608_v53, %v1612_v0  ;;  %v14094_v18 = vrot.slane %v3461_v59, %v10741_v2  ;;  %v3245_v49 = vcombine.high %v15635_v17, %v15634_v34  ;;  %v10504_v5 = vld [vmem:[%s14792_s1 + $0x4e4] ss:$8 sps:$4 sm:$0xff]  }
 0x2d6   : > { %v1621_v24 = vsel %vm10826_vm6, %v1619_v25, %v1620_v60  ;;  %v1716_v53 = vrot.slane %v13542_v39, 7  ;;  %v1719_v0 = vrot.slane %v13570_v29, 7  ;;  %v3244_v25 = vcombine.low %v15635_v17, %v15634_v34 }
 0x2d7   : > { %v1628_v62 = vrot.slane %v1626_v7, 2  ;;  %v14091_v50 = vrot.slane %v3444_v61, %v10741_v2 }
 0x2d8   : > { %9216 = vmatpush1.bf16.msra.mxu1 %v10499_v57  ;;  %v1718_v59 = vrot.slane %v1716_v53, 2 }
 0x2d9   : > { %7842 = vmatmul.mubr.bf16.gmra.mrb[64].mxu0 %v13331_v14  ;;  %9201 = vmatprep.subr.bf16.mxu1 %v10500_v22  ;;  %v14074_v14 = vrot.slane %v3443_v41, %v10741_v2  ;;  %v1624_v41 = vsel %vm10826_vm6, %v1622_v4, %v1623_v3  ;;  %v1630_v31 = vsel %vm10826_vm6, %v1628_v62, %v1629_v32  ;;  %v15636_v22 = vld [vmem:[#allocation92_spill] sm:$0xff]  ;;  %v15637_v4 = vld [vmem:[#allocation77_spill] sm:$0xff] }
 0x2da   : > { %7851 = vmatprep.mubr.bf16.mxu0 %v3781_v63  ;;  %v10503_v63 = vld [vmem:[%s14792_s1 + $0x4d0] ss:$8 sps:$4 sm:$0xff]   ;;  %v3785_v45 = vcombine.high %v14091_v50, %v14094_v18  ;;  %v3462_v60 = vcombine.low %v1621_v24, %v1624_v41  ;;  %v8884_v27 = vrot.slane %v15636_v22, 9  ;;  %v1720_v34 = vsel %vm10826_vm6, %v1718_v59, %v1719_v0 }
 0x2db   : > { %6618 = vmatmul.mubr.bf16.gmra.mrb[24].mxu1 %v3240_v20  ;;  %v3783_v38 = vcombine.high %v14071_v54, %v14074_v14  ;;  %v1627_v20 = vsel %vm10826_vm6, %v1625_v52, %v1626_v7  ;;  %v3782_v57 = vcombine.low %v14071_v54, %v14074_v14  ;;  %v10506_v7 = vld [vmem:[%s14792_s1 + $0x4f4] ss:$8 sps:$4 sm:$0xff]   ;;  %v1728_v24 = vrot.slane %v13602_v58, 7 }
 0x2dc   : > { %6627 = vmatprep.mubr.bf16.mxu1 %v3243_v10  ;;  %9217 = vmatpush1.bf16.msra.mxu1 %v10501_v43  ;;  %v1713_v10 = vrot.slane %v13557_v13, 7  ;;  %v3479_v3 = vcombine.low %v1627_v20, %v1630_v31  ;;  %v1721_v43 = vrot.slane %v1719_v0, 2  ;;  %v15638_v52 = vld [vmem:[#allocation73_spill] sm:$0xff]  ;;  %v14135_v32 = vrot.slane %v3462_v60, %v10741_v2  ;;  %v15639_v60 = vld [vmem:[#allocation8_spill] sm:$0xff] }
 0x2dd   : > { %9202 = vmatprep.subr.bf16.mxu1 %v10502_v15  ;;  %v3247_v15 = vcombine.high %v15638_v52, %v15637_v4  ;;  %v3784_v41 = vcombine.low %v14091_v50, %v14094_v18  ;;  %v1735_v31 = vrot.slane %v13637_v12, 7  ;;  %v15640_v22 = vld [vmem:[#allocation85_spill] sm:$0xff] }
 0x2de   : > { %v1715_v61 = vrot.slane %v1713_v10, 2  ;;  %v1714_v62 = vsel %vm10826_vm6, %v8884_v27, %v1713_v10  ;;  %v15641_v27 = vld [vmem:[#allocation78_spill] sm:$0xff] }
 0x2e0   : > { %9218 = vmatpush1.bf16.msra.mxu1 %v10503_v63  ;;  %v1709_v63 = vcombine.high %v13602_v58, %v13602_v58 }
 0x2e1   : > { %7852 = vmatmul.mubr.bf16.gmra.mrb[68].mxu0 %v3780_v48  ;;  %9203 = vmatprep.subr.bf16.mxu1 %v10504_v5  ;;  %v1722_v48 = vrot.slane %v13584_v40, 7 }
 0x2e2   : > { %7861 = vmatprep.mubr.bf16.mxu0 %v3783_v38  ;;  %v14138_v38 = vrot.slane %v3479_v3, %v10741_v2  ;;  %v8885_v3 = vrot.slane %v15639_v60, 9 }
 0x2e3   : > { %6628 = vmatmul.mubr.bf16.gmra.mrb[28].mxu1 %v3242_v16  ;;  %v1717_v16 = vsel %vm10826_vm6, %v1715_v61, %v1716_v53  ;;  %v1723_v17 = vsel %vm10826_vm6, %v1721_v43, %v1722_v48  ;;  %v1724_v53 = vrot.slane %v1722_v48, 2  ;;  %v1738_v48 = vrot.slane %v13621_v35, 7 }
 0x2e4   : > { %6637 = vmatprep.mubr.bf16.mxu1 %v3245_v49  ;;  %9219 = vmatpush1.bf16.msra.mxu1 %v10505_v30  ;;  %v1725_v49 = vrot.slane %v13606_v9, 7  ;;  %v3788_v20 = vcombine.low %v1714_v62, %v1717_v16  ;;  %v3789_v5 = vcombine.low %v1720_v34, %v1723_v17  ;;  %v3787_v10 = vcombine.high %v14135_v32, %v14138_v38 }
 0x2e5   : > { %9204 = vmatprep.subr.bf16.mxu1 %v10506_v7  ;;  %v1730_v30 = vrot.slane %v1728_v24, 2  ;;  %v3249_v7 = vcombine.high %v15641_v27, %v15640_v22  ;;  %v1737_v17 = vrot.slane %v1735_v31, 2 }
 0x2e6   : > { %v1727_v0 = vrot.slane %v1725_v49, 2  ;;  %v3796_v61 = vrot.slane %v3788_v20, %v10741_v2  ;;  %v3803_v12 = vrot.slane %v3789_v5, %v10741_v2  ;;  %v1726_v59 = vsel %vm10826_vm6, %v1724_v53, %v1725_v49  ;;  %v15642_v5 = vld [vmem:[#allocation89_spill] sm:$0xff] }
 0x2e7   : > { %v1740_v49 = vrot.slane %v1738_v48, 2  ;;  %v1747_v20 = vrot.slane %v13676_v33, 7 }
 0x2e8   : > { %9220 = vmatpush1.bf16.msra.mxu1 %v10507_v8  ;;  %v1729_v43 = vsel %vm10826_vm6, %v1727_v0, %v1728_v24  ;;  %v3786_v8 = vcombine.low %v14135_v32, %v14138_v38  ;;  %v3805_v62 = vcombine.high %v3796_v61, %v3803_v12 }
 0x2e9   : > { %7862 = vmatmul.mubr.bf16.gmra.mrb[72].mxu0 %v3782_v57  ;;  %v3246_v57 = vcombine.low %v15638_v52, %v15637_v4  ;;  %v1736_v4 = vsel %vm10826_vm6, %v8885_v3, %v1735_v31  ;;  %v1741_v52 = vrot.slane %v13644_v36, 7  ;;  %v3806_v16 = vcombine.low %v1726_v59, %v1729_v43 }
 0x2ea   : > { %7871 = vmatprep.mubr.bf16.mxu0 %v3785_v45  ;;  %v1731_v45 = vrot.slane %v1709_v63, 7  ;;  %v3248_v63 = vcombine.low %v15641_v27, %v15640_v22  ;;  %v1739_v31 = vsel %vm10826_vm6, %v1737_v17, %v1738_v48  ;;  %v14194_v22 = vcombine.high %v13672_v21, %v13672_v21 }
 0x2eb   : > { %6638 = vmatmul.mubr.bf16.gmra.mrb[32].mxu1 %v3244_v25  ;;  %v1743_v24 = vrot.slane %v1741_v52, 2  ;;  %v3814_v0 = vrot.slane %v3806_v16, %v10741_v2  ;;  %v1750_v27 = vrot.slane %v13672_v21, 7 }
 0x2ec   : > { %6647 = vmatprep.mubr.bf16.mxu1 %v3247_v15  ;;  %v1732_v25 = vsel %vm10826_vm6, %v1730_v30, %v1731_v45  ;;  %v1744_v15 = vrot.slane %v13647_v11, 7  ;;  %v1742_v30 = vsel %vm10826_vm6, %v1740_v49, %v1741_v52 }
 0x2ed   : > { %v3807_v34 = vcombine.low %v1732_v25, %v1736_v4  ;;  %v3824_v43 = vcombine.low %v1739_v31, %v1742_v30  ;;  %v1749_v4 = vrot.slane %v1747_v20, 2  ;;  %v1752_v52 = vrot.slane %v1750_v27, 2 }
 0x2ee   : > { %v1745_v45 = vsel %vm10826_vm6, %v1743_v24, %v1744_v15 }
 0x2f1   : > { %7872 = vmatmul.mubr.bf16.gmra.mrb[76].mxu0 %v3784_v41  ;;  %v1746_v41 = vrot.slane %v1744_v15, 2  ;;  %v1753_v15 = vrot.slane %v14194_v22, 7 }
 0x2f2   : > { %7881 = vmatprep.mubr.bf16.mxu0 %v3787_v10  ;;  %v15643_v10 = vld [vmem:[#allocation86_spill] sm:$0xff] }
 0x2f3   : > { %6648 = vmatmul.mubr.bf16.gmra.mrb[36].mxu1 %v3246_v57  ;;  %v3251_v53 = vcombine.high %v15643_v10, %v15642_v5  ;;  %v3821_v57 = vrot.slane %v3807_v34, %v10741_v2  ;;  %v1748_v3 = vsel %vm10826_vm6, %v1746_v41, %v1747_v20  ;;  %v3250_v25 = vcombine.low %v15643_v10, %v15642_v5  ;;  %v15646_v20 = vld [vmem:[#allocation105_spill] sm:$0xff]  ;;  %v15647_v5 = vld [vmem:[#allocation98_spill] sm:$0xff] }
 0x2f4   : > { %6657 = vmatprep.mubr.bf16.mxu1 %v3249_v7  ;;  %v3804_v7 = vcombine.low %v3796_v61, %v3803_v12  ;;  %v3825_v48 = vcombine.low %v1745_v45, %v1748_v3  ;;  %v3832_v34 = vrot.slane %v3824_v43, %v10741_v2  ;;  %v1751_v61 = vsel %vm10826_vm6, %v1749_v4, %v1750_v27  ;;  %v15650_v27 = vld [vmem:[#allocation118_spill] sm:$0xff]  ;;  %v15652_v43 = vld [vmem:[#allocation69_spill] sm:$0xff]  ;;  %v15654_v4 = vld [vmem:[#allocation119_spill] sm:$0xff] }
 0x2f5   : > { %v3823_v59 = vcombine.high %v3814_v0, %v3821_v57  ;;  %v1754_v12 = vsel %vm10826_vm6, %v1752_v52, %v1753_v15  ;;  %v3822_v49 = vcombine.low %v3814_v0, %v3821_v57  ;;  %v3255_v10 = vcombine.high %v15647_v5, %v15646_v20  ;;  %v15648_v0 = vld [vmem:[#allocation111_spill] sm:$0xff]  ;;  %v15649_v57 = vld [vmem:[#allocation106_spill] sm:$0xff]  ;;  %v15655_v15 = vld [vmem:[#allocation80_spill] sm:$0xff] }
 0x2f6   : > { %v3839_v17 = vrot.slane %v3825_v48, %v10741_v2  ;;  %v3842_v24 = vcombine.low %v1751_v61, %v1754_v12  ;;  %v3254_v44 = vcombine.low %v15647_v5, %v15646_v20  ;;  %v3257_v45 = vcombine.high %v15649_v57, %v15648_v0  ;;  %v15659_v61 = vld [vmem:[#allocation3_spill] sm:$0xff]  ;;  %v15660_v12 = vld [vmem:[#allocation4_spill] sm:$0xff] }
 0x2f7   : > { %v3256_v3 = vcombine.low %v15649_v57, %v15648_v0  ;;  %v15663_v20 = vld [vmem:[#allocation96_spill] sm:$0xff]  ;;  %v15668_v0 = vld [vmem:[#allocation107_spill] sm:$0xff] }
 0x2f8   : > { %v3840_v31 = vcombine.low %v3832_v34, %v3839_v17  ;;  %v15664_v5 = vld [vmem:[#allocation100_spill] sm:$0xff] }
 0x2f9   : > { %7882 = vmatmul.mubr.bf16.gmra.mrb[80].mxu0 %v3786_v8  ;;  %v15644_v8 = vld [vmem:[#allocation95_spill] sm:$0xff] }
 0x2fa   : > { %7891 = vmatprep.mubr.bf16.mxu0 %v3805_v62  ;;  %v15645_v62 = vld [vmem:[#allocation90_spill] sm:$0xff] }
 0x2fb   : > { %6658 = vmatmul.mubr.bf16.gmra.mrb[40].mxu1 %v3248_v63  ;;  %v3253_v16 = vcombine.high %v15645_v62, %v15644_v8  ;;  %v3841_v63 = vcombine.high %v3832_v34, %v3839_v17  ;;  %v3252_v41 = vcombine.low %v15645_v62, %v15644_v8  ;;  %v15656_v8 = vld [vmem:[#allocation81_spill] sm:$0xff]  ;;  %v15658_v34 = vld [vmem:[#allocation126_spill] sm:$0xff] }
 0x2fc   : > { %6667 = vmatprep.mubr.bf16.mxu1 %v3251_v53  ;;  %v3849_v53 = vrot.slane %v3842_v24, %v10741_v2  ;;  %v15662_v24 = vld [vmem:[#allocation131_spill] sm:$0xff] }
 0x2fe   : > { %v3850_v30 = vcombine.high %v3849_v53, %v3849_v53 }
 0x301   : > { %7892 = vmatmul.mubr.bf16.gmra.mrb[84].mxu0 %v3804_v7  ;;  %v15651_v7 = vld [vmem:[#allocation112_spill] sm:$0xff] }
 0x302   : > { %7901 = vmatprep.mubr.bf16.mxu0 %v3823_v59  ;;  %v3259_v59 = vcombine.high %v15651_v7, %v15650_v27  ;;  %v3258_v48 = vcombine.low %v15651_v7, %v15650_v27  ;;  %v15671_v7 = vld [vmem:[#allocation108_spill] sm:$0xff] }
 0x303   : > { %6668 = vmatmul.mubr.bf16.gmra.mrb[44].mxu1 %v3250_v25  ;;  %v15653_v25 = vld [vmem:[#allocation125_spill] sm:$0xff] }
 0x304   : > { %6677 = vmatprep.mubr.bf16.mxu1 %v3253_v16  ;;  %v3261_v52 = vcombine.high %v15654_v4, %v15653_v25  ;;  %v3260_v62 = vcombine.low %v15654_v4, %v15653_v25  ;;  %v15657_v16 = vld [vmem:[#allocation130_spill] sm:$0xff] }
 0x305   : > { %v3263_v17 = vcombine.high %v15658_v34, %v15657_v16  ;;  %v15674_v25 = vld [vmem:[#allocation134_spill] sm:$0xff] }
 0x309   : > { %7902 = vmatmul.mubr.bf16.gmra.mrb[88].mxu0 %v3822_v49  ;;  %v3262_v49 = vcombine.low %v15658_v34, %v15657_v16  ;;  %v15678_v34 = vld [vmem:[#allocation91_spill] sm:$0xff] }
 0x30a   : > { %7911 = vmatprep.mubr.bf16.mxu0 %v3841_v63  ;;  %v15661_v63 = vld [vmem:[#allocation132_spill] sm:$0xff] }
 0x30b   : > { %6678 = vmatmul.mubr.bf16.gmra.mrb[48].mxu1 %v3252_v41  ;;  %v3265_v41 = vcombine.high %v15662_v24, %v15661_v63 }
 0x30c   : > { %6687 = vmatprep.mubr.bf16.mxu1 %v3255_v10  ;;  %v3264_v10 = vcombine.low %v15662_v24, %v15661_v63  ;;  %v15683_v63 = vld [vmem:[#allocation79_spill] sm:$0xff]  ;;  %v15684_v24 = vld [vmem:[#allocation82_spill] sm:$0xff] }
 0x311   : > { %7912 = vmatmul.mubr.bf16.gmra.mrb[92].mxu0 %v3840_v31  ;;  %v15666_v31 = vld [vmem:[#allocation133_spill] sm:$0xff] }
 0x312   : > { %7921 = vmatprep.mubr.bf16.mxu0 %v3850_v30 }
 0x313   : > { %6688 = vmatmul.mubr.bf16.gmra.mrb[52].mxu1 %v3254_v44  ;;  %v15667_v44 = vld [vmem:[#allocation9_spill] sm:$0xff] }
 0x314   : > { %6697 = vmatprep.mubr.bf16.mxu1 %v3257_v45  ;;  %v15669_v45 = vld [vmem:[#allocation144_spill] sm:$0xff] }
 0x319   : > { %7922 = vmatmul.mubr.bf16.gmra.mrb[96].mxu0 %v3849_v53  ;;  %v15665_v53 = vld [vmem:[#allocation139_spill] sm:$0xff] }
 0x31a   : > { %7962 = vmatprep.mubr.bf16.mxu0 %v15652_v43  ;;  %v3267_v30 = vcombine.high %v15666_v31, %v15665_v53  ;;  %v3266_v57 = vcombine.low %v15666_v31, %v15665_v53  ;;  %v15687_v53 = vld [vmem:[#allocation38_spill] sm:$0xff]  ;;  %v15688_v31 = vld [vmem:[#allocation97_spill] sm:$0xff] }
 0x31b   : > { %6698 = vmatmul.mubr.bf16.gmra.mrb[56].mxu1 %v3256_v3  ;;  %v15670_v3 = vld [vmem:[#allocation140_spill] sm:$0xff] }
 0x31c   : > { %6707 = vmatprep.mubr.bf16.mxu1 %v3259_v59  ;;  %v3269_v27 = vcombine.high %v15670_v3, %v15669_v45  ;;  %v15672_v59 = vld [vmem:[#allocation15_spill] sm:$0xff]  ;;  %v3268_v43 = vcombine.low %v15670_v3, %v15669_v45 }
 0x31d   : > { %v15692_v45 = vld [vmem:[#allocation87_spill] sm:$0xff] }
 0x321   : > { %7963 = vmatmul.mubr.bf16.vlgmr.msra.gmra.mrb[0].mxu0 %v15655_v15  ;;  %v15675_v15 = vld [vmem:[#allocation88_spill] sm:$0xff] }
 0x322   : > { %7972 = vmatprep.mubr.bf16.mxu0 %v15656_v8  ;;  %v15676_v8 = vld [vmem:[#allocation76_spill] sm:$0xff] }
 0x323   : > { %6708 = vmatmul.mubr.bf16.gmra.mrb[60].mxu1 %v3258_v48  ;;  %v15673_v48 = vld [vmem:[#allocation74_spill] sm:$0xff]  ;;  %v3304_v16 = vcombine.low %v15676_v8, %v15675_v15 }
 0x324   : > { %6717 = vmatprep.mubr.bf16.mxu1 %v3261_v52  ;;  %v3287_v4 = vcombine.high %v15674_v25, %v15673_v48  ;;  %v3286_v52 = vcombine.low %v15674_v25, %v15673_v48  ;;  %v15694_v25 = vld [vmem:[#allocation113_spill] sm:$0xff] }
 0x329   : > { %7973 = vmatmul.mubr.bf16.gmra.mrb[4].mxu0 %v15659_v61  ;;  %v15680_v61 = vld [vmem:[#allocation18_spill] sm:$0xff] }
 0x32a   : > { %7982 = vmatprep.mubr.bf16.mxu0 %v15660_v12 }
 0x32b   : > { %6718 = vmatmul.mubr.bf16.gmra.mrb[64].mxu1 %v3260_v62  ;;  %v3305_v62 = vcombine.high %v15676_v8, %v15675_v15  ;;  %v15696_v15 = vld [vmem:[#allocation122_spill] sm:$0xff] }
 0x32c   : > { %6727 = vmatprep.mubr.bf16.mxu1 %v3263_v17  ;;  %v15679_v17 = vld [vmem:[#allocation13_spill] sm:$0xff] }
 0x331   : > { %7983 = vmatmul.mubr.bf16.gmra.mrb[8].mxu0 %v15663_v20  ;;  %v15685_v20 = vld [vmem:[#allocation114_spill] sm:$0xff] }
 0x332   : > { %7992 = vmatprep.mubr.bf16.mxu0 %v15664_v5  ;;  %v15686_v5 = vld [vmem:[#allocation115_spill] sm:$0xff] }
 0x333   : > { %6728 = vmatmul.mubr.bf16.gmra.mrb[68].mxu1 %v3262_v49  ;;  %v15682_v49 = vld [vmem:[#allocation16_spill] sm:$0xff] }
 0x334   : > { %6737 = vmatprep.mubr.bf16.mxu1 %v3265_v41  ;;  %v3410_v41 = vcombine.high %v15684_v24, %v15683_v63 }
 0x339   : > { %7993 = vmatmul.mubr.bf16.gmra.mrb[12].mxu0 %v15667_v44  ;;  %v15689_v44 = vld [vmem:[#allocation147_spill] sm:$0xff] }
 0x33a   : > { %8002 = vmatprep.mubr.bf16.mxu0 %v15668_v0  ;;  %v3411_v0 = vcombine.low %v15688_v31, %v15687_v53 }
 0x33b   : > { %6738 = vmatmul.mubr.bf16.gmra.mrb[72].mxu1 %v3264_v10  ;;  %v3409_v10 = vcombine.low %v15684_v24, %v15683_v63 }
 0x33c   : > { %6747 = vmatprep.mubr.bf16.mxu1 %v3267_v30  ;;  %v3412_v30 = vcombine.high %v15688_v31, %v15687_v53  ;;  %v15704_v31 = vld [vmem:[#allocation93_spill] sm:$0xff] }
 0x341   : > { %8003 = vmatmul.mubr.bf16.gmra.mrb[16].mxu0 %v15671_v7 }
 0x342   : > { %8012 = vmatprep.mubr.bf16.mxu0 %v15672_v59 }
 0x343   : > { %6748 = vmatmul.mubr.bf16.gmra.mrb[76].mxu1 %v3266_v57  ;;  %v15691_v57 = vld [vmem:[#allocation39_spill] sm:$0xff] }
 0x344   : > { %6757 = vmatprep.mubr.bf16.mxu1 %v3269_v27  ;;  %v3414_v3 = vcombine.high %v15692_v45, %v15691_v57  ;;  %v15693_v27 = vld [vmem:[#allocation120_spill] sm:$0xff] }
 0x349   : > { %8013 = vmatmul.mubr.bf16.gmra.mrb[20].mxu0 %v13684_v47  ;;  %v15677_v47 = vld [vmem:[#allocation6_spill] sm:$0xff] }
 0x34a   : > { %8022 = vmatprep.mubr.bf16.mxu0 %v13688_v28  ;;  %v3323_v28 = vcombine.high %v15678_v34, %v15677_v47  ;;  %v3322_v12 = vcombine.low %v15678_v34, %v15677_v47 }
 0x34b   : > { %6758 = vmatmul.mubr.bf16.gmra.mrb[80].mxu1 %v3268_v43  ;;  %v3413_v43 = vcombine.low %v15692_v45, %v15691_v57  ;;  %v15705_v57 = vld [vmem:[#allocation62_spill] sm:$0xff]  ;;  %v15706_v45 = vld [vmem:[#allocation121_spill] sm:$0xff] }
 0x34c   : > { %6767 = vmatprep.mubr.bf16.mxu1 %v3287_v4  ;;  %v15695_v4 = vld [vmem:[#allocation48_spill] sm:$0xff] }
 0x34d   : > { %v3415_v47 = vcombine.low %v15695_v4, %v15694_v25 }
 0x351   : > { %8023 = vmatmul.mubr.bf16.gmra.mrb[24].mxu0 %v13695_v26  ;;  %v15681_v26 = vld [vmem:[#allocation5_spill] sm:$0xff] }
 0x352   : > { %8032 = vmatprep.mubr.bf16.mxu0 %v13699_v19  ;;  %v3332_v19 = vcombine.high %v15681_v26, %v15681_v26 }
 0x353   : > { %6768 = vmatmul.mubr.bf16.gmra.mrb[84].mxu1 %v3286_v52  ;;  %v3416_v52 = vcombine.high %v15695_v4, %v15694_v25 }
 0x354   : > { %6777 = vmatprep.mubr.bf16.mxu1 %v3305_v62 }
 0x359   : > { %8033 = vmatmul.mubr.bf16.gmra.mrb[28].mxu0 %v15679_v17  ;;  %v15699_v17 = vld [vmem:[#allocation50_spill] sm:$0xff] }
 0x35a   : > { %8042 = vmatprep.mubr.bf16.mxu0 %v15680_v61 }
 0x35b   : > { %6778 = vmatmul.mubr.bf16.gmra.mrb[88].mxu1 %v3304_v16 }
 0x35c   : > { %6787 = vmatprep.mubr.bf16.mxu1 %v3323_v28  ;;  %v15698_v28 = vld [vmem:[#allocation55_spill] sm:$0xff] }
 0x35d   : > { %v3418_v61 = vcombine.high %v15699_v17, %v15698_v28  ;;  %v3417_v24 = vcombine.low %v15699_v17, %v15698_v28  ;;  %v15709_v28 = vld [vmem:[#allocation52_spill] sm:$0xff]  ;;  %v15710_v17 = vld [vmem:[#allocation46_spill] sm:$0xff] }
 0x361   : > { %8043 = vmatmul.mubr.bf16.gmra.mrb[32].mxu0 %v15682_v49 }
 0x362   : > { %8052 = vmatprep.mubr.bf16.mxu0 %v13726_v37  ;;  %v15690_v37 = vld [vmem:[#allocation19_spill] sm:$0xff] }
 0x363   : > { %6788 = vmatmul.mubr.bf16.gmra.mrb[92].mxu1 %v3322_v12  ;;  %v15700_v12 = vld [vmem:[#allocation37_spill] sm:$0xff] }
 0x364   : > { %6797 = vmatprep.mubr.bf16.mxu1 %v3332_v19  ;;  %v15701_v19 = vld [vmem:[#allocation127_spill] sm:$0xff] }
 0x369   : > { %8053 = vmatmul.mubr.bf16.gmra.mrb[36].mxu0 %v15685_v20  ;;  %v15702_v20 = vld [vmem:[#allocation61_spill] sm:$0xff] }
 0x36a   : > { %8062 = vmatprep.mubr.bf16.mxu0 %v15686_v5  ;;  %v15703_v5 = vld [vmem:[#allocation56_spill] sm:$0xff] }
 0x36b   : > { %6798 = vmatmul.mubr.bf16.gmra.mrb[96].mxu1 %v15681_v26 }
 0x36c   : > { %6968 = vmatprep.mubr.bf16.mxu1 %v3410_v41 }
 0x371   : > { %8063 = vmatmul.mubr.bf16.gmra.mrb[40].mxu0 %v15689_v44 }
 0x372   : > { %8072 = vmatprep.mubr.bf16.mxu0 %v15690_v37  ;;  %v3419_v37 = vcombine.low %v15703_v5, %v15702_v20 }
 0x373   : > { %6969 = vmatmul.mubr.bf16.vlgmr.msra.gmra.mrb[52].mxu1 %v3409_v10  ;;  %v3420_v10 = vcombine.high %v15703_v5, %v15702_v20 }
 0x374   : > { %6978 = vmatprep.mubr.bf16.mxu1 %v3412_v30 }
 0x379   : > { %8073 = vmatmul.mubr.bf16.gmra.mrb[44].mxu0 %v13791_v51  ;;  %v15697_v51 = vld [vmem:[#allocation83_spill] sm:$0xff] }
 0x37a   : > { %8082 = vmatprep.mubr.bf16.mxu0 %v15693_v27  ;;  %v15707_v27 = vld [vmem:[#allocation51_spill] sm:$0xff] }
 0x37b   : > { %6979 = vmatmul.mubr.bf16.gmra.mrb[56].mxu1 %v3411_v0 }
 0x37c   : > { %6988 = vmatprep.mubr.bf16.mxu1 %v3414_v3  ;;  %v3422_v3 = vcombine.high %v15706_v45, %v15705_v57 }
 0x37e   : > { %v14293_v7 = vpop.f32.mrb[0].mxu1 }
 0x37f   : > { %v14295_v59 = vpop.f32.mrb[1].mxu1 }
 0x380   : > { %v14299_v48 = vpop.f32.mrb[2].mxu1 }
 0x381   : > { %8083 = vmatmul.mubr.bf16.gmra.mrb[48].mxu0 %v15696_v15  ;;  %v14304_v8 = vpop.f32.mrb[3].mxu1 }
 0x382   : > { %8092 = vmatprep.mubr.bf16.mxu0 %v15697_v51 }
 0x383   : > { %6989 = vmatmul.mubr.bf16.gmra.mrb[60].mxu1 %v3413_v43  ;;  %v3868_v43 = vcombine.high %v15615_v56, %v15707_v27 }
 0x384   : > { %6998 = vmatprep.mubr.bf16.mxu1 %v3416_v52  ;;  %v3421_v52 = vcombine.low %v15706_v45, %v15705_v57  ;;  %v3441_v45 = vcombine.low %v14029_v55, %v14071_v54 }
 0x386   : > { %v14307_v62 = vpop.f32.mrb[4].mxu1 }
 0x387   : > { %v14309_v16 = vpop.f32.mrb[5].mxu1 }
 0x388   : > { %v14313_v34 = vpop.f32.mrb[6].mxu1 }
 0x389   : > { %8093 = vmatmul.mubr.bf16.gmra.mrb[52].mxu0 %v15700_v12  ;;  %v14318_v26 = vpop.f32.mrb[7].mxu1 }
 0x38a   : > { %8102 = vmatprep.mubr.bf16.mxu0 %v15701_v19 }
 0x38b   : > { %6999 = vmatmul.mubr.bf16.gmra.mrb[64].mxu1 %v3415_v47  ;;  %v3867_v47 = vcombine.low %v15615_v56, %v15707_v27  ;;  %v3869_v56 = vcombine.low %v15710_v17, %v15709_v28  ;;  %v3460_v27 = vcombine.high %v14074_v14, %v14091_v50 }
 0x38c   : > { %7008 = vmatprep.mubr.bf16.mxu1 %v3418_v61  ;;  %v3870_v61 = vcombine.high %v15710_v17, %v15709_v28 }
 0x38e   : > { %v14321_v49 = vpop.f32.mrb[8].mxu1 }
 0x38f   : > { %v14323_v63 = vpop.f32.mrb[9].mxu1 }
 0x390   : > { %v14327_v41 = vpop.f32.mrb[10].mxu1 }
 0x391   : > { %8103 = vmatmul.mubr.bf16.gmra.mrb[56].mxu0 %v13863_v1  ;;  %v14332_v53 = vpop.f32.mrb[11].mxu1 }
 0x392   : > { %8112 = vmatprep.mubr.bf16.mxu0 %v15704_v31  ;;  %v15712_v31 = vld [vmem:[#allocation157_spill] sm:$0xff] }
 0x393   : > { %7009 = vmatmul.mubr.bf16.gmra.mrb[68].mxu1 %v3417_v24 }
 0x394   : > { %7018 = vmatprep.mubr.bf16.mxu1 %v3420_v10  ;;  %v15711_v10 = vld [vmem:[#allocation59_spill] sm:$0xff] }
 0x396   : > { %v14335_v30 = vpop.f32.mrb[12].mxu1 }
 0x397   : > { %v14337_v44 = vpop.f32.mrb[13].mxu1 }
 0x398   : > { %v14341_v0 = vpop.f32.mrb[14].mxu1 }
 0x399   : > { %8113 = vmatmul.mubr.bf16.gmra.mrb[60].mxu0 %v13887_v6  ;;  %v14346_v1 = vpop.f32.mrb[15].mxu1  ;;  %v15708_v6 = vld [vmem:[#allocation68_spill] sm:$0xff] }
 0x39a   : > { %8122 = vmatprep.mubr.bf16.mxu0 %v13891_v46  ;;  %v3424_v51 = vcombine.high %v15708_v6, %v13327_v42  ;;  %v3423_v24 = vcombine.low %v15708_v6, %v13327_v42  ;;  %v15713_v6 = vld [vmem:[#allocation65_spill] sm:$0xff] }
 0x39b   : > { %7019 = vmatmul.mubr.bf16.gmra.mrb[72].mxu1 %v3419_v37  ;;  %v3872_v37 = vcombine.high %v15712_v31, %v15711_v10 }
 0x39c   : > { %7028 = vmatprep.mubr.bf16.mxu1 %v3422_v3 }
 0x39e   : > { %v14351_v25 = vpop.f32.mrb[16].mxu1 }
 0x39f   : > { %v14353_v4 = vpop.f32.mrb[17].mxu1 }
 0x3a0   : > { %v14357_v15 = vpop.f32.mrb[18].mxu1 }
 0x3a1   : > { %8123 = vmatmul.mubr.bf16.gmra.mrb[64].mxu0 %v13905_v23  ;;  %v14362_v46 = vpop.f32.mrb[19].mxu1  ;;  %v3442_v23 = vcombine.high %v14029_v55, %v14071_v54  ;;  %v3875_v55 = vcombine.low %v13557_v13, %v13542_v39  ;;  %v3876_v54 = vcombine.low %v13570_v29, %v13584_v40 }
 0x3a2   : > { %8132 = vmatprep.mubr.bf16.mxu0 %v3868_v43 }
 0x3a3   : > { %7029 = vmatmul.mubr.bf16.gmra.mrb[76].mxu1 %v3421_v52  ;;  %v3871_v52 = vcombine.low %v15712_v31, %v15711_v10  ;;  %v3883_v10 = vrot.slane %v3875_v55, %v10741_v2  ;;  %v3890_v39 = vrot.slane %v3876_v54, %v10741_v2 }
 0x3a4   : > { %7038 = vmatprep.mubr.bf16.mxu1 %v3424_v51  ;;  %v15714_v51 = vld [vmem:[#allocation159_spill] sm:$0xff] }
 0x3a5   : > { %v3873_v29 = vcombine.low %v15714_v51, %v15713_v6  ;;  %v3892_v13 = vcombine.high %v3883_v10, %v3890_v39 }
 0x3a6   : > { %v14368_v12 = vpop.f32.mrb[20].mxu1 }
 0x3a7   : > { %v14370_v19 = vpop.f32.mrb[21].mxu1 }
 0x3a8   : > { %v14374_v20 = vpop.f32.mrb[22].mxu1 }
 0x3a9   : > { %8133 = vmatmul.mubr.bf16.gmra.mrb[68].mxu0 %v3867_v47  ;;  %v14378_v5 = vpop.f32.mrb[23].mxu1  ;;  %v3874_v47 = vcombine.high %v15714_v51, %v15713_v6 }
 0x3aa   : > { %8142 = vmatprep.mubr.bf16.mxu0 %v3870_v61  ;;  %v3459_v61 = vcombine.low %v14074_v14, %v14091_v50  ;;  %v3893_v14 = vcombine.low %v13606_v9, %v13602_v58  ;;  %v8894_v50 = vcombine.high %v13602_v58, %v15639_v60  ;;  %v3891_v58 = vcombine.low %v3883_v10, %v3890_v39 }
 0x3ab   : > { %7039 = vmatmul.mubr.bf16.gmra.mrb[80].mxu1 %v3423_v24 }
 0x3ac   : > { %7048 = vmatprep.mubr.bf16.mxu1 %v3442_v23  ;;  %v3478_v23 = vcombine.high %v14094_v18, %v14135_v32  ;;  %v3901_v6 = vrot.slane %v3893_v14, %v10741_v2  ;;  %v3908_v9 = vrot.slane %v8894_v50, %v10741_v2 }
 0x3ae   : > { %v14384_v57 = vpop.f32.mrb[24].mxu1  ;;  %v3910_v60 = vcombine.high %v3901_v6, %v3908_v9  ;;  %v3909_v10 = vcombine.low %v3901_v6, %v3908_v9 }
 0x3af   : > { %v14386_v42 = vpop.f32.mrb[25].mxu1 }
 0x3b0   : > { %v14390_v3 = vpop.f32.mrb[26].mxu1 }
 0x3b1   : > { %8143 = vmatmul.mubr.bf16.gmra.mrb[72].mxu0 %v3869_v56  ;;  %v14394_v43 = vpop.f32.mrb[27].mxu1 }
 0x3b2   : > { %8152 = vmatprep.mubr.bf16.mxu0 %v3872_v37  ;;  %v3477_v37 = vcombine.low %v14094_v18, %v14135_v32  ;;  %v3911_v18 = vcombine.low %v13621_v35, %v13644_v36  ;;  %v3912_v32 = vcombine.low %v13647_v11, %v13676_v33  ;;  %v3929_v36 = vcombine.low %v13672_v21, %v14194_v22 }
 0x3b3   : > { %7049 = vmatmul.mubr.bf16.gmra.mrb[84].mxu1 %v3441_v45 }
 0x3b4   : > { %7058 = vmatprep.mubr.bf16.mxu1 %v3460_v27  ;;  %v3487_v27 = vcombine.high %v14138_v38, %v14138_v38 }
 0x3b6   : > { %v14400_v28 = vpop.f32.mrb[28].mxu1 }
 0x3b7   : > { %v14406_v17 = vpop.f32.mrb[29].mxu1 }
 0x3b8   : > { %v14410_v24 = vpop.f32.mrb[30].mxu1 }
 0x3b9   : > { %8153 = vmatmul.mubr.bf16.gmra.mrb[76].mxu0 %v3871_v52  ;;  %v14414_v56 = vpop.f32.mrb[31].mxu1 }
 0x3ba   : > { %8162 = vmatprep.mubr.bf16.mxu0 %v3874_v47 }
 0x3bb   : > { %7059 = vmatmul.mubr.bf16.gmra.mrb[88].mxu1 %v3459_v61  ;;  %v3919_v61 = vrot.slane %v3911_v18, %v10741_v2 }
 0x3bc   : > { %7068 = vmatprep.mubr.bf16.mxu1 %v3478_v23  ;;  %v3926_v23 = vrot.slane %v3912_v32, %v10741_v2 }
 0x3be   : > { %v14420_v40 = vpop.f32.mrb[32].mxu1  ;;  %v3928_v39 = vcombine.high %v3919_v61, %v3926_v23  ;;  %v3927_v14 = vcombine.low %v3919_v61, %v3926_v23 }
 0x3bf   : > { %v14426_v31 = vpop.f32.mrb[33].mxu1 }
 0x3c0   : > { %v14430_v45 = vpop.f32.mrb[34].mxu1 }
 0x3c1   : > { %8163 = vmatmul.mubr.bf16.gmra.mrb[80].mxu0 %v3873_v29  ;;  %v14434_v52 = vpop.f32.mrb[35].mxu1 }
 0x3c2   : > { %8172 = vmatprep.mubr.bf16.mxu0 %v3892_v13  ;;  %v3936_v13 = vrot.slane %v3929_v36, %v10741_v2 }
 0x3c3   : > { %7069 = vmatmul.mubr.bf16.gmra.mrb[92].mxu1 %v3477_v37 }
 0x3c4   : > { %7078 = vmatprep.mubr.bf16.mxu1 %v3487_v27 }
 0x3c6   : > { %v14438_v51 = vpop.f32.mrb[36].mxu1 }
 0x3c7   : > { %v14444_v47 = vpop.f32.mrb[37].mxu1 }
 0x3c8   : > { %v14446_v55 = vpop.f32.mrb[38].mxu1 }
 0x3c9   : > { %8173 = vmatmul.mubr.bf16.gmra.mrb[84].mxu0 %v3891_v58  ;;  %v14448_v54 = vpop.f32.mrb[39].mxu1 }
 0x3ca   : > { %8182 = vmatprep.mubr.bf16.mxu0 %v3910_v60 }
 0x3cb   : > { %7079 = vmatmul.mubr.bf16.gmra.mrb[96].mxu1 %v14138_v38  ;;  %v3937_v38 = vcombine.high %v3936_v13, %v3936_v13 }
 0x3ce   : > { %v14453_v35 = vpop.f32.mrb[40].mxu1 }
 0x3cf   : > { %v14457_v11 = vpop.f32.mrb[41].mxu1 }
 0x3d0   : > { %v14459_v33 = vpop.f32.mrb[42].mxu1 }
 0x3d1   : > { %8183 = vmatmul.mubr.bf16.gmra.mrb[88].mxu0 %v3909_v10  ;;  %v14461_v29 = vpop.f32.mrb[43].mxu1 }
 0x3d2   : > { %8192 = vmatprep.mubr.bf16.mxu0 %v3928_v39 }
 0x3d6   : > { %v14464_v50 = vpop.f32.mrb[44].mxu1 }
 0x3d7   : > { %v14466_v37 = vpop.f32.mrb[45].mxu1 }
 0x3d8   : > { %v14468_v27 = vpop.f32.mrb[46].mxu1 }
 0x3d9   : > { %8193 = vmatmul.mubr.bf16.gmra.mrb[92].mxu0 %v3927_v14  ;;  %v14470_v21 = vpop.f32.mrb[47].mxu1 }
 0x3da   : > { %8202 = vmatprep.mubr.bf16.mxu0 %v3937_v38 }
 0x3de   : > { %v14472_v22 = vpop.f32.mrb[48].mxu1 }
 0x3df   : > { %v14474_v6 = vpop.f32.mrb[49].mxu1 }
 0x3e0   : > { %15715 = vst [vmem:[#allocation84_spill] sm:$0xff] %v14474_v6  ;;  %v14476_v9 = vpop.f32.mrb[50].mxu1 }
 0x3e1   : > { %15716 = vst [vmem:[#allocation40_spill] sm:$0xff] %v14476_v9  ;;  %8203 = vmatmul.mubr.bf16.gmra.mrb[96].mxu0 %v3936_v13  ;;  %v14478_v2 = vpop.f32.mrb[51].mxu1 }
 0x3e2   : > { %15717 = vst [vmem:[#allocation42_spill] sm:$0xff] %v14478_v2 }
 0x3f4   : > { %v7964_v58 = vpop.f32.mrb[0].mxu0 }
 0x3f5   : > { %v9221_v60 = vadd.f32 %v7964_v58, %v14293_v7  ;;  %v7966_v18 = vpop.f32.mrb[1].mxu0 }
 0x3f6   : > { %v9222_v32 = vadd.f32 %v7966_v18, %v14295_v59  ;;  %v7968_v61 = vpop.f32.mrb[2].mxu0 }
 0x3f7   : > { %8211 = vst [vmem:[%s14484_s26] sm:$0xff] %v9221_v60  ;;  %v9223_v23 = vadd.f32 %v7968_v61, %v14299_v48  ;;  %v7970_v10 = vpop.f32.mrb[3].mxu0  ;;  %v8417_v36 = vmul.f32 %v9221_v60, %v9221_v60 }
 0x3f8   : > { %8212 = vst [vmem:[%s14484_s26 + $0x8] sm:$0xff] %v9222_v32  ;;  %v9224_v39 = vadd.f32 %v7970_v10, %v14304_v8  ;;  %v8418_v38 = vmul.f32 %v9222_v32, %v9222_v32 }
 0x3f9   : > { %8213 = vst [vmem:[%s14484_s26 + $0x10] sm:$0xff] %v9223_v23  ;;  %v8309_v13 = vadd.f32 %v9223_v23, %v9221_v60  ;;  %v8419_v14 = vmul.f32 %v9223_v23, %v9223_v23 }
 0x3fa   : > { %8214 = vst [vmem:[%s14484_s26 + $0x18] sm:$0xff] %v9224_v39  ;;  %v8363_v7 = vadd.f32 %v9224_v39, %v9222_v32  ;;  %v8420_v58 = vmul.f32 %v9224_v39, %v9224_v39 }
 0x3fb   : > { %v8515_v2 = vadd.f32 %v8419_v14, %v8417_v36 }
 0x3fc   : > { %v8569_v59 = vadd.f32 %v8420_v58, %v8418_v38  ;;  %v7974_v18 = vpop.f32.mrb[4].mxu0 }
 0x3fd   : > { %v9225_v48 = vadd.f32 %v7974_v18, %v14307_v62  ;;  %v7976_v61 = vpop.f32.mrb[5].mxu0 }
 0x3fe   : > { %v9226_v9 = vadd.f32 %v7976_v61, %v14309_v16  ;;  %v7978_v8 = vpop.f32.mrb[6].mxu0 }
 0x3ff   : > { %8215 = vst [vmem:[%s14484_s26 + $0x20] sm:$0xff] %v9225_v48  ;;  %v8310_v10 = vadd.f32 %v9225_v48, %v8309_v13  ;;  %v8421_v60 = vmul.f32 %v9225_v48, %v9225_v48  ;;  %v9227_v23 = vadd.f32 %v7978_v8, %v14313_v34  ;;  %v7980_v6 = vpop.f32.mrb[7].mxu0 }
 0x400   : > { %8216 = vst [vmem:[%s14484_s26 + $0x28] sm:$0xff] %v9226_v9  ;;  %v8364_v32 = vadd.f32 %v9226_v9, %v8363_v7  ;;  %v8422_v39 = vmul.f32 %v9226_v9, %v9226_v9  ;;  %v9228_v36 = vadd.f32 %v7980_v6, %v14318_v26 }
 0x401   : > { %v8516_v14 = vadd.f32 %v8515_v2, %v8421_v60  ;;  %8217 = vst [vmem:[%s14484_s26 + $0x30] sm:$0xff] %v9227_v23  ;;  %v8311_v62 = vadd.f32 %v9227_v23, %v8310_v10  ;;  %v8423_v38 = vmul.f32 %v9227_v23, %v9227_v23 }
 0x402   : > { %v8570_v58 = vadd.f32 %v8569_v59, %v8422_v39  ;;  %8218 = vst [vmem:[%s14484_s26 + $0x38] sm:$0xff] %v9228_v36  ;;  %v8365_v16 = vadd.f32 %v9228_v36, %v8364_v32  ;;  %v8424_v18 = vmul.f32 %v9228_v36, %v9228_v36 }
 0x403   : > { %v8517_v13 = vadd.f32 %v8516_v14, %v8423_v38 }
 0x404   : > { %v8571_v48 = vadd.f32 %v8570_v58, %v8424_v18  ;;  %v7984_v34 = vpop.f32.mrb[8].mxu0 }
 0x405   : > { %v9229_v61 = vadd.f32 %v7984_v34, %v14321_v49  ;;  %v7986_v7 = vpop.f32.mrb[9].mxu0 }
 0x406   : > { %v9230_v9 = vadd.f32 %v7986_v7, %v14323_v63  ;;  %v7988_v26 = vpop.f32.mrb[10].mxu0 }
 0x407   : > { %8219 = vst [vmem:[%s14484_s26 + $0x40] sm:$0xff] %v9229_v61  ;;  %v8312_v6 = vadd.f32 %v9229_v61, %v8311_v62  ;;  %v8425_v2 = vmul.f32 %v9229_v61, %v9229_v61  ;;  %v9231_v59 = vadd.f32 %v7988_v26, %v14327_v41  ;;  %v7990_v8 = vpop.f32.mrb[11].mxu0 }
 0x408   : > { %8220 = vst [vmem:[%s14484_s26 + $0x48] sm:$0xff] %v9230_v9  ;;  %v8366_v10 = vadd.f32 %v9230_v9, %v8365_v16  ;;  %v8426_v60 = vmul.f32 %v9230_v9, %v9230_v9  ;;  %v9232_v23 = vadd.f32 %v7990_v8, %v14332_v53 }
 0x409   : > { %v8518_v32 = vadd.f32 %v8517_v13, %v8425_v2  ;;  %8221 = vst [vmem:[%s14484_s26 + $0x50] sm:$0xff] %v9231_v59  ;;  %v8313_v49 = vadd.f32 %v9231_v59, %v8312_v6  ;;  %v8427_v39 = vmul.f32 %v9231_v59, %v9231_v59 }
 0x40a   : > { %v8572_v36 = vadd.f32 %v8571_v48, %v8426_v60  ;;  %8222 = vst [vmem:[%s14484_s26 + $0x58] sm:$0xff] %v9232_v23  ;;  %v8367_v63 = vadd.f32 %v9232_v23, %v8366_v10  ;;  %v8428_v14 = vmul.f32 %v9232_v23, %v9232_v23 }
 0x40b   : > { %v8519_v62 = vadd.f32 %v8518_v32, %v8427_v39 }
 0x40c   : > { %v8573_v38 = vadd.f32 %v8572_v36, %v8428_v14  ;;  %v7994_v41 = vpop.f32.mrb[12].mxu0 }
 0x40d   : > { %v9233_v58 = vadd.f32 %v7994_v41, %v14335_v30  ;;  %v7996_v16 = vpop.f32.mrb[13].mxu0 }
 0x40e   : > { %v9234_v18 = vadd.f32 %v7996_v16, %v14337_v44  ;;  %v7998_v53 = vpop.f32.mrb[14].mxu0 }
 0x40f   : > { %8223 = vst [vmem:[%s14484_s26 + $0x60] sm:$0xff] %v9233_v58  ;;  %v8314_v13 = vadd.f32 %v9233_v58, %v8313_v49  ;;  %v8429_v34 = vmul.f32 %v9233_v58, %v9233_v58  ;;  %v9235_v48 = vadd.f32 %v7998_v53, %v14341_v0  ;;  %v8000_v61 = vpop.f32.mrb[15].mxu0 }
 0x410   : > { %8224 = vst [vmem:[%s14484_s26 + $0x68] sm:$0xff] %v9234_v18  ;;  %v8368_v7 = vadd.f32 %v9234_v18, %v8367_v63  ;;  %v8430_v9 = vmul.f32 %v9234_v18, %v9234_v18  ;;  %v9236_v26 = vadd.f32 %v8000_v61, %v14346_v1 }
 0x411   : > { %v8520_v6 = vadd.f32 %v8519_v62, %v8429_v34  ;;  %8225 = vst [vmem:[%s14484_s26 + $0x70] sm:$0xff] %v9235_v48  ;;  %v8315_v30 = vadd.f32 %v9235_v48, %v8314_v13  ;;  %v8431_v2 = vmul.f32 %v9235_v48, %v9235_v48 }
 0x412   : > { %v8574_v59 = vadd.f32 %v8573_v38, %v8430_v9  ;;  %8226 = vst [vmem:[%s14484_s26 + $0x78] sm:$0xff] %v9236_v26  ;;  %v8369_v44 = vadd.f32 %v9236_v26, %v8368_v7  ;;  %v8432_v8 = vmul.f32 %v9236_v26, %v9236_v26 }
 0x413   : > { %v8521_v10 = vadd.f32 %v8520_v6, %v8431_v2 }
 0x414   : > { %v8575_v60 = vadd.f32 %v8574_v59, %v8432_v8  ;;  %v8004_v0 = vpop.f32.mrb[16].mxu0 }
 0x415   : > { %v9237_v23 = vadd.f32 %v8004_v0, %v14351_v25  ;;  %v8006_v32 = vpop.f32.mrb[17].mxu0 }
 0x416   : > { %v9238_v49 = vadd.f32 %v8006_v32, %v14353_v4  ;;  %v8008_v1 = vpop.f32.mrb[18].mxu0 }
 0x417   : > { %8227 = vst [vmem:[%s14484_s26 + $0x80] sm:$0xff] %v9237_v23  ;;  %v8316_v39 = vadd.f32 %v9237_v23, %v8315_v30  ;;  %v8433_v36 = vmul.f32 %v9237_v23, %v9237_v23  ;;  %v9239_v63 = vadd.f32 %v8008_v1, %v14357_v15  ;;  %v8010_v14 = vpop.f32.mrb[19].mxu0 }
 0x418   : > { %8228 = vst [vmem:[%s14484_s26 + $0x88] sm:$0xff] %v9238_v49  ;;  %v8370_v62 = vadd.f32 %v9238_v49, %v8369_v44  ;;  %v8434_v38 = vmul.f32 %v9238_v49, %v9238_v49  ;;  %v9240_v41 = vadd.f32 %v8010_v14, %v14362_v46 }
 0x419   : > { %v8522_v58 = vadd.f32 %v8521_v10, %v8433_v36  ;;  %8229 = vst [vmem:[%s14484_s26 + $0x90] sm:$0xff] %v9239_v63  ;;  %v8317_v25 = vadd.f32 %v9239_v63, %v8316_v39  ;;  %v8435_v16 = vmul.f32 %v9239_v63, %v9239_v63 }
 0x41a   : > { %v8576_v18 = vadd.f32 %v8575_v60, %v8434_v38  ;;  %8230 = vst [vmem:[%s14484_s26 + $0x98] sm:$0xff] %v9240_v41  ;;  %v8371_v4 = vadd.f32 %v9240_v41, %v8370_v62  ;;  %v8436_v53 = vmul.f32 %v9240_v41, %v9240_v41 }
 0x41b   : > { %v8523_v13 = vadd.f32 %v8522_v58, %v8435_v16 }
 0x41c   : > { %v8577_v34 = vadd.f32 %v8576_v18, %v8436_v53  ;;  %v8014_v15 = vpop.f32.mrb[20].mxu0 }
 0x41d   : > { %v9241_v48 = vadd.f32 %v8014_v15, %v14368_v12  ;;  %v8016_v61 = vpop.f32.mrb[21].mxu0 }
 0x41e   : > { %v9242_v7 = vadd.f32 %v8016_v61, %v14370_v19  ;;  %v8018_v46 = vpop.f32.mrb[22].mxu0 }
 0x41f   : > { %8231 = vst [vmem:[%s14484_s26 + $0xa0] sm:$0xff] %v9241_v48  ;;  %v8318_v9 = vadd.f32 %v9241_v48, %v8317_v25  ;;  %v8437_v26 = vmul.f32 %v9241_v48, %v9241_v48  ;;  %v9243_v6 = vadd.f32 %v8018_v46, %v14374_v20  ;;  %v8020_v30 = vpop.f32.mrb[23].mxu0 }
 0x420   : > { %8232 = vst [vmem:[%s14484_s26 + $0xa8] sm:$0xff] %v9242_v7  ;;  %v8372_v2 = vadd.f32 %v9242_v7, %v8371_v4  ;;  %v8438_v59 = vmul.f32 %v9242_v7, %v9242_v7  ;;  %v9244_v44 = vadd.f32 %v8020_v30, %v14378_v5 }
 0x421   : > { %v8524_v8 = vadd.f32 %v8523_v13, %v8437_v26  ;;  %8233 = vst [vmem:[%s14484_s26 + $0xb0] sm:$0xff] %v9243_v6  ;;  %v8319_v12 = vadd.f32 %v9243_v6, %v8318_v9  ;;  %v8439_v10 = vmul.f32 %v9243_v6, %v9243_v6 }
 0x422   : > { %v8578_v60 = vadd.f32 %v8577_v34, %v8438_v59  ;;  %8234 = vst [vmem:[%s14484_s26 + $0xb8] sm:$0xff] %v9244_v44  ;;  %v8373_v19 = vadd.f32 %v9244_v44, %v8372_v2  ;;  %v8440_v0 = vmul.f32 %v9244_v44, %v9244_v44 }
 0x423   : > { %v8525_v23 = vadd.f32 %v8524_v8, %v8439_v10 }
 0x424   : > { %v8579_v32 = vadd.f32 %v8578_v60, %v8440_v0  ;;  %v8024_v20 = vpop.f32.mrb[24].mxu0 }
 0x425   : > { %v9245_v49 = vadd.f32 %v8024_v20, %v14384_v57  ;;  %v8026_v1 = vpop.f32.mrb[25].mxu0 }
 0x426   : > { %v9246_v39 = vadd.f32 %v8026_v1, %v14386_v42  ;;  %v8028_v5 = vpop.f32.mrb[26].mxu0 }
 0x427   : > { %8235 = vst [vmem:[%s14484_s26 + $0xc0] sm:$0xff] %v9245_v49  ;;  %v8320_v36 = vadd.f32 %v9245_v49, %v8319_v12  ;;  %v8441_v63 = vmul.f32 %v9245_v49, %v9245_v49  ;;  %v9247_v14 = vadd.f32 %v8028_v5, %v14390_v3  ;;  %v8030_v62 = vpop.f32.mrb[27].mxu0 }
 0x428   : > { %8236 = vst [vmem:[%s14484_s26 + $0xc8] sm:$0xff] %v9246_v39  ;;  %v8374_v38 = vadd.f32 %v9246_v39, %v8373_v19  ;;  %v8442_v41 = vmul.f32 %v9246_v39, %v9246_v39  ;;  %v9248_v58 = vadd.f32 %v8030_v62, %v14394_v43 }
 0x429   : > { %v8526_v25 = vadd.f32 %v8525_v23, %v8441_v63  ;;  %8237 = vst [vmem:[%s14484_s26 + $0xd0] sm:$0xff] %v9247_v14  ;;  %v8321_v57 = vadd.f32 %v9247_v14, %v8320_v36  ;;  %v8443_v16 = vmul.f32 %v9247_v14, %v9247_v14 }
 0x42a   : > { %v8580_v18 = vadd.f32 %v8579_v32, %v8442_v41  ;;  %8238 = vst [vmem:[%s14484_s26 + $0xd8] sm:$0xff] %v9248_v58  ;;  %v8375_v42 = vadd.f32 %v9248_v58, %v8374_v38  ;;  %v8444_v4 = vmul.f32 %v9248_v58, %v9248_v58 }
 0x42b   : > { %v8527_v53 = vadd.f32 %v8526_v25, %v8443_v16 }
 0x42c   : > { %v8581_v13 = vadd.f32 %v8580_v18, %v8444_v4  ;;  %v8034_v3 = vpop.f32.mrb[28].mxu0 }
 0x42d   : > { %v9249_v34 = vadd.f32 %v8034_v3, %v14400_v28  ;;  %v8036_v15 = vpop.f32.mrb[29].mxu0 }
 0x42e   : > { %v9250_v48 = vadd.f32 %v8036_v15, %v14406_v17  ;;  %v8038_v43 = vpop.f32.mrb[30].mxu0 }
 0x42f   : > { %8239 = vst [vmem:[%s14484_s26 + $0xe0] sm:$0xff] %v9249_v34  ;;  %v8322_v61 = vadd.f32 %v9249_v34, %v8321_v57  ;;  %v8445_v7 = vmul.f32 %v9249_v34, %v9249_v34  ;;  %v9251_v46 = vadd.f32 %v8038_v43, %v14410_v24  ;;  %v8040_v9 = vpop.f32.mrb[31].mxu0 }
 0x430   : > { %8240 = vst [vmem:[%s14484_s26 + $0xe8] sm:$0xff] %v9250_v48  ;;  %v8376_v26 = vadd.f32 %v9250_v48, %v8375_v42  ;;  %v8446_v6 = vmul.f32 %v9250_v48, %v9250_v48  ;;  %v9252_v30 = vadd.f32 %v8040_v9, %v14414_v56 }
 0x431   : > { %v8528_v2 = vadd.f32 %v8527_v53, %v8445_v7  ;;  %8241 = vst [vmem:[%s14484_s26 + $0xf0] sm:$0xff] %v9251_v46  ;;  %v8323_v28 = vadd.f32 %v9251_v46, %v8322_v61  ;;  %v8447_v59 = vmul.f32 %v9251_v46, %v9251_v46 }
 0x432   : > { %v8582_v44 = vadd.f32 %v8581_v13, %v8446_v6  ;;  %8242 = vst [vmem:[%s14484_s26 + $0xf8] sm:$0xff] %v9252_v30  ;;  %v8377_v17 = vadd.f32 %v9252_v30, %v8376_v26  ;;  %v8448_v8 = vmul.f32 %v9252_v30, %v9252_v30 }
 0x433   : > { %v8529_v12 = vadd.f32 %v8528_v2, %v8447_v59 }
 0x434   : > { %v8583_v10 = vadd.f32 %v8582_v44, %v8448_v8  ;;  %v8044_v24 = vpop.f32.mrb[32].mxu0 }
 0x435   : > { %v9253_v60 = vadd.f32 %v8044_v24, %v14420_v40  ;;  %v8046_v19 = vpop.f32.mrb[33].mxu0 }
 0x436   : > { %v9254_v0 = vadd.f32 %v8046_v19, %v14426_v31  ;;  %v8048_v56 = vpop.f32.mrb[34].mxu0 }
 0x437   : > { %8243 = vst [vmem:[%s14484_s26 + $0x100] sm:$0xff] %v9253_v60  ;;  %v8324_v23 = vadd.f32 %v9253_v60, %v8323_v28  ;;  %v8449_v32 = vmul.f32 %v9253_v60, %v9253_v60  ;;  %v9255_v20 = vadd.f32 %v8048_v56, %v14430_v45  ;;  %v8050_v49 = vpop.f32.mrb[35].mxu0 }
 0x438   : > { %8244 = vst [vmem:[%s14484_s26 + $0x108] sm:$0xff] %v9254_v0  ;;  %v8378_v1 = vadd.f32 %v9254_v0, %v8377_v17  ;;  %v8450_v39 = vmul.f32 %v9254_v0, %v9254_v0  ;;  %v9256_v5 = vadd.f32 %v8050_v49, %v14434_v52 }
 0x439   : > { %v8530_v36 = vadd.f32 %v8529_v12, %v8449_v32  ;;  %8245 = vst [vmem:[%s14484_s26 + $0x110] sm:$0xff] %v9255_v20  ;;  %v8325_v40 = vadd.f32 %v9255_v20, %v8324_v23  ;;  %v8451_v63 = vmul.f32 %v9255_v20, %v9255_v20 }
 0x43a   : > { %v8584_v14 = vadd.f32 %v8583_v10, %v8450_v39  ;;  %8246 = vst [vmem:[%s14484_s26 + $0x118] sm:$0xff] %v9256_v5  ;;  %v8379_v31 = vadd.f32 %v9256_v5, %v8378_v1  ;;  %v8452_v62 = vmul.f32 %v9256_v5, %v9256_v5 }
 0x43b   : > { %v8531_v38 = vadd.f32 %v8530_v36, %v8451_v63 }
 0x43c   : > { %v8585_v41 = vadd.f32 %v8584_v14, %v8452_v62  ;;  %v8054_v45 = vpop.f32.mrb[36].mxu0 }
 0x43d   : > { %v9257_v58 = vadd.f32 %v8054_v45, %v14438_v51  ;;  %v8056_v25 = vpop.f32.mrb[37].mxu0 }
 0x43e   : > { %v9258_v57 = vadd.f32 %v8056_v25, %v14444_v47  ;;  %v8058_v52 = vpop.f32.mrb[38].mxu0 }
 0x43f   : > { %8247 = vst [vmem:[%s14484_s26 + $0x120] sm:$0xff] %v9257_v58  ;;  %v8326_v16 = vadd.f32 %v9257_v58, %v8325_v40  ;;  %v8453_v18 = vmul.f32 %v9257_v58, %v9257_v58  ;;  %v9259_v42 = vadd.f32 %v8058_v52, %v14446_v55  ;;  %v8060_v4 = vpop.f32.mrb[39].mxu0 }
 0x440   : > { %8248 = vst [vmem:[%s14484_s26 + $0x128] sm:$0xff] %v9258_v57  ;;  %v8380_v53 = vadd.f32 %v9258_v57, %v8379_v31  ;;  %v8454_v13 = vmul.f32 %v9258_v57, %v9258_v57  ;;  %v9260_v3 = vadd.f32 %v8060_v4, %v14448_v54  ;;  %v15718_v4 = vld [vmem:[#allocation84_spill] sm:$0xff] }
 0x441   : > { %v8532_v34 = vadd.f32 %v8531_v38, %v8453_v18  ;;  %8249 = vst [vmem:[%s14484_s26 + $0x130] sm:$0xff] %v9259_v42  ;;  %v8327_v51 = vadd.f32 %v9259_v42, %v8326_v16  ;;  %v8455_v15 = vmul.f32 %v9259_v42, %v9259_v42 }
 0x442   : > { %v8586_v48 = vadd.f32 %v8585_v41, %v8454_v13  ;;  %8250 = vst [vmem:[%s14484_s26 + $0x138] sm:$0xff] %v9260_v3  ;;  %v8381_v47 = vadd.f32 %v9260_v3, %v8380_v53  ;;  %v8456_v43 = vmul.f32 %v9260_v3, %v9260_v3 }
 0x443   : > { %v8533_v61 = vadd.f32 %v8532_v34, %v8455_v15  ;;  %v15719_v15 = vld [vmem:[#allocation40_spill] sm:$0xff] }
 0x444   : > { %v8587_v7 = vadd.f32 %v8586_v48, %v8456_v43  ;;  %v8064_v46 = vpop.f32.mrb[40].mxu0 }
 0x445   : > { %v9261_v55 = vadd.f32 %v8064_v46, %v14453_v35  ;;  %v8066_v9 = vpop.f32.mrb[41].mxu0 }
 0x446   : > { %v9262_v26 = vadd.f32 %v8066_v9, %v14457_v11  ;;  %v8068_v54 = vpop.f32.mrb[42].mxu0  ;;  %v14568_v6 = vpop.f32.mrb[52].mxu1 }
 0x447   : > { %8251 = vst [vmem:[%s14484_s26 + $0x140] sm:$0xff] %v9261_v55  ;;  %v8328_v30 = vadd.f32 %v9261_v55, %v8327_v51  ;;  %v8457_v2 = vmul.f32 %v9261_v55, %v9261_v55  ;;  %v9263_v28 = vadd.f32 %v8068_v54, %v14459_v33  ;;  %v8070_v59 = vpop.f32.mrb[43].mxu0  ;;  %v14572_v44 = vpop.f32.mrb[53].mxu1 }
 0x448   : > { %8252 = vst [vmem:[%s14484_s26 + $0x148] sm:$0xff] %v9262_v26  ;;  %v8382_v17 = vadd.f32 %v9262_v26, %v8381_v47  ;;  %v8458_v8 = vmul.f32 %v9262_v26, %v9262_v26  ;;  %v9264_v35 = vadd.f32 %v8070_v59, %v14461_v29  ;;  %v14576_v12 = vpop.f32.mrb[54].mxu1 }
 0x449   : > { %v8534_v11 = vadd.f32 %v8533_v61, %v8457_v2  ;;  %8253 = vst [vmem:[%s14484_s26 + $0x150] sm:$0xff] %v9263_v28  ;;  %v8329_v10 = vadd.f32 %v9263_v28, %v8328_v30  ;;  %v8459_v24 = vmul.f32 %v9263_v28, %v9263_v28  ;;  %v14579_v60 = vpop.f32.mrb[55].mxu1 }
 0x44a   : > { %v8588_v19 = vadd.f32 %v8587_v7, %v8458_v8  ;;  %8254 = vst [vmem:[%s14484_s26 + $0x158] sm:$0xff] %v9264_v35  ;;  %v8383_v33 = vadd.f32 %v9264_v35, %v8382_v17  ;;  %v8460_v0 = vmul.f32 %v9264_v35, %v9264_v35 }
 0x44b   : > { %v8535_v56 = vadd.f32 %v8534_v11, %v8459_v24 }
 0x44c   : > { %v8589_v23 = vadd.f32 %v8588_v19, %v8460_v0  ;;  %v8074_v32 = vpop.f32.mrb[44].mxu0 }
 0x44d   : > { %v9265_v20 = vadd.f32 %v8074_v32, %v14464_v50  ;;  %v8076_v29 = vpop.f32.mrb[45].mxu0 }
 0x44e   : > { %v9266_v49 = vadd.f32 %v8076_v29, %v14466_v37  ;;  %v8078_v1 = vpop.f32.mrb[46].mxu0  ;;  %v14584_v39 = vpop.f32.mrb[56].mxu1 }
 0x44f   : > { %8255 = vst [vmem:[%s14484_s26 + $0x160] sm:$0xff] %v9265_v20  ;;  %v8330_v5 = vadd.f32 %v9265_v20, %v8329_v10  ;;  %v8461_v36 = vmul.f32 %v9265_v20, %v9265_v20  ;;  %v9267_v40 = vadd.f32 %v8078_v1, %v14468_v27  ;;  %v8080_v63 = vpop.f32.mrb[47].mxu0  ;;  %v14588_v14 = vpop.f32.mrb[57].mxu1 }
 0x450   : > { %8256 = vst [vmem:[%s14484_s26 + $0x168] sm:$0xff] %v9266_v49  ;;  %v8384_v31 = vadd.f32 %v9266_v49, %v8383_v33  ;;  %v8462_v62 = vmul.f32 %v9266_v49, %v9266_v49  ;;  %v9268_v50 = vadd.f32 %v8080_v63, %v14470_v21  ;;  %v14592_v38 = vpop.f32.mrb[58].mxu1 }
 0x451   : > { %v8536_v37 = vadd.f32 %v8535_v56, %v8461_v36  ;;  %8257 = vst [vmem:[%s14484_s26 + $0x170] sm:$0xff] %v9267_v40  ;;  %v8331_v41 = vadd.f32 %v9267_v40, %v8330_v5  ;;  %v8463_v45 = vmul.f32 %v9267_v40, %v9267_v40  ;;  %v14595_v58 = vpop.f32.mrb[59].mxu1 }
 0x452   : > { %v8590_v25 = vadd.f32 %v8589_v23, %v8462_v62  ;;  %8258 = vst [vmem:[%s14484_s26 + $0x178] sm:$0xff] %v9268_v50  ;;  %v8385_v27 = vadd.f32 %v9268_v50, %v8384_v31  ;;  %v8464_v57 = vmul.f32 %v9268_v50, %v9268_v50 }
 0x453   : > { %v8537_v52 = vadd.f32 %v8536_v37, %v8463_v45 }
 0x454   : > { %v8591_v16 = vadd.f32 %v8590_v25, %v8464_v57  ;;  %v8084_v18 = vpop.f32.mrb[48].mxu0 }
 0x455   : > { %v9269_v42 = vadd.f32 %v8084_v18, %v14472_v22  ;;  %v8086_v21 = vpop.f32.mrb[49].mxu0  ;;  %v15720_v22 = vld [vmem:[#allocation42_spill] sm:$0xff] }
 0x456   : > { %v9270_v53 = vadd.f32 %v8086_v21, %v15718_v4  ;;  %v8088_v13 = vpop.f32.mrb[50].mxu0  ;;  %v14600_v3 = vpop.f32.mrb[60].mxu1 }
 0x457   : > { %8259 = vst [vmem:[%s14484_s26 + $0x180] sm:$0xff] %v9269_v42  ;;  %v8332_v34 = vadd.f32 %v9269_v42, %v8331_v41  ;;  %v8465_v51 = vmul.f32 %v9269_v42, %v9269_v42  ;;  %v9271_v48 = vadd.f32 %v8088_v13, %v15719_v15  ;;  %v8090_v47 = vpop.f32.mrb[51].mxu0  ;;  %v14604_v43 = vpop.f32.mrb[61].mxu1 }
 0x458   : > { %8260 = vst [vmem:[%s14484_s26 + $0x188] sm:$0xff] %v9270_v53  ;;  %v8386_v61 = vadd.f32 %v9270_v53, %v8385_v27  ;;  %v8466_v7 = vmul.f32 %v9270_v53, %v9270_v53  ;;  %v9272_v46 = vadd.f32 %v8090_v47, %v15720_v22  ;;  %v14608_v55 = vpop.f32.mrb[62].mxu1 }
 0x459   : > { %v8538_v9 = vadd.f32 %v8537_v52, %v8465_v51  ;;  %8261 = vst [vmem:[%s14484_s26 + $0x190] sm:$0xff] %v9271_v48  ;;  %v8333_v26 = vadd.f32 %v9271_v48, %v8332_v34  ;;  %v8467_v54 = vmul.f32 %v9271_v48, %v9271_v48  ;;  %v14611_v30 = vpop.f32.mrb[63].mxu1 }
 0x45a   : > { %v8592_v2 = vadd.f32 %v8591_v16, %v8466_v7  ;;  %8262 = vst [vmem:[%s14484_s26 + $0x198] sm:$0xff] %v9272_v46  ;;  %v8387_v28 = vadd.f32 %v9272_v46, %v8386_v61  ;;  %v8468_v59 = vmul.f32 %v9272_v46, %v9272_v46 }
 0x45b   : > { %v8539_v17 = vadd.f32 %v8538_v9, %v8467_v54 }
 0x45c   : > { %v8593_v8 = vadd.f32 %v8592_v2, %v8468_v59  ;;  %v8094_v35 = vpop.f32.mrb[52].mxu0 }
 0x45d   : > { %v9273_v11 = vadd.f32 %v8094_v35, %v14568_v6  ;;  %v8096_v10 = vpop.f32.mrb[53].mxu0 }
 0x45e   : > { %v9274_v24 = vadd.f32 %v8096_v10, %v14572_v44  ;;  %v8098_v19 = vpop.f32.mrb[54].mxu0  ;;  %v14616_v33 = vpop.f32.mrb[64].mxu1 }
 0x45f   : > { %8263 = vst [vmem:[%s14484_s26 + $0x1a0] sm:$0xff] %v9273_v11  ;;  %v8334_v0 = vadd.f32 %v9273_v11, %v8333_v26  ;;  %v8469_v56 = vmul.f32 %v9273_v11, %v9273_v11  ;;  %v9275_v23 = vadd.f32 %v8098_v19, %v14576_v12  ;;  %v8100_v32 = vpop.f32.mrb[55].mxu0  ;;  %v14620_v20 = vpop.f32.mrb[65].mxu1 }
 0x460   : > { %8264 = vst [vmem:[%s14484_s26 + $0x1a8] sm:$0xff] %v9274_v24  ;;  %v8388_v29 = vadd.f32 %v9274_v24, %v8387_v28  ;;  %v8470_v49 = vmul.f32 %v9274_v24, %v9274_v24  ;;  %v9276_v6 = vadd.f32 %v8100_v32, %v14579_v60  ;;  %v14624_v1 = vpop.f32.mrb[66].mxu1 }
 0x461   : > { %v8540_v44 = vadd.f32 %v8539_v17, %v8469_v56  ;;  %8265 = vst [vmem:[%s14484_s26 + $0x1b0] sm:$0xff] %v9275_v23  ;;  %v8335_v5 = vadd.f32 %v9275_v23, %v8334_v0  ;;  %v8471_v36 = vmul.f32 %v9275_v23, %v9275_v23  ;;  %v14627_v40 = vpop.f32.mrb[67].mxu1 }
 0x462   : > { %v8594_v63 = vadd.f32 %v8593_v8, %v8470_v49  ;;  %8266 = vst [vmem:[%s14484_s26 + $0x1b8] sm:$0xff] %v9276_v6  ;;  %v8389_v12 = vadd.f32 %v9276_v6, %v8388_v29  ;;  %v8472_v31 = vmul.f32 %v9276_v6, %v9276_v6 }
 0x463   : > { %v8541_v62 = vadd.f32 %v8540_v44, %v8471_v36 }
 0x464   : > { %v8595_v50 = vadd.f32 %v8594_v63, %v8472_v31  ;;  %v8104_v37 = vpop.f32.mrb[56].mxu0 }
 0x465   : > { %v9277_v41 = vadd.f32 %v8104_v37, %v14584_v39  ;;  %v8106_v60 = vpop.f32.mrb[57].mxu0 }
 0x466   : > { %v9278_v45 = vadd.f32 %v8106_v60, %v14588_v14  ;;  %v8108_v25 = vpop.f32.mrb[58].mxu0  ;;  %v14632_v27 = vpop.f32.mrb[68].mxu1 }
 0x467   : > { %8267 = vst [vmem:[%s14484_s26 + $0x1c0] sm:$0xff] %v9277_v41  ;;  %v8336_v57 = vadd.f32 %v9277_v41, %v8335_v5  ;;  %v8473_v52 = vmul.f32 %v9277_v41, %v9277_v41  ;;  %v9279_v16 = vadd.f32 %v8108_v25, %v14592_v38  ;;  %v8110_v18 = vpop.f32.mrb[59].mxu0  ;;  %v14636_v42 = vpop.f32.mrb[69].mxu1 }
 0x468   : > { %8268 = vst [vmem:[%s14484_s26 + $0x1c8] sm:$0xff] %v9278_v45  ;;  %v8390_v21 = vadd.f32 %v9278_v45, %v8389_v12  ;;  %v8474_v4 = vmul.f32 %v9278_v45, %v9278_v45  ;;  %v9280_v39 = vadd.f32 %v8110_v18, %v14595_v58  ;;  %v14640_v53 = vpop.f32.mrb[70].mxu1 }
 0x469   : > { %v8542_v14 = vadd.f32 %v8541_v62, %v8473_v52  ;;  %8269 = vst [vmem:[%s14484_s26 + $0x1d0] sm:$0xff] %v9279_v16  ;;  %v8337_v13 = vadd.f32 %v9279_v16, %v8336_v57  ;;  %v8475_v34 = vmul.f32 %v9279_v16, %v9279_v16  ;;  %v14643_v51 = vpop.f32.mrb[71].mxu1 }
 0x46a   : > { %v8596_v15 = vadd.f32 %v8595_v50, %v8474_v4  ;;  %8270 = vst [vmem:[%s14484_s26 + $0x1d8] sm:$0xff] %v9280_v39  ;;  %v8391_v38 = vadd.f32 %v9280_v39, %v8390_v21  ;;  %v8476_v48 = vmul.f32 %v9280_v39, %v9280_v39 }
 0x46b   : > { %v8543_v47 = vadd.f32 %v8542_v14, %v8475_v34 }
 0x46c   : > { %v8597_v61 = vadd.f32 %v8596_v15, %v8476_v48  ;;  %v8114_v7 = vpop.f32.mrb[60].mxu0 }
 0x46d   : > { %v9281_v22 = vadd.f32 %v8114_v7, %v14600_v3  ;;  %v8116_v58 = vpop.f32.mrb[61].mxu0 }
 0x46e   : > { %v9282_v46 = vadd.f32 %v8116_v58, %v14604_v43  ;;  %v8118_v9 = vpop.f32.mrb[62].mxu0  ;;  %v14648_v26 = vpop.f32.mrb[72].mxu1 }
 0x46f   : > { %8271 = vst [vmem:[%s14484_s26 + $0x1e0] sm:$0xff] %v9281_v22  ;;  %v8338_v54 = vadd.f32 %v9281_v22, %v8337_v13  ;;  %v8477_v2 = vmul.f32 %v9281_v22, %v9281_v22  ;;  %v9283_v28 = vadd.f32 %v8118_v9, %v14608_v55  ;;  %v8120_v59 = vpop.f32.mrb[63].mxu0  ;;  %v14652_v17 = vpop.f32.mrb[73].mxu1 }
 0x470   : > { %8272 = vst [vmem:[%s14484_s26 + $0x1e8] sm:$0xff] %v9282_v46  ;;  %v8392_v8 = vadd.f32 %v9282_v46, %v8391_v38  ;;  %v8478_v35 = vmul.f32 %v9282_v46, %v9282_v46  ;;  %v9284_v3 = vadd.f32 %v8120_v59, %v14611_v30  ;;  %v14656_v11 = vpop.f32.mrb[74].mxu1 }
 0x471   : > { %v8544_v43 = vadd.f32 %v8543_v47, %v8477_v2  ;;  %8273 = vst [vmem:[%s14484_s26 + $0x1f0] sm:$0xff] %v9283_v28  ;;  %v8339_v10 = vadd.f32 %v9283_v28, %v8338_v54  ;;  %v8479_v24 = vmul.f32 %v9283_v28, %v9283_v28  ;;  %v14659_v19 = vpop.f32.mrb[75].mxu1 }
 0x472   : > { %v8598_v0 = vadd.f32 %v8597_v61, %v8478_v35  ;;  %8274 = vst [vmem:[%s14484_s26 + $0x1f8] sm:$0xff] %v9284_v3  ;;  %v8393_v55 = vadd.f32 %v9284_v3, %v8392_v8  ;;  %v8480_v56 = vmul.f32 %v9284_v3, %v9284_v3 }
 0x473   : > { %v8545_v23 = vadd.f32 %v8544_v43, %v8479_v24 }
 0x474   : > { %v8599_v32 = vadd.f32 %v8598_v0, %v8480_v56  ;;  %v8124_v29 = vpop.f32.mrb[64].mxu0 }
 0x475   : > { %v9285_v49 = vadd.f32 %v8124_v29, %v14616_v33  ;;  %v8126_v30 = vpop.f32.mrb[65].mxu0 }
 0x476   : > { %v9286_v6 = vadd.f32 %v8126_v30, %v14620_v20  ;;  %v8128_v44 = vpop.f32.mrb[66].mxu0  ;;  %v14664_v5 = vpop.f32.mrb[76].mxu1 }
 0x477   : > { %8275 = vst [vmem:[%s14484_s26 + $0x200] sm:$0xff] %v9285_v49  ;;  %v8340_v36 = vadd.f32 %v9285_v49, %v8339_v10  ;;  %v8481_v63 = vmul.f32 %v9285_v49, %v9285_v49  ;;  %v9287_v12 = vadd.f32 %v8128_v44, %v14624_v1  ;;  %v8130_v31 = vpop.f32.mrb[67].mxu0  ;;  %v14668_v62 = vpop.f32.mrb[77].mxu1 }
 0x478   : > { %8276 = vst [vmem:[%s14484_s26 + $0x208] sm:$0xff] %v9286_v6  ;;  %v8394_v50 = vadd.f32 %v9286_v6, %v8393_v55  ;;  %v8482_v37 = vmul.f32 %v9286_v6, %v9286_v6  ;;  %v9288_v33 = vadd.f32 %v8130_v31, %v14627_v40  ;;  %v14672_v41 = vpop.f32.mrb[78].mxu1 }
 0x479   : > { %v8546_v20 = vadd.f32 %v8545_v23, %v8481_v63  ;;  %8277 = vst [vmem:[%s14484_s26 + $0x210] sm:$0xff] %v9287_v12  ;;  %v8341_v60 = vadd.f32 %v9287_v12, %v8340_v36  ;;  %v8483_v45 = vmul.f32 %v9287_v12, %v9287_v12  ;;  %v14675_v25 = vpop.f32.mrb[79].mxu1 }
 0x47a   : > { %v8600_v57 = vadd.f32 %v8599_v32, %v8482_v37  ;;  %8278 = vst [vmem:[%s14484_s26 + $0x218] sm:$0xff] %v9288_v33  ;;  %v8395_v1 = vadd.f32 %v9288_v33, %v8394_v50  ;;  %v8484_v52 = vmul.f32 %v9288_v33, %v9288_v33 }
 0x47b   : > { %v8547_v16 = vadd.f32 %v8546_v20, %v8483_v45 }
 0x47c   : > { %v8601_v18 = vadd.f32 %v8600_v57, %v8484_v52  ;;  %v8134_v21 = vpop.f32.mrb[68].mxu0 }
 0x47d   : > { %v9289_v4 = vadd.f32 %v8134_v21, %v14632_v27  ;;  %v8136_v40 = vpop.f32.mrb[69].mxu0 }
 0x47e   : > { %v9290_v39 = vadd.f32 %v8136_v40, %v14636_v42  ;;  %v8138_v14 = vpop.f32.mrb[70].mxu0  ;;  %v14680_v13 = vpop.f32.mrb[80].mxu1 }
 0x47f   : > { %8279 = vst [vmem:[%s14484_s26 + $0x220] sm:$0xff] %v9289_v4  ;;  %v8342_v34 = vadd.f32 %v9289_v4, %v8341_v60  ;;  %v8485_v15 = vmul.f32 %v9289_v4, %v9289_v4  ;;  %v9291_v38 = vadd.f32 %v8138_v14, %v14640_v53  ;;  %v8140_v48 = vpop.f32.mrb[71].mxu0  ;;  %v14684_v47 = vpop.f32.mrb[81].mxu1 }
 0x480   : > { %8280 = vst [vmem:[%s14484_s26 + $0x228] sm:$0xff] %v9290_v39  ;;  %v8396_v61 = vadd.f32 %v9290_v39, %v8395_v1  ;;  %v8486_v7 = vmul.f32 %v9290_v39, %v9290_v39  ;;  %v9292_v27 = vadd.f32 %v8140_v48, %v14643_v51  ;;  %v14688_v22 = vpop.f32.mrb[82].mxu1 }
 0x481   : > { %v8548_v42 = vadd.f32 %v8547_v16, %v8485_v15  ;;  %8281 = vst [vmem:[%s14484_s26 + $0x230] sm:$0xff] %v9291_v38  ;;  %v8343_v58 = vadd.f32 %v9291_v38, %v8342_v34  ;;  %v8487_v46 = vmul.f32 %v9291_v38, %v9291_v38  ;;  %v14691_v9 = vpop.f32.mrb[83].mxu1 }
 0x482   : > { %v8602_v54 = vadd.f32 %v8601_v18, %v8486_v7  ;;  %8282 = vst [vmem:[%s14484_s26 + $0x238] sm:$0xff] %v9292_v27  ;;  %v8397_v53 = vadd.f32 %v9292_v27, %v8396_v61  ;;  %v8488_v2 = vmul.f32 %v9292_v27, %v9292_v27 }
 0x483   : > { %v8549_v28 = vadd.f32 %v8548_v42, %v8487_v46 }
 0x484   : > { %v8603_v59 = vadd.f32 %v8602_v54, %v8488_v2  ;;  %v8144_v8 = vpop.f32.mrb[72].mxu0 }
 0x485   : > { %v9293_v35 = vadd.f32 %v8144_v8, %v14648_v26  ;;  %v8146_v51 = vpop.f32.mrb[73].mxu0 }
 0x486   : > { %v9294_v3 = vadd.f32 %v8146_v51, %v14652_v17  ;;  %v8148_v43 = vpop.f32.mrb[74].mxu0  ;;  %v14696_v10 = vpop.f32.mrb[84].mxu1 }
 0x487   : > { %8283 = vst [vmem:[%s14484_s26 + $0x240] sm:$0xff] %v9293_v35  ;;  %v8344_v24 = vadd.f32 %v9293_v35, %v8343_v58  ;;  %v8489_v0 = vmul.f32 %v9293_v35, %v9293_v35  ;;  %v9295_v55 = vadd.f32 %v8148_v43, %v14656_v11  ;;  %v8150_v56 = vpop.f32.mrb[75].mxu0  ;;  %v14700_v23 = vpop.f32.mrb[85].mxu1 }
 0x488   : > { %8284 = vst [vmem:[%s14484_s26 + $0x248] sm:$0xff] %v9294_v3  ;;  %v8398_v32 = vadd.f32 %v9294_v3, %v8397_v53  ;;  %v8490_v29 = vmul.f32 %v9294_v3, %v9294_v3  ;;  %v9296_v26 = vadd.f32 %v8150_v56, %v14659_v19  ;;  %v14704_v49 = vpop.f32.mrb[86].mxu1 }
 0x489   : > { %v8550_v17 = vadd.f32 %v8549_v28, %v8489_v0  ;;  %8285 = vst [vmem:[%s14484_s26 + $0x250] sm:$0xff] %v9295_v55  ;;  %v8345_v30 = vadd.f32 %v9295_v55, %v8344_v24  ;;  %v8491_v6 = vmul.f32 %v9295_v55, %v9295_v55  ;;  %v14707_v44 = vpop.f32.mrb[87].mxu1 }
 0x48a   : > { %v8604_v36 = vadd.f32 %v8603_v59, %v8490_v29  ;;  %8286 = vst [vmem:[%s14484_s26 + $0x258] sm:$0xff] %v9296_v26  ;;  %v8399_v11 = vadd.f32 %v9296_v26, %v8398_v32  ;;  %v8492_v63 = vmul.f32 %v9296_v26, %v9296_v26 }
 0x48b   : > { %v8551_v12 = vadd.f32 %v8550_v17, %v8491_v6 }
 0x48c   : > { %v8605_v31 = vadd.f32 %v8604_v36, %v8492_v63  ;;  %v8154_v50 = vpop.f32.mrb[76].mxu0 }
 0x48d   : > { %v9297_v37 = vadd.f32 %v8154_v50, %v14664_v5  ;;  %v8156_v19 = vpop.f32.mrb[77].mxu0 }
 0x48e   : > { %v9298_v33 = vadd.f32 %v8156_v19, %v14668_v62  ;;  %v8158_v20 = vpop.f32.mrb[78].mxu0  ;;  %v14712_v60 = vpop.f32.mrb[88].mxu1 }
 0x48f   : > { %8287 = vst [vmem:[%s14484_s26 + $0x260] sm:$0xff] %v9297_v37  ;;  %v8346_v45 = vadd.f32 %v9297_v37, %v8345_v30  ;;  %v8493_v57 = vmul.f32 %v9297_v37, %v9297_v37  ;;  %v9299_v1 = vadd.f32 %v8158_v20, %v14672_v41  ;;  %v8160_v52 = vpop.f32.mrb[79].mxu0  ;;  %v14716_v16 = vpop.f32.mrb[89].mxu1 }
 0x490   : > { %8288 = vst [vmem:[%s14484_s26 + $0x268] sm:$0xff] %v9298_v33  ;;  %v8400_v18 = vadd.f32 %v9298_v33, %v8399_v11  ;;  %v8494_v21 = vmul.f32 %v9298_v33, %v9298_v33  ;;  %v9300_v5 = vadd.f32 %v8160_v52, %v14675_v25  ;;  %v14720_v4 = vpop.f32.mrb[90].mxu1 }
 0x491   : > { %v8552_v62 = vadd.f32 %v8551_v12, %v8493_v57  ;;  %8289 = vst [vmem:[%s14484_s26 + $0x270] sm:$0xff] %v9299_v1  ;;  %v8347_v40 = vadd.f32 %v9299_v1, %v8346_v45  ;;  %v8495_v39 = vmul.f32 %v9299_v1, %v9299_v1  ;;  %v14723_v14 = vpop.f32.mrb[91].mxu1 }
 0x492   : > { %v8606_v34 = vadd.f32 %v8605_v31, %v8494_v21  ;;  %8290 = vst [vmem:[%s14484_s26 + $0x278] sm:$0xff] %v9300_v5  ;;  %v8401_v41 = vadd.f32 %v9300_v5, %v8400_v18  ;;  %v8496_v15 = vmul.f32 %v9300_v5, %v9300_v5 }
 0x493   : > { %v8553_v38 = vadd.f32 %v8552_v62, %v8495_v39 }
 0x494   : > { %v8607_v48 = vadd.f32 %v8606_v34, %v8496_v15  ;;  %v8164_v61 = vpop.f32.mrb[80].mxu0 }
 0x495   : > { %v9301_v7 = vadd.f32 %v8164_v61, %v14680_v13  ;;  %v8166_v25 = vpop.f32.mrb[81].mxu0 }
 0x496   : > { %v9302_v27 = vadd.f32 %v8166_v25, %v14684_v47  ;;  %v8168_v42 = vpop.f32.mrb[82].mxu0  ;;  %v14728_v58 = vpop.f32.mrb[92].mxu1 }
 0x497   : > { %8291 = vst [vmem:[%s14484_s26 + $0x280] sm:$0xff] %v9301_v7  ;;  %v8348_v46 = vadd.f32 %v9301_v7, %v8347_v40  ;;  %v8497_v54 = vmul.f32 %v9301_v7, %v9301_v7  ;;  %v9303_v53 = vadd.f32 %v8168_v42, %v14688_v22  ;;  %v8170_v2 = vpop.f32.mrb[83].mxu0  ;;  %v14732_v28 = vpop.f32.mrb[93].mxu1 }
 0x498   : > { %8292 = vst [vmem:[%s14484_s26 + $0x288] sm:$0xff] %v9302_v27  ;;  %v8402_v59 = vadd.f32 %v9302_v27, %v8401_v41  ;;  %v8498_v8 = vmul.f32 %v9302_v27, %v9302_v27  ;;  %v9304_v13 = vadd.f32 %v8170_v2, %v14691_v9  ;;  %v14736_v35 = vpop.f32.mrb[94].mxu1 }
 0x499   : > { %v8554_v47 = vadd.f32 %v8553_v38, %v8497_v54  ;;  %8293 = vst [vmem:[%s14484_s26 + $0x290] sm:$0xff] %v9303_v53  ;;  %v8349_v51 = vadd.f32 %v9303_v53, %v8348_v46  ;;  %v8499_v3 = vmul.f32 %v9303_v53, %v9303_v53  ;;  %v14739_v43 = vpop.f32.mrb[95].mxu1 }
 0x49a   : > { %v8608_v24 = vadd.f32 %v8607_v48, %v8498_v8  ;;  %8294 = vst [vmem:[%s14484_s26 + $0x298] sm:$0xff] %v9304_v13  ;;  %v8403_v22 = vadd.f32 %v9304_v13, %v8402_v59  ;;  %v8500_v0 = vmul.f32 %v9304_v13, %v9304_v13 }
 0x49b   : > { %v8555_v55 = vadd.f32 %v8554_v47, %v8499_v3 }
 0x49c   : > { %v8609_v56 = vadd.f32 %v8608_v24, %v8500_v0  ;;  %v8174_v32 = vpop.f32.mrb[84].mxu0 }
 0x49d   : > { %v9305_v29 = vadd.f32 %v8174_v32, %v14696_v10  ;;  %v8176_v9 = vpop.f32.mrb[85].mxu0 }
 0x49e   : > { %v9306_v26 = vadd.f32 %v8176_v9, %v14700_v23  ;;  %v8178_v17 = vpop.f32.mrb[86].mxu0  ;;  %v14744_v30 = vpop.f32.mrb[96].mxu1 }
 0x49f   : > { %8295 = vst [vmem:[%s14484_s26 + $0x2a0] sm:$0xff] %v9305_v29  ;;  %v8350_v6 = vadd.f32 %v9305_v29, %v8349_v51  ;;  %v8501_v36 = vmul.f32 %v9305_v29, %v9305_v29  ;;  %v9307_v11 = vadd.f32 %v8178_v17, %v14704_v49  ;;  %v8180_v63 = vpop.f32.mrb[87].mxu0  ;;  %v14748_v12 = vpop.f32.mrb[97].mxu1 }
 0x4a0   : > { %8296 = vst [vmem:[%s14484_s26 + $0x2a8] sm:$0xff] %v9306_v26  ;;  %v8404_v31 = vadd.f32 %v9306_v26, %v8403_v22  ;;  %v8502_v50 = vmul.f32 %v9306_v26, %v9306_v26  ;;  %v9308_v10 = vadd.f32 %v8180_v63, %v14707_v44  ;;  %v7084_v37 = vpop.f32.mrb[98].mxu1 }
 0x4a1   : > { %v8556_v19 = vadd.f32 %v8555_v55, %v8501_v36  ;;  %8297 = vst [vmem:[%s14484_s26 + $0x2b0] sm:$0xff] %v9307_v11  ;;  %v8351_v23 = vadd.f32 %v9307_v11, %v8350_v6  ;;  %v8503_v33 = vmul.f32 %v9307_v11, %v9307_v11  ;;  %v7085_v20 = vpop.f32.mrb[99].mxu1 }
 0x4a2   : > { %v8610_v45 = vadd.f32 %v8609_v56, %v8502_v50  ;;  %8298 = vst [vmem:[%s14484_s26 + $0x2b8] sm:$0xff] %v9308_v10  ;;  %v8405_v57 = vadd.f32 %v9308_v10, %v8404_v31  ;;  %v8504_v49 = vmul.f32 %v9308_v10, %v9308_v10 }
 0x4a3   : > { %v8557_v1 = vadd.f32 %v8556_v19, %v8503_v33 }
 0x4a4   : > { %v8611_v52 = vadd.f32 %v8610_v45, %v8504_v49  ;;  %v8184_v18 = vpop.f32.mrb[88].mxu0 }
 0x4a5   : > { %v9309_v21 = vadd.f32 %v8184_v18, %v14712_v60  ;;  %v8186_v5 = vpop.f32.mrb[89].mxu0 }
 0x4a6   : > { %v9310_v44 = vadd.f32 %v8186_v5, %v14716_v16  ;;  %v8188_v62 = vpop.f32.mrb[90].mxu0 }
 0x4a7   : > { %8299 = vst [vmem:[%s14484_s26 + $0x2c0] sm:$0xff] %v9309_v21  ;;  %v8352_v40 = vadd.f32 %v9309_v21, %v8351_v23  ;;  %v8505_v39 = vmul.f32 %v9309_v21, %v9309_v21  ;;  %v9311_v34 = vadd.f32 %v8188_v62, %v14720_v4  ;;  %v8190_v41 = vpop.f32.mrb[91].mxu0 }
 0x4a8   : > { %8300 = vst [vmem:[%s14484_s26 + $0x2c8] sm:$0xff] %v9310_v44  ;;  %v8406_v15 = vadd.f32 %v9310_v44, %v8405_v57  ;;  %v8506_v38 = vmul.f32 %v9310_v44, %v9310_v44  ;;  %v9312_v48 = vadd.f32 %v8190_v41, %v14723_v14 }
 0x4a9   : > { %v8558_v61 = vadd.f32 %v8557_v1, %v8505_v39  ;;  %8301 = vst [vmem:[%s14484_s26 + $0x2d0] sm:$0xff] %v9311_v34  ;;  %v8353_v60 = vadd.f32 %v9311_v34, %v8352_v40  ;;  %v8507_v7 = vmul.f32 %v9311_v34, %v9311_v34 }
 0x4aa   : > { %v8612_v25 = vadd.f32 %v8611_v52, %v8506_v38  ;;  %8302 = vst [vmem:[%s14484_s26 + $0x2d8] sm:$0xff] %v9312_v48  ;;  %v8407_v16 = vadd.f32 %v9312_v48, %v8406_v15  ;;  %v8508_v27 = vmul.f32 %v9312_v48, %v9312_v48 }
 0x4ab   : > { %v8559_v42 = vadd.f32 %v8558_v61, %v8507_v7 }
 0x4ac   : > { %v8613_v46 = vadd.f32 %v8612_v25, %v8508_v27  ;;  %v8194_v4 = vpop.f32.mrb[92].mxu0 }
 0x4ad   : > { %v9313_v54 = vadd.f32 %v8194_v4, %v14728_v58  ;;  %v8196_v53 = vpop.f32.mrb[93].mxu0 }
 0x4ae   : > { %v9314_v2 = vadd.f32 %v8196_v53, %v14732_v28  ;;  %v8198_v14 = vpop.f32.mrb[94].mxu0 }
 0x4af   : > { %8303 = vst [vmem:[%s14484_s26 + $0x2e0] sm:$0xff] %v9313_v54  ;;  %v8354_v59 = vadd.f32 %v9313_v54, %v8353_v60  ;;  %v8509_v8 = vmul.f32 %v9313_v54, %v9313_v54  ;;  %v9315_v13 = vadd.f32 %v8198_v14, %v14736_v35  ;;  %v8200_v47 = vpop.f32.mrb[95].mxu0 }
 0x4b0   : > { %8304 = vst [vmem:[%s14484_s26 + $0x2e8] sm:$0xff] %v9314_v2  ;;  %v8408_v51 = vadd.f32 %v9314_v2, %v8407_v16  ;;  %v8510_v3 = vmul.f32 %v9314_v2, %v9314_v2  ;;  %v9316_v24 = vadd.f32 %v8200_v47, %v14739_v43 }
 0x4b1   : > { %v8560_v22 = vadd.f32 %v8559_v42, %v8509_v8  ;;  %8305 = vst [vmem:[%s14484_s26 + $0x2f0] sm:$0xff] %v9315_v13  ;;  %v8355_v58 = vadd.f32 %v9315_v13, %v8354_v59  ;;  %v8511_v0 = vmul.f32 %v9315_v13, %v9315_v13 }
 0x4b2   : > { %v8614_v28 = vadd.f32 %v8613_v46, %v8510_v3  ;;  %8306 = vst [vmem:[%s14484_s26 + $0x2f8] sm:$0xff] %v9316_v24  ;;  %v8409_v55 = vadd.f32 %v9316_v24, %v8408_v51  ;;  %v8512_v56 = vmul.f32 %v9316_v24, %v9316_v24 }
 0x4b3   : > { %v8561_v32 = vadd.f32 %v8560_v22, %v8511_v0 }
 0x4b4   : > { %v8615_v29 = vadd.f32 %v8614_v28, %v8512_v56  ;;  %v8204_v35 = vpop.f32.mrb[96].mxu0 }
 0x4b5   : > { %v9317_v9 = vadd.f32 %v8204_v35, %v14744_v30  ;;  %v8206_v26 = vpop.f32.mrb[97].mxu0 }
 0x4b6   : > { %v9318_v43 = vadd.f32 %v8206_v26, %v14748_v12  ;;  %v8208_v17 = vpop.f32.mrb[98].mxu0 }
 0x4b7   : > { %8307 = vst [vmem:[%s14484_s26 + $0x300] sm:$0xff] %v9317_v9  ;;  %v8356_v6 = vadd.f32 %v9317_v9, %v8355_v58  ;;  %v8513_v36 = vmul.f32 %v9317_v9, %v9317_v9  ;;  %v8209_v11 = vpop.f32.mrb[99].mxu0 }
 0x4b8   : > { %8308 = vst [vmem:[%s14484_s26 + $0x308] sm:$0xff] %v9318_v43  ;;  %v8410_v63 = vadd.f32 %v9318_v43, %v8409_v55  ;;  %v8514_v31 = vmul.f32 %v9318_v43, %v9318_v43 }
 0x4b9   : > { %v8357_v50 = vrot.slane %v8356_v6, 4  ;;  %v8562_v10 = vadd.f32 %v8561_v32, %v8513_v36 }
 0x4ba   : > { %v8411_v37 = vrot.slane %v8410_v63, 4  ;;  %v8616_v19 = vadd.f32 %v8615_v29, %v8514_v31 }
 0x4bb   : > { %v8358_v23 = vadd.f32 %v8357_v50, %v8356_v6  ;;  %v8563_v30 = vrot.slane %v8562_v10, 4 }
 0x4bc   : > { %v8412_v33 = vadd.f32 %v8411_v37, %v8410_v63  ;;  %v8617_v20 = vrot.slane %v8616_v19, 4 }
 0x4bd   : > { %v8359_v45 = vrot.slane %v8358_v23, 2  ;;  %v8564_v12 = vadd.f32 %v8563_v30, %v8562_v10 }
 0x4be   : > { %v8413_v57 = vrot.slane %v8412_v33, 2  ;;  %v8618_v49 = vadd.f32 %v8617_v20, %v8616_v19 }
 0x4bf   : > { %v8360_v1 = vadd.f32 %v8359_v45, %v8358_v23  ;;  %v8565_v52 = vrot.slane %v8564_v12, 2 }
 0x4c0   : > { %v8414_v18 = vadd.f32 %v8413_v57, %v8412_v33  ;;  %v8619_v21 = vrot.slane %v8618_v49, 2 }
 0x4c1   : > { %v8361_v5 = vrot.slane %v8360_v1, 1  ;;  %v8566_v44 = vadd.f32 %v8565_v52, %v8564_v12 }
 0x4c2   : > { %v8415_v62 = vrot.slane %v8414_v18, 1  ;;  %v8620_v40 = vadd.f32 %v8619_v21, %v8618_v49 }
 0x4c3   : > { %v8362_v39 = vadd.f32 %v8361_v5, %v8360_v1  ;;  %v8567_v34 = vrot.slane %v8566_v44, 1 }
 0x4c4   : > { %v8416_v41 = vadd.f32 %v8415_v62, %v8414_v18  ;;  %v8621_v15 = vrot.slane %v8620_v40, 1 }
 0x4c5   : > { %v8568_v38 = vadd.f32 %v8567_v34, %v8566_v44  ;;  %8623 = vst [vmem:[%s256_s30] sm:$0xff] %v8362_v39 }
 0x4c6   : > { %v8622_v48 = vadd.f32 %v8621_v15, %v8620_v40  ;;  %8624 = vst [vmem:[%s256_s30 + $0x8] sm:$0xff] %v8416_v41 }
 0x4c7   : > { %8625 = vst [vmem:[%s265_s7] sm:$0xff] %v8568_v38 }
 0x4c8   : > { %8626 = vst [vmem:[%s265_s7 + $0x8] sm:$0xff] %v8622_v48 }
 0x4c9 PF: > { %s15_s17 = sadd.s32 1, %s10530_s17   ;;  %s15721_s15 = smov %s10526_s16 }
 0x4ca   : > { %p12_p6 = scmp.ge.s32.totalorder %s15_s17, 4   ;;  %s15722_s16 = smov %s15724_s18 }
 0x4cc   :  { %14 = sbr.rel (!%p12_p6) target bundleno = 2 (0x2), region = 83 }

</bundles_post_ra>
